<compile_context>
chip_gen: v6e
topology: v6e:2x2x1
jax: 0.10.0
libtpu: 0.0.40
codegen_flags: <defaults>
</compile_context>

<pallas_src>
import functools

import jax
import jax.numpy as jnp
from jax.experimental import pallas as pl
from jax.experimental.pallas import tpu as pltpu


# ----------------------------------------------------------------------------
# Pallas kernels
# ----------------------------------------------------------------------------
def _conv_act_kernel(wt_ref, pt_ref, o_ref, *, slope):
    """One M-tile of the transposed conv GEMM with fused LeakyReLU.

    wt_ref: (Cout, K) bf16, pt_ref: (K, tm) bf16, o_ref: (Cout, tm) bf16.
    """
    y = jnp.dot(wt_ref[...], pt_ref[...], preferred_element_type=jnp.float32)
    y = jnp.maximum(y, slope * y)
    o_ref[...] = y.astype(o_ref.dtype)


def _conv_bn_act_kernel(wt_ref, pt_ref, g_ref, b_ref, o_ref, *, eps, slope):
    """Whole-layer fused Conv3d + BatchNorm3d(batch stats) + LeakyReLU.

    wt_ref: (Cout, K) bf16, pt_ref: (K, M) bf16, g/b: (Cout, 1) f32,
    o_ref: (Cout, M) bf16.  Stats are exact (no padded columns present).
    """
    y = jnp.dot(wt_ref[...], pt_ref[...], preferred_element_type=jnp.float32)
    mean = jnp.mean(y, axis=1, keepdims=True)                       # (Cout, 1)
    var = jnp.mean(jnp.square(y - mean), axis=1, keepdims=True)     # biased var
    # Fold BN affine into one scale/shift so the epilogue is a single FMA.
    scale = g_ref[...] * jax.lax.rsqrt(var + eps)                   # (Cout, 1)
    shift = b_ref[...] - mean * scale                               # (Cout, 1)
    y = y * scale + shift
    y = jnp.maximum(y, slope * y)
    o_ref[...] = y.astype(o_ref.dtype)


# ----------------------------------------------------------------------------
# pallas_call wrappers
# ----------------------------------------------------------------------------
def conv_act_pallas(pt, wt, *, slope=0.2, tm=2048):
    """pt: (K, M) bf16 patches, wt: (Cout, K) bf16 -> (Cout, M) bf16."""
    K, M = pt.shape
    Cout, Kw = wt.shape
    assert K == Kw
    tm = min(tm, M)
    m_pad = pl.cdiv(M, tm) * tm
    if m_pad != M:
        pt = jnp.pad(pt, ((0, 0), (0, m_pad - M)))
    out = pl.pallas_call(
        functools.partial(_conv_act_kernel, slope=slope),
        out_shape=jax.ShapeDtypeStruct((Cout, m_pad), jnp.bfloat16),
        grid_spec=pltpu.PrefetchScalarGridSpec(
            num_scalar_prefetch=0,
            grid=(m_pad // tm,),
            in_specs=[
                pl.BlockSpec((Cout, K), lambda i: (0, 0)),   # weights resident
                pl.BlockSpec((K, tm), lambda i: (0, i)),     # stream M tiles
            ],
            out_specs=pl.BlockSpec((Cout, tm), lambda i: (0, i)),
        ),
        compiler_params=pltpu.CompilerParams(
            dimension_semantics=("parallel",)),
    )(wt, pt)
    return out[:, :M]


def conv_bn_act_pallas(pt, wt, gamma, beta, *, eps=1e-5, slope=0.2):
    """Single-block fused conv + BN + LeakyReLU.  pt: (K, M), wt: (Cout, K)."""
    K, M = pt.shape
    Cout, Kw = wt.shape
    assert K == Kw
    g = gamma.reshape(Cout, 1).astype(jnp.float32)
    b = beta.reshape(Cout, 1).astype(jnp.float32)
    return pl.pallas_call(
        functools.partial(_conv_bn_act_kernel, eps=eps, slope=slope),
        out_shape=jax.ShapeDtypeStruct((Cout, M), jnp.bfloat16),
        grid_spec=pltpu.PrefetchScalarGridSpec(
            num_scalar_prefetch=0,
            grid=(1,),
            in_specs=[
                pl.BlockSpec((Cout, K), lambda i: (0, 0)),
                pl.BlockSpec((K, M), lambda i: (0, 0)),
                pl.BlockSpec((Cout, 1), lambda i: (0, 0)),
                pl.BlockSpec((Cout, 1), lambda i: (0, 0)),
            ],
            out_specs=pl.BlockSpec((Cout, M), lambda i: (0, 0)),
        ),
        compiler_params=pltpu.CompilerParams(
            dimension_semantics=("arbitrary",)),
    )(wt, pt, g, b)


# ----------------------------------------------------------------------------
# Layout plumbing (pure data movement, done once per layer in the wrapper)
# ----------------------------------------------------------------------------
def im2col_cf(x_cf, ksize, stride, padding):
    """Channel-first im2col.

    x_cf: (C, N, D, H, W) bf16 -> patches (K, M) bf16 with
    K ordered as (Cin, kd, kh, kw) and M = N*Do*Ho*Wo (n, do, ho, wo).
    """
    kd, kh, kw = ksize
    sd, sh, sw = stride
    pd, ph, pw = padding
    x_cf = jnp.pad(x_cf, ((0, 0), (0, 0), (pd, pd), (ph, ph), (pw, pw)))
    C, N, D, H, W = x_cf.shape
    Do = (D - kd) // sd + 1
    Ho = (H - kh) // sh + 1
    Wo = (W - kw) // sw + 1
    taps = []
    for i in range(kd):
        for j in range(kh):
            for k in range(kw):
                taps.append(
                    x_cf[:, :, i:i + Do * sd:sd, j:j + Ho * sh:sh, k:k + Wo * sw:sw])
    pt = jnp.stack(taps, axis=1)                       # (C, kd*kh*kw, N, Do, Ho, Wo)
    pt = pt.reshape(C * kd * kh * kw, N * Do * Ho * Wo)
    return pt, (N, Do, Ho, Wo)


def _w_mat(w):
    """PyTorch (Cout, Cin, kd, kh, kw) -> (Cout, Cin*kd*kh*kw) bf16."""
    return w.reshape(w.shape[0], -1).astype(jnp.bfloat16)


# ----------------------------------------------------------------------------
# VideoDiscriminator forward
# ----------------------------------------------------------------------------
def init_params(key, n_channels=3, ndf=8, n_output_neurons=1):
    ks = jax.random.split(key, 11)

    def conv_w(k, cout, cin, kd, kh, kw):
        return 0.05 * jax.random.normal(k, (cout, cin, kd, kh, kw), jnp.float32)

    return dict(
        w1=conv_w(ks[0], ndf, n_channels, 3, 4, 4),
        w2=conv_w(ks[1], ndf * 2, ndf, 3, 4, 4),
        g2=1.0 + 0.1 * jax.random.normal(ks[2], (ndf * 2,), jnp.float32),
        b2=0.1 * jax.random.normal(ks[3], (ndf * 2,), jnp.float32),
        w3=conv_w(ks[4], ndf * 4, ndf * 2, 3, 4, 4),
        g3=1.0 + 0.1 * jax.random.normal(ks[5], (ndf * 4,), jnp.float32),
        b3=0.1 * jax.random.normal(ks[6], (ndf * 4,), jnp.float32),
        w4=conv_w(ks[7], ndf * 8, ndf * 4, 3, 4, 4),
        g4=1.0 + 0.1 * jax.random.normal(ks[8], (ndf * 8,), jnp.float32),
        b4=0.1 * jax.random.normal(ks[9], (ndf * 8,), jnp.float32),
        w5=conv_w(ks[10], n_output_neurons, ndf * 8, 2, 4, 4),
    )


def video_discriminator_forward(x_ncdhw, params, *, negative_slope=0.2):
    # NCDHW -> CNDHW (channel-first keeps every GEMM output lane-dense and
    # avoids per-layer transposes); stream activations in bf16.
    x = jnp.transpose(x_ncdhw, (1, 0, 2, 3, 4)).astype(jnp.bfloat16)

    # --- Layer 1: Conv3d + LeakyReLU (fused, M-tiled) ---
    pt, (N, Do, Ho, Wo) = im2col_cf(x, (3, 4, 4), (1, 2, 2), (0, 1, 1))
    y = conv_act_pallas(pt, _w_mat(params['w1']), slope=negative_slope)
    x = y.reshape(y.shape[0], N, Do, Ho, Wo)

    # --- Layers 2-4: Conv3d + BatchNorm3d (batch statistics) + LeakyReLU,
    #     fused into one single-block pallas_call each ---
    for wk, gk, bk in (('w2', 'g2', 'b2'), ('w3', 'g3', 'b3'), ('w4', 'g4', 'b4')):
        pt, (N, Do, Ho, Wo) = im2col_cf(x, (3, 4, 4), (1, 2, 2), (0, 1, 1))
        y = conv_bn_act_pallas(pt, _w_mat(params[wk]), params[gk], params[bk],
                               slope=negative_slope)
        x = y.reshape(y.shape[0], N, Do, Ho, Wo)

    # --- Layer 5: Conv3d(ndf*8 -> n_out, (2,4,4), stride 1, no pad) ---
    # x is (ndf*8, N, 2, 4, 4); the kernel covers the full remaining volume, so
    # this is a tiny (N, 2048) x (2048, n_out) contraction -- far too small for
    # a pallas_call (launch + padding cost >> useful work), so compute it here.
    h = jnp.einsum('cndhw,ocdhw->no',
                   x.astype(jnp.float32), params['w5'].astype(jnp.float32))
    h = jnp.squeeze(h)                       # matches torch .squeeze()
    return h, None


if __name__ == "__main__":
    key = jax.random.PRNGKey(0)
    k_param, k_x = jax.random.split(key)

    n_channels, ndf = 3, 8
    # (N, C, T, H, W): T=10, H=W=64 -> after 4 strided convs depth=2, spatial=4,
    # final (2,4,4) conv -> (N, 1, 1, 1, 1) -> squeeze -> (N,)
    x = jax.random.normal(k_x, (2, n_channels, 10, 64, 64), jnp.float32)

    params = init_params(k_param, n_channels=n_channels, ndf=ndf,
                         n_output_neurons=1)

    fwd = jax.jit(video_discriminator_forward)
    h, aux = fwd(x, params)
    h = jax.block_until_ready(h)
    assert aux is None
    assert h.shape == (2,), h.shape
    assert jnp.all(jnp.isfinite(h))
    print("KERNEL_OK")
</pallas_src>

<mosaic_0001>
module attributes {stable_mosaic.version = 11 : i64} {
  func.func @_conv_act_kernel(%arg0: i32, %arg1: memref<8x144xbf16, #tpu.memory_space<vmem>>, %arg2: memref<144x2048xbf16, #tpu.memory_space<vmem>>, %arg3: memref<8x2048xbf16, #tpu.memory_space<vmem>>) attributes {dimension_semantics = [#tpu.dimension_semantics<parallel>], iteration_bounds = array<i64: 8>, scalar_prefetch = 0 : i64, scratch_operands = 0 : i64, tpu.core_type = #tpu.core_type<tc>, window_params = [{pipeline_mode = #tpu.pipeline_mode<synchronous>, transform_indices = @transform_0, window_bounds = array<i64: 8, 144>}, {transform_indices = @transform_1, window_bounds = array<i64: 144, 2048>}, {transform_indices = @transform_2, window_bounds = array<i64: 8, 2048>}]} {
    %c0 = arith.constant 0 : index
    %c0_0 = arith.constant 0 : index
    %0 = vector.load %arg1[%c0, %c0_0] : memref<8x144xbf16, #tpu.memory_space<vmem>>, vector<8x144xbf16>
    %c0_1 = arith.constant 0 : index
    %c0_2 = arith.constant 0 : index
    %1 = vector.load %arg2[%c0_1, %c0_2] : memref<144x2048xbf16, #tpu.memory_space<vmem>>, vector<144x2048xbf16>
    %cst = arith.constant dense<0.000000e+00> : vector<8x2048xf32>
    %2 = tpu.matmul %0, %1, %cst {dimension_numbers = #tpu.dot_dimension_numbers<[1], [0], [0], [1], [0, 0, 1, 1], [], []>} : vector<8x144xbf16>, vector<144x2048xbf16>, vector<8x2048xf32> -> vector<8x2048xf32>
    %cst_3 = arith.constant 2.000000e-01 : f32
    %3 = vector.broadcast %cst_3 : f32 to vector<8x2048xf32>
    %4 = arith.mulf %3, %2 : vector<8x2048xf32>
    %5 = arith.maximumf %2, %4 : vector<8x2048xf32>
    %6 = arith.truncf %5 : vector<8x2048xf32> to vector<8x2048xbf16>
    %c0_4 = arith.constant 0 : index
    %c0_5 = arith.constant 0 : index
    %7 = vector.load %arg3[%c0_4, %c0_5] : memref<8x2048xbf16, #tpu.memory_space<vmem>>, vector<8x2048xbf16>
    tpu.vector_store %arg3[%c0_4, %c0_5], %6 {strides = array<i32>} : memref<8x2048xbf16, #tpu.memory_space<vmem>>, vector<8x2048xbf16>,
    return
  }
  func.func @transform_0(%arg0: i32) -> (i32, i32) {
    %c0_i32 = arith.constant 0 : i32
    %c0_i32_0 = arith.constant 0 : i32
    %c0_i32_1 = arith.constant 0 : i32
    return %c0_i32, %c0_i32_0 : i32, i32
  }
  func.func @transform_1(%arg0: i32) -> (i32, i32) {
    %c0_i32 = arith.constant 0 : i32
    %c0_i32_0 = arith.constant 0 : i32
    return %c0_i32, %arg0 : i32, i32
  }
  func.func @transform_2(%arg0: i32) -> (i32, i32) {
    %c0_i32 = arith.constant 0 : i32
    %c0_i32_0 = arith.constant 0 : i32
    return %c0_i32, %arg0 : i32, i32
  }
}

module attributes {stable_mosaic.version = 11 : i64} {
  func.func @_conv_bn_act_kernel(%arg0: i32, %arg1: memref<16x384xbf16, #tpu.memory_space<vmem>>, %arg2: memref<384x3072xbf16, #tpu.memory_space<vmem>>, %arg3: memref<16x1xf32, #tpu.memory_space<vmem>>, %arg4: memref<16x1xf32, #tpu.memory_space<vmem>>, %arg5: memref<16x3072xbf16, #tpu.memory_space<vmem>>) attributes {dimension_semantics = [#tpu.dimension_semantics<arbitrary>], iteration_bounds = array<i64: 1>, scalar_prefetch = 0 : i64, scratch_operands = 0 : i64, tpu.core_type = #tpu.core_type<tc>, window_params = [{pipeline_mode = #tpu.pipeline_mode<synchronous>, transform_indices = @transform_0, window_bounds = array<i64: 16, 384>}, {pipeline_mode = #tpu.pipeline_mode<synchronous>, transform_indices = @transform_1, window_bounds = array<i64: 384, 3072>}, {pipeline_mode = #tpu.pipeline_mode<synchronous>, transform_indices = @transform_2, window_bounds = array<i64: 16, 1>}, {pipeline_mode = #tpu.pipeline_mode<synchronous>, transform_indices = @transform_3, window_bounds = array<i64: 16, 1>}, {pipeline_mode = #tpu.pipeline_mode<synchronous>, transform_indices = @transform_4, window_bounds = array<i64: 16, 3072>}]} {
    %c0 = arith.constant 0 : index
    %c0_0 = arith.constant 0 : index
    %0 = vector.load %arg1[%c0, %c0_0] : memref<16x384xbf16, #tpu.memory_space<vmem>>, vector<16x384xbf16>
    %c0_1 = arith.constant 0 : index
    %c0_2 = arith.constant 0 : index
    %1 = vector.load %arg2[%c0_1, %c0_2] : memref<384x3072xbf16, #tpu.memory_space<vmem>>, vector<384x3072xbf16>
    %cst = arith.constant dense<0.000000e+00> : vector<16x3072xf32>
    %2 = tpu.matmul %0, %1, %cst {dimension_numbers = #tpu.dot_dimension_numbers<[1], [0], [0], [1], [0, 0, 1, 1], [], []>} : vector<16x384xbf16>, vector<384x3072xbf16>, vector<16x3072xf32> -> vector<16x3072xf32>
    %cst_3 = arith.constant dense<0.000000e+00> : vector<16xf32>
    %3 = vector.multi_reduction <add>, %2, %cst_3 [1] : vector<16x3072xf32> to vector<16xf32>
    %4 = vector.shape_cast %3 : vector<16xf32> to vector<16x1xf32>
    %cst_4 = arith.constant 3.072000e+03 : f32
    %5 = vector.broadcast %cst_4 : f32 to vector<16x1xf32>
    %6 = arith.divf %4, %5 : vector<16x1xf32>
    %7 = vector.broadcast %6 : vector<16x1xf32> to vector<16x3072xf32>
    %8 = arith.subf %2, %7 : vector<16x3072xf32>
    %9 = arith.mulf %8, %8 : vector<16x3072xf32>
    %cst_5 = arith.constant dense<0.000000e+00> : vector<16xf32>
    %10 = vector.multi_reduction <add>, %9, %cst_5 [1] : vector<16x3072xf32> to vector<16xf32>
    %11 = vector.shape_cast %10 : vector<16xf32> to vector<16x1xf32>
    %cst_6 = arith.constant 3.072000e+03 : f32
    %12 = vector.broadcast %cst_6 : f32 to vector<16x1xf32>
    %13 = arith.divf %11, %12 : vector<16x1xf32>
    %c0_7 = arith.constant 0 : index
    %c0_8 = arith.constant 0 : index
    %14 = vector.load %arg3[%c0_7, %c0_8] : memref<16x1xf32, #tpu.memory_space<vmem>>, vector<16x1xf32>
    %cst_9 = arith.constant 9.99999974E-6 : f32
    %15 = vector.broadcast %cst_9 : f32 to vector<16x1xf32>
    %16 = arith.addf %13, %15 : vector<16x1xf32>
    %17 = math.rsqrt %16 : vector<16x1xf32>
    %18 = arith.mulf %14, %17 : vector<16x1xf32>
    %c0_10 = arith.constant 0 : index
    %c0_11 = arith.constant 0 : index
    %19 = vector.load %arg4[%c0_10, %c0_11] : memref<16x1xf32, #tpu.memory_space<vmem>>, vector<16x1xf32>
    %20 = arith.mulf %6, %18 : vector<16x1xf32>
    %21 = arith.subf %19, %20 : vector<16x1xf32>
    %22 = vector.broadcast %18 : vector<16x1xf32> to vector<16x3072xf32>
    %23 = arith.mulf %2, %22 : vector<16x3072xf32>
    %24 = vector.broadcast %21 : vector<16x1xf32> to vector<16x3072xf32>
    %25 = arith.addf %23, %24 : vector<16x3072xf32>
    %cst_12 = arith.constant 2.000000e-01 : f32
    %26 = vector.broadcast %cst_12 : f32 to vector<16x3072xf32>
    %27 = arith.mulf %26, %25 : vector<16x3072xf32>
    %28 = arith.maximumf %25, %27 : vector<16x3072xf32>
    %29 = arith.truncf %28 : vector<16x3072xf32> to vector<16x3072xbf16>
    %c0_13 = arith.constant 0 : index
    %c0_14 = arith.constant 0 : index
    %30 = vector.load %arg5[%c0_13, %c0_14] : memref<16x3072xbf16, #tpu.memory_space<vmem>>, vector<16x3072xbf16>
    tpu.vector_store %arg5[%c0_13, %c0_14], %29 {strides = array<i32>} : memref<16x3072xbf16, #tpu.memory_space<vmem>>, vector<16x3072xbf16>,
    return
  }
  func.func @transform_0(%arg0: i32) -> (i32, i32) {
    %c0_i32 = arith.constant 0 : i32
    %c0_i32_0 = arith.constant 0 : i32
    %c0_i32_1 = arith.constant 0 : i32
    return %c0_i32, %c0_i32_0 : i32, i32
  }
  func.func @transform_1(%arg0: i32) -> (i32, i32) {
    %c0_i32 = arith.constant 0 : i32
    %c0_i32_0 = arith.constant 0 : i32
    %c0_i32_1 = arith.constant 0 : i32
    return %c0_i32, %c0_i32_0 : i32, i32
  }
  func.func @transform_2(%arg0: i32) -> (i32, i32) {
    %c0_i32 = arith.constant 0 : i32
    %c0_i32_0 = arith.constant 0 : i32
    %c0_i32_1 = arith.constant 0 : i32
    return %c0_i32, %c0_i32_0 : i32, i32
  }
  func.func @transform_3(%arg0: i32) -> (i32, i32) {
    %c0_i32 = arith.constant 0 : i32
    %c0_i32_0 = arith.constant 0 : i32
    %c0_i32_1 = arith.constant 0 : i32
    return %c0_i32, %c0_i32_0 : i32, i32
  }
  func.func @transform_4(%arg0: i32) -> (i32, i32) {
    %c0_i32 = arith.constant 0 : i32
    %c0_i32_0 = arith.constant 0 : i32
    %c0_i32_1 = arith.constant 0 : i32
    return %c0_i32, %c0_i32_0 : i32, i32
  }
}

module attributes {stable_mosaic.version = 11 : i64} {
  func.func @_conv_bn_act_kernel(%arg0: i32, %arg1: memref<32x768xbf16, #tpu.memory_space<vmem>>, %arg2: memref<768x512xbf16, #tpu.memory_space<vmem>>, %arg3: memref<32x1xf32, #tpu.memory_space<vmem>>, %arg4: memref<32x1xf32, #tpu.memory_space<vmem>>, %arg5: memref<32x512xbf16, #tpu.memory_space<vmem>>) attributes {dimension_semantics = [#tpu.dimension_semantics<arbitrary>], iteration_bounds = array<i64: 1>, scalar_prefetch = 0 : i64, scratch_operands = 0 : i64, tpu.core_type = #tpu.core_type<tc>, window_params = [{pipeline_mode = #tpu.pipeline_mode<synchronous>, transform_indices = @transform_0, window_bounds = array<i64: 32, 768>}, {pipeline_mode = #tpu.pipeline_mode<synchronous>, transform_indices = @transform_1, window_bounds = array<i64: 768, 512>}, {pipeline_mode = #tpu.pipeline_mode<synchronous>, transform_indices = @transform_2, window_bounds = array<i64: 32, 1>}, {pipeline_mode = #tpu.pipeline_mode<synchronous>, transform_indices = @transform_3, window_bounds = array<i64: 32, 1>}, {pipeline_mode = #tpu.pipeline_mode<synchronous>, transform_indices = @transform_4, window_bounds = array<i64: 32, 512>}]} {
    %c0 = arith.constant 0 : index
    %c0_0 = arith.constant 0 : index
    %0 = vector.load %arg1[%c0, %c0_0] : memref<32x768xbf16, #tpu.memory_space<vmem>>, vector<32x768xbf16>
    %c0_1 = arith.constant 0 : index
    %c0_2 = arith.constant 0 : index
    %1 = vector.load %arg2[%c0_1, %c0_2] : memref<768x512xbf16, #tpu.memory_space<vmem>>, vector<768x512xbf16>
    %cst = arith.constant dense<0.000000e+00> : vector<32x512xf32>
    %2 = tpu.matmul %0, %1, %cst {dimension_numbers = #tpu.dot_dimension_numbers<[1], [0], [0], [1], [0, 0, 1, 1], [], []>} : vector<32x768xbf16>, vector<768x512xbf16>, vector<32x512xf32> -> vector<32x512xf32>
    %cst_3 = arith.constant dense<0.000000e+00> : vector<32xf32>
    %3 = vector.multi_reduction <add>, %2, %cst_3 [1] : vector<32x512xf32> to vector<32xf32>
    %4 = vector.shape_cast %3 : vector<32xf32> to vector<32x1xf32>
    %cst_4 = arith.constant 5.120000e+02 : f32
    %5 = vector.broadcast %cst_4 : f32 to vector<32x1xf32>
    %6 = arith.divf %4, %5 : vector<32x1xf32>
    %7 = vector.broadcast %6 : vector<32x1xf32> to vector<32x512xf32>
    %8 = arith.subf %2, %7 : vector<32x512xf32>
    %9 = arith.mulf %8, %8 : vector<32x512xf32>
    %cst_5 = arith.constant dense<0.000000e+00> : vector<32xf32>
    %10 = vector.multi_reduction <add>, %9, %cst_5 [1] : vector<32x512xf32> to vector<32xf32>
    %11 = vector.shape_cast %10 : vector<32xf32> to vector<32x1xf32>
    %cst_6 = arith.constant 5.120000e+02 : f32
    %12 = vector.broadcast %cst_6 : f32 to vector<32x1xf32>
    %13 = arith.divf %11, %12 : vector<32x1xf32>
    %c0_7 = arith.constant 0 : index
    %c0_8 = arith.constant 0 : index
    %14 = vector.load %arg3[%c0_7, %c0_8] : memref<32x1xf32, #tpu.memory_space<vmem>>, vector<32x1xf32>
    %cst_9 = arith.constant 9.99999974E-6 : f32
    %15 = vector.broadcast %cst_9 : f32 to vector<32x1xf32>
    %16 = arith.addf %13, %15 : vector<32x1xf32>
    %17 = math.rsqrt %16 : vector<32x1xf32>
    %18 = arith.mulf %14, %17 : vector<32x1xf32>
    %c0_10 = arith.constant 0 : index
    %c0_11 = arith.constant 0 : index
    %19 = vector.load %arg4[%c0_10, %c0_11] : memref<32x1xf32, #tpu.memory_space<vmem>>, vector<32x1xf32>
    %20 = arith.mulf %6, %18 : vector<32x1xf32>
    %21 = arith.subf %19, %20 : vector<32x1xf32>
    %22 = vector.broadcast %18 : vector<32x1xf32> to vector<32x512xf32>
    %23 = arith.mulf %2, %22 : vector<32x512xf32>
    %24 = vector.broadcast %21 : vector<32x1xf32> to vector<32x512xf32>
    %25 = arith.addf %23, %24 : vector<32x512xf32>
    %cst_12 = arith.constant 2.000000e-01 : f32
    %26 = vector.broadcast %cst_12 : f32 to vector<32x512xf32>
    %27 = arith.mulf %26, %25 : vector<32x512xf32>
    %28 = arith.maximumf %25, %27 : vector<32x512xf32>
    %29 = arith.truncf %28 : vector<32x512xf32> to vector<32x512xbf16>
    %c0_13 = arith.constant 0 : index
    %c0_14 = arith.constant 0 : index
    %30 = vector.load %arg5[%c0_13, %c0_14] : memref<32x512xbf16, #tpu.memory_space<vmem>>, vector<32x512xbf16>
    tpu.vector_store %arg5[%c0_13, %c0_14], %29 {strides = array<i32>} : memref<32x512xbf16, #tpu.memory_space<vmem>>, vector<32x512xbf16>,
    return
  }
  func.func @transform_0(%arg0: i32) -> (i32, i32) {
    %c0_i32 = arith.constant 0 : i32
    %c0_i32_0 = arith.constant 0 : i32
    %c0_i32_1 = arith.constant 0 : i32
    return %c0_i32, %c0_i32_0 : i32, i32
  }
  func.func @transform_1(%arg0: i32) -> (i32, i32) {
    %c0_i32 = arith.constant 0 : i32
    %c0_i32_0 = arith.constant 0 : i32
    %c0_i32_1 = arith.constant 0 : i32
    return %c0_i32, %c0_i32_0 : i32, i32
  }
  func.func @transform_2(%arg0: i32) -> (i32, i32) {
    %c0_i32 = arith.constant 0 : i32
    %c0_i32_0 = arith.constant 0 : i32
    %c0_i32_1 = arith.constant 0 : i32
    return %c0_i32, %c0_i32_0 : i32, i32
  }
  func.func @transform_3(%arg0: i32) -> (i32, i32) {
    %c0_i32 = arith.constant 0 : i32
    %c0_i32_0 = arith.constant 0 : i32
    %c0_i32_1 = arith.constant 0 : i32
    return %c0_i32, %c0_i32_0 : i32, i32
  }
  func.func @transform_4(%arg0: i32) -> (i32, i32) {
    %c0_i32 = arith.constant 0 : i32
    %c0_i32_0 = arith.constant 0 : i32
    %c0_i32_1 = arith.constant 0 : i32
    return %c0_i32, %c0_i32_0 : i32, i32
  }
}

module attributes {stable_mosaic.version = 11 : i64} {
  func.func @_conv_bn_act_kernel(%arg0: i32, %arg1: memref<64x1536xbf16, #tpu.memory_space<vmem>>, %arg2: memref<1536x64xbf16, #tpu.memory_space<vmem>>, %arg3: memref<64x1xf32, #tpu.memory_space<vmem>>, %arg4: memref<64x1xf32, #tpu.memory_space<vmem>>, %arg5: memref<64x64xbf16, #tpu.memory_space<vmem>>) attributes {dimension_semantics = [#tpu.dimension_semantics<arbitrary>], iteration_bounds = array<i64: 1>, scalar_prefetch = 0 : i64, scratch_operands = 0 : i64, tpu.core_type = #tpu.core_type<tc>, window_params = [{pipeline_mode = #tpu.pipeline_mode<synchronous>, transform_indices = @transform_0, window_bounds = array<i64: 64, 1536>}, {pipeline_mode = #tpu.pipeline_mode<synchronous>, transform_indices = @transform_1, window_bounds = array<i64: 1536, 64>}, {pipeline_mode = #tpu.pipeline_mode<synchronous>, transform_indices = @transform_2, window_bounds = array<i64: 64, 1>}, {pipeline_mode = #tpu.pipeline_mode<synchronous>, transform_indices = @transform_3, window_bounds = array<i64: 64, 1>}, {pipeline_mode = #tpu.pipeline_mode<synchronous>, transform_indices = @transform_4, window_bounds = array<i64: 64, 64>}]} {
    %c0 = arith.constant 0 : index
    %c0_0 = arith.constant 0 : index
    %0 = vector.load %arg1[%c0, %c0_0] : memref<64x1536xbf16, #tpu.memory_space<vmem>>, vector<64x1536xbf16>
    %c0_1 = arith.constant 0 : index
    %c0_2 = arith.constant 0 : index
    %1 = vector.load %arg2[%c0_1, %c0_2] : memref<1536x64xbf16, #tpu.memory_space<vmem>>, vector<1536x64xbf16>
    %cst = arith.constant dense<0.000000e+00> : vector<64x64xf32>
    %2 = tpu.matmul %0, %1, %cst {dimension_numbers = #tpu.dot_dimension_numbers<[1], [0], [0], [1], [0, 0, 1, 1], [], []>} : vector<64x1536xbf16>, vector<1536x64xbf16>, vector<64x64xf32> -> vector<64x64xf32>
    %cst_3 = arith.constant dense<0.000000e+00> : vector<64xf32>
    %3 = vector.multi_reduction <add>, %2, %cst_3 [1] : vector<64x64xf32> to vector<64xf32>
    %4 = vector.shape_cast %3 : vector<64xf32> to vector<64x1xf32>
    %cst_4 = arith.constant 6.400000e+01 : f32
    %5 = vector.broadcast %cst_4 : f32 to vector<64x1xf32>
    %6 = arith.divf %4, %5 : vector<64x1xf32>
    %7 = vector.broadcast %6 : vector<64x1xf32> to vector<64x64xf32>
    %8 = arith.subf %2, %7 : vector<64x64xf32>
    %9 = arith.mulf %8, %8 : vector<64x64xf32>
    %cst_5 = arith.constant dense<0.000000e+00> : vector<64xf32>
    %10 = vector.multi_reduction <add>, %9, %cst_5 [1] : vector<64x64xf32> to vector<64xf32>
    %11 = vector.shape_cast %10 : vector<64xf32> to vector<64x1xf32>
    %cst_6 = arith.constant 6.400000e+01 : f32
    %12 = vector.broadcast %cst_6 : f32 to vector<64x1xf32>
    %13 = arith.divf %11, %12 : vector<64x1xf32>
    %c0_7 = arith.constant 0 : index
    %c0_8 = arith.constant 0 : index
    %14 = vector.load %arg3[%c0_7, %c0_8] : memref<64x1xf32, #tpu.memory_space<vmem>>, vector<64x1xf32>
    %cst_9 = arith.constant 9.99999974E-6 : f32
    %15 = vector.broadcast %cst_9 : f32 to vector<64x1xf32>
    %16 = arith.addf %13, %15 : vector<64x1xf32>
    %17 = math.rsqrt %16 : vector<64x1xf32>
    %18 = arith.mulf %14, %17 : vector<64x1xf32>
    %c0_10 = arith.constant 0 : index
    %c0_11 = arith.constant 0 : index
    %19 = vector.load %arg4[%c0_10, %c0_11] : memref<64x1xf32, #tpu.memory_space<vmem>>, vector<64x1xf32>
    %20 = arith.mulf %6, %18 : vector<64x1xf32>
    %21 = arith.subf %19, %20 : vector<64x1xf32>
    %22 = vector.broadcast %18 : vector<64x1xf32> to vector<64x64xf32>
    %23 = arith.mulf %2, %22 : vector<64x64xf32>
    %24 = vector.broadcast %21 : vector<64x1xf32> to vector<64x64xf32>
    %25 = arith.addf %23, %24 : vector<64x64xf32>
    %cst_12 = arith.constant 2.000000e-01 : f32
    %26 = vector.broadcast %cst_12 : f32 to vector<64x64xf32>
    %27 = arith.mulf %26, %25 : vector<64x64xf32>
    %28 = arith.maximumf %25, %27 : vector<64x64xf32>
    %29 = arith.truncf %28 : vector<64x64xf32> to vector<64x64xbf16>
    %c0_13 = arith.constant 0 : index
    %c0_14 = arith.constant 0 : index
    %30 = vector.load %arg5[%c0_13, %c0_14] : memref<64x64xbf16, #tpu.memory_space<vmem>>, vector<64x64xbf16>
    tpu.vector_store %arg5[%c0_13, %c0_14], %29 {strides = array<i32>} : memref<64x64xbf16, #tpu.memory_space<vmem>>, vector<64x64xbf16>,
    return
  }
  func.func @transform_0(%arg0: i32) -> (i32, i32) {
    %c0_i32 = arith.constant 0 : i32
    %c0_i32_0 = arith.constant 0 : i32
    %c0_i32_1 = arith.constant 0 : i32
    return %c0_i32, %c0_i32_0 : i32, i32
  }
  func.func @transform_1(%arg0: i32) -> (i32, i32) {
    %c0_i32 = arith.constant 0 : i32
    %c0_i32_0 = arith.constant 0 : i32
    %c0_i32_1 = arith.constant 0 : i32
    return %c0_i32, %c0_i32_0 : i32, i32
  }
  func.func @transform_2(%arg0: i32) -> (i32, i32) {
    %c0_i32 = arith.constant 0 : i32
    %c0_i32_0 = arith.constant 0 : i32
    %c0_i32_1 = arith.constant 0 : i32
    return %c0_i32, %c0_i32_0 : i32, i32
  }
  func.func @transform_3(%arg0: i32) -> (i32, i32) {
    %c0_i32 = arith.constant 0 : i32
    %c0_i32_0 = arith.constant 0 : i32
    %c0_i32_1 = arith.constant 0 : i32
    return %c0_i32, %c0_i32_0 : i32, i32
  }
  func.func @transform_4(%arg0: i32) -> (i32, i32) {
    %c0_i32 = arith.constant 0 : i32
    %c0_i32_0 = arith.constant 0 : i32
    %c0_i32_1 = arith.constant 0 : i32
    return %c0_i32, %c0_i32_0 : i32, i32
  }
}

</mosaic_0001>

<bundles_post_ra>
// kernel: video_discriminator_forward.4
= control target key start
LH: loop header
LB: loop body
LE: loop exit
PB: predicated region body
PF: predicated region fallthrough
CT: control target
= control target key end

     0   :  { %s2071_s9 = smov 0   ;;  %s2073_s10 = smov 0   ;;  %s2608_s0 = inlined_call_operand.vmem [shape: bf16[8,144], index: 0, kind: input, shape index: {}]   ;;  %s2609_s1 = inlined_call_operand.vmem [shape: bf16[144,16384], index: 1, kind: input, shape index: {}]   ;;  %s2610_s2 = inlined_call_operand.vmem [shape: bf16[8,16384], index: 2, kind: output, shape index: {}]  }
   0x1   :  { %s2075_s11 = smov 0  }
   0x2 LB: > { %s1822_s12 = sadd.s32 4294967295, %s2054_s11   ;;  %s2088_s13 = sadd.s32 1, %s2054_s11   ;;  %s2054_s11 = sphi %s2075_s11, %s2613_s11   ;;  %s2050_s10 = sphi %s2073_s10, %s2612_s10   ;;  %s2046_s9 = sphi %s2071_s9, %s2611_s9  }
   0x3   : > { %s37_s14 = ssub.s32 %s2054_s11, %s2088_s13  ;;  %s40_s15 = sadd.s32 1, %s2050_s10 }
   0x4   : > { %p38_p0 = scmp.eq.s32.totalorder %s37_s14, 0  ;;  %p47_p1 = scmp.ne.s32.totalorder %s2050_s10, %s2046_s9 }
   0x5   : > { %p48_p2 = scmp.eq.s32.totalorder %s2054_s11, 0  ;;  %p1825_p4 = scmp.ge.s32.totalorder %s2054_s11, 8 }
   0x6   : > { %s2097_s16 = scalar_select %p38_p0, %s2050_s10, %s40_s15  }
   0x7   : > { %p49_p3 = por %p48_p2, %p47_p1  ;;  %102 = sbr.rel (%p1825_p4) target bundleno = 89 (0x59), region = 20 }
   0xc   : > { %105 = sbr.rel (!%p49_p3) target bundleno = 89 (0x59), region = 24  ;;  %s107_s17 = sand.u32 (%p49_p3), 1, %s2050_s10  }
   0xd   : > { %s1995_s18 = sshll.u32 (%p49_p3), %s2054_s11, 6  ;;  %s2004_s19 = smul.u32 (%p49_p3), 1152, %s107_s17 }
   0xe   : > { %s2105_s22 = scalar_lea.vmem (%p49_p3), %s2609_s1, %s1995_s18 }
   0xf   : > { %v125_v0 = vld [vmem:[%s2105_s22] sm:$0xff] (%p49_p3)  ;;  %v127_v1 = vld [vmem:[%s2105_s22 + $0x8] sm:$0xff] (%p49_p3)  ;;  %v129_v2 = vld [vmem:[%s2105_s22 + $0x10] sm:$0xff] (%p49_p3)  ;;  %s2113_s23 = scalar_lea.vmem (%p49_p3), [#allocation2], %s2004_s19 }
  0x10   : > { %v131_v3 = vld [vmem:[%s2105_s22 + $0x18] sm:$0xff] (%p49_p3)  ;;  %v133_v4 = vld [vmem:[%s2105_s22 + $0x20] sm:$0xff] (%p49_p3)  ;;  %v135_v5 = vld [vmem:[%s2105_s22 + $0x28] sm:$0xff] (%p49_p3)  ;;  %126 = vst [vmem:[%s2113_s23] sm:$0xff] (%p49_p3), %v125_v0 }
  0x11   : > { %128 = vst [vmem:[%s2113_s23 + $0x8] sm:$0xff] %v127_v1  ;;  %130 = vst [vmem:[%s2113_s23 + $0x10] sm:$0xff] %v129_v2  ;;  %v137_v6 = vld [vmem:[%s2105_s22 + $0x30] sm:$0xff]  ;;  %v139_v7 = vld [vmem:[%s2105_s22 + $0x38] sm:$0xff] }
  0x12   : > { %132 = vst [vmem:[%s2113_s23 + $0x18] sm:$0xff] %v131_v3  ;;  %134 = vst [vmem:[%s2113_s23 + $0x20] sm:$0xff] %v133_v4  ;;  %v141_v8 = vld [vmem:[%s2105_s22 + $0x200] sm:$0xff]  ;;  %v143_v9 = vld [vmem:[%s2105_s22 + $0x208] sm:$0xff] }
  0x13   : > { %136 = vst [vmem:[%s2113_s23 + $0x28] sm:$0xff] %v135_v5  ;;  %138 = vst [vmem:[%s2113_s23 + $0x30] sm:$0xff] %v137_v6  ;;  %v145_v10 = vld [vmem:[%s2105_s22 + $0x210] sm:$0xff]  ;;  %v147_v11 = vld [vmem:[%s2105_s22 + $0x218] sm:$0xff] }
  0x14   : > { %140 = vst [vmem:[%s2113_s23 + $0x38] sm:$0xff] %v139_v7  ;;  %142 = vst [vmem:[%s2113_s23 + $0x40] sm:$0xff] %v141_v8  ;;  %v149_v12 = vld [vmem:[%s2105_s22 + $0x220] sm:$0xff]  ;;  %v151_v13 = vld [vmem:[%s2105_s22 + $0x228] sm:$0xff] }
  0x15   : > { %144 = vst [vmem:[%s2113_s23 + $0x48] sm:$0xff] %v143_v9  ;;  %146 = vst [vmem:[%s2113_s23 + $0x50] sm:$0xff] %v145_v10  ;;  %v153_v14 = vld [vmem:[%s2105_s22 + $0x230] sm:$0xff]  ;;  %v155_v15 = vld [vmem:[%s2105_s22 + $0x238] sm:$0xff] }
  0x16   : > { %148 = vst [vmem:[%s2113_s23 + $0x58] sm:$0xff] %v147_v11  ;;  %150 = vst [vmem:[%s2113_s23 + $0x60] sm:$0xff] %v149_v12  ;;  %v157_v16 = vld [vmem:[%s2105_s22 + $0x400] sm:$0xff]  ;;  %v159_v17 = vld [vmem:[%s2105_s22 + $0x408] sm:$0xff] }
  0x17   : > { %152 = vst [vmem:[%s2113_s23 + $0x68] sm:$0xff] %v151_v13  ;;  %154 = vst [vmem:[%s2113_s23 + $0x70] sm:$0xff] %v153_v14  ;;  %v161_v18 = vld [vmem:[%s2105_s22 + $0x410] sm:$0xff]  ;;  %v163_v19 = vld [vmem:[%s2105_s22 + $0x418] sm:$0xff] }
  0x18   : > { %156 = vst [vmem:[%s2113_s23 + $0x78] sm:$0xff] %v155_v15  ;;  %158 = vst [vmem:[%s2113_s23 + $0x80] sm:$0xff] %v157_v16  ;;  %v165_v20 = vld [vmem:[%s2105_s22 + $0x420] sm:$0xff]  ;;  %v167_v21 = vld [vmem:[%s2105_s22 + $0x428] sm:$0xff] }
  0x19   : > { %160 = vst [vmem:[%s2113_s23 + $0x88] sm:$0xff] %v159_v17  ;;  %162 = vst [vmem:[%s2113_s23 + $0x90] sm:$0xff] %v161_v18  ;;  %v169_v22 = vld [vmem:[%s2105_s22 + $0x430] sm:$0xff]  ;;  %v171_v23 = vld [vmem:[%s2105_s22 + $0x438] sm:$0xff] }
  0x1a   : > { %164 = vst [vmem:[%s2113_s23 + $0x98] sm:$0xff] %v163_v19  ;;  %166 = vst [vmem:[%s2113_s23 + $0xa0] sm:$0xff] %v165_v20  ;;  %v173_v24 = vld [vmem:[%s2105_s22 + $0x600] sm:$0xff]  ;;  %v175_v25 = vld [vmem:[%s2105_s22 + $0x608] sm:$0xff] }
  0x1b   : > { %168 = vst [vmem:[%s2113_s23 + $0xa8] sm:$0xff] %v167_v21  ;;  %170 = vst [vmem:[%s2113_s23 + $0xb0] sm:$0xff] %v169_v22  ;;  %v177_v26 = vld [vmem:[%s2105_s22 + $0x610] sm:$0xff]  ;;  %v179_v27 = vld [vmem:[%s2105_s22 + $0x618] sm:$0xff] }
  0x1c   : > { %172 = vst [vmem:[%s2113_s23 + $0xb8] sm:$0xff] %v171_v23  ;;  %174 = vst [vmem:[%s2113_s23 + $0xc0] sm:$0xff] %v173_v24  ;;  %v181_v28 = vld [vmem:[%s2105_s22 + $0x620] sm:$0xff]  ;;  %v183_v29 = vld [vmem:[%s2105_s22 + $0x628] sm:$0xff] }
  0x1d   : > { %176 = vst [vmem:[%s2113_s23 + $0xc8] sm:$0xff] %v175_v25  ;;  %178 = vst [vmem:[%s2113_s23 + $0xd0] sm:$0xff] %v177_v26  ;;  %v185_v30 = vld [vmem:[%s2105_s22 + $0x630] sm:$0xff]  ;;  %v187_v31 = vld [vmem:[%s2105_s22 + $0x638] sm:$0xff] }
  0x1e   : > { %180 = vst [vmem:[%s2113_s23 + $0xd8] sm:$0xff] %v179_v27  ;;  %182 = vst [vmem:[%s2113_s23 + $0xe0] sm:$0xff] %v181_v28  ;;  %v189_v32 = vld [vmem:[%s2105_s22 + $0x800] sm:$0xff]  ;;  %v191_v33 = vld [vmem:[%s2105_s22 + $0x808] sm:$0xff] }
  0x1f   : > { %184 = vst [vmem:[%s2113_s23 + $0xe8] sm:$0xff] %v183_v29  ;;  %186 = vst [vmem:[%s2113_s23 + $0xf0] sm:$0xff] %v185_v30  ;;  %v193_v34 = vld [vmem:[%s2105_s22 + $0x810] sm:$0xff]  ;;  %v195_v35 = vld [vmem:[%s2105_s22 + $0x818] sm:$0xff] }
  0x20   : > { %188 = vst [vmem:[%s2113_s23 + $0xf8] sm:$0xff] %v187_v31  ;;  %190 = vst [vmem:[%s2113_s23 + $0x100] sm:$0xff] %v189_v32  ;;  %v197_v36 = vld [vmem:[%s2105_s22 + $0x820] sm:$0xff]  ;;  %v199_v37 = vld [vmem:[%s2105_s22 + $0x828] sm:$0xff] }
  0x21   : > { %192 = vst [vmem:[%s2113_s23 + $0x108] sm:$0xff] %v191_v33  ;;  %194 = vst [vmem:[%s2113_s23 + $0x110] sm:$0xff] %v193_v34  ;;  %v201_v38 = vld [vmem:[%s2105_s22 + $0x830] sm:$0xff]  ;;  %v203_v39 = vld [vmem:[%s2105_s22 + $0x838] sm:$0xff] }
  0x22   : > { %196 = vst [vmem:[%s2113_s23 + $0x118] sm:$0xff] %v195_v35  ;;  %198 = vst [vmem:[%s2113_s23 + $0x120] sm:$0xff] %v197_v36  ;;  %v205_v40 = vld [vmem:[%s2105_s22 + $0xa00] sm:$0xff]  ;;  %v207_v41 = vld [vmem:[%s2105_s22 + $0xa08] sm:$0xff] }
  0x23   : > { %200 = vst [vmem:[%s2113_s23 + $0x128] sm:$0xff] %v199_v37  ;;  %202 = vst [vmem:[%s2113_s23 + $0x130] sm:$0xff] %v201_v38  ;;  %v209_v42 = vld [vmem:[%s2105_s22 + $0xa10] sm:$0xff]  ;;  %v211_v43 = vld [vmem:[%s2105_s22 + $0xa18] sm:$0xff] }
  0x24   : > { %204 = vst [vmem:[%s2113_s23 + $0x138] sm:$0xff] %v203_v39  ;;  %206 = vst [vmem:[%s2113_s23 + $0x140] sm:$0xff] %v205_v40  ;;  %v213_v44 = vld [vmem:[%s2105_s22 + $0xa20] sm:$0xff]  ;;  %v215_v45 = vld [vmem:[%s2105_s22 + $0xa28] sm:$0xff] }
  0x25   : > { %208 = vst [vmem:[%s2113_s23 + $0x148] sm:$0xff] %v207_v41  ;;  %210 = vst [vmem:[%s2113_s23 + $0x150] sm:$0xff] %v209_v42  ;;  %v217_v46 = vld [vmem:[%s2105_s22 + $0xa30] sm:$0xff]  ;;  %v219_v47 = vld [vmem:[%s2105_s22 + $0xa38] sm:$0xff] }
  0x26   : > { %212 = vst [vmem:[%s2113_s23 + $0x158] sm:$0xff] %v211_v43  ;;  %214 = vst [vmem:[%s2113_s23 + $0x160] sm:$0xff] %v213_v44  ;;  %v221_v48 = vld [vmem:[%s2105_s22 + $0xc00] sm:$0xff]  ;;  %v223_v49 = vld [vmem:[%s2105_s22 + $0xc08] sm:$0xff] }
  0x27   : > { %216 = vst [vmem:[%s2113_s23 + $0x168] sm:$0xff] %v215_v45  ;;  %218 = vst [vmem:[%s2113_s23 + $0x170] sm:$0xff] %v217_v46  ;;  %v225_v50 = vld [vmem:[%s2105_s22 + $0xc10] sm:$0xff]  ;;  %v227_v51 = vld [vmem:[%s2105_s22 + $0xc18] sm:$0xff] }
  0x28   : > { %220 = vst [vmem:[%s2113_s23 + $0x178] sm:$0xff] %v219_v47  ;;  %222 = vst [vmem:[%s2113_s23 + $0x180] sm:$0xff] %v221_v48  ;;  %v229_v52 = vld [vmem:[%s2105_s22 + $0xc20] sm:$0xff]  ;;  %v231_v53 = vld [vmem:[%s2105_s22 + $0xc28] sm:$0xff] }
  0x29   : > { %224 = vst [vmem:[%s2113_s23 + $0x188] sm:$0xff] %v223_v49  ;;  %226 = vst [vmem:[%s2113_s23 + $0x190] sm:$0xff] %v225_v50  ;;  %v233_v54 = vld [vmem:[%s2105_s22 + $0xc30] sm:$0xff]  ;;  %v235_v55 = vld [vmem:[%s2105_s22 + $0xc38] sm:$0xff] }
  0x2a   : > { %228 = vst [vmem:[%s2113_s23 + $0x198] sm:$0xff] %v227_v51  ;;  %230 = vst [vmem:[%s2113_s23 + $0x1a0] sm:$0xff] %v229_v52  ;;  %v237_v56 = vld [vmem:[%s2105_s22 + $0xe00] sm:$0xff]  ;;  %v239_v57 = vld [vmem:[%s2105_s22 + $0xe08] sm:$0xff] }
  0x2b   : > { %232 = vst [vmem:[%s2113_s23 + $0x1a8] sm:$0xff] %v231_v53  ;;  %234 = vst [vmem:[%s2113_s23 + $0x1b0] sm:$0xff] %v233_v54  ;;  %v241_v58 = vld [vmem:[%s2105_s22 + $0xe10] sm:$0xff]  ;;  %v243_v59 = vld [vmem:[%s2105_s22 + $0xe18] sm:$0xff] }
  0x2c   : > { %236 = vst [vmem:[%s2113_s23 + $0x1b8] sm:$0xff] %v235_v55  ;;  %238 = vst [vmem:[%s2113_s23 + $0x1c0] sm:$0xff] %v237_v56  ;;  %v245_v60 = vld [vmem:[%s2105_s22 + $0xe20] sm:$0xff]  ;;  %v247_v61 = vld [vmem:[%s2105_s22 + $0xe28] sm:$0xff] }
  0x2d   : > { %240 = vst [vmem:[%s2113_s23 + $0x1c8] sm:$0xff] %v239_v57  ;;  %242 = vst [vmem:[%s2113_s23 + $0x1d0] sm:$0xff] %v241_v58  ;;  %v249_v62 = vld [vmem:[%s2105_s22 + $0xe30] sm:$0xff]  ;;  %v251_v63 = vld [vmem:[%s2105_s22 + $0xe38] sm:$0xff] }
  0x2e   : > { %244 = vst [vmem:[%s2113_s23 + $0x1d8] sm:$0xff] %v243_v59  ;;  %246 = vst [vmem:[%s2113_s23 + $0x1e0] sm:$0xff] %v245_v60  ;;  %v253_v0 = vld [vmem:[%s2105_s22 + $0x1000] sm:$0xff]  ;;  %v255_v1 = vld [vmem:[%s2105_s22 + $0x1008] sm:$0xff] }
  0x2f   : > { %248 = vst [vmem:[%s2113_s23 + $0x1e8] sm:$0xff] %v247_v61  ;;  %250 = vst [vmem:[%s2113_s23 + $0x1f0] sm:$0xff] %v249_v62  ;;  %v257_v2 = vld [vmem:[%s2105_s22 + $0x1010] sm:$0xff]  ;;  %v259_v3 = vld [vmem:[%s2105_s22 + $0x1018] sm:$0xff] }
  0x30   : > { %252 = vst [vmem:[%s2113_s23 + $0x1f8] sm:$0xff] %v251_v63  ;;  %254 = vst [vmem:[%s2113_s23 + $0x200] sm:$0xff] %v253_v0  ;;  %v261_v4 = vld [vmem:[%s2105_s22 + $0x1020] sm:$0xff]  ;;  %v263_v5 = vld [vmem:[%s2105_s22 + $0x1028] sm:$0xff] }
  0x31   : > { %256 = vst [vmem:[%s2113_s23 + $0x208] sm:$0xff] %v255_v1  ;;  %258 = vst [vmem:[%s2113_s23 + $0x210] sm:$0xff] %v257_v2  ;;  %v265_v6 = vld [vmem:[%s2105_s22 + $0x1030] sm:$0xff]  ;;  %v267_v7 = vld [vmem:[%s2105_s22 + $0x1038] sm:$0xff] }
  0x32   : > { %260 = vst [vmem:[%s2113_s23 + $0x218] sm:$0xff] %v259_v3  ;;  %262 = vst [vmem:[%s2113_s23 + $0x220] sm:$0xff] %v261_v4  ;;  %v269_v8 = vld [vmem:[%s2105_s22 + $0x1200] sm:$0xff]  ;;  %v271_v9 = vld [vmem:[%s2105_s22 + $0x1208] sm:$0xff] }
  0x33   : > { %264 = vst [vmem:[%s2113_s23 + $0x228] sm:$0xff] %v263_v5  ;;  %266 = vst [vmem:[%s2113_s23 + $0x230] sm:$0xff] %v265_v6  ;;  %v273_v10 = vld [vmem:[%s2105_s22 + $0x1210] sm:$0xff]  ;;  %v275_v11 = vld [vmem:[%s2105_s22 + $0x1218] sm:$0xff] }
  0x34   : > { %268 = vst [vmem:[%s2113_s23 + $0x238] sm:$0xff] %v267_v7  ;;  %270 = vst [vmem:[%s2113_s23 + $0x240] sm:$0xff] %v269_v8  ;;  %v277_v12 = vld [vmem:[%s2105_s22 + $0x1220] sm:$0xff]  ;;  %v279_v13 = vld [vmem:[%s2105_s22 + $0x1228] sm:$0xff] }
  0x35   : > { %272 = vst [vmem:[%s2113_s23 + $0x248] sm:$0xff] %v271_v9  ;;  %274 = vst [vmem:[%s2113_s23 + $0x250] sm:$0xff] %v273_v10  ;;  %v281_v14 = vld [vmem:[%s2105_s22 + $0x1230] sm:$0xff]  ;;  %v283_v15 = vld [vmem:[%s2105_s22 + $0x1238] sm:$0xff] }
  0x36   : > { %276 = vst [vmem:[%s2113_s23 + $0x258] sm:$0xff] %v275_v11  ;;  %278 = vst [vmem:[%s2113_s23 + $0x260] sm:$0xff] %v277_v12  ;;  %v285_v16 = vld [vmem:[%s2105_s22 + $0x1400] sm:$0xff]  ;;  %v287_v17 = vld [vmem:[%s2105_s22 + $0x1408] sm:$0xff] }
  0x37   : > { %280 = vst [vmem:[%s2113_s23 + $0x268] sm:$0xff] %v279_v13  ;;  %282 = vst [vmem:[%s2113_s23 + $0x270] sm:$0xff] %v281_v14  ;;  %v289_v18 = vld [vmem:[%s2105_s22 + $0x1410] sm:$0xff]  ;;  %v291_v19 = vld [vmem:[%s2105_s22 + $0x1418] sm:$0xff] }
  0x38   : > { %284 = vst [vmem:[%s2113_s23 + $0x278] sm:$0xff] %v283_v15  ;;  %286 = vst [vmem:[%s2113_s23 + $0x280] sm:$0xff] %v285_v16  ;;  %v293_v20 = vld [vmem:[%s2105_s22 + $0x1420] sm:$0xff]  ;;  %v295_v21 = vld [vmem:[%s2105_s22 + $0x1428] sm:$0xff] }
  0x39   : > { %288 = vst [vmem:[%s2113_s23 + $0x288] sm:$0xff] %v287_v17  ;;  %290 = vst [vmem:[%s2113_s23 + $0x290] sm:$0xff] %v289_v18  ;;  %v297_v22 = vld [vmem:[%s2105_s22 + $0x1430] sm:$0xff]  ;;  %v299_v23 = vld [vmem:[%s2105_s22 + $0x1438] sm:$0xff] }
  0x3a   : > { %292 = vst [vmem:[%s2113_s23 + $0x298] sm:$0xff] %v291_v19  ;;  %294 = vst [vmem:[%s2113_s23 + $0x2a0] sm:$0xff] %v293_v20  ;;  %v301_v24 = vld [vmem:[%s2105_s22 + $0x1600] sm:$0xff]  ;;  %v303_v25 = vld [vmem:[%s2105_s22 + $0x1608] sm:$0xff] }
  0x3b   : > { %296 = vst [vmem:[%s2113_s23 + $0x2a8] sm:$0xff] %v295_v21  ;;  %298 = vst [vmem:[%s2113_s23 + $0x2b0] sm:$0xff] %v297_v22  ;;  %v305_v26 = vld [vmem:[%s2105_s22 + $0x1610] sm:$0xff]  ;;  %v307_v27 = vld [vmem:[%s2105_s22 + $0x1618] sm:$0xff] }
  0x3c   : > { %300 = vst [vmem:[%s2113_s23 + $0x2b8] sm:$0xff] %v299_v23  ;;  %302 = vst [vmem:[%s2113_s23 + $0x2c0] sm:$0xff] %v301_v24  ;;  %v309_v28 = vld [vmem:[%s2105_s22 + $0x1620] sm:$0xff]  ;;  %v311_v29 = vld [vmem:[%s2105_s22 + $0x1628] sm:$0xff] }
  0x3d   : > { %304 = vst [vmem:[%s2113_s23 + $0x2c8] sm:$0xff] %v303_v25  ;;  %306 = vst [vmem:[%s2113_s23 + $0x2d0] sm:$0xff] %v305_v26  ;;  %v313_v30 = vld [vmem:[%s2105_s22 + $0x1630] sm:$0xff]  ;;  %v315_v31 = vld [vmem:[%s2105_s22 + $0x1638] sm:$0xff] }
  0x3e   : > { %308 = vst [vmem:[%s2113_s23 + $0x2d8] sm:$0xff] %v307_v27  ;;  %310 = vst [vmem:[%s2113_s23 + $0x2e0] sm:$0xff] %v309_v28  ;;  %v317_v32 = vld [vmem:[%s2105_s22 + $0x1800] sm:$0xff]  ;;  %v319_v33 = vld [vmem:[%s2105_s22 + $0x1808] sm:$0xff] }
  0x3f   : > { %312 = vst [vmem:[%s2113_s23 + $0x2e8] sm:$0xff] %v311_v29  ;;  %314 = vst [vmem:[%s2113_s23 + $0x2f0] sm:$0xff] %v313_v30  ;;  %v321_v34 = vld [vmem:[%s2105_s22 + $0x1810] sm:$0xff]  ;;  %v323_v35 = vld [vmem:[%s2105_s22 + $0x1818] sm:$0xff] }
  0x40   : > { %316 = vst [vmem:[%s2113_s23 + $0x2f8] sm:$0xff] %v315_v31  ;;  %318 = vst [vmem:[%s2113_s23 + $0x300] sm:$0xff] %v317_v32  ;;  %v325_v36 = vld [vmem:[%s2105_s22 + $0x1820] sm:$0xff]  ;;  %v327_v37 = vld [vmem:[%s2105_s22 + $0x1828] sm:$0xff] }
  0x41   : > { %320 = vst [vmem:[%s2113_s23 + $0x308] sm:$0xff] %v319_v33  ;;  %322 = vst [vmem:[%s2113_s23 + $0x310] sm:$0xff] %v321_v34  ;;  %v329_v38 = vld [vmem:[%s2105_s22 + $0x1830] sm:$0xff]  ;;  %v331_v39 = vld [vmem:[%s2105_s22 + $0x1838] sm:$0xff] }
  0x42   : > { %324 = vst [vmem:[%s2113_s23 + $0x318] sm:$0xff] %v323_v35  ;;  %326 = vst [vmem:[%s2113_s23 + $0x320] sm:$0xff] %v325_v36  ;;  %v333_v40 = vld [vmem:[%s2105_s22 + $0x1a00] sm:$0xff]  ;;  %v335_v41 = vld [vmem:[%s2105_s22 + $0x1a08] sm:$0xff] }
  0x43   : > { %328 = vst [vmem:[%s2113_s23 + $0x328] sm:$0xff] %v327_v37  ;;  %330 = vst [vmem:[%s2113_s23 + $0x330] sm:$0xff] %v329_v38  ;;  %v337_v42 = vld [vmem:[%s2105_s22 + $0x1a10] sm:$0xff]  ;;  %v339_v43 = vld [vmem:[%s2105_s22 + $0x1a18] sm:$0xff] }
  0x44   : > { %332 = vst [vmem:[%s2113_s23 + $0x338] sm:$0xff] %v331_v39  ;;  %334 = vst [vmem:[%s2113_s23 + $0x340] sm:$0xff] %v333_v40  ;;  %v341_v44 = vld [vmem:[%s2105_s22 + $0x1a20] sm:$0xff]  ;;  %v343_v45 = vld [vmem:[%s2105_s22 + $0x1a28] sm:$0xff] }
  0x45   : > { %336 = vst [vmem:[%s2113_s23 + $0x348] sm:$0xff] %v335_v41  ;;  %338 = vst [vmem:[%s2113_s23 + $0x350] sm:$0xff] %v337_v42  ;;  %v345_v46 = vld [vmem:[%s2105_s22 + $0x1a30] sm:$0xff]  ;;  %v347_v47 = vld [vmem:[%s2105_s22 + $0x1a38] sm:$0xff] }
  0x46   : > { %340 = vst [vmem:[%s2113_s23 + $0x358] sm:$0xff] %v339_v43  ;;  %342 = vst [vmem:[%s2113_s23 + $0x360] sm:$0xff] %v341_v44  ;;  %v349_v48 = vld [vmem:[%s2105_s22 + $0x1c00] sm:$0xff]  ;;  %v351_v49 = vld [vmem:[%s2105_s22 + $0x1c08] sm:$0xff] }
  0x47   : > { %344 = vst [vmem:[%s2113_s23 + $0x368] sm:$0xff] %v343_v45  ;;  %346 = vst [vmem:[%s2113_s23 + $0x370] sm:$0xff] %v345_v46  ;;  %v353_v50 = vld [vmem:[%s2105_s22 + $0x1c10] sm:$0xff]  ;;  %v355_v51 = vld [vmem:[%s2105_s22 + $0x1c18] sm:$0xff] }
  0x48   : > { %348 = vst [vmem:[%s2113_s23 + $0x378] sm:$0xff] %v347_v47  ;;  %350 = vst [vmem:[%s2113_s23 + $0x380] sm:$0xff] %v349_v48  ;;  %v357_v52 = vld [vmem:[%s2105_s22 + $0x1c20] sm:$0xff]  ;;  %v359_v53 = vld [vmem:[%s2105_s22 + $0x1c28] sm:$0xff] }
  0x49   : > { %352 = vst [vmem:[%s2113_s23 + $0x388] sm:$0xff] %v351_v49  ;;  %354 = vst [vmem:[%s2113_s23 + $0x390] sm:$0xff] %v353_v50  ;;  %v361_v54 = vld [vmem:[%s2105_s22 + $0x1c30] sm:$0xff]  ;;  %v363_v55 = vld [vmem:[%s2105_s22 + $0x1c38] sm:$0xff] }
  0x4a   : > { %356 = vst [vmem:[%s2113_s23 + $0x398] sm:$0xff] %v355_v51  ;;  %358 = vst [vmem:[%s2113_s23 + $0x3a0] sm:$0xff] %v357_v52  ;;  %v365_v56 = vld [vmem:[%s2105_s22 + $0x1e00] sm:$0xff]  ;;  %v367_v57 = vld [vmem:[%s2105_s22 + $0x1e08] sm:$0xff] }
  0x4b   : > { %360 = vst [vmem:[%s2113_s23 + $0x3a8] sm:$0xff] %v359_v53  ;;  %362 = vst [vmem:[%s2113_s23 + $0x3b0] sm:$0xff] %v361_v54  ;;  %v369_v58 = vld [vmem:[%s2105_s22 + $0x1e10] sm:$0xff]  ;;  %v371_v59 = vld [vmem:[%s2105_s22 + $0x1e18] sm:$0xff] }
  0x4c   : > { %364 = vst [vmem:[%s2113_s23 + $0x3b8] sm:$0xff] %v363_v55  ;;  %366 = vst [vmem:[%s2113_s23 + $0x3c0] sm:$0xff] %v365_v56  ;;  %v373_v60 = vld [vmem:[%s2105_s22 + $0x1e20] sm:$0xff]  ;;  %v375_v61 = vld [vmem:[%s2105_s22 + $0x1e28] sm:$0xff] }
  0x4d   : > { %368 = vst [vmem:[%s2113_s23 + $0x3c8] sm:$0xff] %v367_v57  ;;  %370 = vst [vmem:[%s2113_s23 + $0x3d0] sm:$0xff] %v369_v58  ;;  %v377_v62 = vld [vmem:[%s2105_s22 + $0x1e30] sm:$0xff]  ;;  %v379_v63 = vld [vmem:[%s2105_s22 + $0x1e38] sm:$0xff] }
  0x4e   : > { %372 = vst [vmem:[%s2113_s23 + $0x3d8] sm:$0xff] %v371_v59  ;;  %374 = vst [vmem:[%s2113_s23 + $0x3e0] sm:$0xff] %v373_v60  ;;  %v381_v0 = vld [vmem:[%s2105_s22 + $0x2000] sm:$0xff]  ;;  %v383_v1 = vld [vmem:[%s2105_s22 + $0x2008] sm:$0xff] }
  0x4f   : > { %376 = vst [vmem:[%s2113_s23 + $0x3e8] sm:$0xff] %v375_v61  ;;  %378 = vst [vmem:[%s2113_s23 + $0x3f0] sm:$0xff] %v377_v62  ;;  %v385_v2 = vld [vmem:[%s2105_s22 + $0x2010] sm:$0xff]  ;;  %v387_v3 = vld [vmem:[%s2105_s22 + $0x2018] sm:$0xff] }
  0x50   : > { %380 = vst [vmem:[%s2113_s23 + $0x3f8] sm:$0xff] %v379_v63  ;;  %382 = vst [vmem:[%s2113_s23 + $0x400] sm:$0xff] %v381_v0  ;;  %v389_v4 = vld [vmem:[%s2105_s22 + $0x2020] sm:$0xff]  ;;  %v391_v5 = vld [vmem:[%s2105_s22 + $0x2028] sm:$0xff] }
  0x51   : > { %384 = vst [vmem:[%s2113_s23 + $0x408] sm:$0xff] %v383_v1  ;;  %386 = vst [vmem:[%s2113_s23 + $0x410] sm:$0xff] %v385_v2  ;;  %v393_v6 = vld [vmem:[%s2105_s22 + $0x2030] sm:$0xff]  ;;  %v395_v7 = vld [vmem:[%s2105_s22 + $0x2038] sm:$0xff] }
  0x52   : > { %388 = vst [vmem:[%s2113_s23 + $0x418] sm:$0xff] %v387_v3  ;;  %390 = vst [vmem:[%s2113_s23 + $0x420] sm:$0xff] %v389_v4  ;;  %v397_v8 = vld [vmem:[%s2105_s22 + $0x2200] sm:$0xff]  ;;  %v399_v9 = vld [vmem:[%s2105_s22 + $0x2208] sm:$0xff] }
  0x53   : > { %392 = vst [vmem:[%s2113_s23 + $0x428] sm:$0xff] %v391_v5  ;;  %394 = vst [vmem:[%s2113_s23 + $0x430] sm:$0xff] %v393_v6  ;;  %v401_v10 = vld [vmem:[%s2105_s22 + $0x2210] sm:$0xff]  ;;  %v403_v11 = vld [vmem:[%s2105_s22 + $0x2218] sm:$0xff] }
  0x54   : > { %396 = vst [vmem:[%s2113_s23 + $0x438] sm:$0xff] %v395_v7  ;;  %398 = vst [vmem:[%s2113_s23 + $0x440] sm:$0xff] %v397_v8  ;;  %v405_v12 = vld [vmem:[%s2105_s22 + $0x2220] sm:$0xff]  ;;  %v407_v13 = vld [vmem:[%s2105_s22 + $0x2228] sm:$0xff] }
  0x55   : > { %400 = vst [vmem:[%s2113_s23 + $0x448] sm:$0xff] %v399_v9  ;;  %402 = vst [vmem:[%s2113_s23 + $0x450] sm:$0xff] %v401_v10  ;;  %v409_v14 = vld [vmem:[%s2105_s22 + $0x2230] sm:$0xff]  ;;  %v411_v15 = vld [vmem:[%s2105_s22 + $0x2238] sm:$0xff] }
  0x56   : > { %404 = vst [vmem:[%s2113_s23 + $0x458] sm:$0xff] %v403_v11  ;;  %406 = vst [vmem:[%s2113_s23 + $0x460] sm:$0xff] %v405_v12 }
  0x57   : > { %408 = vst [vmem:[%s2113_s23 + $0x468] sm:$0xff] %v407_v13  ;;  %410 = vst [vmem:[%s2113_s23 + $0x470] sm:$0xff] %v409_v14 }
  0x58   : > { %412 = vst [vmem:[%s2113_s23 + $0x478] sm:$0xff] %v411_v15 }
  0x59 PF: > { %p1828_p5 = scmp.ge.s32.totalorder %s2054_s11, 1  ;;  %p417_p6 = scmp.lt.s32.totalorder %s2054_s11, 9 }
  0x5b   : > { %p418_p7 = pnand %p1828_p5, %p417_p6 }
  0x5c   : > { %s424_s24 = sand.u32 (!%p418_p7), 1, %s2046_s9   ;;  %s1829_s29 = sshll.u32 (!%p418_p7), %s1822_s12, 4 }
  0x5d   : > { %421 = sbr.rel (%p418_p7) target bundleno = 449 (0x1c1), region = 47  ;;  %p447_p8 = scmp.lt.s32.totalorder (!%p418_p7), %s1829_s29, 127 }
  0x5e   : > { %s2005_s27 = smul.u32 (!%p418_p7), 1152, %s424_s24 }
  0x60   : > { %s2413_s28 = scalar_lea.vmem (!%p418_p7), [#allocation2], %s2005_s27 }
  0x62   : > { %v2403_v16 = vld [vmem:[%s2608_s0] sm:$0xff]  ;;  %vm1324_vm0 = vcmask 130048   ;;  %v567_v20 = vld [vmem:[%s2413_s28 + $0x388] sm:$0xff]  ;;  %s2615_s29 = smov (!%p447_p8, %s1829_s29), 127 }
  0x63   : > { %v2407_v17 = vcombine.high %v2403_v16, %v2403_v16  ;;  %v566_v18 = vld [vmem:[%s2413_s28 + $0x380] sm:$0xff]  ;;  %v575_v22 = vld [vmem:[%s2413_s28 + $0x3c8] sm:$0xff]  ;;  %s1830_s30 = sshll.u32 %s2615_s29, 2 }
  0x64   : > { %v574_v19 = vld [vmem:[%s2413_s28 + $0x3c0] sm:$0xff]  ;;  %v1948_v26 = vcombine.high %v567_v20, %v575_v22  ;;  %v1947_v27 = vcombine.low %v567_v20, %v575_v22  ;;  %v551_v29 = vld [vmem:[%s2413_s28 + $0x308] sm:$0xff]  ;;  %s2588_s5 = scalar_lea.vmem %s2610_s2, %s1830_s30 }
  0x65   : > { %1977 = vmatprep.mubr.msk.bf16.mxu0 %vm1324_vm0, %v2407_v17  ;;  %1978 = vmatprep.mubr.msk.bf16.mxu1 %vm1324_vm0, %v2407_v17  ;;  %v1946_v21 = vcombine.high %v566_v18, %v574_v19  ;;  %v1945_v23 = vcombine.low %v566_v18, %v574_v19  ;;  %v550_v24 = vld [vmem:[%s2413_s28 + $0x300] sm:$0xff]  ;;  %v559_v30 = vld [vmem:[%s2413_s28 + $0x348] sm:$0xff] }
  0x66   : > { %v558_v25 = vld [vmem:[%s2413_s28 + $0x340] sm:$0xff]  ;;  %v1932_v32 = vcombine.high %v551_v29, %v559_v30  ;;  %v535_v34 = vld [vmem:[%s2413_s28 + $0x288] sm:$0xff]  ;;  %1369 = vmatprep.subr.bf16.mxu1 %v1948_v26  ;;  %v1931_v37 = vcombine.low %v551_v29, %v559_v30  ;;  %v568_v26 = vld [vmem:[%s2413_s28 + $0x390] sm:$0xff] }
  0x67   : > { %v1930_v28 = vcombine.high %v550_v24, %v558_v25  ;;  %v534_v31 = vld [vmem:[%s2413_s28 + $0x280] sm:$0xff]  ;;  %1328 = vmatprep.subr.bf16.mxu0 %v1946_v21  ;;  %v543_v35 = vld [vmem:[%s2413_s28 + $0x2c8] sm:$0xff]  ;;  %v1929_v36 = vcombine.low %v550_v24, %v558_v25  ;;  %1370 = vmatpush1.bf16.msra.mxu1 %v1947_v27  ;;  %v576_v27 = vld [vmem:[%s2413_s28 + $0x3d0] sm:$0xff] }
  0x68   : > { %v542_v33 = vld [vmem:[%s2413_s28 + $0x2c0] sm:$0xff]  ;;  %1329 = vmatpush1.bf16.msra.mxu0 %v1945_v23  ;;  %1371 = vmatprep.subr.bf16.mxu1 %v1932_v32  ;;  %v1916_v39 = vcombine.high %v535_v34, %v543_v35  ;;  %v519_v42 = vld [vmem:[%s2413_s28 + $0x208] sm:$0xff]  ;;  %v1915_v45 = vcombine.low %v535_v34, %v543_v35  ;;  %v577_v29 = vld [vmem:[%s2413_s28 + $0x3d8] sm:$0xff]  ;;  %v1950_v32 = vcombine.high %v568_v26, %v576_v27 }
  0x69   : > { %1330 = vmatprep.subr.bf16.mxu0 %v1930_v28  ;;  %v1914_v38 = vcombine.high %v534_v31, %v542_v33  ;;  %v518_v40 = vld [vmem:[%s2413_s28 + $0x200] sm:$0xff]  ;;  %v527_v43 = vld [vmem:[%s2413_s28 + $0x248] sm:$0xff]  ;;  %v1913_v44 = vcombine.low %v534_v31, %v542_v33  ;;  %v569_v28 = vld [vmem:[%s2413_s28 + $0x398] sm:$0xff] }
  0x6a   : > { %v526_v41 = vld [vmem:[%s2413_s28 + $0x240] sm:$0xff]  ;;  %v1900_v47 = vcombine.high %v519_v42, %v527_v43  ;;  %v503_v50 = vld [vmem:[%s2413_s28 + $0x188] sm:$0xff]  ;;  %v1899_v53 = vcombine.low %v519_v42, %v527_v43  ;;  %v1952_v33 = vcombine.high %v569_v28, %v577_v29  ;;  %v552_v34 = vld [vmem:[%s2413_s28 + $0x310] sm:$0xff] }
  0x6b   : > { %1372 = vmatpush1.bf16.msra.mxu1 %v1931_v37  ;;  %v1898_v46 = vcombine.high %v518_v40, %v526_v41  ;;  %v502_v48 = vld [vmem:[%s2413_s28 + $0x180] sm:$0xff]  ;;  %v511_v51 = vld [vmem:[%s2413_s28 + $0x1c8] sm:$0xff]  ;;  %v1897_v52 = vcombine.low %v518_v40, %v526_v41  ;;  %v560_v35 = vld [vmem:[%s2413_s28 + $0x350] sm:$0xff]  ;;  %v1951_v40 = vcombine.low %v569_v28, %v577_v29 }
  0x6c   : > { %1331 = vmatpush1.bf16.msra.mxu0 %v1929_v36  ;;  %1373 = vmatprep.subr.bf16.mxu1 %v1916_v39  ;;  %v510_v49 = vld [vmem:[%s2413_s28 + $0x1c0] sm:$0xff]  ;;  %v1884_v55 = vcombine.high %v503_v50, %v511_v51  ;;  %v487_v58 = vld [vmem:[%s2413_s28 + $0x108] sm:$0xff]  ;;  %v1883_v61 = vcombine.low %v503_v50, %v511_v51  ;;  %v2459_v36 = vcombine.low %v2403_v16, %v2403_v16  ;;  %v553_v37 = vld [vmem:[%s2413_s28 + $0x318] sm:$0xff] }
  0x6d   : > { %1332 = vmatprep.subr.bf16.mxu0 %v1914_v38  ;;  %v1882_v54 = vcombine.high %v502_v48, %v510_v49  ;;  %v486_v56 = vld [vmem:[%s2413_s28 + $0x100] sm:$0xff]  ;;  %v495_v59 = vld [vmem:[%s2413_s28 + $0x148] sm:$0xff]  ;;  %v1881_v60 = vcombine.low %v502_v48, %v510_v49  ;;  %v561_v38 = vld [vmem:[%s2413_s28 + $0x358] sm:$0xff]  ;;  %v1949_v39 = vcombine.low %v568_v26, %v576_v27  ;;  %v1934_v41 = vcombine.high %v552_v34, %v560_v35 }
  0x6e   : > { %v494_v57 = vld [vmem:[%s2413_s28 + $0x140] sm:$0xff]  ;;  %v1868_v63 = vcombine.high %v487_v58, %v495_v59  ;;  %v471_v2 = vld [vmem:[%s2413_s28 + $0x88] sm:$0xff]  ;;  %v1867_v5 = vcombine.low %v487_v58, %v495_v59  ;;  %v1936_v42 = vcombine.high %v553_v37, %v561_v38  ;;  %v536_v43 = vld [vmem:[%s2413_s28 + $0x290] sm:$0xff] }
  0x6f   : > { %1374 = vmatpush1.bf16.msra.mxu1 %v1915_v45  ;;  %v1866_v62 = vcombine.high %v486_v56, %v494_v57  ;;  %v470_v0 = vld [vmem:[%s2413_s28 + $0x80] sm:$0xff]  ;;  %v479_v3 = vld [vmem:[%s2413_s28 + $0xc8] sm:$0xff]  ;;  %v1865_v4 = vcombine.low %v486_v56, %v494_v57  ;;  %v537_v16 = vld [vmem:[%s2413_s28 + $0x298] sm:$0xff] }
  0x70   : > { %1333 = vmatpush1.bf16.msra.mxu0 %v1913_v44  ;;  %1375 = vmatprep.subr.bf16.mxu1 %v1900_v47  ;;  %v478_v1 = vld [vmem:[%s2413_s28 + $0xc0] sm:$0xff]  ;;  %v1852_v7 = vcombine.high %v471_v2, %v479_v3  ;;  %v455_v10 = vld [vmem:[%s2413_s28 + $0x8] sm:$0xff]  ;;  %v1851_v13 = vcombine.low %v471_v2, %v479_v3  ;;  %v544_v44 = vld [vmem:[%s2413_s28 + $0x2d0] sm:$0xff]  ;;  %v1935_v47 = vcombine.low %v553_v37, %v561_v38 }
  0x71   : > { %1334 = vmatprep.subr.bf16.mxu0 %v1898_v46  ;;  %v1850_v6 = vcombine.high %v470_v0, %v478_v1  ;;  %v454_v8 = vld [vmem:[%s2413_s28] sm:$0xff]  ;;  %v463_v11 = vld [vmem:[%s2413_s28 + $0x48] sm:$0xff]  ;;  %v1849_v12 = vcombine.low %v470_v0, %v478_v1  ;;  %v545_v45 = vld [vmem:[%s2413_s28 + $0x2d8] sm:$0xff]  ;;  %v1933_v46 = vcombine.low %v552_v34, %v560_v35  ;;  %v1918_v48 = vcombine.high %v536_v43, %v544_v44 }
  0x72   : > { %v462_v9 = vld [vmem:[%s2413_s28 + $0x40] sm:$0xff]  ;;  %v1836_v15 = vcombine.high %v455_v10, %v463_v11  ;;  %v583_v20 = vld [vmem:[%s2413_s28 + $0x408] sm:$0xff]  ;;  %v1835_v23 = vcombine.low %v455_v10, %v463_v11  ;;  %v1920_v49 = vcombine.high %v537_v16, %v545_v45  ;;  %v520_v50 = vld [vmem:[%s2413_s28 + $0x210] sm:$0xff] }
  0x73   : > { %1376 = vmatpush1.bf16.msra.mxu1 %v1899_v53  ;;  %v1834_v14 = vcombine.high %v454_v8, %v462_v9  ;;  %v582_v18 = vld [vmem:[%s2413_s28 + $0x400] sm:$0xff]  ;;  %v591_v21 = vld [vmem:[%s2413_s28 + $0x448] sm:$0xff]  ;;  %v1833_v22 = vcombine.low %v454_v8, %v462_v9  ;;  %v528_v51 = vld [vmem:[%s2413_s28 + $0x250] sm:$0xff] }
  0x74   : > { %1335 = vmatpush1.bf16.msra.mxu0 %v1897_v52  ;;  %1377 = vmatprep.subr.bf16.mxu1 %v1884_v55  ;;  %v590_v19 = vld [vmem:[%s2413_s28 + $0x440] sm:$0xff]  ;;  %v1964_v25 = vcombine.high %v583_v20, %v591_v21  ;;  %v1963_v31 = vcombine.low %v583_v20, %v591_v21  ;;  %v521_v52 = vld [vmem:[%s2413_s28 + $0x218] sm:$0xff]  ;;  %v1919_v55 = vcombine.low %v537_v16, %v545_v45  ;;  %v504_v58 = vld [vmem:[%s2413_s28 + $0x190] sm:$0xff] }
  0x75   : > { %1336 = vmatprep.subr.bf16.mxu0 %v1882_v54  ;;  %v1962_v24 = vcombine.high %v582_v18, %v590_v19  ;;  %v1961_v30 = vcombine.low %v582_v18, %v590_v19  ;;  %v529_v53 = vld [vmem:[%s2413_s28 + $0x258] sm:$0xff]  ;;  %v1917_v54 = vcombine.low %v536_v43, %v544_v44  ;;  %v1902_v56 = vcombine.high %v520_v50, %v528_v51  ;;  %v512_v59 = vld [vmem:[%s2413_s28 + $0x1d0] sm:$0xff]  ;;  %v570_v37 = vld [vmem:[%s2413_s28 + $0x3a0] sm:$0xff] }
  0x76   : > { %v1904_v57 = vcombine.high %v521_v52, %v529_v53  ;;  %v1886_v0 = vcombine.high %v504_v58, %v512_v59  ;;  %v488_v2 = vld [vmem:[%s2413_s28 + $0x110] sm:$0xff]  ;;  %v578_v38 = vld [vmem:[%s2413_s28 + $0x3e0] sm:$0xff] }
  0x77   : > { %1378 = vmatpush1.bf16.msra.mxu1 %v1883_v61  ;;  %v513_v61 = vld [vmem:[%s2413_s28 + $0x1d8] sm:$0xff]  ;;  %v496_v3 = vld [vmem:[%s2413_s28 + $0x150] sm:$0xff]  ;;  %v1954_v43 = vcombine.high %v570_v37, %v578_v38  ;;  %v554_v16 = vld [vmem:[%s2413_s28 + $0x320] sm:$0xff] }
  0x78   : > { %1337 = vmatpush1.bf16.msra.mxu0 %v1881_v60  ;;  %1379 = vmatprep.subr.bf16.mxu1 %v1868_v63  ;;  %v505_v60 = vld [vmem:[%s2413_s28 + $0x198] sm:$0xff]  ;;  %v1903_v63 = vcombine.low %v521_v52, %v529_v53  ;;  %v1870_v8 = vcombine.high %v488_v2, %v496_v3  ;;  %v472_v10 = vld [vmem:[%s2413_s28 + $0x90] sm:$0xff]  ;;  %v562_v45 = vld [vmem:[%s2413_s28 + $0x360] sm:$0xff] }
  0x79   : > { %1338 = vmatprep.subr.bf16.mxu0 %v1866_v62  ;;  %v1901_v62 = vcombine.low %v520_v50, %v528_v51  ;;  %v1888_v1 = vcombine.high %v505_v60, %v513_v61  ;;  %v480_v11 = vld [vmem:[%s2413_s28 + $0xd0] sm:$0xff]  ;;  %v1938_v50 = vcombine.high %v554_v16, %v562_v45  ;;  %v538_v52 = vld [vmem:[%s2413_s28 + $0x2a0] sm:$0xff] }
  0x7a   : > { %v1854_v18 = vcombine.high %v472_v10, %v480_v11  ;;  %v456_v20 = vld [vmem:[%s2413_s28 + $0x10] sm:$0xff]  ;;  %v546_v53 = vld [vmem:[%s2413_s28 + $0x2e0] sm:$0xff] }
  0x7b   : > { %1380 = vmatpush1.bf16.msra.mxu1 %v1867_v5  ;;  %v497_v5 = vld [vmem:[%s2413_s28 + $0x158] sm:$0xff]  ;;  %v464_v21 = vld [vmem:[%s2413_s28 + $0x50] sm:$0xff] }
  0x7c   : > { %1339 = vmatpush1.bf16.msra.mxu0 %v1865_v4  ;;  %1381 = vmatprep.subr.bf16.mxu1 %v1852_v7  ;;  %v489_v4 = vld [vmem:[%s2413_s28 + $0x118] sm:$0xff]  ;;  %v1887_v7 = vcombine.low %v505_v60, %v513_v61  ;;  %v1838_v26 = vcombine.high %v456_v20, %v464_v21  ;;  %v584_v28 = vld [vmem:[%s2413_s28 + $0x410] sm:$0xff]  ;;  %v522_v60 = vld [vmem:[%s2413_s28 + $0x220] sm:$0xff] }
  0x7d   : > { %1340 = vmatprep.subr.bf16.mxu0 %v1850_v6  ;;  %v1885_v6 = vcombine.low %v504_v58, %v512_v59  ;;  %v1872_v9 = vcombine.high %v489_v4, %v497_v5  ;;  %v592_v29 = vld [vmem:[%s2413_s28 + $0x450] sm:$0xff]  ;;  %v1922_v58 = vcombine.high %v538_v52, %v546_v53  ;;  %v530_v61 = vld [vmem:[%s2413_s28 + $0x260] sm:$0xff] }
  0x7e   : > { %v1966_v34 = vcombine.high %v584_v28, %v592_v29 }
  0x7f   : > { %1382 = vmatpush1.bf16.msra.mxu1 %v1851_v13  ;;  %v481_v13 = vld [vmem:[%s2413_s28 + $0xd8] sm:$0xff] }
  0x80   : > { %1341 = vmatpush1.bf16.msra.mxu0 %v1849_v12  ;;  %1383 = vmatprep.subr.bf16.mxu1 %v1836_v15  ;;  %v473_v12 = vld [vmem:[%s2413_s28 + $0x98] sm:$0xff]  ;;  %v1871_v15 = vcombine.low %v489_v4, %v497_v5  ;;  %v506_v4 = vld [vmem:[%s2413_s28 + $0x1a0] sm:$0xff] }
  0x81   : > { %1342 = vmatprep.subr.bf16.mxu0 %v1834_v14  ;;  %v1869_v14 = vcombine.low %v488_v2, %v496_v3  ;;  %v1856_v19 = vcombine.high %v473_v12, %v481_v13  ;;  %v1906_v2 = vcombine.high %v522_v60, %v530_v61  ;;  %v514_v5 = vld [vmem:[%s2413_s28 + $0x1e0] sm:$0xff] }
  0x83   : > { %1384 = vmatpush1.bf16.msra.mxu1 %v1835_v23  ;;  %v465_v23 = vld [vmem:[%s2413_s28 + $0x58] sm:$0xff] }
  0x84   : > { %1343 = vmatpush1.bf16.msra.mxu0 %v1833_v22  ;;  %1399 = vmatprep.subr.bf16.mxu1 %v1964_v25  ;;  %v457_v22 = vld [vmem:[%s2413_s28 + $0x18] sm:$0xff]  ;;  %v1855_v25 = vcombine.low %v473_v12, %v481_v13  ;;  %v490_v12 = vld [vmem:[%s2413_s28 + $0x120] sm:$0xff] }
  0x85   : > { %1358 = vmatprep.subr.bf16.mxu0 %v1962_v24  ;;  %v1853_v24 = vcombine.low %v472_v10, %v480_v11  ;;  %v1840_v27 = vcombine.high %v457_v22, %v465_v23  ;;  %v1890_v10 = vcombine.high %v506_v4, %v514_v5  ;;  %v498_v13 = vld [vmem:[%s2413_s28 + $0x160] sm:$0xff] }
  0x87   : > { %1400 = vmatpush2.bf16.msra.mxu1 %v1963_v31  ;;  %v593_v31 = vld [vmem:[%s2413_s28 + $0x458] sm:$0xff] }
  0x88   : > { %1359 = vmatpush2.bf16.msra.mxu0 %v1961_v30  ;;  %1451 = vmatprep.subr.bf16.mxu1 %v1952_v33  ;;  %v585_v30 = vld [vmem:[%s2413_s28 + $0x418] sm:$0xff]  ;;  %v1839_v33 = vcombine.low %v457_v22, %v465_v23  ;;  %v474_v22 = vld [vmem:[%s2413_s28 + $0xa0] sm:$0xff] }
  0x89   : > { %1410 = vmatprep.subr.bf16.mxu0 %v1950_v32  ;;  %v1837_v32 = vcombine.low %v456_v20, %v464_v21  ;;  %v1968_v35 = vcombine.high %v585_v30, %v593_v31  ;;  %v1874_v20 = vcombine.high %v490_v12, %v498_v13  ;;  %v482_v23 = vld [vmem:[%s2413_s28 + $0xe0] sm:$0xff] }
  0x8a   : > { %1402 = vmatmul.mubr.bf16.vlgmr.msra.gmra.mxu1 %v2459_v36 }
  0x8b   : > { %1361 = vmatmul.mubr.bf16.vlgmr.msra.gmra.mxu0 %v2459_v36  ;;  %1452 = vmatpush1.bf16.msra.mxu1 %v1951_v40  ;;  %v579_v40 = vld [vmem:[%s2413_s28 + $0x3e8] sm:$0xff] }
  0x8c   : > { %1411 = vmatpush1.bf16.msra.mxu0 %v1949_v39  ;;  %1453 = vmatprep.subr.bf16.mxu1 %v1936_v42  ;;  %v571_v39 = vld [vmem:[%s2413_s28 + $0x3a8] sm:$0xff]  ;;  %v1967_v42 = vcombine.low %v585_v30, %v593_v31  ;;  %v458_v30 = vld [vmem:[%s2413_s28 + $0x20] sm:$0xff] }
  0x8d   : > { %1412 = vmatprep.subr.bf16.mxu0 %v1934_v41  ;;  %1979 = vmatprep.mubr.msk.bf16.mxu0 %vm1324_vm0, %v2407_v17  ;;  %v1965_v41 = vcombine.low %v584_v28, %v592_v29  ;;  %v1956_v44 = vcombine.high %v571_v39, %v579_v40  ;;  %v1858_v28 = vcombine.high %v474_v22, %v482_v23  ;;  %v466_v31 = vld [vmem:[%s2413_s28 + $0x60] sm:$0xff] }
  0x8e   : > { %1980 = vmatprep.mubr.msk.bf16.mxu1 %vm1324_vm0, %v2407_v17 }
  0x8f   : > { %1454 = vmatpush1.bf16.msra.mxu1 %v1935_v47  ;;  %v563_v47 = vld [vmem:[%s2413_s28 + $0x368] sm:$0xff] }
  0x90   : > { %1413 = vmatpush1.bf16.msra.mxu0 %v1933_v46  ;;  %1455 = vmatprep.subr.bf16.mxu1 %v1920_v49  ;;  %v555_v46 = vld [vmem:[%s2413_s28 + $0x328] sm:$0xff]  ;;  %v1955_v49 = vcombine.low %v571_v39, %v579_v40  ;;  %v586_v39 = vld [vmem:[%s2413_s28 + $0x420] sm:$0xff] }
  0x91   : > { %1414 = vmatprep.subr.bf16.mxu0 %v1918_v48  ;;  %v1953_v48 = vcombine.low %v570_v37, %v578_v38  ;;  %v1940_v51 = vcombine.high %v555_v46, %v563_v47  ;;  %v1842_v37 = vcombine.high %v458_v30, %v466_v31  ;;  %v594_v40 = vld [vmem:[%s2413_s28 + $0x460] sm:$0xff] }
  0x93   : > { %1456 = vmatpush1.bf16.msra.mxu1 %v1919_v55  ;;  %v547_v55 = vld [vmem:[%s2413_s28 + $0x2e8] sm:$0xff] }
  0x94   : > { %1415 = vmatpush1.bf16.msra.mxu0 %v1917_v54  ;;  %1457 = vmatprep.subr.bf16.mxu1 %v1904_v57  ;;  %v539_v54 = vld [vmem:[%s2413_s28 + $0x2a8] sm:$0xff]  ;;  %v1939_v57 = vcombine.low %v555_v46, %v563_v47  ;;  %v572_v46 = vld [vmem:[%s2413_s28 + $0x3b0] sm:$0xff] }
  0x95   : > { %1416 = vmatprep.subr.bf16.mxu0 %v1902_v56  ;;  %v1937_v56 = vcombine.low %v554_v16, %v562_v45  ;;  %v1924_v59 = vcombine.high %v539_v54, %v547_v55  ;;  %v1970_v16 = vcombine.high %v586_v39, %v594_v40  ;;  %v580_v47 = vld [vmem:[%s2413_s28 + $0x3f0] sm:$0xff] }
  0x97   : > { %1458 = vmatpush1.bf16.msra.mxu1 %v1903_v63  ;;  %v531_v63 = vld [vmem:[%s2413_s28 + $0x268] sm:$0xff] }
  0x98   : > { %1417 = vmatpush1.bf16.msra.mxu0 %v1901_v62  ;;  %1459 = vmatprep.subr.bf16.mxu1 %v1888_v1  ;;  %v523_v62 = vld [vmem:[%s2413_s28 + $0x228] sm:$0xff]  ;;  %v1923_v1 = vcombine.low %v539_v54, %v547_v55  ;;  %v556_v54 = vld [vmem:[%s2413_s28 + $0x330] sm:$0xff] }
  0x99   : > { %1418 = vmatprep.subr.bf16.mxu0 %v1886_v0  ;;  %v1921_v0 = vcombine.low %v538_v52, %v546_v53  ;;  %v1908_v3 = vcombine.high %v523_v62, %v531_v63  ;;  %v1958_v52 = vcombine.high %v572_v46, %v580_v47  ;;  %v564_v55 = vld [vmem:[%s2413_s28 + $0x370] sm:$0xff] }
  0x9b   : > { %1460 = vmatpush1.bf16.msra.mxu1 %v1887_v7  ;;  %v515_v7 = vld [vmem:[%s2413_s28 + $0x1e8] sm:$0xff] }
  0x9c   : > { %1419 = vmatpush1.bf16.msra.mxu0 %v1885_v6  ;;  %1461 = vmatprep.subr.bf16.mxu1 %v1872_v9  ;;  %v507_v6 = vld [vmem:[%s2413_s28 + $0x1a8] sm:$0xff]  ;;  %v1907_v9 = vcombine.low %v523_v62, %v531_v63  ;;  %v540_v62 = vld [vmem:[%s2413_s28 + $0x2b0] sm:$0xff] }
  0x9d   : > { %1420 = vmatprep.subr.bf16.mxu0 %v1870_v8  ;;  %v1905_v8 = vcombine.low %v522_v60, %v530_v61  ;;  %v1892_v11 = vcombine.high %v507_v6, %v515_v7  ;;  %v1942_v60 = vcombine.high %v556_v54, %v564_v55  ;;  %v548_v63 = vld [vmem:[%s2413_s28 + $0x2f0] sm:$0xff] }
  0x9f   : > { %1462 = vmatpush1.bf16.msra.mxu1 %v1871_v15  ;;  %v499_v15 = vld [vmem:[%s2413_s28 + $0x168] sm:$0xff] }
  0xa0   : > { %1421 = vmatpush1.bf16.msra.mxu0 %v1869_v14  ;;  %1463 = vmatprep.subr.bf16.mxu1 %v1856_v19  ;;  %v491_v14 = vld [vmem:[%s2413_s28 + $0x128] sm:$0xff]  ;;  %v1891_v19 = vcombine.low %v507_v6, %v515_v7  ;;  %v524_v6 = vld [vmem:[%s2413_s28 + $0x230] sm:$0xff] }
  0xa1   : > { %1422 = vmatprep.subr.bf16.mxu0 %v1854_v18  ;;  %v1889_v18 = vcombine.low %v506_v4, %v514_v5  ;;  %v1876_v21 = vcombine.high %v491_v14, %v499_v15  ;;  %v1926_v4 = vcombine.high %v540_v62, %v548_v63  ;;  %v532_v7 = vld [vmem:[%s2413_s28 + $0x270] sm:$0xff] }
  0xa3   : > { %1464 = vmatpush1.bf16.msra.mxu1 %v1855_v25  ;;  %v483_v25 = vld [vmem:[%s2413_s28 + $0xe8] sm:$0xff] }
  0xa4   : > { %1423 = vmatpush1.bf16.msra.mxu0 %v1853_v24  ;;  %1465 = vmatprep.subr.bf16.mxu1 %v1840_v27  ;;  %v475_v24 = vld [vmem:[%s2413_s28 + $0xa8] sm:$0xff]  ;;  %v1875_v27 = vcombine.low %v491_v14, %v499_v15  ;;  %v508_v14 = vld [vmem:[%s2413_s28 + $0x1b0] sm:$0xff] }
  0xa5   : > { %1424 = vmatprep.subr.bf16.mxu0 %v1838_v26  ;;  %v1873_v26 = vcombine.low %v490_v12, %v498_v13  ;;  %v1860_v29 = vcombine.high %v475_v24, %v483_v25  ;;  %v1910_v12 = vcombine.high %v524_v6, %v532_v7  ;;  %v516_v15 = vld [vmem:[%s2413_s28 + $0x1f0] sm:$0xff] }
  0xa7   : > { %1466 = vmatpush1.bf16.msra.mxu1 %v1839_v33  ;;  %v467_v33 = vld [vmem:[%s2413_s28 + $0x68] sm:$0xff] }
  0xa8   : > { %1425 = vmatpush1.bf16.msra.mxu0 %v1837_v32  ;;  %1481 = vmatprep.subr.bf16.mxu1 %v1968_v35  ;;  %v459_v32 = vld [vmem:[%s2413_s28 + $0x28] sm:$0xff]  ;;  %v1859_v35 = vcombine.low %v475_v24, %v483_v25  ;;  %v500_v24 = vld [vmem:[%s2413_s28 + $0x170] sm:$0xff]  ;;  %v493_v25 = vld [vmem:[%s2413_s28 + $0x138] sm:$0xff] }
  0xa9   : > { %1440 = vmatprep.subr.bf16.mxu0 %v1966_v34  ;;  %v1857_v34 = vcombine.low %v474_v22, %v482_v23  ;;  %v1844_v38 = vcombine.high %v459_v32, %v467_v33  ;;  %v492_v23 = vld [vmem:[%s2413_s28 + $0x130] sm:$0xff] }
  0xab   : > { %1482 = vmatpush2.bf16.msra.mxu1 %v1967_v42  ;;  %v595_v42 = vld [vmem:[%s2413_s28 + $0x468] sm:$0xff] }
  0xac   : > { %1441 = vmatpush2.bf16.msra.mxu0 %v1965_v41  ;;  %1533 = vmatprep.subr.bf16.mxu1 %v1956_v44  ;;  %v587_v41 = vld [vmem:[%s2413_s28 + $0x428] sm:$0xff]  ;;  %v1843_v44 = vcombine.low %v459_v32, %v467_v33  ;;  %v484_v32 = vld [vmem:[%s2413_s28 + $0xf0] sm:$0xff]  ;;  %v477_v33 = vld [vmem:[%s2413_s28 + $0xb8] sm:$0xff] }
  0xad   : > { %1492 = vmatprep.subr.bf16.mxu0 %v1954_v43  ;;  %v1841_v43 = vcombine.low %v458_v30, %v466_v31  ;;  %v1972_v45 = vcombine.high %v587_v41, %v595_v42  ;;  %v476_v31 = vld [vmem:[%s2413_s28 + $0xb0] sm:$0xff] }
  0xae   : > { %1484 = vmatmul.mubr.bf16.vlgmr.msra.gmra.mxu1 %v2459_v36 }
  0xaf   : > { %1443 = vmatmul.mubr.bf16.vlgmr.msra.gmra.mxu0 %v2459_v36  ;;  %1534 = vmatpush1.bf16.msra.mxu1 %v1955_v49  ;;  %v581_v49 = vld [vmem:[%s2413_s28 + $0x3f8] sm:$0xff] }
  0xb0   : > { %1493 = vmatpush1.bf16.msra.mxu0 %v1953_v48  ;;  %1535 = vmatprep.subr.bf16.mxu1 %v1940_v51  ;;  %v573_v48 = vld [vmem:[%s2413_s28 + $0x3b8] sm:$0xff]  ;;  %v1971_v51 = vcombine.low %v587_v41, %v595_v42  ;;  %v468_v41 = vld [vmem:[%s2413_s28 + $0x70] sm:$0xff] }
  0xb1   : > { %1494 = vmatprep.subr.bf16.mxu0 %v1938_v50  ;;  %1981 = vmatprep.mubr.msk.bf16.mxu0 %vm1324_vm0, %v2407_v17  ;;  %v1969_v50 = vcombine.low %v586_v39, %v594_v40  ;;  %v1960_v53 = vcombine.high %v573_v48, %v581_v49  ;;  %v460_v40 = vld [vmem:[%s2413_s28 + $0x30] sm:$0xff]  ;;  %v461_v42 = vld [vmem:[%s2413_s28 + $0x38] sm:$0xff] }
  0xb2   : > { %1982 = vmatprep.mubr.msk.bf16.mxu1 %vm1324_vm0, %v2407_v17 }
  0xb3   : > { %1536 = vmatpush1.bf16.msra.mxu1 %v1939_v57  ;;  %v565_v57 = vld [vmem:[%s2413_s28 + $0x378] sm:$0xff] }
  0xb4   : > { %1495 = vmatpush1.bf16.msra.mxu0 %v1937_v56  ;;  %1537 = vmatprep.subr.bf16.mxu1 %v1924_v59  ;;  %v557_v56 = vld [vmem:[%s2413_s28 + $0x338] sm:$0xff]  ;;  %v1959_v59 = vcombine.low %v573_v48, %v581_v49  ;;  %v596_v48 = vld [vmem:[%s2413_s28 + $0x470] sm:$0xff] }
  0xb5   : > { %1496 = vmatprep.subr.bf16.mxu0 %v1922_v58  ;;  %v1957_v58 = vcombine.low %v572_v46, %v580_v47  ;;  %v1944_v61 = vcombine.high %v557_v56, %v565_v57  ;;  %v588_v47 = vld [vmem:[%s2413_s28 + $0x430] sm:$0xff]  ;;  %v589_v49 = vld [vmem:[%s2413_s28 + $0x438] sm:$0xff] }
  0xb7   : > { %1538 = vmatpush1.bf16.msra.mxu1 %v1923_v1  ;;  %v549_v1 = vld [vmem:[%s2413_s28 + $0x2f8] sm:$0xff] }
  0xb8   : > { %1497 = vmatpush1.bf16.msra.mxu0 %v1921_v0  ;;  %1539 = vmatprep.subr.bf16.mxu1 %v1908_v3  ;;  %v541_v0 = vld [vmem:[%s2413_s28 + $0x2b8] sm:$0xff]  ;;  %v1943_v3 = vcombine.low %v557_v56, %v565_v57 }
  0xb9   : > { %1498 = vmatprep.subr.bf16.mxu0 %v1906_v2  ;;  %v1941_v2 = vcombine.low %v556_v54, %v564_v55  ;;  %v1928_v5 = vcombine.high %v541_v0, %v549_v1  ;;  %v1973_v55 = vcombine.low %v588_v47, %v596_v48 }
  0xbb   : > { %1540 = vmatpush1.bf16.msra.mxu1 %v1907_v9  ;;  %v533_v9 = vld [vmem:[%s2413_s28 + $0x278] sm:$0xff] }
  0xbc   : > { %1499 = vmatpush1.bf16.msra.mxu0 %v1905_v8  ;;  %1541 = vmatprep.subr.bf16.mxu1 %v1892_v11  ;;  %v525_v8 = vld [vmem:[%s2413_s28 + $0x238] sm:$0xff]  ;;  %v1927_v11 = vcombine.low %v541_v0, %v549_v1 }
  0xbd   : > { %1500 = vmatprep.subr.bf16.mxu0 %v1890_v10  ;;  %v1925_v10 = vcombine.low %v540_v62, %v548_v63  ;;  %v1912_v13 = vcombine.high %v525_v8, %v533_v9 }
  0xbf   : > { %1542 = vmatpush1.bf16.msra.mxu1 %v1891_v19  ;;  %v517_v19 = vld [vmem:[%s2413_s28 + $0x1f8] sm:$0xff] }
  0xc0   : > { %1501 = vmatpush1.bf16.msra.mxu0 %v1889_v18  ;;  %1543 = vmatprep.subr.bf16.mxu1 %v1876_v21  ;;  %v509_v18 = vld [vmem:[%s2413_s28 + $0x1b8] sm:$0xff]  ;;  %v1894_v21 = vcombine.high %v508_v14, %v516_v15 }
  0xc1   : > { %1502 = vmatprep.subr.bf16.mxu0 %v1874_v20  ;;  %v1909_v20 = vcombine.low %v524_v6, %v532_v7  ;;  %v1896_v22 = vcombine.high %v509_v18, %v517_v19 }
  0xc3   : > { %1544 = vmatpush1.bf16.msra.mxu1 %v1875_v27  ;;  %v1893_v27 = vcombine.low %v508_v14, %v516_v15 }
  0xc4   : > { %1503 = vmatpush1.bf16.msra.mxu0 %v1873_v26  ;;  %1545 = vmatprep.subr.bf16.mxu1 %v1860_v29  ;;  %v501_v26 = vld [vmem:[%s2413_s28 + $0x178] sm:$0xff]  ;;  %v1878_v29 = vcombine.high %v492_v23, %v500_v24 }
  0xc5   : > { %1504 = vmatprep.subr.bf16.mxu0 %v1858_v28  ;;  %v1895_v28 = vcombine.low %v509_v18, %v517_v19  ;;  %v1880_v30 = vcombine.high %v493_v25, %v501_v26 }
  0xc7   : > { %1546 = vmatpush1.bf16.msra.mxu1 %v1859_v35  ;;  %v1877_v35 = vcombine.low %v492_v23, %v500_v24 }
  0xc8   : > { %1505 = vmatpush1.bf16.msra.mxu0 %v1857_v34  ;;  %1547 = vmatprep.subr.bf16.mxu1 %v1844_v38  ;;  %v485_v34 = vld [vmem:[%s2413_s28 + $0xf8] sm:$0xff]  ;;  %v1862_v38 = vcombine.high %v476_v31, %v484_v32 }
  0xc9   : > { %1506 = vmatprep.subr.bf16.mxu0 %v1842_v37  ;;  %v1879_v37 = vcombine.low %v493_v25, %v501_v26  ;;  %v1864_v39 = vcombine.high %v477_v33, %v485_v34 }
  0xcb   : > { %1548 = vmatpush1.bf16.msra.mxu1 %v1843_v44  ;;  %v1861_v44 = vcombine.low %v476_v31, %v484_v32 }
  0xcc   : > { %1507 = vmatpush1.bf16.msra.mxu0 %v1841_v43  ;;  %1563 = vmatprep.subr.bf16.mxu1 %v1972_v45  ;;  %v469_v43 = vld [vmem:[%s2413_s28 + $0x78] sm:$0xff]  ;;  %v1846_v45 = vcombine.high %v460_v40, %v468_v41 }
  0xcd   : > { %1522 = vmatprep.subr.bf16.mxu0 %v1970_v16  ;;  %v1863_v16 = vcombine.low %v477_v33, %v485_v34  ;;  %v1848_v46 = vcombine.high %v461_v42, %v469_v43 }
  0xcf   : > { %1564 = vmatpush2.bf16.msra.mxu1 %v1971_v51  ;;  %v1845_v51 = vcombine.low %v460_v40, %v468_v41 }
  0xd0   : > { %1523 = vmatpush2.bf16.msra.mxu0 %v1969_v50  ;;  %1615 = vmatprep.subr.bf16.mxu1 %v1960_v53  ;;  %v597_v50 = vld [vmem:[%s2413_s28 + $0x478] sm:$0xff]  ;;  %v1974_v53 = vcombine.high %v588_v47, %v596_v48 }
  0xd1   : > { %1574 = vmatprep.subr.bf16.mxu0 %v1958_v52  ;;  %v1847_v52 = vcombine.low %v461_v42, %v469_v43  ;;  %v1976_v54 = vcombine.high %v589_v49, %v597_v50  ;;  %v1975_v56 = vcombine.low %v589_v49, %v597_v50 }
  0xd2   : > { %1566 = vmatmul.mubr.bf16.vlgmr.msra.gmra.mxu1 %v2459_v36 }
  0xd3   : > { %1525 = vmatmul.mubr.bf16.vlgmr.msra.gmra.mxu0 %v2459_v36  ;;  %1616 = vmatpush1.bf16.msra.mxu1 %v1959_v59 }
  0xd4   : > { %1575 = vmatpush1.bf16.msra.mxu0 %v1957_v58  ;;  %1617 = vmatprep.subr.bf16.mxu1 %v1944_v61 }
  0xd5   : > { %1576 = vmatprep.subr.bf16.mxu0 %v1942_v60  ;;  %1983 = vmatprep.mubr.msk.bf16.mxu0 %vm1324_vm0, %v2407_v17 }
  0xd6   : > { %1984 = vmatprep.mubr.msk.bf16.mxu1 %vm1324_vm0, %v2407_v17  ;;  %v1911_v17 = vcombine.low %v525_v8, %v533_v9 }
  0xd7   : > { %1618 = vmatpush1.bf16.msra.mxu1 %v1943_v3 }
  0xd8   : > { %1577 = vmatpush1.bf16.msra.mxu0 %v1941_v2  ;;  %1619 = vmatprep.subr.bf16.mxu1 %v1928_v5 }
  0xd9   : > { %1578 = vmatprep.subr.bf16.mxu0 %v1926_v4 }
  0xdb   : > { %1620 = vmatpush1.bf16.msra.mxu1 %v1927_v11 }
  0xdc   : > { %1579 = vmatpush1.bf16.msra.mxu0 %v1925_v10  ;;  %1621 = vmatprep.subr.bf16.mxu1 %v1912_v13 }
  0xdd   : > { %1580 = vmatprep.subr.bf16.mxu0 %v1910_v12 }
  0xdf   : > { %1622 = vmatpush1.bf16.msra.mxu1 %v1911_v17 }
  0xe0   : > { %1581 = vmatpush1.bf16.msra.mxu0 %v1909_v20  ;;  %1623 = vmatprep.subr.bf16.mxu1 %v1896_v22 }
  0xe1   : > { %1582 = vmatprep.subr.bf16.mxu0 %v1894_v21 }
  0xe3   : > { %1624 = vmatpush1.bf16.msra.mxu1 %v1895_v28 }
  0xe4   : > { %1583 = vmatpush1.bf16.msra.mxu0 %v1893_v27  ;;  %1625 = vmatprep.subr.bf16.mxu1 %v1880_v30 }
  0xe5   : > { %1584 = vmatprep.subr.bf16.mxu0 %v1878_v29 }
  0xe7   : > { %1626 = vmatpush1.bf16.msra.mxu1 %v1879_v37 }
  0xe8   : > { %1585 = vmatpush1.bf16.msra.mxu0 %v1877_v35  ;;  %1627 = vmatprep.subr.bf16.mxu1 %v1864_v39 }
  0xe9   : > { %1586 = vmatprep.subr.bf16.mxu0 %v1862_v38 }
  0xeb   : > { %1628 = vmatpush1.bf16.msra.mxu1 %v1863_v16 }
  0xec   : > { %1587 = vmatpush1.bf16.msra.mxu0 %v1861_v44  ;;  %1629 = vmatprep.subr.bf16.mxu1 %v1848_v46 }
  0xed   : > { %1588 = vmatprep.subr.bf16.mxu0 %v1846_v45 }
  0xef   : > { %1630 = vmatpush1.bf16.msra.mxu1 %v1847_v52 }
  0xf0   : > { %1589 = vmatpush1.bf16.msra.mxu0 %v1845_v51  ;;  %1645 = vmatprep.subr.bf16.mxu1 %v1976_v54 }
  0xf1   : > { %1604 = vmatprep.subr.bf16.mxu0 %v1974_v53 }
  0xf3   : > { %1646 = vmatpush2.bf16.msra.mxu1 %v1975_v56 }
  0xf4   : > { %1605 = vmatpush2.bf16.msra.mxu0 %v1973_v55 }
  0xf6   : > { %1648 = vmatmul.mubr.bf16.vlgmr.msra.gmra.mxu1 %v2459_v36 }
  0xf7   : > { %1607 = vmatmul.mubr.bf16.vlgmr.msra.gmra.mxu0 %v2459_v36 }
 0x14a   : > { %v1403_v59 = vpop.f32.mrf.mxu1 }
 0x14b   : > { %v1362_v57 = vpop.f32.mrf.mxu0  ;;  %v1658_v60 = vmul.f32 0.2, %v1403_v59 }
 0x14c   : > { %v1656_v58 = vmul.f32 0.2, %v1362_v57  ;;  %v1405_v63 = vpop.f32.mrf.mxu1 }
 0x14d   : > { %v1364_v61 = vpop.f32.mrf.mxu0  ;;  %v1659_v0 = vmul.f32 0.2, %v1405_v63  ;;  %v1674_v5 = vmax.f32 %v1403_v59, %v1658_v60 }
 0x14e   : > { %v1657_v62 = vmul.f32 0.2, %v1364_v61  ;;  %v1672_v2 = vmax.f32 %v1362_v57, %v1656_v58  ;;  %v1407_v4 = vpop.f32.mrf.mxu1 }
 0x14f   : > { %v1366_v1 = vpop.f32.mrf.mxu0  ;;  %v1675_v36 = vmax.f32 %v1405_v63, %v1659_v0 }
 0x150   : > { %v1673_v3 = vmax.f32 %v1364_v61, %v1657_v62  ;;  %v1408_v8 = vpop.f32.mrf.mxu1 }
 0x151   : > { %v1367_v6 = vpop.f32.mrf.mxu0  ;;  %v1997_v9 = vpack.c.bf16 %v1675_v36, %v1674_v5 }
 0x152   : > { %v1996_v7 = vpack.c.bf16 %v1673_v3, %v1672_v2 }
 0x153   : > { %1753 = vst [vmem:[%s2588_s5 + $0x8] sm:$0xff] %v1997_v9 }
 0x154   : > { %1752 = vst [vmem:[%s2588_s5] sm:$0xff] %v1996_v7 }
 0x16e   : > { %v1485_v12 = vpop.f32.mrf.mxu1 }
 0x16f   : > { %v1444_v10 = vpop.f32.mrf.mxu0  ;;  %v1662_v13 = vmul.f32 0.2, %v1485_v12 }
 0x170   : > { %v1660_v11 = vmul.f32 0.2, %v1444_v10  ;;  %v1487_v18 = vpop.f32.mrf.mxu1 }
 0x171   : > { %v1446_v14 = vpop.f32.mrf.mxu0  ;;  %v1663_v19 = vmul.f32 0.2, %v1487_v18  ;;  %v1678_v23 = vmax.f32 %v1485_v12, %v1662_v13 }
 0x172   : > { %v1661_v15 = vmul.f32 0.2, %v1446_v14  ;;  %v1676_v17 = vmax.f32 %v1444_v10, %v1660_v11  ;;  %v1489_v22 = vpop.f32.mrf.mxu1 }
 0x173   : > { %v1448_v20 = vpop.f32.mrf.mxu0  ;;  %v1679_v24 = vmax.f32 %v1487_v18, %v1663_v19 }
 0x174   : > { %v1677_v21 = vmax.f32 %v1446_v14, %v1661_v15  ;;  %v1490_v27 = vpop.f32.mrf.mxu1 }
 0x175   : > { %v1449_v25 = vpop.f32.mrf.mxu0  ;;  %v1999_v28 = vpack.c.bf16 %v1679_v24, %v1678_v23 }
 0x176   : > { %v1998_v26 = vpack.c.bf16 %v1677_v21, %v1676_v17 }
 0x177   : > { %1755 = vst [vmem:[%s2588_s5 + $0x18] sm:$0xff] %v1999_v28 }
 0x178   : > { %1754 = vst [vmem:[%s2588_s5 + $0x10] sm:$0xff] %v1998_v26 }
 0x192   : > { %v1567_v31 = vpop.f32.mrf.mxu1 }
 0x193   : > { %v1526_v29 = vpop.f32.mrf.mxu0  ;;  %v1666_v32 = vmul.f32 0.2, %v1567_v31 }
 0x194   : > { %v1664_v30 = vmul.f32 0.2, %v1526_v29  ;;  %v1569_v35 = vpop.f32.mrf.mxu1 }
 0x195   : > { %v1528_v33 = vpop.f32.mrf.mxu0  ;;  %v1667_v37 = vmul.f32 0.2, %v1569_v35  ;;  %v1682_v42 = vmax.f32 %v1567_v31, %v1666_v32 }
 0x196   : > { %v1665_v34 = vmul.f32 0.2, %v1528_v33  ;;  %v1680_v39 = vmax.f32 %v1526_v29, %v1664_v30  ;;  %v1571_v41 = vpop.f32.mrf.mxu1 }
 0x197   : > { %v1530_v38 = vpop.f32.mrf.mxu0  ;;  %v1683_v43 = vmax.f32 %v1569_v35, %v1667_v37 }
 0x198   : > { %v1681_v40 = vmax.f32 %v1528_v33, %v1665_v34  ;;  %v1572_v45 = vpop.f32.mrf.mxu1 }
 0x199   : > { %v1531_v44 = vpop.f32.mrf.mxu0  ;;  %v2001_v46 = vpack.c.bf16 %v1683_v43, %v1682_v42 }
 0x19a   : > { %v2000_v16 = vpack.c.bf16 %v1681_v40, %v1680_v39 }
 0x19b   : > { %1757 = vst [vmem:[%s2588_s5 + $0x28] sm:$0xff] %v2001_v46 }
 0x19c   : > { %1756 = vst [vmem:[%s2588_s5 + $0x20] sm:$0xff] %v2000_v16 }
 0x1b6   : > { %v1649_v49 = vpop.f32.mrf.mxu1 }
 0x1b7   : > { %v1608_v47 = vpop.f32.mrf.mxu0  ;;  %v1670_v50 = vmul.f32 0.2, %v1649_v49 }
 0x1b8   : > { %v1668_v48 = vmul.f32 0.2, %v1608_v47  ;;  %v1651_v53 = vpop.f32.mrf.mxu1 }
 0x1b9   : > { %v1610_v51 = vpop.f32.mrf.mxu0  ;;  %v1671_v54 = vmul.f32 0.2, %v1651_v53  ;;  %v1686_v59 = vmax.f32 %v1649_v49, %v1670_v50 }
 0x1ba   : > { %v1669_v52 = vmul.f32 0.2, %v1610_v51  ;;  %v1684_v56 = vmax.f32 %v1608_v47, %v1668_v48  ;;  %v1653_v58 = vpop.f32.mrf.mxu1 }
 0x1bb   : > { %v1612_v55 = vpop.f32.mrf.mxu0  ;;  %v1687_v60 = vmax.f32 %v1651_v53, %v1671_v54 }
 0x1bc   : > { %v1685_v57 = vmax.f32 %v1610_v51, %v1669_v52  ;;  %v1654_v63 = vpop.f32.mrf.mxu1 }
 0x1bd   : > { %v1613_v61 = vpop.f32.mrf.mxu0  ;;  %v2003_v0 = vpack.c.bf16 %v1687_v60, %v1686_v59 }
 0x1be   : > { %v2002_v62 = vpack.c.bf16 %v1685_v57, %v1684_v56 }
 0x1bf   : > { %1759 = vst [vmem:[%s2588_s5 + $0x38] sm:$0xff] %v2003_v0 }
 0x1c0   : > { %1758 = vst [vmem:[%s2588_s5 + $0x30] sm:$0xff] %v2002_v62 }
 0x1c1 PF: > { %p9_p9 = scmp.ge.s32.totalorder %s2088_s13, 10   ;;  %s2611_s9 = smov %s2050_s10 }
 0x1c2   : > { %s2612_s10 = smov %s2097_s16  ;;  %s2613_s11 = smov %s2088_s13 }
 0x1c3   :  { %11 = sbr.rel (!%p9_p9) target bundleno = 2 (0x2), region = 86 }

// kernel: video_discriminator_forward.5
= control target key start
LH: loop header
LB: loop body
LE: loop exit
PB: predicated region body
PF: predicated region fallthrough
CT: control target
= control target key end

     0   :  { %v5769_v3 = vmov 0   ;;  %s8311_s1 = inlined_call_operand.vmem [shape: bf16[384,3072], index: 1, kind: input, shape index: {}]   ;;  %s8312_s0 = inlined_call_operand.vmem [shape: bf16[16,384], index: 0, kind: input, shape index: {}]   ;;  %s8313_s2 = inlined_call_operand.vmem [shape: f32[16,1], index: 2, kind: input, shape index: {}]   ;;  %s8314_s3 = inlined_call_operand.vmem [shape: f32[16,1], index: 3, kind: input, shape index: {}]   ;;  %s8315_s4 = inlined_call_operand.vmem [shape: bf16[16,3072], index: 4, kind: output, shape index: {}]  }
   0x1   :  { %v190_v0 = vld [vmem:[%s8311_s1 + $0x540] sm:$0xff]  ;;  %3569 = vmatprep.mubr.bf16.mxu1 %v5769_v3  ;;  %5753 = vset.pattern.permute.xlu0 %v5769_v3 }
   0x2   :  { %v202_v1 = vld [vmem:[%s8311_s1 + $0x5a0] sm:$0xff]  ;;  %5754 = vset.pattern.permute.xlu1 %v5769_v3 }
   0x3   :  { %v574_v2 = vld [vmem:[%s8311_s1 + $0x1140] sm:$0xff]  ;;  %v5297_v4 = vcombine.high %v190_v0, %v202_v1  ;;  %v5296_v6 = vcombine.low %v190_v0, %v202_v1 }
   0x4   :  { %v586_v5 = vld [vmem:[%s8311_s1 + $0x11a0] sm:$0xff] }
   0x5   :  { %v166_v7 = vld [vmem:[%s8311_s1 + $0x480] sm:$0xff]  ;;  %v5681_v9 = vcombine.high %v574_v2, %v586_v5  ;;  %v5680_v10 = vcombine.low %v574_v2, %v586_v5  ;;  %3494 = vmatprep.subr.bf16.mxu0 %v5297_v4  ;;  %v191_v2 = vld [vmem:[%s8311_s1 + $0x548] sm:$0xff] }
   0x6   :  { %v178_v8 = vld [vmem:[%s8311_s1 + $0x4e0] sm:$0xff]  ;;  %3495 = vmatpush1.bf16.msra.mxu0 %v5296_v6  ;;  %v203_v4 = vld [vmem:[%s8311_s1 + $0x5a8] sm:$0xff] }
   0x7   :  { %v5273_v11 = vcombine.high %v166_v7, %v178_v8  ;;  %v550_v12 = vld [vmem:[%s8311_s1 + $0x1080] sm:$0xff]  ;;  %3537 = vmatprep.subr.bf16.mxu1 %v5681_v9  ;;  %v5272_v19 = vcombine.low %v166_v7, %v178_v8  ;;  %v5299_v8 = vcombine.high %v191_v2, %v203_v4 }
   0x8   :  { %v562_v13 = vld [vmem:[%s8311_s1 + $0x10e0] sm:$0xff]  ;;  %3538 = vmatpush1.bf16.msra.mxu1 %v5680_v10 }
   0x9   :  { %v142_v14 = vld [vmem:[%s8311_s1 + $0x3c0] sm:$0xff]  ;;  %v5657_v15 = vcombine.high %v550_v12, %v562_v13  ;;  %3496 = vmatprep.subr.bf16.mxu0 %v5273_v11  ;;  %v5656_v20 = vcombine.low %v550_v12, %v562_v13  ;;  %v167_v11 = vld [vmem:[%s8311_s1 + $0x488] sm:$0xff] }
   0xa   :  { %v154_v16 = vld [vmem:[%s8311_s1 + $0x420] sm:$0xff]  ;;  %3497 = vmatpush1.bf16.msra.mxu0 %v5272_v19  ;;  %v179_v12 = vld [vmem:[%s8311_s1 + $0x4e8] sm:$0xff] }
   0xb   :  { %v526_v17 = vld [vmem:[%s8311_s1 + $0xfc0] sm:$0xff]  ;;  %v5249_v21 = vcombine.high %v142_v14, %v154_v16  ;;  %3539 = vmatprep.subr.bf16.mxu1 %v5657_v15  ;;  %v5248_v27 = vcombine.low %v142_v14, %v154_v16  ;;  %v5927_v13 = vld [vmem:[%s8312_s0 + $0x8] ss:$12 sps:$4 sm:$0xff]   ;;  %v5298_v15 = vcombine.low %v191_v2, %v203_v4 }
   0xc   :  { %v538_v18 = vld [vmem:[%s8311_s1 + $0x1020] sm:$0xff]  ;;  %3540 = vmatpush1.bf16.msra.mxu1 %v5656_v20  ;;  %v143_v20 = vld [vmem:[%s8311_s1 + $0x3c8] sm:$0xff] }
   0xd   :  { %v5633_v22 = vcombine.high %v526_v17, %v538_v18  ;;  %v118_v23 = vld [vmem:[%s8311_s1 + $0x300] sm:$0xff]  ;;  %3498 = vmatprep.subr.bf16.mxu0 %v5249_v21  ;;  %v5632_v28 = vcombine.low %v526_v17, %v538_v18  ;;  %v5275_v17 = vcombine.high %v167_v11, %v179_v12  ;;  %v155_v21 = vld [vmem:[%s8311_s1 + $0x428] sm:$0xff] }
   0xe   :  { %v130_v24 = vld [vmem:[%s8311_s1 + $0x360] sm:$0xff]  ;;  %3499 = vmatpush1.bf16.msra.mxu0 %v5248_v27  ;;  %v575_v4 = vld [vmem:[%s8311_s1 + $0x1148] sm:$0xff] }
   0xf   :  { %v502_v25 = vld [vmem:[%s8311_s1 + $0xf00] sm:$0xff]  ;;  %v5225_v29 = vcombine.high %v118_v23, %v130_v24  ;;  %3541 = vmatprep.subr.bf16.mxu1 %v5633_v22  ;;  %v5224_v35 = vcombine.low %v118_v23, %v130_v24  ;;  %v5274_v23 = vcombine.low %v167_v11, %v179_v12  ;;  %v551_v12 = vld [vmem:[%s8311_s1 + $0x1088] sm:$0xff] }
  0x10   :  { %v514_v26 = vld [vmem:[%s8311_s1 + $0xf60] sm:$0xff]  ;;  %3542 = vmatpush1.bf16.msra.mxu1 %v5632_v28  ;;  %v119_v28 = vld [vmem:[%s8311_s1 + $0x308] sm:$0xff] }
  0x11   :  { %v5609_v30 = vcombine.high %v502_v25, %v514_v26  ;;  %v94_v31 = vld [vmem:[%s8311_s1 + $0x240] sm:$0xff]  ;;  %3500 = vmatprep.subr.bf16.mxu0 %v5225_v29  ;;  %v5608_v36 = vcombine.low %v502_v25, %v514_v26  ;;  %v5251_v25 = vcombine.high %v143_v20, %v155_v21  ;;  %v131_v29 = vld [vmem:[%s8311_s1 + $0x368] sm:$0xff] }
  0x12   :  { %v106_v32 = vld [vmem:[%s8311_s1 + $0x2a0] sm:$0xff]  ;;  %3501 = vmatpush1.bf16.msra.mxu0 %v5224_v35 }
  0x13   :  { %v478_v33 = vld [vmem:[%s8311_s1 + $0xe40] sm:$0xff]  ;;  %v5201_v37 = vcombine.high %v94_v31, %v106_v32  ;;  %3543 = vmatprep.subr.bf16.mxu1 %v5609_v30  ;;  %v5200_v43 = vcombine.low %v94_v31, %v106_v32  ;;  %v5250_v31 = vcombine.low %v143_v20, %v155_v21 }
  0x14   :  { %v490_v34 = vld [vmem:[%s8311_s1 + $0xea0] sm:$0xff]  ;;  %3544 = vmatpush1.bf16.msra.mxu1 %v5608_v36  ;;  %v95_v36 = vld [vmem:[%s8311_s1 + $0x248] sm:$0xff] }
  0x15   :  { %v5585_v38 = vcombine.high %v478_v33, %v490_v34  ;;  %v70_v39 = vld [vmem:[%s8311_s1 + $0x180] sm:$0xff]  ;;  %3502 = vmatprep.subr.bf16.mxu0 %v5201_v37  ;;  %v5584_v44 = vcombine.low %v478_v33, %v490_v34  ;;  %v5227_v33 = vcombine.high %v119_v28, %v131_v29  ;;  %v107_v37 = vld [vmem:[%s8311_s1 + $0x2a8] sm:$0xff] }
  0x16   :  { %v82_v40 = vld [vmem:[%s8311_s1 + $0x1e0] sm:$0xff]  ;;  %3503 = vmatpush1.bf16.msra.mxu0 %v5200_v43 }
  0x17   :  { %v454_v41 = vld [vmem:[%s8311_s1 + $0xd80] sm:$0xff]  ;;  %v5177_v45 = vcombine.high %v70_v39, %v82_v40  ;;  %3545 = vmatprep.subr.bf16.mxu1 %v5585_v38  ;;  %v5176_v51 = vcombine.low %v70_v39, %v82_v40  ;;  %v5226_v39 = vcombine.low %v119_v28, %v131_v29 }
  0x18   :  { %v466_v42 = vld [vmem:[%s8311_s1 + $0xde0] sm:$0xff]  ;;  %3546 = vmatpush1.bf16.msra.mxu1 %v5584_v44  ;;  %v71_v44 = vld [vmem:[%s8311_s1 + $0x188] sm:$0xff] }
  0x19   :  { %v5561_v46 = vcombine.high %v454_v41, %v466_v42  ;;  %v46_v47 = vld [vmem:[%s8311_s1 + $0xc0] sm:$0xff]  ;;  %3504 = vmatprep.subr.bf16.mxu0 %v5177_v45  ;;  %v5560_v52 = vcombine.low %v454_v41, %v466_v42  ;;  %v5203_v41 = vcombine.high %v95_v36, %v107_v37  ;;  %v83_v45 = vld [vmem:[%s8311_s1 + $0x1e8] sm:$0xff] }
  0x1a   :  { %v58_v48 = vld [vmem:[%s8311_s1 + $0x120] sm:$0xff]  ;;  %3505 = vmatpush1.bf16.msra.mxu0 %v5176_v51 }
  0x1b   :  { %v430_v49 = vld [vmem:[%s8311_s1 + $0xcc0] sm:$0xff]  ;;  %v5153_v53 = vcombine.high %v46_v47, %v58_v48  ;;  %3547 = vmatprep.subr.bf16.mxu1 %v5561_v46  ;;  %v5152_v60 = vcombine.low %v46_v47, %v58_v48  ;;  %v5202_v47 = vcombine.low %v95_v36, %v107_v37 }
  0x1c   :  { %v442_v50 = vld [vmem:[%s8311_s1 + $0xd20] sm:$0xff]  ;;  %3548 = vmatpush1.bf16.msra.mxu1 %v5560_v52  ;;  %v47_v52 = vld [vmem:[%s8311_s1 + $0xc8] sm:$0xff] }
  0x1d   :  { %v22_v54 = vld [vmem:[%s8311_s1] sm:$0xff]  ;;  %v5537_v55 = vcombine.high %v430_v49, %v442_v50  ;;  %3506 = vmatprep.subr.bf16.mxu0 %v5153_v53  ;;  %v5536_v61 = vcombine.low %v430_v49, %v442_v50  ;;  %v5179_v49 = vcombine.high %v71_v44, %v83_v45  ;;  %v59_v53 = vld [vmem:[%s8311_s1 + $0x128] sm:$0xff] }
  0x1e   :  { %v34_v56 = vld [vmem:[%s8311_s1 + $0x60] sm:$0xff]  ;;  %3507 = vmatpush1.bf16.msra.mxu0 %v5152_v60 }
  0x1f   :  { %v406_v57 = vld [vmem:[%s8311_s1 + $0xc00] sm:$0xff]  ;;  %v5129_v62 = vcombine.high %v22_v54, %v34_v56  ;;  %3549 = vmatprep.subr.bf16.mxu1 %v5537_v55  ;;  %v5128_v5 = vcombine.low %v22_v54, %v34_v56  ;;  %v5178_v55 = vcombine.low %v71_v44, %v83_v45 }
  0x20   :  { %v418_v58 = vld [vmem:[%s8311_s1 + $0xc60] sm:$0xff]  ;;  %3550 = vmatpush1.bf16.msra.mxu1 %v5536_v61  ;;  %v23_v61 = vld [vmem:[%s8311_s1 + $0x8] sm:$0xff] }
  0x21   :  { %v5897_v59 = vld [vmem:[%s8312_s0 + $0x4] ss:$12 sps:$4 sm:$0xff]   ;;  %v5513_v63 = vcombine.high %v406_v57, %v418_v58  ;;  %3508 = vmatprep.subr.bf16.mxu0 %v5129_v62  ;;  %v5512_v6 = vcombine.low %v406_v57, %v418_v58  ;;  %v5155_v57 = vcombine.high %v47_v52, %v59_v53  ;;  %v35_v62 = vld [vmem:[%s8311_s1 + $0x68] sm:$0xff] }
  0x22   :  { %v382_v0 = vld [vmem:[%s8311_s1 + $0xb40] sm:$0xff]  ;;  %3526 = vmatprep.mubr.bf16.mxu0 %v5897_v59  ;;  %3509 = vmatpush1.bf16.msra.mxu0 %v5128_v5  ;;  %v5131_v2 = vcombine.high %v23_v61, %v35_v62  ;;  %v587_v5 = vld [vmem:[%s8311_s1 + $0x11a8] sm:$0xff] }
  0x23   :  { %v394_v1 = vld [vmem:[%s8311_s1 + $0xba0] sm:$0xff]  ;;  %3551 = vmatprep.subr.bf16.mxu1 %v5513_v63 }
  0x24   :  { %v5489_v7 = vcombine.high %v382_v0, %v394_v1  ;;  %v358_v9 = vld [vmem:[%s8311_s1 + $0xa80] sm:$0xff]  ;;  %v5488_v14 = vcombine.low %v382_v0, %v394_v1  ;;  %3552 = vmatpush1.bf16.msra.mxu1 %v5512_v6  ;;  %v5154_v0 = vcombine.low %v47_v52, %v59_v53  ;;  %v383_v6 = vld [vmem:[%s8311_s1 + $0xb48] sm:$0xff] }
  0x25   :  { %v370_v10 = vld [vmem:[%s8311_s1 + $0xae0] sm:$0xff]  ;;  %3580 = vmatprep.subr.bf16.mxu1 %v5299_v8 }
  0x26   :  { %3510 = vmatprep.subr.bf16.mxu0 %v5489_v7  ;;  %v5465_v16 = vcombine.high %v358_v9, %v370_v10  ;;  %v334_v18 = vld [vmem:[%s8311_s1 + $0x9c0] sm:$0xff]  ;;  %v5464_v22 = vcombine.low %v358_v9, %v370_v10  ;;  %v395_v7 = vld [vmem:[%s8311_s1 + $0xba8] sm:$0xff]  ;;  %v5130_v9 = vcombine.low %v23_v61, %v35_v62  ;;  %v5683_v10 = vcombine.high %v575_v4, %v587_v5 }
  0x27   :  { %v346_v19 = vld [vmem:[%s8311_s1 + $0xa20] sm:$0xff]  ;;  %3570 = vmatmul.mubr.bf16.vlgmr.msra.gmra.mxu1 %v5927_v13  ;;  %3511 = vmatpush2.bf16.msra.mxu0 %v5488_v14  ;;  %v5491_v11 = vcombine.high %v383_v6, %v395_v7  ;;  %v563_v14 = vld [vmem:[%s8311_s1 + $0x10e8] sm:$0xff] }
  0x28   :  { %3581 = vmatpush1.bf16.msra.mxu1 %v5298_v15  ;;  %3512 = vmatprep.subr.bf16.mxu0 %v5465_v16  ;;  %v5441_v24 = vcombine.high %v334_v18, %v346_v19  ;;  %v310_v26 = vld [vmem:[%s8311_s1 + $0x900] sm:$0xff]  ;;  %v5440_v30 = vcombine.low %v334_v18, %v346_v19  ;;  %v359_v16 = vld [vmem:[%s8311_s1 + $0xa88] sm:$0xff]  ;;  %v5682_v18 = vcombine.low %v575_v4, %v587_v5 }
  0x29   :  { %3582 = vmatprep.subr.bf16.mxu1 %v5275_v17  ;;  %v322_v27 = vld [vmem:[%s8311_s1 + $0x960] sm:$0xff]  ;;  %3612 = vmatprep.mubr.bf16.mxu1 %v5897_v59  ;;  %v371_v17 = vld [vmem:[%s8311_s1 + $0xae8] sm:$0xff]  ;;  %v5490_v19 = vcombine.low %v383_v6, %v395_v7  ;;  %v5659_v20 = vcombine.high %v551_v12, %v563_v14 }
  0x2a   :  { %v5417_v32 = vcombine.high %v310_v26, %v322_v27  ;;  %v286_v34 = vld [vmem:[%s8311_s1 + $0x840] sm:$0xff]  ;;  %v5416_v38 = vcombine.low %v310_v26, %v322_v27  ;;  %v5467_v21 = vcombine.high %v359_v16, %v371_v17  ;;  %v5658_v26 = vcombine.low %v551_v12, %v563_v14 }
  0x2b   :  { %3513 = vmatpush2.bf16.msra.mxu0 %v5464_v22  ;;  %v298_v35 = vld [vmem:[%s8311_s1 + $0x8a0] sm:$0xff]  ;;  %v527_v22 = vld [vmem:[%s8311_s1 + $0xfc8] sm:$0xff]  ;;  %v5466_v27 = vcombine.low %v359_v16, %v371_v17 }
  0x2c   :  { %3583 = vmatpush1.bf16.msra.mxu1 %v5274_v23  ;;  %3514 = vmatprep.subr.bf16.mxu0 %v5441_v24  ;;  %v5393_v40 = vcombine.high %v286_v34, %v298_v35  ;;  %v262_v42 = vld [vmem:[%s8311_s1 + $0x780] sm:$0xff]  ;;  %v5392_v46 = vcombine.low %v286_v34, %v298_v35  ;;  %v539_v23 = vld [vmem:[%s8311_s1 + $0x1028] sm:$0xff] }
  0x2d   :  { %3584 = vmatprep.subr.bf16.mxu1 %v5251_v25  ;;  %v274_v43 = vld [vmem:[%s8311_s1 + $0x7e0] sm:$0xff]  ;;  %v335_v24 = vld [vmem:[%s8311_s1 + $0x9c8] sm:$0xff]  ;;  %v5635_v28 = vcombine.high %v527_v22, %v539_v23  ;;  %v5634_v34 = vcombine.low %v527_v22, %v539_v23 }
  0x2e   :  { %v5369_v48 = vcombine.high %v262_v42, %v274_v43  ;;  %v238_v50 = vld [vmem:[%s8311_s1 + $0x6c0] sm:$0xff]  ;;  %v5368_v54 = vcombine.low %v262_v42, %v274_v43  ;;  %v347_v25 = vld [vmem:[%s8311_s1 + $0xa28] sm:$0xff] }
  0x2f   :  { %3515 = vmatpush2.bf16.msra.mxu0 %v5440_v30  ;;  %v250_v51 = vld [vmem:[%s8311_s1 + $0x720] sm:$0xff]  ;;  %v5443_v29 = vcombine.high %v335_v24, %v347_v25  ;;  %v503_v30 = vld [vmem:[%s8311_s1 + $0xf08] sm:$0xff]  ;;  %v5442_v35 = vcombine.low %v335_v24, %v347_v25 }
  0x30   :  { %3585 = vmatpush1.bf16.msra.mxu1 %v5250_v31  ;;  %3516 = vmatprep.subr.bf16.mxu0 %v5417_v32  ;;  %v5345_v56 = vcombine.high %v238_v50, %v250_v51  ;;  %v214_v58 = vld [vmem:[%s8311_s1 + $0x600] sm:$0xff]  ;;  %v5344_v63 = vcombine.low %v238_v50, %v250_v51  ;;  %v515_v31 = vld [vmem:[%s8311_s1 + $0xf68] sm:$0xff] }
  0x31   :  { %3586 = vmatprep.subr.bf16.mxu1 %v5227_v33  ;;  %v226_v60 = vld [vmem:[%s8311_s1 + $0x660] sm:$0xff]  ;;  %v311_v32 = vld [vmem:[%s8311_s1 + $0x908] sm:$0xff]  ;;  %v5611_v36 = vcombine.high %v503_v30, %v515_v31  ;;  %v5610_v42 = vcombine.low %v503_v30, %v515_v31 }
  0x32   :  { %v5321_v1 = vcombine.high %v214_v58, %v226_v60  ;;  %v5320_v8 = vcombine.low %v214_v58, %v226_v60  ;;  %v6024_v15 = vld [vmem:[%s8312_s0] ss:$12 sps:$4 sm:$0xff]  }
  0x33   :  { %3517 = vmatpush2.bf16.msra.mxu0 %v5416_v38  ;;  %v323_v33 = vld [vmem:[%s8311_s1 + $0x968] sm:$0xff] }
  0x34   :  { %3587 = vmatpush1.bf16.msra.mxu1 %v5226_v39  ;;  %3518 = vmatprep.subr.bf16.mxu0 %v5393_v40  ;;  %v5419_v37 = vcombine.high %v311_v32, %v323_v33  ;;  %v479_v38 = vld [vmem:[%s8311_s1 + $0xe48] sm:$0xff]  ;;  %v5418_v43 = vcombine.low %v311_v32, %v323_v33 }
  0x35   :  { %3588 = vmatprep.subr.bf16.mxu1 %v5203_v41  ;;  %v491_v39 = vld [vmem:[%s8311_s1 + $0xea8] sm:$0xff] }
  0x36   :  { %v287_v40 = vld [vmem:[%s8311_s1 + $0x848] sm:$0xff]  ;;  %v5587_v44 = vcombine.high %v479_v38, %v491_v39  ;;  %v5586_v50 = vcombine.low %v479_v38, %v491_v39 }
  0x37   :  { %3519 = vmatpush2.bf16.msra.mxu0 %v5392_v46  ;;  %v299_v41 = vld [vmem:[%s8311_s1 + $0x8a8] sm:$0xff] }
  0x38   :  { %3589 = vmatpush1.bf16.msra.mxu1 %v5202_v47  ;;  %3520 = vmatprep.subr.bf16.mxu0 %v5369_v48  ;;  %v5395_v45 = vcombine.high %v287_v40, %v299_v41  ;;  %v455_v46 = vld [vmem:[%s8311_s1 + $0xd88] sm:$0xff]  ;;  %v5394_v51 = vcombine.low %v287_v40, %v299_v41 }
  0x39   :  { %3590 = vmatprep.subr.bf16.mxu1 %v5179_v49  ;;  %v467_v47 = vld [vmem:[%s8311_s1 + $0xde8] sm:$0xff] }
  0x3a   :  { %v263_v48 = vld [vmem:[%s8311_s1 + $0x788] sm:$0xff]  ;;  %v5563_v52 = vcombine.high %v455_v46, %v467_v47  ;;  %v5562_v58 = vcombine.low %v455_v46, %v467_v47 }
  0x3b   :  { %3521 = vmatpush2.bf16.msra.mxu0 %v5368_v54  ;;  %v275_v49 = vld [vmem:[%s8311_s1 + $0x7e8] sm:$0xff] }
  0x3c   :  { %3591 = vmatpush1.bf16.msra.mxu1 %v5178_v55  ;;  %3522 = vmatprep.subr.bf16.mxu0 %v5345_v56  ;;  %v5371_v53 = vcombine.high %v263_v48, %v275_v49  ;;  %v431_v54 = vld [vmem:[%s8311_s1 + $0xcc8] sm:$0xff]  ;;  %v5370_v60 = vcombine.low %v263_v48, %v275_v49 }
  0x3d   :  { %3592 = vmatprep.subr.bf16.mxu1 %v5155_v57  ;;  %v443_v55 = vld [vmem:[%s8311_s1 + $0xd28] sm:$0xff] }
  0x3e   :  { %v239_v56 = vld [vmem:[%s8311_s1 + $0x6c8] sm:$0xff]  ;;  %v5539_v61 = vcombine.high %v431_v54, %v443_v55  ;;  %v5538_v4 = vcombine.low %v431_v54, %v443_v55 }
  0x3f   :  { %3523 = vmatpush2.bf16.msra.mxu0 %v5344_v63  ;;  %v251_v57 = vld [vmem:[%s8311_s1 + $0x728] sm:$0xff] }
  0x40   :  { %3593 = vmatpush1.bf16.msra.mxu1 %v5154_v0  ;;  %3524 = vmatprep.subr.bf16.mxu0 %v5321_v1  ;;  %v5347_v62 = vcombine.high %v239_v56, %v251_v57  ;;  %v407_v63 = vld [vmem:[%s8311_s1 + $0xc08] sm:$0xff]  ;;  %v5346_v5 = vcombine.low %v239_v56, %v251_v57 }
  0x41   :  { %3594 = vmatprep.subr.bf16.mxu1 %v5131_v2  ;;  %v419_v0 = vld [vmem:[%s8311_s1 + $0xc68] sm:$0xff] }
  0x42   :  { %v215_v1 = vld [vmem:[%s8311_s1 + $0x608] sm:$0xff]  ;;  %v5515_v6 = vcombine.high %v407_v63, %v419_v0  ;;  %v5514_v12 = vcombine.low %v407_v63, %v419_v0 }
  0x43   :  { %3525 = vmatpush2.bf16.msra.mxu0 %v5320_v8  ;;  %v227_v2 = vld [vmem:[%s8311_s1 + $0x668] sm:$0xff]  ;;  %v192_v8 = vld [vmem:[%s8311_s1 + $0x550] sm:$0xff] }
  0x44   :  { %3595 = vmatpush1.bf16.msra.mxu1 %v5130_v9  ;;  %3623 = vmatprep.subr.bf16.mxu0 %v5683_v10  ;;  %v5323_v7 = vcombine.high %v215_v1, %v227_v2  ;;  %v204_v9 = vld [vmem:[%s8311_s1 + $0x5b0] sm:$0xff]  ;;  %v5322_v14 = vcombine.low %v215_v1, %v227_v2 }
  0x45   :  { %3596 = vmatprep.subr.bf16.mxu1 %v5491_v11  ;;  %v576_v10 = vld [vmem:[%s8311_s1 + $0x1150] sm:$0xff]  ;;  %v5301_v16 = vcombine.high %v192_v8, %v204_v9  ;;  %v5300_v22 = vcombine.low %v192_v8, %v204_v9 }
  0x46   :  { %3527 = vmatmul.mubr.bf16.vlgmr.msra.gmra.mxu0 %v6024_v15  ;;  %v588_v11 = vld [vmem:[%s8311_s1 + $0x11b0] sm:$0xff] }
  0x47   :  { %3624 = vmatpush1.bf16.msra.mxu0 %v5682_v18  ;;  %3655 = vmatprep.mubr.bf16.mxu0 %v5769_v3  ;;  %v5685_v17 = vcombine.high %v576_v10, %v588_v11  ;;  %v168_v18 = vld [vmem:[%s8311_s1 + $0x490] sm:$0xff]  ;;  %v5684_v23 = vcombine.low %v576_v10, %v588_v11 }
  0x48   :  { %3597 = vmatpush2.bf16.msra.mxu1 %v5490_v19  ;;  %3625 = vmatprep.subr.bf16.mxu0 %v5659_v20  ;;  %v180_v19 = vld [vmem:[%s8311_s1 + $0x4f0] sm:$0xff] }
  0x49   :  { %3598 = vmatprep.subr.bf16.mxu1 %v5467_v21  ;;  %v552_v20 = vld [vmem:[%s8311_s1 + $0x1090] sm:$0xff]  ;;  %v5277_v24 = vcombine.high %v168_v18, %v180_v19  ;;  %v5276_v30 = vcombine.low %v168_v18, %v180_v19 }
  0x4a   :  { %v564_v21 = vld [vmem:[%s8311_s1 + $0x10f0] sm:$0xff] }
  0x4b   :  { %3626 = vmatpush1.bf16.msra.mxu0 %v5658_v26  ;;  %v5661_v25 = vcombine.high %v552_v20, %v564_v21  ;;  %v144_v26 = vld [vmem:[%s8311_s1 + $0x3d0] sm:$0xff]  ;;  %v5660_v31 = vcombine.low %v552_v20, %v564_v21 }
  0x4c   :  { %3599 = vmatpush2.bf16.msra.mxu1 %v5466_v27  ;;  %3627 = vmatprep.subr.bf16.mxu0 %v5635_v28  ;;  %v156_v27 = vld [vmem:[%s8311_s1 + $0x430] sm:$0xff] }
  0x4d   :  { %3600 = vmatprep.subr.bf16.mxu1 %v5443_v29  ;;  %v528_v28 = vld [vmem:[%s8311_s1 + $0xfd0] sm:$0xff]  ;;  %v5253_v32 = vcombine.high %v144_v26, %v156_v27  ;;  %v5252_v38 = vcombine.low %v144_v26, %v156_v27 }
  0x4e   :  { %v540_v29 = vld [vmem:[%s8311_s1 + $0x1030] sm:$0xff] }
  0x4f   :  { %3628 = vmatpush1.bf16.msra.mxu0 %v5634_v34  ;;  %v5637_v33 = vcombine.high %v528_v28, %v540_v29  ;;  %v120_v34 = vld [vmem:[%s8311_s1 + $0x310] sm:$0xff]  ;;  %v5636_v39 = vcombine.low %v528_v28, %v540_v29 }
  0x50   :  { %3601 = vmatpush2.bf16.msra.mxu1 %v5442_v35  ;;  %3629 = vmatprep.subr.bf16.mxu0 %v5611_v36  ;;  %v132_v35 = vld [vmem:[%s8311_s1 + $0x370] sm:$0xff] }
  0x51   :  { %3602 = vmatprep.subr.bf16.mxu1 %v5419_v37  ;;  %v504_v36 = vld [vmem:[%s8311_s1 + $0xf10] sm:$0xff]  ;;  %v5229_v40 = vcombine.high %v120_v34, %v132_v35  ;;  %v5228_v46 = vcombine.low %v120_v34, %v132_v35 }
  0x52   :  { %v516_v37 = vld [vmem:[%s8311_s1 + $0xf70] sm:$0xff] }
  0x53   :  { %3630 = vmatpush1.bf16.msra.mxu0 %v5610_v42  ;;  %v5613_v41 = vcombine.high %v504_v36, %v516_v37  ;;  %v96_v42 = vld [vmem:[%s8311_s1 + $0x250] sm:$0xff]  ;;  %v5612_v47 = vcombine.low %v504_v36, %v516_v37 }
  0x54   :  { %3603 = vmatpush2.bf16.msra.mxu1 %v5418_v43  ;;  %3631 = vmatprep.subr.bf16.mxu0 %v5587_v44  ;;  %v108_v43 = vld [vmem:[%s8311_s1 + $0x2b0] sm:$0xff] }
  0x55   :  { %3604 = vmatprep.subr.bf16.mxu1 %v5395_v45  ;;  %v480_v44 = vld [vmem:[%s8311_s1 + $0xe50] sm:$0xff]  ;;  %v5205_v48 = vcombine.high %v96_v42, %v108_v43  ;;  %v5204_v54 = vcombine.low %v96_v42, %v108_v43 }
  0x56   :  { %v492_v45 = vld [vmem:[%s8311_s1 + $0xeb0] sm:$0xff] }
  0x57   :  { %3632 = vmatpush1.bf16.msra.mxu0 %v5586_v50  ;;  %v5589_v49 = vcombine.high %v480_v44, %v492_v45  ;;  %v72_v50 = vld [vmem:[%s8311_s1 + $0x190] sm:$0xff]  ;;  %v5588_v55 = vcombine.low %v480_v44, %v492_v45 }
  0x58   :  { %3605 = vmatpush2.bf16.msra.mxu1 %v5394_v51  ;;  %3633 = vmatprep.subr.bf16.mxu0 %v5563_v52  ;;  %v84_v51 = vld [vmem:[%s8311_s1 + $0x1f0] sm:$0xff] }
  0x59   :  { %3606 = vmatprep.subr.bf16.mxu1 %v5371_v53  ;;  %v456_v52 = vld [vmem:[%s8311_s1 + $0xd90] sm:$0xff]  ;;  %v5181_v56 = vcombine.high %v72_v50, %v84_v51  ;;  %v5180_v63 = vcombine.low %v72_v50, %v84_v51 }
  0x5a   :  { %v468_v53 = vld [vmem:[%s8311_s1 + $0xdf0] sm:$0xff] }
  0x5b   :  { %3634 = vmatpush1.bf16.msra.mxu0 %v5562_v58  ;;  %v5565_v57 = vcombine.high %v456_v52, %v468_v53  ;;  %v48_v58 = vld [vmem:[%s8311_s1 + $0xd0] sm:$0xff]  ;;  %v5564_v0 = vcombine.low %v456_v52, %v468_v53 }
  0x5c   :  { %3607 = vmatpush2.bf16.msra.mxu1 %v5370_v60  ;;  %3635 = vmatprep.subr.bf16.mxu0 %v5539_v61  ;;  %v60_v60 = vld [vmem:[%s8311_s1 + $0x130] sm:$0xff] }
  0x5d   :  { %3608 = vmatprep.subr.bf16.mxu1 %v5347_v62  ;;  %v432_v61 = vld [vmem:[%s8311_s1 + $0xcd0] sm:$0xff]  ;;  %v5157_v1 = vcombine.high %v48_v58, %v60_v60  ;;  %v5156_v8 = vcombine.low %v48_v58, %v60_v60 }
  0x5e   :  { %v444_v62 = vld [vmem:[%s8311_s1 + $0xd30] sm:$0xff] }
  0x5f   :  { %3636 = vmatpush1.bf16.msra.mxu0 %v5538_v4  ;;  %v5541_v2 = vcombine.high %v432_v61, %v444_v62  ;;  %v24_v4 = vld [vmem:[%s8311_s1 + $0x10] sm:$0xff]  ;;  %v5540_v9 = vcombine.low %v432_v61, %v444_v62 }
  0x60   :  { %3609 = vmatpush2.bf16.msra.mxu1 %v5346_v5  ;;  %3637 = vmatprep.subr.bf16.mxu0 %v5515_v6  ;;  %v36_v5 = vld [vmem:[%s8311_s1 + $0x70] sm:$0xff] }
  0x61   :  { %3610 = vmatprep.subr.bf16.mxu1 %v5323_v7  ;;  %v408_v6 = vld [vmem:[%s8311_s1 + $0xc10] sm:$0xff]  ;;  %v5133_v10 = vcombine.high %v24_v4, %v36_v5  ;;  %v5132_v18 = vcombine.low %v24_v4, %v36_v5 }
  0x62   :  { %v420_v7 = vld [vmem:[%s8311_s1 + $0xc70] sm:$0xff] }
  0x63   :  { %3638 = vmatpush1.bf16.msra.mxu0 %v5514_v12  ;;  %v5517_v11 = vcombine.high %v408_v6, %v420_v7  ;;  %v384_v12 = vld [vmem:[%s8311_s1 + $0xb50] sm:$0xff]  ;;  %v5516_v19 = vcombine.low %v408_v6, %v420_v7 }
  0x64   :  { %3611 = vmatpush2.bf16.msra.mxu1 %v5322_v14  ;;  %3666 = vmatprep.subr.bf16.mxu0 %v5301_v16  ;;  %v396_v14 = vld [vmem:[%s8311_s1 + $0xbb0] sm:$0xff]  ;;  %v193_v16 = vld [vmem:[%s8311_s1 + $0x558] sm:$0xff] }
  0x65   :  { %3709 = vmatprep.subr.bf16.mxu1 %v5685_v17  ;;  %v205_v17 = vld [vmem:[%s8311_s1 + $0x5b8] sm:$0xff]  ;;  %v5493_v20 = vcombine.high %v384_v12, %v396_v14  ;;  %v5492_v26 = vcombine.low %v384_v12, %v396_v14  ;;  %v264_v53 = vld [vmem:[%s8311_s1 + $0x790] sm:$0xff] }
  0x66   :  { %3656 = vmatmul.mubr.bf16.vlgmr.msra.gmra.mxu0 %v5927_v13  ;;  %v5303_v21 = vcombine.high %v193_v16, %v205_v17  ;;  %v5302_v27 = vcombine.low %v193_v16, %v205_v17  ;;  %v240_v62 = vld [vmem:[%s8311_s1 + $0x6d0] sm:$0xff]  ;;  %v577_v17 = vld [vmem:[%s8311_s1 + $0x1158] sm:$0xff] }
  0x67   :  { %3613 = vmatmul.mubr.bf16.vlgmr.msra.gmra.mxu1 %v6024_v15  ;;  %3667 = vmatpush1.bf16.msra.mxu0 %v5300_v22  ;;  %v360_v22 = vld [vmem:[%s8311_s1 + $0xa90] sm:$0xff] }
  0x68   :  { %3710 = vmatpush1.bf16.msra.mxu1 %v5684_v23  ;;  %3668 = vmatprep.subr.bf16.mxu0 %v5277_v24  ;;  %v372_v23 = vld [vmem:[%s8311_s1 + $0xaf0] sm:$0xff]  ;;  %v169_v24 = vld [vmem:[%s8311_s1 + $0x498] sm:$0xff] }
  0x69   :  { %3711 = vmatprep.subr.bf16.mxu1 %v5661_v25  ;;  %3741 = vmatprep.mubr.bf16.mxu1 %v5769_v3  ;;  %v181_v25 = vld [vmem:[%s8311_s1 + $0x4f8] sm:$0xff]  ;;  %v5469_v28 = vcombine.high %v360_v22, %v372_v23  ;;  %v5468_v34 = vcombine.low %v360_v22, %v372_v23  ;;  %v216_v7 = vld [vmem:[%s8311_s1 + $0x610] sm:$0xff] }
  0x6a   :  { %3698 = vmatprep.mubr.bf16.mxu0 %v5897_v59  ;;  %v5279_v29 = vcombine.high %v169_v24, %v181_v25  ;;  %v5278_v35 = vcombine.low %v169_v24, %v181_v25  ;;  %v553_v25 = vld [vmem:[%s8311_s1 + $0x1098] sm:$0xff] }
  0x6b   :  { %3669 = vmatpush1.bf16.msra.mxu0 %v5276_v30  ;;  %v336_v30 = vld [vmem:[%s8311_s1 + $0x9d0] sm:$0xff] }
  0x6c   :  { %3712 = vmatpush1.bf16.msra.mxu1 %v5660_v31  ;;  %3670 = vmatprep.subr.bf16.mxu0 %v5253_v32  ;;  %v348_v31 = vld [vmem:[%s8311_s1 + $0xa30] sm:$0xff]  ;;  %v145_v32 = vld [vmem:[%s8311_s1 + $0x3d8] sm:$0xff] }
  0x6d   :  { %3713 = vmatprep.subr.bf16.mxu1 %v5637_v33  ;;  %v157_v33 = vld [vmem:[%s8311_s1 + $0x438] sm:$0xff]  ;;  %v5445_v36 = vcombine.high %v336_v30, %v348_v31  ;;  %v5444_v42 = vcombine.low %v336_v30, %v348_v31 }
  0x6e   :  { %v5255_v37 = vcombine.high %v145_v32, %v157_v33  ;;  %v5254_v43 = vcombine.low %v145_v32, %v157_v33  ;;  %v529_v33 = vld [vmem:[%s8311_s1 + $0xfd8] sm:$0xff] }
  0x6f   :  { %3671 = vmatpush1.bf16.msra.mxu0 %v5252_v38  ;;  %v312_v38 = vld [vmem:[%s8311_s1 + $0x910] sm:$0xff] }
  0x70   :  { %3714 = vmatpush1.bf16.msra.mxu1 %v5636_v39  ;;  %3672 = vmatprep.subr.bf16.mxu0 %v5229_v40  ;;  %v324_v39 = vld [vmem:[%s8311_s1 + $0x970] sm:$0xff]  ;;  %v121_v40 = vld [vmem:[%s8311_s1 + $0x318] sm:$0xff] }
  0x71   :  { %3715 = vmatprep.subr.bf16.mxu1 %v5613_v41  ;;  %v133_v41 = vld [vmem:[%s8311_s1 + $0x378] sm:$0xff]  ;;  %v5421_v44 = vcombine.high %v312_v38, %v324_v39 }
  0x72   :  { %v5231_v45 = vcombine.high %v121_v40, %v133_v41  ;;  %v5230_v50 = vcombine.low %v121_v40, %v133_v41  ;;  %v505_v41 = vld [vmem:[%s8311_s1 + $0xf18] sm:$0xff] }
  0x73   :  { %3673 = vmatpush1.bf16.msra.mxu0 %v5228_v46  ;;  %v300_v46 = vld [vmem:[%s8311_s1 + $0x8b0] sm:$0xff] }
  0x74   :  { %3716 = vmatpush1.bf16.msra.mxu1 %v5612_v47  ;;  %3674 = vmatprep.subr.bf16.mxu0 %v5205_v48  ;;  %v97_v47 = vld [vmem:[%s8311_s1 + $0x258] sm:$0xff] }
  0x75   :  { %3717 = vmatprep.subr.bf16.mxu1 %v5589_v49  ;;  %v109_v48 = vld [vmem:[%s8311_s1 + $0x2b8] sm:$0xff]  ;;  %v5420_v49 = vcombine.low %v312_v38, %v324_v39 }
  0x76   :  { %v5207_v52 = vcombine.high %v97_v47, %v109_v48  ;;  %v5206_v58 = vcombine.low %v97_v47, %v109_v48  ;;  %v481_v48 = vld [vmem:[%s8311_s1 + $0xe58] sm:$0xff] }
  0x77   :  { %3675 = vmatpush1.bf16.msra.mxu0 %v5204_v54  ;;  %v276_v54 = vld [vmem:[%s8311_s1 + $0x7f0] sm:$0xff] }
  0x78   :  { %3718 = vmatpush1.bf16.msra.mxu1 %v5588_v55  ;;  %3676 = vmatprep.subr.bf16.mxu0 %v5181_v56  ;;  %v73_v55 = vld [vmem:[%s8311_s1 + $0x198] sm:$0xff]  ;;  %v5373_v60 = vcombine.high %v264_v53, %v276_v54 }
  0x79   :  { %3719 = vmatprep.subr.bf16.mxu1 %v5565_v57  ;;  %v85_v56 = vld [vmem:[%s8311_s1 + $0x1f8] sm:$0xff] }
  0x7a   :  { %v5183_v61 = vcombine.high %v73_v55, %v85_v56  ;;  %v5182_v4 = vcombine.low %v73_v55, %v85_v56  ;;  %v457_v56 = vld [vmem:[%s8311_s1 + $0xd98] sm:$0xff] }
  0x7b   :  { %3677 = vmatpush1.bf16.msra.mxu0 %v5180_v63  ;;  %v252_v63 = vld [vmem:[%s8311_s1 + $0x730] sm:$0xff] }
  0x7c   :  { %3720 = vmatpush1.bf16.msra.mxu1 %v5564_v0  ;;  %3678 = vmatprep.subr.bf16.mxu0 %v5157_v1  ;;  %v49_v0 = vld [vmem:[%s8311_s1 + $0xd8] sm:$0xff]  ;;  %v5349_v5 = vcombine.high %v240_v62, %v252_v63 }
  0x7d   :  { %3721 = vmatprep.subr.bf16.mxu1 %v5541_v2  ;;  %v61_v1 = vld [vmem:[%s8311_s1 + $0x138] sm:$0xff]  ;;  %v5372_v2 = vcombine.low %v264_v53, %v276_v54 }
  0x7e   :  { %v5159_v6 = vcombine.high %v49_v0, %v61_v1  ;;  %v5158_v12 = vcombine.low %v49_v0, %v61_v1  ;;  %v433_v1 = vld [vmem:[%s8311_s1 + $0xcd8] sm:$0xff] }
  0x7f   :  { %3679 = vmatpush1.bf16.msra.mxu0 %v5156_v8  ;;  %v228_v8 = vld [vmem:[%s8311_s1 + $0x670] sm:$0xff] }
  0x80   :  { %3722 = vmatpush1.bf16.msra.mxu1 %v5540_v9  ;;  %3680 = vmatprep.subr.bf16.mxu0 %v5133_v10  ;;  %v25_v9 = vld [vmem:[%s8311_s1 + $0x18] sm:$0xff]  ;;  %v5325_v14 = vcombine.high %v216_v7, %v228_v8 }
  0x81   :  { %3723 = vmatprep.subr.bf16.mxu1 %v5517_v11  ;;  %v37_v10 = vld [vmem:[%s8311_s1 + $0x78] sm:$0xff]  ;;  %v5348_v11 = vcombine.low %v240_v62, %v252_v63 }
  0x82   :  { %v5135_v16 = vcombine.high %v25_v9, %v37_v10  ;;  %v5134_v22 = vcombine.low %v25_v9, %v37_v10  ;;  %v409_v10 = vld [vmem:[%s8311_s1 + $0xc18] sm:$0xff] }
  0x83   :  { %3681 = vmatpush1.bf16.msra.mxu0 %v5132_v18  ;;  %v589_v18 = vld [vmem:[%s8311_s1 + $0x11b8] sm:$0xff] }
  0x84   :  { %3724 = vmatpush1.bf16.msra.mxu1 %v5516_v19  ;;  %3682 = vmatprep.subr.bf16.mxu0 %v5493_v20  ;;  %v385_v19 = vld [vmem:[%s8311_s1 + $0xb58] sm:$0xff]  ;;  %v5687_v23 = vcombine.high %v577_v17, %v589_v18 }
  0x85   :  { %3752 = vmatprep.subr.bf16.mxu1 %v5303_v21  ;;  %v397_v20 = vld [vmem:[%s8311_s1 + $0xbb8] sm:$0xff]  ;;  %v5324_v21 = vcombine.low %v216_v7, %v228_v8 }
  0x86   :  { %v5495_v24 = vcombine.high %v385_v19, %v397_v20  ;;  %v5494_v30 = vcombine.low %v385_v19, %v397_v20  ;;  %v194_v20 = vld [vmem:[%s8311_s1 + $0x560] sm:$0xff] }
  0x87   :  { %3742 = vmatmul.mubr.bf16.vlgmr.msra.gmra.mxu1 %v5927_v13  ;;  %3683 = vmatpush2.bf16.msra.mxu0 %v5492_v26  ;;  %v565_v26 = vld [vmem:[%s8311_s1 + $0x10f8] sm:$0xff] }
  0x88   :  { %3753 = vmatpush1.bf16.msra.mxu1 %v5302_v27  ;;  %3684 = vmatprep.subr.bf16.mxu0 %v5469_v28  ;;  %v361_v27 = vld [vmem:[%s8311_s1 + $0xa98] sm:$0xff]  ;;  %v5663_v31 = vcombine.high %v553_v25, %v565_v26 }
  0x89   :  { %3754 = vmatprep.subr.bf16.mxu1 %v5279_v29  ;;  %3784 = vmatprep.mubr.bf16.mxu1 %v5897_v59  ;;  %v288_v59 = vld [vmem:[%s8311_s1 + $0x850] sm:$0xff]  ;;  %v373_v28 = vld [vmem:[%s8311_s1 + $0xaf8] sm:$0xff]  ;;  %v5686_v29 = vcombine.low %v577_v17, %v589_v18 }
  0x8a   :  { %v5397_v51 = vcombine.high %v288_v59, %v300_v46  ;;  %v5396_v57 = vcombine.low %v288_v59, %v300_v46  ;;  %v5471_v32 = vcombine.high %v361_v27, %v373_v28  ;;  %v5470_v38 = vcombine.low %v361_v27, %v373_v28  ;;  %v170_v28 = vld [vmem:[%s8311_s1 + $0x4a0] sm:$0xff] }
  0x8b   :  { %3685 = vmatpush2.bf16.msra.mxu0 %v5468_v34  ;;  %v541_v34 = vld [vmem:[%s8311_s1 + $0x1038] sm:$0xff] }
  0x8c   :  { %3755 = vmatpush1.bf16.msra.mxu1 %v5278_v35  ;;  %3686 = vmatprep.subr.bf16.mxu0 %v5445_v36  ;;  %v337_v35 = vld [vmem:[%s8311_s1 + $0x9d8] sm:$0xff]  ;;  %v5639_v39 = vcombine.high %v529_v33, %v541_v34 }
  0x8d   :  { %3756 = vmatprep.subr.bf16.mxu1 %v5255_v37  ;;  %v349_v36 = vld [vmem:[%s8311_s1 + $0xa38] sm:$0xff]  ;;  %v5662_v37 = vcombine.low %v553_v25, %v565_v26 }
  0x8e   :  { %v5447_v40 = vcombine.high %v337_v35, %v349_v36  ;;  %v5446_v59 = vcombine.low %v337_v35, %v349_v36  ;;  %v146_v36 = vld [vmem:[%s8311_s1 + $0x3e0] sm:$0xff] }
  0x8f   :  { %3687 = vmatpush2.bf16.msra.mxu0 %v5444_v42  ;;  %v517_v42 = vld [vmem:[%s8311_s1 + $0xf78] sm:$0xff] }
  0x90   :  { %3757 = vmatpush1.bf16.msra.mxu1 %v5254_v43  ;;  %3688 = vmatprep.subr.bf16.mxu0 %v5421_v44  ;;  %v313_v43 = vld [vmem:[%s8311_s1 + $0x918] sm:$0xff]  ;;  %v5615_v46 = vcombine.high %v505_v41, %v517_v42 }
  0x91   :  { %3758 = vmatprep.subr.bf16.mxu1 %v5231_v45  ;;  %v325_v44 = vld [vmem:[%s8311_s1 + $0x978] sm:$0xff]  ;;  %v5638_v45 = vcombine.low %v529_v33, %v541_v34 }
  0x92   :  { %v5423_v47 = vcombine.high %v313_v43, %v325_v44  ;;  %v5422_v53 = vcombine.low %v313_v43, %v325_v44  ;;  %v134_v44 = vld [vmem:[%s8311_s1 + $0x380] sm:$0xff] }
  0x93   :  { %3689 = vmatpush2.bf16.msra.mxu0 %v5420_v49  ;;  %v493_v49 = vld [vmem:[%s8311_s1 + $0xeb8] sm:$0xff] }
  0x94   :  { %3759 = vmatpush1.bf16.msra.mxu1 %v5230_v50  ;;  %3690 = vmatprep.subr.bf16.mxu0 %v5397_v51  ;;  %v289_v50 = vld [vmem:[%s8311_s1 + $0x858] sm:$0xff]  ;;  %v5591_v54 = vcombine.high %v481_v48, %v493_v49 }
  0x95   :  { %3760 = vmatprep.subr.bf16.mxu1 %v5207_v52  ;;  %v301_v51 = vld [vmem:[%s8311_s1 + $0x8b8] sm:$0xff]  ;;  %v5614_v52 = vcombine.low %v505_v41, %v517_v42 }
  0x96   :  { %v5399_v55 = vcombine.high %v289_v50, %v301_v51  ;;  %v5398_v62 = vcombine.low %v289_v50, %v301_v51  ;;  %v98_v50 = vld [vmem:[%s8311_s1 + $0x260] sm:$0xff] }
  0x97   :  { %3691 = vmatpush2.bf16.msra.mxu0 %v5396_v57  ;;  %v469_v57 = vld [vmem:[%s8311_s1 + $0xdf8] sm:$0xff]  ;;  %v110_v51 = vld [vmem:[%s8311_s1 + $0x2c0] sm:$0xff] }
  0x98   :  { %3761 = vmatpush1.bf16.msra.mxu1 %v5206_v58  ;;  %3692 = vmatprep.subr.bf16.mxu0 %v5373_v60  ;;  %v265_v58 = vld [vmem:[%s8311_s1 + $0x798] sm:$0xff]  ;;  %v5567_v63 = vcombine.high %v457_v56, %v469_v57 }
  0x99   :  { %3762 = vmatprep.subr.bf16.mxu1 %v5183_v61  ;;  %v277_v60 = vld [vmem:[%s8311_s1 + $0x7f8] sm:$0xff]  ;;  %v5590_v61 = vcombine.low %v481_v48, %v493_v49 }
  0x9a   :  { %v5375_v0 = vcombine.high %v265_v58, %v277_v60  ;;  %v5374_v7 = vcombine.low %v265_v58, %v277_v60  ;;  %v74_v58 = vld [vmem:[%s8311_s1 + $0x1a0] sm:$0xff] }
  0x9b   :  { %3693 = vmatpush2.bf16.msra.mxu0 %v5372_v2  ;;  %v445_v2 = vld [vmem:[%s8311_s1 + $0xd38] sm:$0xff]  ;;  %v86_v60 = vld [vmem:[%s8311_s1 + $0x200] sm:$0xff] }
  0x9c   :  { %3763 = vmatpush1.bf16.msra.mxu1 %v5182_v4  ;;  %3694 = vmatprep.subr.bf16.mxu0 %v5349_v5  ;;  %v241_v4 = vld [vmem:[%s8311_s1 + $0x6d8] sm:$0xff]  ;;  %v5543_v8 = vcombine.high %v433_v1, %v445_v2 }
  0x9d   :  { %3764 = vmatprep.subr.bf16.mxu1 %v5159_v6  ;;  %v253_v5 = vld [vmem:[%s8311_s1 + $0x738] sm:$0xff]  ;;  %v5566_v6 = vcombine.low %v457_v56, %v469_v57  ;;  %v5209_v56 = vcombine.high %v98_v50, %v110_v51 }
  0x9e   :  { %v5351_v9 = vcombine.high %v241_v4, %v253_v5  ;;  %v5350_v17 = vcombine.low %v241_v4, %v253_v5  ;;  %v50_v4 = vld [vmem:[%s8311_s1 + $0xe0] sm:$0xff] }
  0x9f   :  { %3695 = vmatpush2.bf16.msra.mxu0 %v5348_v11  ;;  %v421_v11 = vld [vmem:[%s8311_s1 + $0xc78] sm:$0xff]  ;;  %v62_v5 = vld [vmem:[%s8311_s1 + $0x140] sm:$0xff] }
  0xa0   :  { %3765 = vmatpush1.bf16.msra.mxu1 %v5158_v12  ;;  %3696 = vmatprep.subr.bf16.mxu0 %v5325_v14  ;;  %v217_v12 = vld [vmem:[%s8311_s1 + $0x618] sm:$0xff]  ;;  %v5519_v18 = vcombine.high %v409_v10, %v421_v11 }
  0xa1   :  { %3766 = vmatprep.subr.bf16.mxu1 %v5135_v16  ;;  %v229_v14 = vld [vmem:[%s8311_s1 + $0x678] sm:$0xff]  ;;  %v5542_v16 = vcombine.low %v433_v1, %v445_v2  ;;  %v5185_v1 = vcombine.high %v74_v58, %v86_v60 }
  0xa2   :  { %v5327_v19 = vcombine.high %v217_v12, %v229_v14  ;;  %v5326_v25 = vcombine.low %v217_v12, %v229_v14  ;;  %v26_v12 = vld [vmem:[%s8311_s1 + $0x20] sm:$0xff] }
  0xa3   :  { %3697 = vmatpush2.bf16.msra.mxu0 %v5324_v21  ;;  %v206_v21 = vld [vmem:[%s8311_s1 + $0x5c0] sm:$0xff] }
  0xa4   :  { %3767 = vmatpush1.bf16.msra.mxu1 %v5134_v22  ;;  %3795 = vmatprep.subr.bf16.mxu0 %v5687_v23  ;;  %v578_v22 = vld [vmem:[%s8311_s1 + $0x1160] sm:$0xff]  ;;  %v5305_v26 = vcombine.high %v194_v20, %v206_v21 }
  0xa5   :  { %3768 = vmatprep.subr.bf16.mxu1 %v5495_v24  ;;  %v590_v23 = vld [vmem:[%s8311_s1 + $0x11c0] sm:$0xff]  ;;  %v5518_v24 = vcombine.low %v409_v10, %v421_v11  ;;  %v5161_v10 = vcombine.high %v50_v4, %v62_v5 }
  0xa6   :  { %3699 = vmatmul.mubr.bf16.vlgmr.msra.gmra.mxu0 %v6024_v15  ;;  %v5689_v27 = vcombine.high %v578_v22, %v590_v23  ;;  %v5688_v33 = vcombine.low %v578_v22, %v590_v23  ;;  %v38_v14 = vld [vmem:[%s8311_s1 + $0x80] sm:$0xff] }
  0xa7   :  { %3796 = vmatpush1.bf16.msra.mxu0 %v5686_v29  ;;  %3827 = vmatprep.mubr.bf16.mxu0 %v5769_v3  ;;  %v182_v29 = vld [vmem:[%s8311_s1 + $0x500] sm:$0xff] }
  0xa8   :  { %3769 = vmatpush2.bf16.msra.mxu1 %v5494_v30  ;;  %3797 = vmatprep.subr.bf16.mxu0 %v5663_v31  ;;  %v554_v30 = vld [vmem:[%s8311_s1 + $0x10a0] sm:$0xff]  ;;  %v5281_v34 = vcombine.high %v170_v28, %v182_v29 }
  0xa9   :  { %3770 = vmatprep.subr.bf16.mxu1 %v5471_v32  ;;  %v566_v31 = vld [vmem:[%s8311_s1 + $0x1100] sm:$0xff]  ;;  %v5304_v32 = vcombine.low %v194_v20, %v206_v21  ;;  %v5137_v20 = vcombine.high %v26_v12, %v38_v14 }
  0xaa   :  { %v5665_v35 = vcombine.high %v554_v30, %v566_v31  ;;  %v5664_v41 = vcombine.low %v554_v30, %v566_v31  ;;  %v386_v22 = vld [vmem:[%s8311_s1 + $0xb60] sm:$0xff] }
  0xab   :  { %3798 = vmatpush1.bf16.msra.mxu0 %v5662_v37  ;;  %v158_v37 = vld [vmem:[%s8311_s1 + $0x440] sm:$0xff] }
  0xac   :  { %3771 = vmatpush2.bf16.msra.mxu1 %v5470_v38  ;;  %3799 = vmatprep.subr.bf16.mxu0 %v5639_v39  ;;  %v530_v38 = vld [vmem:[%s8311_s1 + $0xfe0] sm:$0xff]  ;;  %v5257_v42 = vcombine.high %v146_v36, %v158_v37 }
  0xad   :  { %3772 = vmatprep.subr.bf16.mxu1 %v5447_v40  ;;  %v542_v39 = vld [vmem:[%s8311_s1 + $0x1040] sm:$0xff]  ;;  %v5280_v40 = vcombine.low %v170_v28, %v182_v29 }
  0xae   :  { %v5641_v43 = vcombine.high %v530_v38, %v542_v39  ;;  %v398_v23 = vld [vmem:[%s8311_s1 + $0xbc0] sm:$0xff] }
  0xaf   :  { %3800 = vmatpush1.bf16.msra.mxu0 %v5638_v45  ;;  %v518_v45 = vld [vmem:[%s8311_s1 + $0xf80] sm:$0xff]  ;;  %v5497_v28 = vcombine.high %v386_v22, %v398_v23 }
  0xb0   :  { %3773 = vmatpush2.bf16.msra.mxu1 %v5446_v59  ;;  %3801 = vmatprep.subr.bf16.mxu0 %v5615_v46  ;;  %v6456_v59 = vld [vmem:[%s8312_s0 + $0x4] ss:$12 sps:$4 sm:$0xff]   ;;  %v5256_v46 = vcombine.low %v146_v36, %v158_v37 }
  0xb1   :  { %3774 = vmatprep.subr.bf16.mxu1 %v5423_v47  ;;  %v5640_v47 = vcombine.low %v530_v38, %v542_v39  ;;  %v362_v30 = vld [vmem:[%s8311_s1 + $0xaa0] sm:$0xff] }
  0xb2   :  { %v374_v31 = vld [vmem:[%s8311_s1 + $0xb00] sm:$0xff] }
  0xb3   :  { %3802 = vmatpush1.bf16.msra.mxu0 %v5614_v52  ;;  %v482_v52 = vld [vmem:[%s8311_s1 + $0xe60] sm:$0xff]  ;;  %v5473_v36 = vcombine.high %v362_v30, %v374_v31 }
  0xb4   :  { %3775 = vmatpush2.bf16.msra.mxu1 %v5422_v53  ;;  %3803 = vmatprep.subr.bf16.mxu0 %v5591_v54  ;;  %v494_v53 = vld [vmem:[%s8311_s1 + $0xec0] sm:$0xff] }
  0xb5   :  { %3776 = vmatprep.subr.bf16.mxu1 %v5399_v55  ;;  %v5593_v57 = vcombine.high %v482_v52, %v494_v53  ;;  %v338_v38 = vld [vmem:[%s8311_s1 + $0x9e0] sm:$0xff] }
  0xb6   :  { %v350_v39 = vld [vmem:[%s8311_s1 + $0xa40] sm:$0xff] }
  0xb7   :  { %3804 = vmatpush1.bf16.msra.mxu0 %v5590_v61  ;;  %v458_v61 = vld [vmem:[%s8311_s1 + $0xda0] sm:$0xff] }
  0xb8   :  { %3777 = vmatpush2.bf16.msra.mxu1 %v5398_v62  ;;  %3805 = vmatprep.subr.bf16.mxu0 %v5567_v63  ;;  %v470_v62 = vld [vmem:[%s8311_s1 + $0xe00] sm:$0xff]  ;;  %v5208_v63 = vcombine.low %v98_v50, %v110_v51 }
  0xb9   :  { %3778 = vmatprep.subr.bf16.mxu1 %v5375_v0  ;;  %v5592_v0 = vcombine.low %v482_v52, %v494_v53  ;;  %v5569_v2 = vcombine.high %v458_v61, %v470_v62  ;;  %v290_v53 = vld [vmem:[%s8311_s1 + $0x860] sm:$0xff] }
  0xbb   :  { %3806 = vmatpush1.bf16.msra.mxu0 %v5566_v6  ;;  %v434_v6 = vld [vmem:[%s8311_s1 + $0xce0] sm:$0xff] }
  0xbc   :  { %3779 = vmatpush2.bf16.msra.mxu1 %v5374_v7  ;;  %3807 = vmatprep.subr.bf16.mxu0 %v5543_v8  ;;  %v446_v7 = vld [vmem:[%s8311_s1 + $0xd40] sm:$0xff]  ;;  %v5184_v8 = vcombine.low %v74_v58, %v86_v60 }
  0xbd   :  { %3780 = vmatprep.subr.bf16.mxu1 %v5351_v9  ;;  %v5568_v9 = vcombine.low %v458_v61, %v470_v62  ;;  %v5545_v11 = vcombine.high %v434_v6, %v446_v7  ;;  %v266_v62 = vld [vmem:[%s8311_s1 + $0x7a0] sm:$0xff] }
  0xbf   :  { %3808 = vmatpush1.bf16.msra.mxu0 %v5542_v16  ;;  %v410_v16 = vld [vmem:[%s8311_s1 + $0xc20] sm:$0xff] }
  0xc0   :  { %3781 = vmatpush2.bf16.msra.mxu1 %v5350_v17  ;;  %3809 = vmatprep.subr.bf16.mxu0 %v5519_v18  ;;  %v422_v17 = vld [vmem:[%s8311_s1 + $0xc80] sm:$0xff]  ;;  %v5160_v18 = vcombine.low %v50_v4, %v62_v5 }
  0xc1   :  { %3782 = vmatprep.subr.bf16.mxu1 %v5327_v19  ;;  %v5544_v19 = vcombine.low %v434_v6, %v446_v7  ;;  %v5521_v21 = vcombine.high %v410_v16, %v422_v17  ;;  %v242_v7 = vld [vmem:[%s8311_s1 + $0x6e0] sm:$0xff] }
  0xc3   :  { %3810 = vmatpush1.bf16.msra.mxu0 %v5518_v24  ;;  %v195_v24 = vld [vmem:[%s8311_s1 + $0x568] sm:$0xff] }
  0xc4   :  { %3783 = vmatpush2.bf16.msra.mxu1 %v5326_v25  ;;  %3838 = vmatprep.subr.bf16.mxu0 %v5305_v26  ;;  %v207_v25 = vld [vmem:[%s8311_s1 + $0x5c8] sm:$0xff]  ;;  %v5136_v26 = vcombine.low %v26_v12, %v38_v14 }
  0xc5   :  { %3881 = vmatprep.subr.bf16.mxu1 %v5689_v27  ;;  %v5520_v27 = vcombine.low %v410_v16, %v422_v17  ;;  %v5307_v29 = vcombine.high %v195_v24, %v207_v25  ;;  %v218_v17 = vld [vmem:[%s8311_s1 + $0x620] sm:$0xff] }
  0xc6   :  { %3828 = vmatmul.mubr.bf16.vlgmr.msra.gmra.mxu0 %v5927_v13  ;;  %v122_v13 = vld [vmem:[%s8311_s1 + $0x320] sm:$0xff] }
  0xc7   :  { %3785 = vmatmul.mubr.bf16.vlgmr.msra.gmra.mxu1 %v6024_v15  ;;  %3839 = vmatpush1.bf16.msra.mxu0 %v5304_v32  ;;  %v506_v15 = vld [vmem:[%s8311_s1 + $0xf20] sm:$0xff]  ;;  %v5233_v48 = vcombine.high %v122_v13, %v134_v44  ;;  %v5232_v54 = vcombine.low %v122_v13, %v134_v44  ;;  %v171_v32 = vld [vmem:[%s8311_s1 + $0x4a8] sm:$0xff]  ;;  %v5449_v44 = vcombine.high %v338_v38, %v350_v39 }
  0xc8   :  { %3882 = vmatpush1.bf16.msra.mxu1 %v5688_v33  ;;  %3840 = vmatprep.subr.bf16.mxu0 %v5281_v34  ;;  %v5617_v49 = vcombine.high %v506_v15, %v518_v45  ;;  %v5616_v55 = vcombine.low %v506_v15, %v518_v45  ;;  %v183_v33 = vld [vmem:[%s8311_s1 + $0x508] sm:$0xff]  ;;  %v5496_v34 = vcombine.low %v386_v22, %v398_v23  ;;  %v314_v45 = vld [vmem:[%s8311_s1 + $0x920] sm:$0xff] }
  0xc9   :  { %3883 = vmatprep.subr.bf16.mxu1 %v5665_v35  ;;  %3913 = vmatprep.mubr.bf16.mxu1 %v5769_v3  ;;  %v5306_v35 = vcombine.low %v195_v24, %v207_v25  ;;  %v5283_v37 = vcombine.high %v171_v32, %v183_v33  ;;  %v5282_v13 = vcombine.low %v171_v32, %v183_v33  ;;  %v579_v25 = vld [vmem:[%s8311_s1 + $0x1168] sm:$0xff] }
  0xca   :  { %3870 = vmatprep.mubr.bf16.mxu0 %v6456_v59  ;;  %v555_v33 = vld [vmem:[%s8311_s1 + $0x10a8] sm:$0xff] }
  0xcb   :  { %3841 = vmatpush1.bf16.msra.mxu0 %v5280_v40  ;;  %v147_v40 = vld [vmem:[%s8311_s1 + $0x3e8] sm:$0xff] }
  0xcc   :  { %3884 = vmatpush1.bf16.msra.mxu1 %v5664_v41  ;;  %3842 = vmatprep.subr.bf16.mxu0 %v5257_v42  ;;  %v159_v41 = vld [vmem:[%s8311_s1 + $0x448] sm:$0xff] }
  0xcd   :  { %3885 = vmatprep.subr.bf16.mxu1 %v5641_v43  ;;  %v6546_v42 = vld [vmem:[%s8312_s0 + $0x8] ss:$12 sps:$4 sm:$0xff]   ;;  %v5472_v43 = vcombine.low %v362_v30, %v374_v31  ;;  %v5259_v15 = vcombine.high %v147_v40, %v159_v41  ;;  %v5258_v50 = vcombine.low %v147_v40, %v159_v41 }
  0xce   :  { %v531_v41 = vld [vmem:[%s8311_s1 + $0xfe8] sm:$0xff] }
  0xcf   :  { %3843 = vmatpush1.bf16.msra.mxu0 %v5256_v46  ;;  %v326_v46 = vld [vmem:[%s8311_s1 + $0x980] sm:$0xff] }
  0xd0   :  { %3886 = vmatpush1.bf16.msra.mxu1 %v5640_v47  ;;  %3844 = vmatprep.subr.bf16.mxu0 %v5233_v48  ;;  %v123_v47 = vld [vmem:[%s8311_s1 + $0x328] sm:$0xff]  ;;  %v5425_v51 = vcombine.high %v314_v45, %v326_v46 }
  0xd1   :  { %3887 = vmatprep.subr.bf16.mxu1 %v5617_v49  ;;  %v135_v48 = vld [vmem:[%s8311_s1 + $0x388] sm:$0xff]  ;;  %v5448_v49 = vcombine.low %v338_v38, %v350_v39 }
  0xd2   :  { %v5235_v52 = vcombine.high %v123_v47, %v135_v48  ;;  %v5234_v58 = vcombine.low %v123_v47, %v135_v48 }
  0xd3   :  { %3845 = vmatpush1.bf16.msra.mxu0 %v5232_v54  ;;  %v302_v54 = vld [vmem:[%s8311_s1 + $0x8c0] sm:$0xff] }
  0xd4   :  { %3888 = vmatpush1.bf16.msra.mxu1 %v5616_v55  ;;  %3846 = vmatprep.subr.bf16.mxu0 %v5209_v56  ;;  %v99_v55 = vld [vmem:[%s8311_s1 + $0x268] sm:$0xff]  ;;  %v5401_v60 = vcombine.high %v290_v53, %v302_v54 }
  0xd5   :  { %3889 = vmatprep.subr.bf16.mxu1 %v5593_v57  ;;  %v111_v56 = vld [vmem:[%s8311_s1 + $0x2c8] sm:$0xff]  ;;  %v5424_v57 = vcombine.low %v314_v45, %v326_v46 }
  0xd6   :  { %v5211_v61 = vcombine.high %v99_v55, %v111_v56  ;;  %v5210_v4 = vcombine.low %v99_v55, %v111_v56 }
  0xd7   :  { %3847 = vmatpush1.bf16.msra.mxu0 %v5208_v63  ;;  %v278_v63 = vld [vmem:[%s8311_s1 + $0x800] sm:$0xff] }
  0xd8   :  { %3890 = vmatpush1.bf16.msra.mxu1 %v5592_v0  ;;  %3848 = vmatprep.subr.bf16.mxu0 %v5185_v1  ;;  %v75_v0 = vld [vmem:[%s8311_s1 + $0x1a8] sm:$0xff]  ;;  %v5377_v5 = vcombine.high %v266_v62, %v278_v63 }
  0xd9   :  { %3891 = vmatprep.subr.bf16.mxu1 %v5569_v2  ;;  %v87_v1 = vld [vmem:[%s8311_s1 + $0x208] sm:$0xff]  ;;  %v5400_v2 = vcombine.low %v290_v53, %v302_v54 }
  0xda   :  { %v5187_v6 = vcombine.high %v75_v0, %v87_v1  ;;  %v5186_v12 = vcombine.low %v75_v0, %v87_v1 }
  0xdb   :  { %3849 = vmatpush1.bf16.msra.mxu0 %v5184_v8  ;;  %v254_v8 = vld [vmem:[%s8311_s1 + $0x740] sm:$0xff] }
  0xdc   :  { %3892 = vmatpush1.bf16.msra.mxu1 %v5568_v9  ;;  %3850 = vmatprep.subr.bf16.mxu0 %v5161_v10  ;;  %v51_v9 = vld [vmem:[%s8311_s1 + $0xe8] sm:$0xff]  ;;  %v5353_v14 = vcombine.high %v242_v7, %v254_v8 }
  0xdd   :  { %3893 = vmatprep.subr.bf16.mxu1 %v5545_v11  ;;  %v63_v10 = vld [vmem:[%s8311_s1 + $0x148] sm:$0xff]  ;;  %v5376_v11 = vcombine.low %v266_v62, %v278_v63 }
  0xde   :  { %v5163_v16 = vcombine.high %v51_v9, %v63_v10  ;;  %v5162_v22 = vcombine.low %v51_v9, %v63_v10 }
  0xdf   :  { %3851 = vmatpush1.bf16.msra.mxu0 %v5160_v18  ;;  %v230_v18 = vld [vmem:[%s8311_s1 + $0x680] sm:$0xff] }
  0xe0   :  { %3894 = vmatpush1.bf16.msra.mxu1 %v5544_v19  ;;  %3852 = vmatprep.subr.bf16.mxu0 %v5137_v20  ;;  %v27_v19 = vld [vmem:[%s8311_s1 + $0x28] sm:$0xff]  ;;  %v5329_v23 = vcombine.high %v218_v17, %v230_v18 }
  0xe1   :  { %3895 = vmatprep.subr.bf16.mxu1 %v5521_v21  ;;  %v39_v20 = vld [vmem:[%s8311_s1 + $0x88] sm:$0xff]  ;;  %v5352_v21 = vcombine.low %v242_v7, %v254_v8 }
  0xe2   :  { %v5139_v24 = vcombine.high %v27_v19, %v39_v20  ;;  %v5138_v30 = vcombine.low %v27_v19, %v39_v20 }
  0xe3   :  { %3853 = vmatpush1.bf16.msra.mxu0 %v5136_v26  ;;  %v591_v26 = vld [vmem:[%s8311_s1 + $0x11c8] sm:$0xff] }
  0xe4   :  { %3896 = vmatpush1.bf16.msra.mxu1 %v5520_v27  ;;  %3854 = vmatprep.subr.bf16.mxu0 %v5497_v28  ;;  %v387_v27 = vld [vmem:[%s8311_s1 + $0xb68] sm:$0xff]  ;;  %v5691_v31 = vcombine.high %v579_v25, %v591_v26 }
  0xe5   :  { %3924 = vmatprep.subr.bf16.mxu1 %v5307_v29  ;;  %v399_v28 = vld [vmem:[%s8311_s1 + $0xbc8] sm:$0xff]  ;;  %v5328_v29 = vcombine.low %v218_v17, %v230_v18 }
  0xe6   :  { %v5499_v32 = vcombine.high %v387_v27, %v399_v28  ;;  %v5498_v38 = vcombine.low %v387_v27, %v399_v28 }
  0xe7   :  { %3914 = vmatmul.mubr.bf16.vlgmr.msra.gmra.mxu1 %v6546_v42  ;;  %3855 = vmatpush2.bf16.msra.mxu0 %v5496_v34  ;;  %v567_v34 = vld [vmem:[%s8311_s1 + $0x1108] sm:$0xff] }
  0xe8   :  { %3925 = vmatpush1.bf16.msra.mxu1 %v5306_v35  ;;  %3856 = vmatprep.subr.bf16.mxu0 %v5473_v36  ;;  %v363_v35 = vld [vmem:[%s8311_s1 + $0xaa8] sm:$0xff]  ;;  %v5667_v39 = vcombine.high %v555_v33, %v567_v34  ;;  %v5666_v45 = vcombine.low %v555_v33, %v567_v34 }
  0xe9   :  { %3926 = vmatprep.subr.bf16.mxu1 %v5283_v37  ;;  %3956 = vmatprep.mubr.bf16.mxu1 %v6456_v59  ;;  %v375_v36 = vld [vmem:[%s8311_s1 + $0xb08] sm:$0xff]  ;;  %v5690_v37 = vcombine.low %v579_v25, %v591_v26 }
  0xea   :  { %v5475_v40 = vcombine.high %v363_v35, %v375_v36  ;;  %v5474_v46 = vcombine.low %v363_v35, %v375_v36 }
  0xeb   :  { %3857 = vmatpush2.bf16.msra.mxu0 %v5472_v43  ;;  %v543_v43 = vld [vmem:[%s8311_s1 + $0x1048] sm:$0xff] }
  0xec   :  { %3927 = vmatpush1.bf16.msra.mxu1 %v5282_v13  ;;  %3858 = vmatprep.subr.bf16.mxu0 %v5449_v44  ;;  %v6643_v13 = vld [vmem:[%s8312_s0] ss:$12 sps:$4 sm:$0xff]   ;;  %v5643_v47 = vcombine.high %v531_v41, %v543_v43  ;;  %v5642_v53 = vcombine.low %v531_v41, %v543_v43 }
  0xed   :  { %3928 = vmatprep.subr.bf16.mxu1 %v5259_v15  ;;  %v339_v44 = vld [vmem:[%s8311_s1 + $0x9e8] sm:$0xff] }
  0xee   :  { %v351_v15 = vld [vmem:[%s8311_s1 + $0xa48] sm:$0xff] }
  0xef   :  { %3859 = vmatpush2.bf16.msra.mxu0 %v5448_v49  ;;  %v5451_v48 = vcombine.high %v339_v44, %v351_v15  ;;  %v507_v49 = vld [vmem:[%s8311_s1 + $0xf28] sm:$0xff]  ;;  %v5450_v54 = vcombine.low %v339_v44, %v351_v15 }
  0xf0   :  { %3929 = vmatpush1.bf16.msra.mxu1 %v5258_v50  ;;  %3860 = vmatprep.subr.bf16.mxu0 %v5425_v51  ;;  %v519_v50 = vld [vmem:[%s8311_s1 + $0xf88] sm:$0xff] }
  0xf1   :  { %3930 = vmatprep.subr.bf16.mxu1 %v5235_v52  ;;  %v315_v51 = vld [vmem:[%s8311_s1 + $0x928] sm:$0xff]  ;;  %v5619_v55 = vcombine.high %v507_v49, %v519_v50  ;;  %v5618_v62 = vcombine.low %v507_v49, %v519_v50 }
  0xf2   :  { %v327_v52 = vld [vmem:[%s8311_s1 + $0x988] sm:$0xff] }
  0xf3   :  { %3861 = vmatpush2.bf16.msra.mxu0 %v5424_v57  ;;  %v5427_v56 = vcombine.high %v315_v51, %v327_v52  ;;  %v483_v57 = vld [vmem:[%s8311_s1 + $0xe68] sm:$0xff]  ;;  %v5426_v63 = vcombine.low %v315_v51, %v327_v52 }
  0xf4   :  { %3931 = vmatpush1.bf16.msra.mxu1 %v5234_v58  ;;  %3862 = vmatprep.subr.bf16.mxu0 %v5401_v60  ;;  %v495_v58 = vld [vmem:[%s8311_s1 + $0xec8] sm:$0xff] }
  0xf5   :  { %3932 = vmatprep.subr.bf16.mxu1 %v5211_v61  ;;  %v291_v60 = vld [vmem:[%s8311_s1 + $0x868] sm:$0xff]  ;;  %v5595_v0 = vcombine.high %v483_v57, %v495_v58  ;;  %v5594_v7 = vcombine.low %v483_v57, %v495_v58 }
  0xf6   :  { %v303_v61 = vld [vmem:[%s8311_s1 + $0x8c8] sm:$0xff] }
  0xf7   :  { %3863 = vmatpush2.bf16.msra.mxu0 %v5400_v2  ;;  %v5403_v1 = vcombine.high %v291_v60, %v303_v61  ;;  %v459_v2 = vld [vmem:[%s8311_s1 + $0xda8] sm:$0xff]  ;;  %v5402_v8 = vcombine.low %v291_v60, %v303_v61 }
  0xf8   :  { %3933 = vmatpush1.bf16.msra.mxu1 %v5210_v4  ;;  %3864 = vmatprep.subr.bf16.mxu0 %v5377_v5  ;;  %v471_v4 = vld [vmem:[%s8311_s1 + $0xe08] sm:$0xff] }
  0xf9   :  { %3934 = vmatprep.subr.bf16.mxu1 %v5187_v6  ;;  %v267_v5 = vld [vmem:[%s8311_s1 + $0x7a8] sm:$0xff]  ;;  %v5571_v9 = vcombine.high %v459_v2, %v471_v4  ;;  %v5570_v17 = vcombine.low %v459_v2, %v471_v4 }
  0xfa   :  { %v279_v6 = vld [vmem:[%s8311_s1 + $0x808] sm:$0xff] }
  0xfb   :  { %3865 = vmatpush2.bf16.msra.mxu0 %v5376_v11  ;;  %v5379_v10 = vcombine.high %v267_v5, %v279_v6  ;;  %v435_v11 = vld [vmem:[%s8311_s1 + $0xce8] sm:$0xff]  ;;  %v5378_v18 = vcombine.low %v267_v5, %v279_v6 }
  0xfc   :  { %3935 = vmatpush1.bf16.msra.mxu1 %v5186_v12  ;;  %3866 = vmatprep.subr.bf16.mxu0 %v5353_v14  ;;  %v447_v12 = vld [vmem:[%s8311_s1 + $0xd48] sm:$0xff] }
  0xfd   :  { %3936 = vmatprep.subr.bf16.mxu1 %v5163_v16  ;;  %v243_v14 = vld [vmem:[%s8311_s1 + $0x6e8] sm:$0xff]  ;;  %v5547_v19 = vcombine.high %v435_v11, %v447_v12  ;;  %v5546_v25 = vcombine.low %v435_v11, %v447_v12 }
  0xfe   :  { %v255_v16 = vld [vmem:[%s8311_s1 + $0x748] sm:$0xff] }
  0xff   :  { %3867 = vmatpush2.bf16.msra.mxu0 %v5352_v21  ;;  %v5355_v20 = vcombine.high %v243_v14, %v255_v16  ;;  %v411_v21 = vld [vmem:[%s8311_s1 + $0xc28] sm:$0xff]  ;;  %v5354_v26 = vcombine.low %v243_v14, %v255_v16 }
 0x100   :  { %3937 = vmatpush1.bf16.msra.mxu1 %v5162_v22  ;;  %3868 = vmatprep.subr.bf16.mxu0 %v5329_v23  ;;  %v423_v22 = vld [vmem:[%s8311_s1 + $0xc88] sm:$0xff] }
 0x101   :  { %3938 = vmatprep.subr.bf16.mxu1 %v5139_v24  ;;  %v219_v23 = vld [vmem:[%s8311_s1 + $0x628] sm:$0xff]  ;;  %v5523_v27 = vcombine.high %v411_v21, %v423_v22  ;;  %v5522_v33 = vcombine.low %v411_v21, %v423_v22 }
 0x102   :  { %v231_v24 = vld [vmem:[%s8311_s1 + $0x688] sm:$0xff] }
 0x103   :  { %3869 = vmatpush2.bf16.msra.mxu0 %v5328_v29  ;;  %v5331_v28 = vcombine.high %v219_v23, %v231_v24  ;;  %v196_v29 = vld [vmem:[%s8311_s1 + $0x570] sm:$0xff]  ;;  %v5330_v34 = vcombine.low %v219_v23, %v231_v24 }
 0x104   :  { %3939 = vmatpush1.bf16.msra.mxu1 %v5138_v30  ;;  %3967 = vmatprep.subr.bf16.mxu0 %v5691_v31  ;;  %v208_v30 = vld [vmem:[%s8311_s1 + $0x5d0] sm:$0xff] }
 0x105   :  { %3940 = vmatprep.subr.bf16.mxu1 %v5499_v32  ;;  %v580_v31 = vld [vmem:[%s8311_s1 + $0x1170] sm:$0xff]  ;;  %v5309_v35 = vcombine.high %v196_v29, %v208_v30  ;;  %v5308_v41 = vcombine.low %v196_v29, %v208_v30 }
 0x106   :  { %3871 = vmatmul.mubr.bf16.vlgmr.msra.gmra.mxu0 %v6643_v13  ;;  %v592_v32 = vld [vmem:[%s8311_s1 + $0x11d0] sm:$0xff] }
 0x107   :  { %3968 = vmatpush1.bf16.msra.mxu0 %v5690_v37  ;;  %3999 = vmatprep.mubr.bf16.mxu0 %v5769_v3  ;;  %v5693_v36 = vcombine.high %v580_v31, %v592_v32  ;;  %v172_v37 = vld [vmem:[%s8311_s1 + $0x4b0] sm:$0xff]  ;;  %v5692_v43 = vcombine.low %v580_v31, %v592_v32 }
 0x108   :  { %3941 = vmatpush2.bf16.msra.mxu1 %v5498_v38  ;;  %3969 = vmatprep.subr.bf16.mxu0 %v5667_v39  ;;  %v184_v38 = vld [vmem:[%s8311_s1 + $0x510] sm:$0xff] }
 0x109   :  { %3942 = vmatprep.subr.bf16.mxu1 %v5475_v40  ;;  %v556_v39 = vld [vmem:[%s8311_s1 + $0x10b0] sm:$0xff]  ;;  %v5285_v44 = vcombine.high %v172_v37, %v184_v38  ;;  %v5284_v49 = vcombine.low %v172_v37, %v184_v38 }
 0x10a   :  { %v568_v40 = vld [vmem:[%s8311_s1 + $0x1110] sm:$0xff] }
 0x10b   :  { %3970 = vmatpush1.bf16.msra.mxu0 %v5666_v45  ;;  %v5669_v15 = vcombine.high %v556_v39, %v568_v40  ;;  %v148_v45 = vld [vmem:[%s8311_s1 + $0x3f0] sm:$0xff]  ;;  %v5668_v50 = vcombine.low %v556_v39, %v568_v40 }
 0x10c   :  { %3943 = vmatpush2.bf16.msra.mxu1 %v5474_v46  ;;  %3971 = vmatprep.subr.bf16.mxu0 %v5643_v47  ;;  %v160_v46 = vld [vmem:[%s8311_s1 + $0x450] sm:$0xff] }
 0x10d   :  { %3944 = vmatprep.subr.bf16.mxu1 %v5451_v48  ;;  %v532_v47 = vld [vmem:[%s8311_s1 + $0xff0] sm:$0xff]  ;;  %v5261_v51 = vcombine.high %v148_v45, %v160_v46  ;;  %v5260_v57 = vcombine.low %v148_v45, %v160_v46 }
 0x10e   :  { %v544_v48 = vld [vmem:[%s8311_s1 + $0x1050] sm:$0xff] }
 0x10f   :  { %3972 = vmatpush1.bf16.msra.mxu0 %v5642_v53  ;;  %v5645_v52 = vcombine.high %v532_v47, %v544_v48  ;;  %v124_v53 = vld [vmem:[%s8311_s1 + $0x330] sm:$0xff]  ;;  %v5644_v58 = vcombine.low %v532_v47, %v544_v48 }
 0x110   :  { %3945 = vmatpush2.bf16.msra.mxu1 %v5450_v54  ;;  %3973 = vmatprep.subr.bf16.mxu0 %v5619_v55  ;;  %v136_v54 = vld [vmem:[%s8311_s1 + $0x390] sm:$0xff] }
 0x111   :  { %3946 = vmatprep.subr.bf16.mxu1 %v5427_v56  ;;  %v508_v55 = vld [vmem:[%s8311_s1 + $0xf30] sm:$0xff]  ;;  %v5237_v60 = vcombine.high %v124_v53, %v136_v54  ;;  %v5236_v2 = vcombine.low %v124_v53, %v136_v54 }
 0x112   :  { %v520_v56 = vld [vmem:[%s8311_s1 + $0xf90] sm:$0xff] }
 0x113   :  { %3974 = vmatpush1.bf16.msra.mxu0 %v5618_v62  ;;  %v5621_v61 = vcombine.high %v508_v55, %v520_v56  ;;  %v100_v62 = vld [vmem:[%s8311_s1 + $0x270] sm:$0xff]  ;;  %v5620_v4 = vcombine.low %v508_v55, %v520_v56 }
 0x114   :  { %3947 = vmatpush2.bf16.msra.mxu1 %v5426_v63  ;;  %3975 = vmatprep.subr.bf16.mxu0 %v5595_v0  ;;  %v112_v63 = vld [vmem:[%s8311_s1 + $0x2d0] sm:$0xff] }
 0x115   :  { %3948 = vmatprep.subr.bf16.mxu1 %v5403_v1  ;;  %v484_v0 = vld [vmem:[%s8311_s1 + $0xe70] sm:$0xff]  ;;  %v5213_v5 = vcombine.high %v100_v62, %v112_v63  ;;  %v5212_v11 = vcombine.low %v100_v62, %v112_v63 }
 0x116   :  { %v496_v1 = vld [vmem:[%s8311_s1 + $0xed0] sm:$0xff] }
 0x117   :  { %3976 = vmatpush1.bf16.msra.mxu0 %v5594_v7  ;;  %v5597_v6 = vcombine.high %v484_v0, %v496_v1  ;;  %v76_v7 = vld [vmem:[%s8311_s1 + $0x1b0] sm:$0xff]  ;;  %v5596_v12 = vcombine.low %v484_v0, %v496_v1 }
 0x118   :  { %3949 = vmatpush2.bf16.msra.mxu1 %v5402_v8  ;;  %3977 = vmatprep.subr.bf16.mxu0 %v5571_v9  ;;  %v88_v8 = vld [vmem:[%s8311_s1 + $0x210] sm:$0xff] }
 0x119   :  { %3950 = vmatprep.subr.bf16.mxu1 %v5379_v10  ;;  %v460_v9 = vld [vmem:[%s8311_s1 + $0xdb0] sm:$0xff]  ;;  %v5189_v14 = vcombine.high %v76_v7, %v88_v8  ;;  %v5188_v21 = vcombine.low %v76_v7, %v88_v8 }
 0x11a   :  { %v472_v10 = vld [vmem:[%s8311_s1 + $0xe10] sm:$0xff] }
 0x11b   :  { %3978 = vmatpush1.bf16.msra.mxu0 %v5570_v17  ;;  %v5573_v16 = vcombine.high %v460_v9, %v472_v10  ;;  %v52_v17 = vld [vmem:[%s8311_s1 + $0xf0] sm:$0xff]  ;;  %v5572_v22 = vcombine.low %v460_v9, %v472_v10 }
 0x11c   :  { %3951 = vmatpush2.bf16.msra.mxu1 %v5378_v18  ;;  %3979 = vmatprep.subr.bf16.mxu0 %v5547_v19  ;;  %v64_v18 = vld [vmem:[%s8311_s1 + $0x150] sm:$0xff] }
 0x11d   :  { %3952 = vmatprep.subr.bf16.mxu1 %v5355_v20  ;;  %v436_v19 = vld [vmem:[%s8311_s1 + $0xcf0] sm:$0xff]  ;;  %v5165_v23 = vcombine.high %v52_v17, %v64_v18  ;;  %v5164_v29 = vcombine.low %v52_v17, %v64_v18 }
 0x11e   :  { %v448_v20 = vld [vmem:[%s8311_s1 + $0xd50] sm:$0xff] }
 0x11f   :  { %3980 = vmatpush1.bf16.msra.mxu0 %v5546_v25  ;;  %v5549_v24 = vcombine.high %v436_v19, %v448_v20  ;;  %v28_v25 = vld [vmem:[%s8311_s1 + $0x30] sm:$0xff]  ;;  %v5548_v30 = vcombine.low %v436_v19, %v448_v20 }
 0x120   :  { %3953 = vmatpush2.bf16.msra.mxu1 %v5354_v26  ;;  %3981 = vmatprep.subr.bf16.mxu0 %v5523_v27  ;;  %v40_v26 = vld [vmem:[%s8311_s1 + $0x90] sm:$0xff] }
 0x121   :  { %3954 = vmatprep.subr.bf16.mxu1 %v5331_v28  ;;  %v412_v27 = vld [vmem:[%s8311_s1 + $0xc30] sm:$0xff]  ;;  %v5141_v31 = vcombine.high %v28_v25, %v40_v26  ;;  %v5140_v37 = vcombine.low %v28_v25, %v40_v26 }
 0x122   :  { %v424_v28 = vld [vmem:[%s8311_s1 + $0xc90] sm:$0xff] }
 0x123   :  { %3982 = vmatpush1.bf16.msra.mxu0 %v5522_v33  ;;  %v5525_v32 = vcombine.high %v412_v27, %v424_v28  ;;  %v388_v33 = vld [vmem:[%s8311_s1 + $0xb70] sm:$0xff]  ;;  %v5524_v38 = vcombine.low %v412_v27, %v424_v28 }
 0x124   :  { %3955 = vmatpush2.bf16.msra.mxu1 %v5330_v34  ;;  %4010 = vmatprep.subr.bf16.mxu0 %v5309_v35  ;;  %v400_v34 = vld [vmem:[%s8311_s1 + $0xbd0] sm:$0xff]  ;;  %v197_v35 = vld [vmem:[%s8311_s1 + $0x578] sm:$0xff] }
 0x125   :  { %4053 = vmatprep.subr.bf16.mxu1 %v5693_v36  ;;  %v209_v36 = vld [vmem:[%s8311_s1 + $0x5d8] sm:$0xff]  ;;  %v5501_v39 = vcombine.high %v388_v33, %v400_v34  ;;  %v5500_v45 = vcombine.low %v388_v33, %v400_v34  ;;  %v268_v10 = vld [vmem:[%s8311_s1 + $0x7b0] sm:$0xff] }
 0x126   :  { %4000 = vmatmul.mubr.bf16.vlgmr.msra.gmra.mxu0 %v6546_v42  ;;  %v5311_v40 = vcombine.high %v197_v35, %v209_v36  ;;  %v5310_v46 = vcombine.low %v197_v35, %v209_v36  ;;  %v244_v20 = vld [vmem:[%s8311_s1 + $0x6f0] sm:$0xff]  ;;  %v581_v36 = vld [vmem:[%s8311_s1 + $0x1178] sm:$0xff] }
 0x127   :  { %3957 = vmatmul.mubr.bf16.vlgmr.msra.gmra.mxu1 %v6643_v13  ;;  %4011 = vmatpush1.bf16.msra.mxu0 %v5308_v41  ;;  %v364_v41 = vld [vmem:[%s8311_s1 + $0xab0] sm:$0xff] }
 0x128   :  { %4054 = vmatpush1.bf16.msra.mxu1 %v5692_v43  ;;  %4012 = vmatprep.subr.bf16.mxu0 %v5285_v44  ;;  %v376_v43 = vld [vmem:[%s8311_s1 + $0xb10] sm:$0xff]  ;;  %v173_v44 = vld [vmem:[%s8311_s1 + $0x4b8] sm:$0xff] }
 0x129   :  { %4055 = vmatprep.subr.bf16.mxu1 %v5669_v15  ;;  %4085 = vmatprep.mubr.bf16.mxu1 %v5769_v3  ;;  %v185_v15 = vld [vmem:[%s8311_s1 + $0x518] sm:$0xff]  ;;  %v5477_v47 = vcombine.high %v364_v41, %v376_v43  ;;  %v5476_v53 = vcombine.low %v364_v41, %v376_v43  ;;  %v220_v28 = vld [vmem:[%s8311_s1 + $0x630] sm:$0xff] }
 0x12a   :  { %4042 = vmatprep.mubr.bf16.mxu0 %v6456_v59  ;;  %v5287_v48 = vcombine.high %v173_v44, %v185_v15  ;;  %v5286_v54 = vcombine.low %v173_v44, %v185_v15  ;;  %v557_v15 = vld [vmem:[%s8311_s1 + $0x10b8] sm:$0xff] }
 0x12b   :  { %4013 = vmatpush1.bf16.msra.mxu0 %v5284_v49  ;;  %v340_v49 = vld [vmem:[%s8311_s1 + $0x9f0] sm:$0xff] }
 0x12c   :  { %4056 = vmatpush1.bf16.msra.mxu1 %v5668_v50  ;;  %4014 = vmatprep.subr.bf16.mxu0 %v5261_v51  ;;  %v352_v50 = vld [vmem:[%s8311_s1 + $0xa50] sm:$0xff]  ;;  %v149_v51 = vld [vmem:[%s8311_s1 + $0x3f8] sm:$0xff] }
 0x12d   :  { %4057 = vmatprep.subr.bf16.mxu1 %v5645_v52  ;;  %v161_v52 = vld [vmem:[%s8311_s1 + $0x458] sm:$0xff]  ;;  %v5453_v55 = vcombine.high %v340_v49, %v352_v50  ;;  %v5452_v62 = vcombine.low %v340_v49, %v352_v50 }
 0x12e   :  { %v5263_v56 = vcombine.high %v149_v51, %v161_v52  ;;  %v5262_v63 = vcombine.low %v149_v51, %v161_v52  ;;  %v533_v52 = vld [vmem:[%s8311_s1 + $0xff8] sm:$0xff] }
 0x12f   :  { %4015 = vmatpush1.bf16.msra.mxu0 %v5260_v57  ;;  %v316_v57 = vld [vmem:[%s8311_s1 + $0x930] sm:$0xff] }
 0x130   :  { %4058 = vmatpush1.bf16.msra.mxu1 %v5644_v58  ;;  %4016 = vmatprep.subr.bf16.mxu0 %v5237_v60  ;;  %v328_v58 = vld [vmem:[%s8311_s1 + $0x990] sm:$0xff]  ;;  %v125_v60 = vld [vmem:[%s8311_s1 + $0x338] sm:$0xff] }
 0x131   :  { %4059 = vmatprep.subr.bf16.mxu1 %v5621_v61  ;;  %v137_v61 = vld [vmem:[%s8311_s1 + $0x398] sm:$0xff]  ;;  %v5429_v0 = vcombine.high %v316_v57, %v328_v58 }
 0x132   :  { %v5239_v1 = vcombine.high %v125_v60, %v137_v61  ;;  %v5238_v7 = vcombine.low %v125_v60, %v137_v61  ;;  %v509_v61 = vld [vmem:[%s8311_s1 + $0xf38] sm:$0xff] }
 0x133   :  { %4017 = vmatpush1.bf16.msra.mxu0 %v5236_v2  ;;  %v304_v2 = vld [vmem:[%s8311_s1 + $0x8d0] sm:$0xff] }
 0x134   :  { %4060 = vmatpush1.bf16.msra.mxu1 %v5620_v4  ;;  %4018 = vmatprep.subr.bf16.mxu0 %v5213_v5  ;;  %v101_v4 = vld [vmem:[%s8311_s1 + $0x278] sm:$0xff] }
 0x135   :  { %4061 = vmatprep.subr.bf16.mxu1 %v5597_v6  ;;  %v113_v5 = vld [vmem:[%s8311_s1 + $0x2d8] sm:$0xff]  ;;  %v5428_v6 = vcombine.low %v316_v57, %v328_v58 }
 0x136   :  { %v5215_v9 = vcombine.high %v101_v4, %v113_v5  ;;  %v5214_v17 = vcombine.low %v101_v4, %v113_v5  ;;  %v485_v5 = vld [vmem:[%s8311_s1 + $0xe78] sm:$0xff] }
 0x137   :  { %4019 = vmatpush1.bf16.msra.mxu0 %v5212_v11  ;;  %v280_v11 = vld [vmem:[%s8311_s1 + $0x810] sm:$0xff] }
 0x138   :  { %4062 = vmatpush1.bf16.msra.mxu1 %v5596_v12  ;;  %4020 = vmatprep.subr.bf16.mxu0 %v5189_v14  ;;  %v77_v12 = vld [vmem:[%s8311_s1 + $0x1b8] sm:$0xff]  ;;  %v5381_v18 = vcombine.high %v268_v10, %v280_v11 }
 0x139   :  { %4063 = vmatprep.subr.bf16.mxu1 %v5573_v16  ;;  %v89_v14 = vld [vmem:[%s8311_s1 + $0x218] sm:$0xff] }
 0x13a   :  { %v5191_v19 = vcombine.high %v77_v12, %v89_v14  ;;  %v5190_v25 = vcombine.low %v77_v12, %v89_v14  ;;  %v461_v14 = vld [vmem:[%s8311_s1 + $0xdb8] sm:$0xff] }
 0x13b   :  { %4021 = vmatpush1.bf16.msra.mxu0 %v5188_v21  ;;  %v256_v21 = vld [vmem:[%s8311_s1 + $0x750] sm:$0xff] }
 0x13c   :  { %4064 = vmatpush1.bf16.msra.mxu1 %v5572_v22  ;;  %4022 = vmatprep.subr.bf16.mxu0 %v5165_v23  ;;  %v53_v22 = vld [vmem:[%s8311_s1 + $0xf8] sm:$0xff]  ;;  %v5357_v26 = vcombine.high %v244_v20, %v256_v21 }
 0x13d   :  { %4065 = vmatprep.subr.bf16.mxu1 %v5549_v24  ;;  %v65_v23 = vld [vmem:[%s8311_s1 + $0x158] sm:$0xff]  ;;  %v5380_v24 = vcombine.low %v268_v10, %v280_v11 }
 0x13e   :  { %v5167_v27 = vcombine.high %v53_v22, %v65_v23  ;;  %v5166_v33 = vcombine.low %v53_v22, %v65_v23  ;;  %v437_v23 = vld [vmem:[%s8311_s1 + $0xcf8] sm:$0xff] }
 0x13f   :  { %4023 = vmatpush1.bf16.msra.mxu0 %v5164_v29  ;;  %v232_v29 = vld [vmem:[%s8311_s1 + $0x690] sm:$0xff] }
 0x140   :  { %4066 = vmatpush1.bf16.msra.mxu1 %v5548_v30  ;;  %4024 = vmatprep.subr.bf16.mxu0 %v5141_v31  ;;  %v29_v30 = vld [vmem:[%s8311_s1 + $0x38] sm:$0xff]  ;;  %v5333_v34 = vcombine.high %v220_v28, %v232_v29 }
 0x141   :  { %4067 = vmatprep.subr.bf16.mxu1 %v5525_v32  ;;  %v41_v31 = vld [vmem:[%s8311_s1 + $0x98] sm:$0xff]  ;;  %v5356_v32 = vcombine.low %v244_v20, %v256_v21 }
 0x142   :  { %v5143_v35 = vcombine.high %v29_v30, %v41_v31  ;;  %v5142_v41 = vcombine.low %v29_v30, %v41_v31  ;;  %v413_v31 = vld [vmem:[%s8311_s1 + $0xc38] sm:$0xff] }
 0x143   :  { %4025 = vmatpush1.bf16.msra.mxu0 %v5140_v37  ;;  %v593_v37 = vld [vmem:[%s8311_s1 + $0x11d8] sm:$0xff] }
 0x144   :  { %4068 = vmatpush1.bf16.msra.mxu1 %v5524_v38  ;;  %4026 = vmatprep.subr.bf16.mxu0 %v5501_v39  ;;  %v389_v38 = vld [vmem:[%s8311_s1 + $0xb78] sm:$0xff]  ;;  %v5695_v43 = vcombine.high %v581_v36, %v593_v37 }
 0x145   :  { %4096 = vmatprep.subr.bf16.mxu1 %v5311_v40  ;;  %v401_v39 = vld [vmem:[%s8311_s1 + $0xbd8] sm:$0xff]  ;;  %v5332_v40 = vcombine.low %v220_v28, %v232_v29 }
 0x146   :  { %v5503_v44 = vcombine.high %v389_v38, %v401_v39  ;;  %v5502_v49 = vcombine.low %v389_v38, %v401_v39  ;;  %v198_v39 = vld [vmem:[%s8311_s1 + $0x580] sm:$0xff] }
 0x147   :  { %4086 = vmatmul.mubr.bf16.vlgmr.msra.gmra.mxu1 %v6546_v42  ;;  %4027 = vmatpush2.bf16.msra.mxu0 %v5500_v45  ;;  %v569_v45 = vld [vmem:[%s8311_s1 + $0x1118] sm:$0xff] }
 0x148   :  { %4097 = vmatpush1.bf16.msra.mxu1 %v5310_v46  ;;  %4028 = vmatprep.subr.bf16.mxu0 %v5477_v47  ;;  %v365_v46 = vld [vmem:[%s8311_s1 + $0xab8] sm:$0xff]  ;;  %v5671_v50 = vcombine.high %v557_v15, %v569_v45 }
 0x149   :  { %4098 = vmatprep.subr.bf16.mxu1 %v5287_v48  ;;  %4128 = vmatprep.mubr.bf16.mxu1 %v6456_v59  ;;  %v292_v59 = vld [vmem:[%s8311_s1 + $0x870] sm:$0xff]  ;;  %v377_v47 = vld [vmem:[%s8311_s1 + $0xb18] sm:$0xff]  ;;  %v5694_v48 = vcombine.low %v581_v36, %v593_v37 }
 0x14a   :  { %v5405_v8 = vcombine.high %v292_v59, %v304_v2  ;;  %v5404_v16 = vcombine.low %v292_v59, %v304_v2  ;;  %v5479_v51 = vcombine.high %v365_v46, %v377_v47  ;;  %v5478_v57 = vcombine.low %v365_v46, %v377_v47  ;;  %v174_v47 = vld [vmem:[%s8311_s1 + $0x4c0] sm:$0xff] }
 0x14b   :  { %4029 = vmatpush2.bf16.msra.mxu0 %v5476_v53  ;;  %v545_v53 = vld [vmem:[%s8311_s1 + $0x1058] sm:$0xff] }
 0x14c   :  { %4099 = vmatpush1.bf16.msra.mxu1 %v5286_v54  ;;  %4030 = vmatprep.subr.bf16.mxu0 %v5453_v55  ;;  %v341_v54 = vld [vmem:[%s8311_s1 + $0x9f8] sm:$0xff]  ;;  %v5647_v58 = vcombine.high %v533_v52, %v545_v53 }
 0x14d   :  { %4100 = vmatprep.subr.bf16.mxu1 %v5263_v56  ;;  %v353_v55 = vld [vmem:[%s8311_s1 + $0xa58] sm:$0xff]  ;;  %v5670_v56 = vcombine.low %v557_v15, %v569_v45 }
 0x14e   :  { %v5455_v60 = vcombine.high %v341_v54, %v353_v55  ;;  %v5454_v59 = vcombine.low %v341_v54, %v353_v55  ;;  %v150_v55 = vld [vmem:[%s8311_s1 + $0x400] sm:$0xff] }
 0x14f   :  { %4031 = vmatpush2.bf16.msra.mxu0 %v5452_v62  ;;  %v521_v62 = vld [vmem:[%s8311_s1 + $0xf98] sm:$0xff] }
 0x150   :  { %4101 = vmatpush1.bf16.msra.mxu1 %v5262_v63  ;;  %4032 = vmatprep.subr.bf16.mxu0 %v5429_v0  ;;  %v317_v63 = vld [vmem:[%s8311_s1 + $0x938] sm:$0xff]  ;;  %v5623_v2 = vcombine.high %v509_v61, %v521_v62 }
 0x151   :  { %4102 = vmatprep.subr.bf16.mxu1 %v5239_v1  ;;  %v329_v0 = vld [vmem:[%s8311_s1 + $0x998] sm:$0xff]  ;;  %v5646_v1 = vcombine.low %v533_v52, %v545_v53 }
 0x152   :  { %v5431_v4 = vcombine.high %v317_v63, %v329_v0  ;;  %v5430_v10 = vcombine.low %v317_v63, %v329_v0  ;;  %v138_v0 = vld [vmem:[%s8311_s1 + $0x3a0] sm:$0xff] }
 0x153   :  { %4033 = vmatpush2.bf16.msra.mxu0 %v5428_v6  ;;  %v497_v6 = vld [vmem:[%s8311_s1 + $0xed8] sm:$0xff] }
 0x154   :  { %4103 = vmatpush1.bf16.msra.mxu1 %v5238_v7  ;;  %4034 = vmatprep.subr.bf16.mxu0 %v5405_v8  ;;  %v293_v7 = vld [vmem:[%s8311_s1 + $0x878] sm:$0xff]  ;;  %v5599_v11 = vcombine.high %v485_v5, %v497_v6 }
 0x155   :  { %4104 = vmatprep.subr.bf16.mxu1 %v5215_v9  ;;  %v305_v8 = vld [vmem:[%s8311_s1 + $0x8d8] sm:$0xff]  ;;  %v5622_v9 = vcombine.low %v509_v61, %v521_v62 }
 0x156   :  { %v5407_v12 = vcombine.high %v293_v7, %v305_v8  ;;  %v5406_v20 = vcombine.low %v293_v7, %v305_v8  ;;  %v102_v7 = vld [vmem:[%s8311_s1 + $0x280] sm:$0xff] }
 0x157   :  { %4035 = vmatpush2.bf16.msra.mxu0 %v5404_v16  ;;  %v473_v16 = vld [vmem:[%s8311_s1 + $0xe18] sm:$0xff]  ;;  %v114_v8 = vld [vmem:[%s8311_s1 + $0x2e0] sm:$0xff] }
 0x158   :  { %4105 = vmatpush1.bf16.msra.mxu1 %v5214_v17  ;;  %4036 = vmatprep.subr.bf16.mxu0 %v5381_v18  ;;  %v269_v17 = vld [vmem:[%s8311_s1 + $0x7b8] sm:$0xff]  ;;  %v5575_v21 = vcombine.high %v461_v14, %v473_v16 }
 0x159   :  { %4106 = vmatprep.subr.bf16.mxu1 %v5191_v19  ;;  %v281_v18 = vld [vmem:[%s8311_s1 + $0x818] sm:$0xff]  ;;  %v5598_v19 = vcombine.low %v485_v5, %v497_v6 }
 0x15a   :  { %v5383_v22 = vcombine.high %v269_v17, %v281_v18  ;;  %v5382_v28 = vcombine.low %v269_v17, %v281_v18  ;;  %v78_v17 = vld [vmem:[%s8311_s1 + $0x1c0] sm:$0xff] }
 0x15b   :  { %4037 = vmatpush2.bf16.msra.mxu0 %v5380_v24  ;;  %v449_v24 = vld [vmem:[%s8311_s1 + $0xd58] sm:$0xff]  ;;  %v90_v18 = vld [vmem:[%s8311_s1 + $0x220] sm:$0xff] }
 0x15c   :  { %4107 = vmatpush1.bf16.msra.mxu1 %v5190_v25  ;;  %4038 = vmatprep.subr.bf16.mxu0 %v5357_v26  ;;  %v245_v25 = vld [vmem:[%s8311_s1 + $0x6f8] sm:$0xff]  ;;  %v5551_v29 = vcombine.high %v437_v23, %v449_v24 }
 0x15d   :  { %4108 = vmatprep.subr.bf16.mxu1 %v5167_v27  ;;  %v257_v26 = vld [vmem:[%s8311_s1 + $0x758] sm:$0xff]  ;;  %v5574_v27 = vcombine.low %v461_v14, %v473_v16  ;;  %v5217_v14 = vcombine.high %v102_v7, %v114_v8 }
 0x15e   :  { %v5359_v30 = vcombine.high %v245_v25, %v257_v26  ;;  %v5358_v36 = vcombine.low %v245_v25, %v257_v26  ;;  %v54_v25 = vld [vmem:[%s8311_s1 + $0x100] sm:$0xff] }
 0x15f   :  { %4039 = vmatpush2.bf16.msra.mxu0 %v5356_v32  ;;  %v425_v32 = vld [vmem:[%s8311_s1 + $0xc98] sm:$0xff]  ;;  %v66_v26 = vld [vmem:[%s8311_s1 + $0x160] sm:$0xff] }
 0x160   :  { %4109 = vmatpush1.bf16.msra.mxu1 %v5166_v33  ;;  %4040 = vmatprep.subr.bf16.mxu0 %v5333_v34  ;;  %v221_v33 = vld [vmem:[%s8311_s1 + $0x638] sm:$0xff]  ;;  %v5527_v37 = vcombine.high %v413_v31, %v425_v32 }
 0x161   :  { %4110 = vmatprep.subr.bf16.mxu1 %v5143_v35  ;;  %v233_v34 = vld [vmem:[%s8311_s1 + $0x698] sm:$0xff]  ;;  %v5550_v35 = vcombine.low %v437_v23, %v449_v24  ;;  %v5193_v23 = vcombine.high %v78_v17, %v90_v18 }
 0x162   :  { %v5335_v38 = vcombine.high %v221_v33, %v233_v34  ;;  %v5334_v15 = vcombine.low %v221_v33, %v233_v34  ;;  %v30_v33 = vld [vmem:[%s8311_s1 + $0x40] sm:$0xff] }
 0x163   :  { %4041 = vmatpush2.bf16.msra.mxu0 %v5332_v40  ;;  %v210_v40 = vld [vmem:[%s8311_s1 + $0x5e0] sm:$0xff] }
 0x164   :  { %4111 = vmatpush1.bf16.msra.mxu1 %v5142_v41  ;;  %4139 = vmatprep.subr.bf16.mxu0 %v5695_v43  ;;  %v582_v41 = vld [vmem:[%s8311_s1 + $0x1180] sm:$0xff]  ;;  %v5313_v45 = vcombine.high %v198_v39, %v210_v40 }
 0x165   :  { %4112 = vmatprep.subr.bf16.mxu1 %v5503_v44  ;;  %v594_v43 = vld [vmem:[%s8311_s1 + $0x11e0] sm:$0xff]  ;;  %v5526_v44 = vcombine.low %v413_v31, %v425_v32  ;;  %v5169_v31 = vcombine.high %v54_v25, %v66_v26 }
 0x166   :  { %4043 = vmatmul.mubr.bf16.vlgmr.msra.gmra.mxu0 %v6643_v13  ;;  %v5697_v46 = vcombine.high %v582_v41, %v594_v43  ;;  %v5696_v52 = vcombine.low %v582_v41, %v594_v43  ;;  %v42_v34 = vld [vmem:[%s8311_s1 + $0xa0] sm:$0xff] }
 0x167   :  { %4140 = vmatpush1.bf16.msra.mxu0 %v5694_v48  ;;  %4171 = vmatprep.mubr.bf16.mxu0 %v5769_v3  ;;  %v186_v48 = vld [vmem:[%s8311_s1 + $0x520] sm:$0xff] }
 0x168   :  { %4113 = vmatpush2.bf16.msra.mxu1 %v5502_v49  ;;  %4141 = vmatprep.subr.bf16.mxu0 %v5671_v50  ;;  %v558_v49 = vld [vmem:[%s8311_s1 + $0x10c0] sm:$0xff]  ;;  %v5289_v53 = vcombine.high %v174_v47, %v186_v48 }
 0x169   :  { %4114 = vmatprep.subr.bf16.mxu1 %v5479_v51  ;;  %v570_v50 = vld [vmem:[%s8311_s1 + $0x1120] sm:$0xff]  ;;  %v5312_v51 = vcombine.low %v198_v39, %v210_v40  ;;  %v5145_v39 = vcombine.high %v30_v33, %v42_v34 }
 0x16a   :  { %v5673_v54 = vcombine.high %v558_v49, %v570_v50  ;;  %v5672_v61 = vcombine.low %v558_v49, %v570_v50  ;;  %v390_v41 = vld [vmem:[%s8311_s1 + $0xb80] sm:$0xff] }
 0x16b   :  { %4142 = vmatpush1.bf16.msra.mxu0 %v5670_v56  ;;  %v162_v56 = vld [vmem:[%s8311_s1 + $0x460] sm:$0xff] }
 0x16c   :  { %4115 = vmatpush2.bf16.msra.mxu1 %v5478_v57  ;;  %4143 = vmatprep.subr.bf16.mxu0 %v5647_v58  ;;  %v534_v57 = vld [vmem:[%s8311_s1 + $0x1000] sm:$0xff]  ;;  %v5265_v62 = vcombine.high %v150_v55, %v162_v56 }
 0x16d   :  { %4116 = vmatprep.subr.bf16.mxu1 %v5455_v60  ;;  %v546_v58 = vld [vmem:[%s8311_s1 + $0x1060] sm:$0xff]  ;;  %v5288_v60 = vcombine.low %v174_v47, %v186_v48 }
 0x16e   :  { %v5649_v63 = vcombine.high %v534_v57, %v546_v58  ;;  %v402_v43 = vld [vmem:[%s8311_s1 + $0xbe0] sm:$0xff] }
 0x16f   :  { %4144 = vmatpush1.bf16.msra.mxu0 %v5646_v1  ;;  %v522_v1 = vld [vmem:[%s8311_s1 + $0xfa0] sm:$0xff]  ;;  %v5505_v47 = vcombine.high %v390_v41, %v402_v43 }
 0x170   :  { %4117 = vmatpush2.bf16.msra.mxu1 %v5454_v59  ;;  %4145 = vmatprep.subr.bf16.mxu0 %v5623_v2  ;;  %v7063_v59 = vld [vmem:[%s8312_s0 + $0x4] ss:$12 sps:$4 sm:$0xff]   ;;  %v5264_v2 = vcombine.low %v150_v55, %v162_v56 }
 0x171   :  { %4118 = vmatprep.subr.bf16.mxu1 %v5431_v4  ;;  %v5648_v4 = vcombine.low %v534_v57, %v546_v58  ;;  %v366_v49 = vld [vmem:[%s8311_s1 + $0xac0] sm:$0xff] }
 0x172   :  { %v378_v50 = vld [vmem:[%s8311_s1 + $0xb20] sm:$0xff] }
 0x173   :  { %4146 = vmatpush1.bf16.msra.mxu0 %v5622_v9  ;;  %v486_v9 = vld [vmem:[%s8311_s1 + $0xe80] sm:$0xff]  ;;  %v5481_v55 = vcombine.high %v366_v49, %v378_v50 }
 0x174   :  { %4119 = vmatpush2.bf16.msra.mxu1 %v5430_v10  ;;  %4147 = vmatprep.subr.bf16.mxu0 %v5599_v11  ;;  %v498_v10 = vld [vmem:[%s8311_s1 + $0xee0] sm:$0xff] }
 0x175   :  { %4120 = vmatprep.subr.bf16.mxu1 %v5407_v12  ;;  %v5601_v16 = vcombine.high %v486_v9, %v498_v10  ;;  %v342_v57 = vld [vmem:[%s8311_s1 + $0xa00] sm:$0xff] }
 0x176   :  { %v354_v58 = vld [vmem:[%s8311_s1 + $0xa60] sm:$0xff] }
 0x177   :  { %4148 = vmatpush1.bf16.msra.mxu0 %v5598_v19  ;;  %v462_v19 = vld [vmem:[%s8311_s1 + $0xdc0] sm:$0xff] }
 0x178   :  { %4121 = vmatpush2.bf16.msra.mxu1 %v5406_v20  ;;  %4149 = vmatprep.subr.bf16.mxu0 %v5575_v21  ;;  %v474_v20 = vld [vmem:[%s8311_s1 + $0xe20] sm:$0xff]  ;;  %v5216_v21 = vcombine.low %v102_v7, %v114_v8 }
 0x179   :  { %4122 = vmatprep.subr.bf16.mxu1 %v5383_v22  ;;  %v5600_v22 = vcombine.low %v486_v9, %v498_v10  ;;  %v5577_v24 = vcombine.high %v462_v19, %v474_v20  ;;  %v294_v10 = vld [vmem:[%s8311_s1 + $0x880] sm:$0xff] }
 0x17b   :  { %4150 = vmatpush1.bf16.msra.mxu0 %v5574_v27  ;;  %v438_v27 = vld [vmem:[%s8311_s1 + $0xd00] sm:$0xff] }
 0x17c   :  { %4123 = vmatpush2.bf16.msra.mxu1 %v5382_v28  ;;  %4151 = vmatprep.subr.bf16.mxu0 %v5551_v29  ;;  %v450_v28 = vld [vmem:[%s8311_s1 + $0xd60] sm:$0xff]  ;;  %v5192_v29 = vcombine.low %v78_v17, %v90_v18 }
 0x17d   :  { %4124 = vmatprep.subr.bf16.mxu1 %v5359_v30  ;;  %v5576_v30 = vcombine.low %v462_v19, %v474_v20  ;;  %v5553_v32 = vcombine.high %v438_v27, %v450_v28  ;;  %v270_v20 = vld [vmem:[%s8311_s1 + $0x7c0] sm:$0xff] }
 0x17f   :  { %4152 = vmatpush1.bf16.msra.mxu0 %v5550_v35  ;;  %v414_v35 = vld [vmem:[%s8311_s1 + $0xc40] sm:$0xff] }
 0x180   :  { %4125 = vmatpush2.bf16.msra.mxu1 %v5358_v36  ;;  %4153 = vmatprep.subr.bf16.mxu0 %v5527_v37  ;;  %v426_v36 = vld [vmem:[%s8311_s1 + $0xca0] sm:$0xff]  ;;  %v5168_v37 = vcombine.low %v54_v25, %v66_v26 }
 0x181   :  { %4126 = vmatprep.subr.bf16.mxu1 %v5335_v38  ;;  %v5552_v38 = vcombine.low %v438_v27, %v450_v28  ;;  %v5529_v40 = vcombine.high %v414_v35, %v426_v36  ;;  %v246_v28 = vld [vmem:[%s8311_s1 + $0x700] sm:$0xff] }
 0x183   :  { %4154 = vmatpush1.bf16.msra.mxu0 %v5526_v44  ;;  %v199_v44 = vld [vmem:[%s8311_s1 + $0x588] sm:$0xff] }
 0x184   :  { %4127 = vmatpush2.bf16.msra.mxu1 %v5334_v15  ;;  %4182 = vmatprep.subr.bf16.mxu0 %v5313_v45  ;;  %v211_v15 = vld [vmem:[%s8311_s1 + $0x5e8] sm:$0xff]  ;;  %v5144_v45 = vcombine.low %v30_v33, %v42_v34 }
 0x185   :  { %4225 = vmatprep.subr.bf16.mxu1 %v5697_v46  ;;  %v5528_v46 = vcombine.low %v414_v35, %v426_v36  ;;  %v5315_v48 = vcombine.high %v199_v44, %v211_v15  ;;  %v222_v36 = vld [vmem:[%s8311_s1 + $0x640] sm:$0xff] }
 0x186   :  { %4172 = vmatmul.mubr.bf16.vlgmr.msra.gmra.mxu0 %v6546_v42  ;;  %v126_v42 = vld [vmem:[%s8311_s1 + $0x340] sm:$0xff] }
 0x187   :  { %4129 = vmatmul.mubr.bf16.vlgmr.msra.gmra.mxu1 %v6643_v13  ;;  %4183 = vmatpush1.bf16.msra.mxu0 %v5312_v51  ;;  %v510_v13 = vld [vmem:[%s8311_s1 + $0xf40] sm:$0xff]  ;;  %v5241_v5 = vcombine.high %v126_v42, %v138_v0  ;;  %v5240_v11 = vcombine.low %v126_v42, %v138_v0  ;;  %v175_v51 = vld [vmem:[%s8311_s1 + $0x4c8] sm:$0xff]  ;;  %v5457_v0 = vcombine.high %v342_v57, %v354_v58 }
 0x188   :  { %4226 = vmatpush1.bf16.msra.mxu1 %v5696_v52  ;;  %4184 = vmatprep.subr.bf16.mxu0 %v5289_v53  ;;  %v5625_v6 = vcombine.high %v510_v13, %v522_v1  ;;  %v5624_v12 = vcombine.low %v510_v13, %v522_v1  ;;  %v187_v52 = vld [vmem:[%s8311_s1 + $0x528] sm:$0xff]  ;;  %v5504_v53 = vcombine.low %v390_v41, %v402_v43  ;;  %v318_v1 = vld [vmem:[%s8311_s1 + $0x940] sm:$0xff] }
 0x189   :  { %4227 = vmatprep.subr.bf16.mxu1 %v5673_v54  ;;  %4257 = vmatprep.mubr.bf16.mxu1 %v5769_v3  ;;  %v5314_v54 = vcombine.low %v199_v44, %v211_v15  ;;  %v5291_v56 = vcombine.high %v175_v51, %v187_v52  ;;  %v5290_v42 = vcombine.low %v175_v51, %v187_v52  ;;  %v583_v15 = vld [vmem:[%s8311_s1 + $0x1188] sm:$0xff] }
 0x18a   :  { %4214 = vmatprep.mubr.bf16.mxu0 %v7063_v59  ;;  %v559_v52 = vld [vmem:[%s8311_s1 + $0x10c8] sm:$0xff] }
 0x18b   :  { %4185 = vmatpush1.bf16.msra.mxu0 %v5288_v60  ;;  %v151_v60 = vld [vmem:[%s8311_s1 + $0x408] sm:$0xff] }
 0x18c   :  { %4228 = vmatpush1.bf16.msra.mxu1 %v5672_v61  ;;  %4186 = vmatprep.subr.bf16.mxu0 %v5265_v62  ;;  %v163_v61 = vld [vmem:[%s8311_s1 + $0x468] sm:$0xff] }
 0x18d   :  { %4229 = vmatprep.subr.bf16.mxu1 %v5649_v63  ;;  %v7153_v62 = vld [vmem:[%s8312_s0 + $0x8] ss:$12 sps:$4 sm:$0xff]   ;;  %v5480_v63 = vcombine.low %v366_v49, %v378_v50  ;;  %v5267_v13 = vcombine.high %v151_v60, %v163_v61  ;;  %v5266_v7 = vcombine.low %v151_v60, %v163_v61 }
 0x18e   :  { %v535_v61 = vld [vmem:[%s8311_s1 + $0x1008] sm:$0xff] }
 0x18f   :  { %4187 = vmatpush1.bf16.msra.mxu0 %v5264_v2  ;;  %v330_v2 = vld [vmem:[%s8311_s1 + $0x9a0] sm:$0xff] }
 0x190   :  { %4230 = vmatpush1.bf16.msra.mxu1 %v5648_v4  ;;  %4188 = vmatprep.subr.bf16.mxu0 %v5241_v5  ;;  %v127_v4 = vld [vmem:[%s8311_s1 + $0x348] sm:$0xff]  ;;  %v5433_v8 = vcombine.high %v318_v1, %v330_v2 }
 0x191   :  { %4231 = vmatprep.subr.bf16.mxu1 %v5625_v6  ;;  %v139_v5 = vld [vmem:[%s8311_s1 + $0x3a8] sm:$0xff]  ;;  %v5456_v6 = vcombine.low %v342_v57, %v354_v58 }
 0x192   :  { %v5243_v9 = vcombine.high %v127_v4, %v139_v5  ;;  %v5242_v17 = vcombine.low %v127_v4, %v139_v5 }
 0x193   :  { %4189 = vmatpush1.bf16.msra.mxu0 %v5240_v11  ;;  %v306_v11 = vld [vmem:[%s8311_s1 + $0x8e0] sm:$0xff] }
 0x194   :  { %4232 = vmatpush1.bf16.msra.mxu1 %v5624_v12  ;;  %4190 = vmatprep.subr.bf16.mxu0 %v5217_v14  ;;  %v103_v12 = vld [vmem:[%s8311_s1 + $0x288] sm:$0xff]  ;;  %v5409_v18 = vcombine.high %v294_v10, %v306_v11 }
 0x195   :  { %4233 = vmatprep.subr.bf16.mxu1 %v5601_v16  ;;  %v115_v14 = vld [vmem:[%s8311_s1 + $0x2e8] sm:$0xff]  ;;  %v5432_v16 = vcombine.low %v318_v1, %v330_v2 }
 0x196   :  { %v5219_v19 = vcombine.high %v103_v12, %v115_v14  ;;  %v5218_v25 = vcombine.low %v103_v12, %v115_v14 }
 0x197   :  { %4191 = vmatpush1.bf16.msra.mxu0 %v5216_v21  ;;  %v282_v21 = vld [vmem:[%s8311_s1 + $0x820] sm:$0xff] }
 0x198   :  { %4234 = vmatpush1.bf16.msra.mxu1 %v5600_v22  ;;  %4192 = vmatprep.subr.bf16.mxu0 %v5193_v23  ;;  %v79_v22 = vld [vmem:[%s8311_s1 + $0x1c8] sm:$0xff]  ;;  %v5385_v26 = vcombine.high %v270_v20, %v282_v21 }
 0x199   :  { %4235 = vmatprep.subr.bf16.mxu1 %v5577_v24  ;;  %v91_v23 = vld [vmem:[%s8311_s1 + $0x228] sm:$0xff]  ;;  %v5408_v24 = vcombine.low %v294_v10, %v306_v11 }
 0x19a   :  { %v5195_v27 = vcombine.high %v79_v22, %v91_v23  ;;  %v5194_v33 = vcombine.low %v79_v22, %v91_v23 }
 0x19b   :  { %4193 = vmatpush1.bf16.msra.mxu0 %v5192_v29  ;;  %v258_v29 = vld [vmem:[%s8311_s1 + $0x760] sm:$0xff] }
 0x19c   :  { %4236 = vmatpush1.bf16.msra.mxu1 %v5576_v30  ;;  %4194 = vmatprep.subr.bf16.mxu0 %v5169_v31  ;;  %v55_v30 = vld [vmem:[%s8311_s1 + $0x108] sm:$0xff]  ;;  %v5361_v34 = vcombine.high %v246_v28, %v258_v29 }
 0x19d   :  { %4237 = vmatprep.subr.bf16.mxu1 %v5553_v32  ;;  %v67_v31 = vld [vmem:[%s8311_s1 + $0x168] sm:$0xff]  ;;  %v5384_v32 = vcombine.low %v270_v20, %v282_v21 }
 0x19e   :  { %v5171_v35 = vcombine.high %v55_v30, %v67_v31  ;;  %v5170_v41 = vcombine.low %v55_v30, %v67_v31 }
 0x19f   :  { %4195 = vmatpush1.bf16.msra.mxu0 %v5168_v37  ;;  %v234_v37 = vld [vmem:[%s8311_s1 + $0x6a0] sm:$0xff] }
 0x1a0   :  { %4238 = vmatpush1.bf16.msra.mxu1 %v5552_v38  ;;  %4196 = vmatprep.subr.bf16.mxu0 %v5145_v39  ;;  %v31_v38 = vld [vmem:[%s8311_s1 + $0x48] sm:$0xff]  ;;  %v5337_v43 = vcombine.high %v222_v36, %v234_v37 }
 0x1a1   :  { %4239 = vmatprep.subr.bf16.mxu1 %v5529_v40  ;;  %v43_v39 = vld [vmem:[%s8311_s1 + $0xa8] sm:$0xff]  ;;  %v5360_v40 = vcombine.low %v246_v28, %v258_v29 }
 0x1a2   :  { %v5147_v44 = vcombine.high %v31_v38, %v43_v39  ;;  %v5146_v49 = vcombine.low %v31_v38, %v43_v39 }
 0x1a3   :  { %4197 = vmatpush1.bf16.msra.mxu0 %v5144_v45  ;;  %v595_v45 = vld [vmem:[%s8311_s1 + $0x11e8] sm:$0xff] }
 0x1a4   :  { %4240 = vmatpush1.bf16.msra.mxu1 %v5528_v46  ;;  %4198 = vmatprep.subr.bf16.mxu0 %v5505_v47  ;;  %v391_v46 = vld [vmem:[%s8311_s1 + $0xb88] sm:$0xff]  ;;  %v5699_v50 = vcombine.high %v583_v15, %v595_v45 }
 0x1a5   :  { %4268 = vmatprep.subr.bf16.mxu1 %v5315_v48  ;;  %v403_v47 = vld [vmem:[%s8311_s1 + $0xbe8] sm:$0xff]  ;;  %v5336_v48 = vcombine.low %v222_v36, %v234_v37 }
 0x1a6   :  { %v5507_v51 = vcombine.high %v391_v46, %v403_v47  ;;  %v5506_v57 = vcombine.low %v391_v46, %v403_v47 }
 0x1a7   :  { %4258 = vmatmul.mubr.bf16.vlgmr.msra.gmra.mxu1 %v7153_v62  ;;  %4199 = vmatpush2.bf16.msra.mxu0 %v5504_v53  ;;  %v571_v53 = vld [vmem:[%s8311_s1 + $0x1128] sm:$0xff] }
 0x1a8   :  { %4269 = vmatpush1.bf16.msra.mxu1 %v5314_v54  ;;  %4200 = vmatprep.subr.bf16.mxu0 %v5481_v55  ;;  %v367_v54 = vld [vmem:[%s8311_s1 + $0xac8] sm:$0xff]  ;;  %v5675_v58 = vcombine.high %v559_v52, %v571_v53  ;;  %v5674_v1 = vcombine.low %v559_v52, %v571_v53 }
 0x1a9   :  { %4270 = vmatprep.subr.bf16.mxu1 %v5291_v56  ;;  %4300 = vmatprep.mubr.bf16.mxu1 %v7063_v59  ;;  %v379_v55 = vld [vmem:[%s8311_s1 + $0xb28] sm:$0xff]  ;;  %v5698_v56 = vcombine.low %v583_v15, %v595_v45 }
 0x1aa   :  { %v5483_v60 = vcombine.high %v367_v54, %v379_v55  ;;  %v5482_v2 = vcombine.low %v367_v54, %v379_v55 }
 0x1ab   :  { %4201 = vmatpush2.bf16.msra.mxu0 %v5480_v63  ;;  %v547_v63 = vld [vmem:[%s8311_s1 + $0x1068] sm:$0xff] }
 0x1ac   :  { %4271 = vmatpush1.bf16.msra.mxu1 %v5290_v42  ;;  %4202 = vmatprep.subr.bf16.mxu0 %v5457_v0  ;;  %v7250_v42 = vld [vmem:[%s8312_s0] ss:$12 sps:$4 sm:$0xff]   ;;  %v5651_v4 = vcombine.high %v535_v61, %v547_v63  ;;  %v5650_v10 = vcombine.low %v535_v61, %v547_v63 }
 0x1ad   :  { %4272 = vmatprep.subr.bf16.mxu1 %v5267_v13  ;;  %v343_v0 = vld [vmem:[%s8311_s1 + $0xa08] sm:$0xff] }
 0x1ae   :  { %v355_v13 = vld [vmem:[%s8311_s1 + $0xa68] sm:$0xff] }
 0x1af   :  { %4203 = vmatpush2.bf16.msra.mxu0 %v5456_v6  ;;  %v5459_v5 = vcombine.high %v343_v0, %v355_v13  ;;  %v511_v6 = vld [vmem:[%s8311_s1 + $0xf48] sm:$0xff]  ;;  %v5458_v11 = vcombine.low %v343_v0, %v355_v13 }
 0x1b0   :  { %4273 = vmatpush1.bf16.msra.mxu1 %v5266_v7  ;;  %4204 = vmatprep.subr.bf16.mxu0 %v5433_v8  ;;  %v523_v7 = vld [vmem:[%s8311_s1 + $0xfa8] sm:$0xff] }
 0x1b1   :  { %4274 = vmatprep.subr.bf16.mxu1 %v5243_v9  ;;  %v319_v8 = vld [vmem:[%s8311_s1 + $0x948] sm:$0xff]  ;;  %v5627_v12 = vcombine.high %v511_v6, %v523_v7  ;;  %v5626_v20 = vcombine.low %v511_v6, %v523_v7 }
 0x1b2   :  { %v331_v9 = vld [vmem:[%s8311_s1 + $0x9a8] sm:$0xff] }
 0x1b3   :  { %4205 = vmatpush2.bf16.msra.mxu0 %v5432_v16  ;;  %v5435_v14 = vcombine.high %v319_v8, %v331_v9  ;;  %v487_v16 = vld [vmem:[%s8311_s1 + $0xe88] sm:$0xff]  ;;  %v5434_v21 = vcombine.low %v319_v8, %v331_v9 }
 0x1b4   :  { %4275 = vmatpush1.bf16.msra.mxu1 %v5242_v17  ;;  %4206 = vmatprep.subr.bf16.mxu0 %v5409_v18  ;;  %v499_v17 = vld [vmem:[%s8311_s1 + $0xee8] sm:$0xff] }
 0x1b5   :  { %4276 = vmatprep.subr.bf16.mxu1 %v5219_v19  ;;  %v295_v18 = vld [vmem:[%s8311_s1 + $0x888] sm:$0xff]  ;;  %v5603_v22 = vcombine.high %v487_v16, %v499_v17  ;;  %v5602_v28 = vcombine.low %v487_v16, %v499_v17 }
 0x1b6   :  { %v307_v19 = vld [vmem:[%s8311_s1 + $0x8e8] sm:$0xff] }
 0x1b7   :  { %4207 = vmatpush2.bf16.msra.mxu0 %v5408_v24  ;;  %v5411_v23 = vcombine.high %v295_v18, %v307_v19  ;;  %v463_v24 = vld [vmem:[%s8311_s1 + $0xdc8] sm:$0xff]  ;;  %v5410_v29 = vcombine.low %v295_v18, %v307_v19 }
 0x1b8   :  { %4277 = vmatpush1.bf16.msra.mxu1 %v5218_v25  ;;  %4208 = vmatprep.subr.bf16.mxu0 %v5385_v26  ;;  %v475_v25 = vld [vmem:[%s8311_s1 + $0xe28] sm:$0xff] }
 0x1b9   :  { %4278 = vmatprep.subr.bf16.mxu1 %v5195_v27  ;;  %v271_v26 = vld [vmem:[%s8311_s1 + $0x7c8] sm:$0xff]  ;;  %v5579_v30 = vcombine.high %v463_v24, %v475_v25  ;;  %v5578_v36 = vcombine.low %v463_v24, %v475_v25 }
 0x1ba   :  { %v283_v27 = vld [vmem:[%s8311_s1 + $0x828] sm:$0xff] }
 0x1bb   :  { %4209 = vmatpush2.bf16.msra.mxu0 %v5384_v32  ;;  %v5387_v31 = vcombine.high %v271_v26, %v283_v27  ;;  %v439_v32 = vld [vmem:[%s8311_s1 + $0xd08] sm:$0xff]  ;;  %v5386_v37 = vcombine.low %v271_v26, %v283_v27 }
 0x1bc   :  { %4279 = vmatpush1.bf16.msra.mxu1 %v5194_v33  ;;  %4210 = vmatprep.subr.bf16.mxu0 %v5361_v34  ;;  %v451_v33 = vld [vmem:[%s8311_s1 + $0xd68] sm:$0xff] }
 0x1bd   :  { %4280 = vmatprep.subr.bf16.mxu1 %v5171_v35  ;;  %v247_v34 = vld [vmem:[%s8311_s1 + $0x708] sm:$0xff]  ;;  %v5555_v38 = vcombine.high %v439_v32, %v451_v33  ;;  %v5554_v15 = vcombine.low %v439_v32, %v451_v33 }
 0x1be   :  { %v259_v35 = vld [vmem:[%s8311_s1 + $0x768] sm:$0xff] }
 0x1bf   :  { %4211 = vmatpush2.bf16.msra.mxu0 %v5360_v40  ;;  %v5363_v39 = vcombine.high %v247_v34, %v259_v35  ;;  %v415_v40 = vld [vmem:[%s8311_s1 + $0xc48] sm:$0xff]  ;;  %v5362_v45 = vcombine.low %v247_v34, %v259_v35 }
 0x1c0   :  { %4281 = vmatpush1.bf16.msra.mxu1 %v5170_v41  ;;  %4212 = vmatprep.subr.bf16.mxu0 %v5337_v43  ;;  %v427_v41 = vld [vmem:[%s8311_s1 + $0xca8] sm:$0xff] }
 0x1c1   :  { %4282 = vmatprep.subr.bf16.mxu1 %v5147_v44  ;;  %v223_v43 = vld [vmem:[%s8311_s1 + $0x648] sm:$0xff]  ;;  %v5531_v46 = vcombine.high %v415_v40, %v427_v41  ;;  %v5530_v52 = vcombine.low %v415_v40, %v427_v41 }
 0x1c2   :  { %v235_v44 = vld [vmem:[%s8311_s1 + $0x6a8] sm:$0xff] }
 0x1c3   :  { %4213 = vmatpush2.bf16.msra.mxu0 %v5336_v48  ;;  %v5339_v47 = vcombine.high %v223_v43, %v235_v44  ;;  %v200_v48 = vld [vmem:[%s8311_s1 + $0x590] sm:$0xff]  ;;  %v5338_v53 = vcombine.low %v223_v43, %v235_v44 }
 0x1c4   :  { %4283 = vmatpush1.bf16.msra.mxu1 %v5146_v49  ;;  %4311 = vmatprep.subr.bf16.mxu0 %v5699_v50  ;;  %v212_v49 = vld [vmem:[%s8311_s1 + $0x5f0] sm:$0xff] }
 0x1c5   :  { %4284 = vmatprep.subr.bf16.mxu1 %v5507_v51  ;;  %v584_v50 = vld [vmem:[%s8311_s1 + $0x1190] sm:$0xff]  ;;  %v5317_v54 = vcombine.high %v200_v48, %v212_v49  ;;  %v5316_v61 = vcombine.low %v200_v48, %v212_v49 }
 0x1c6   :  { %4215 = vmatmul.mubr.bf16.vlgmr.msra.gmra.mxu0 %v7250_v42  ;;  %v596_v51 = vld [vmem:[%s8311_s1 + $0x11f0] sm:$0xff] }
 0x1c7   :  { %4312 = vmatpush1.bf16.msra.mxu0 %v5698_v56  ;;  %4343 = vmatprep.mubr.bf16.mxu0 %v5769_v3  ;;  %v5701_v55 = vcombine.high %v584_v50, %v596_v51  ;;  %v176_v56 = vld [vmem:[%s8311_s1 + $0x4d0] sm:$0xff]  ;;  %v5700_v63 = vcombine.low %v584_v50, %v596_v51 }
 0x1c8   :  { %4285 = vmatpush2.bf16.msra.mxu1 %v5506_v57  ;;  %4313 = vmatprep.subr.bf16.mxu0 %v5675_v58  ;;  %v188_v57 = vld [vmem:[%s8311_s1 + $0x530] sm:$0xff] }
 0x1c9   :  { %4286 = vmatprep.subr.bf16.mxu1 %v5483_v60  ;;  %v560_v58 = vld [vmem:[%s8311_s1 + $0x10d0] sm:$0xff]  ;;  %v5293_v0 = vcombine.high %v176_v56, %v188_v57  ;;  %v5292_v6 = vcombine.low %v176_v56, %v188_v57 }
 0x1ca   :  { %v572_v60 = vld [vmem:[%s8311_s1 + $0x1130] sm:$0xff] }
 0x1cb   :  { %4314 = vmatpush1.bf16.msra.mxu0 %v5674_v1  ;;  %v5677_v13 = vcombine.high %v560_v58, %v572_v60  ;;  %v152_v1 = vld [vmem:[%s8311_s1 + $0x410] sm:$0xff]  ;;  %v5676_v7 = vcombine.low %v560_v58, %v572_v60 }
 0x1cc   :  { %4287 = vmatpush2.bf16.msra.mxu1 %v5482_v2  ;;  %4315 = vmatprep.subr.bf16.mxu0 %v5651_v4  ;;  %v164_v2 = vld [vmem:[%s8311_s1 + $0x470] sm:$0xff] }
 0x1cd   :  { %4288 = vmatprep.subr.bf16.mxu1 %v5459_v5  ;;  %v536_v4 = vld [vmem:[%s8311_s1 + $0x1010] sm:$0xff]  ;;  %v5269_v8 = vcombine.high %v152_v1, %v164_v2  ;;  %v5268_v16 = vcombine.low %v152_v1, %v164_v2 }
 0x1ce   :  { %v548_v5 = vld [vmem:[%s8311_s1 + $0x1070] sm:$0xff] }
 0x1cf   :  { %4316 = vmatpush1.bf16.msra.mxu0 %v5650_v10  ;;  %v5653_v9 = vcombine.high %v536_v4, %v548_v5  ;;  %v128_v10 = vld [vmem:[%s8311_s1 + $0x350] sm:$0xff]  ;;  %v5652_v17 = vcombine.low %v536_v4, %v548_v5 }
 0x1d0   :  { %4289 = vmatpush2.bf16.msra.mxu1 %v5458_v11  ;;  %4317 = vmatprep.subr.bf16.mxu0 %v5627_v12  ;;  %v140_v11 = vld [vmem:[%s8311_s1 + $0x3b0] sm:$0xff] }
 0x1d1   :  { %4290 = vmatprep.subr.bf16.mxu1 %v5435_v14  ;;  %v512_v12 = vld [vmem:[%s8311_s1 + $0xf50] sm:$0xff]  ;;  %v5245_v18 = vcombine.high %v128_v10, %v140_v11  ;;  %v5244_v24 = vcombine.low %v128_v10, %v140_v11 }
 0x1d2   :  { %v524_v14 = vld [vmem:[%s8311_s1 + $0xfb0] sm:$0xff] }
 0x1d3   :  { %4318 = vmatpush1.bf16.msra.mxu0 %v5626_v20  ;;  %v5629_v19 = vcombine.high %v512_v12, %v524_v14  ;;  %v104_v20 = vld [vmem:[%s8311_s1 + $0x290] sm:$0xff]  ;;  %v5628_v25 = vcombine.low %v512_v12, %v524_v14 }
 0x1d4   :  { %4291 = vmatpush2.bf16.msra.mxu1 %v5434_v21  ;;  %4319 = vmatprep.subr.bf16.mxu0 %v5603_v22  ;;  %v116_v21 = vld [vmem:[%s8311_s1 + $0x2f0] sm:$0xff] }
 0x1d5   :  { %4292 = vmatprep.subr.bf16.mxu1 %v5411_v23  ;;  %v488_v22 = vld [vmem:[%s8311_s1 + $0xe90] sm:$0xff]  ;;  %v5221_v26 = vcombine.high %v104_v20, %v116_v21  ;;  %v5220_v32 = vcombine.low %v104_v20, %v116_v21 }
 0x1d6   :  { %v500_v23 = vld [vmem:[%s8311_s1 + $0xef0] sm:$0xff] }
 0x1d7   :  { %4320 = vmatpush1.bf16.msra.mxu0 %v5602_v28  ;;  %v5605_v27 = vcombine.high %v488_v22, %v500_v23  ;;  %v80_v28 = vld [vmem:[%s8311_s1 + $0x1d0] sm:$0xff]  ;;  %v5604_v33 = vcombine.low %v488_v22, %v500_v23 }
 0x1d8   :  { %4293 = vmatpush2.bf16.msra.mxu1 %v5410_v29  ;;  %4321 = vmatprep.subr.bf16.mxu0 %v5579_v30  ;;  %v92_v29 = vld [vmem:[%s8311_s1 + $0x230] sm:$0xff] }
 0x1d9   :  { %4294 = vmatprep.subr.bf16.mxu1 %v5387_v31  ;;  %v464_v30 = vld [vmem:[%s8311_s1 + $0xdd0] sm:$0xff]  ;;  %v5197_v34 = vcombine.high %v80_v28, %v92_v29  ;;  %v5196_v40 = vcombine.low %v80_v28, %v92_v29 }
 0x1da   :  { %v476_v31 = vld [vmem:[%s8311_s1 + $0xe30] sm:$0xff] }
 0x1db   :  { %4322 = vmatpush1.bf16.msra.mxu0 %v5578_v36  ;;  %v5581_v35 = vcombine.high %v464_v30, %v476_v31  ;;  %v56_v36 = vld [vmem:[%s8311_s1 + $0x110] sm:$0xff]  ;;  %v5580_v41 = vcombine.low %v464_v30, %v476_v31 }
 0x1dc   :  { %4295 = vmatpush2.bf16.msra.mxu1 %v5386_v37  ;;  %4323 = vmatprep.subr.bf16.mxu0 %v5555_v38  ;;  %v68_v37 = vld [vmem:[%s8311_s1 + $0x170] sm:$0xff] }
 0x1dd   :  { %4296 = vmatprep.subr.bf16.mxu1 %v5363_v39  ;;  %v440_v38 = vld [vmem:[%s8311_s1 + $0xd10] sm:$0xff]  ;;  %v5173_v43 = vcombine.high %v56_v36, %v68_v37  ;;  %v5172_v48 = vcombine.low %v56_v36, %v68_v37 }
 0x1de   :  { %v452_v39 = vld [vmem:[%s8311_s1 + $0xd70] sm:$0xff] }
 0x1df   :  { %4324 = vmatpush1.bf16.msra.mxu0 %v5554_v15  ;;  %v5557_v44 = vcombine.high %v440_v38, %v452_v39  ;;  %v32_v15 = vld [vmem:[%s8311_s1 + $0x50] sm:$0xff]  ;;  %v5556_v49 = vcombine.low %v440_v38, %v452_v39 }
 0x1e0   :  { %4297 = vmatpush2.bf16.msra.mxu1 %v5362_v45  ;;  %4325 = vmatprep.subr.bf16.mxu0 %v5531_v46  ;;  %v44_v45 = vld [vmem:[%s8311_s1 + $0xb0] sm:$0xff] }
 0x1e1   :  { %4298 = vmatprep.subr.bf16.mxu1 %v5339_v47  ;;  %v416_v46 = vld [vmem:[%s8311_s1 + $0xc50] sm:$0xff]  ;;  %v5149_v50 = vcombine.high %v32_v15, %v44_v45  ;;  %v5148_v56 = vcombine.low %v32_v15, %v44_v45 }
 0x1e2   :  { %v428_v47 = vld [vmem:[%s8311_s1 + $0xcb0] sm:$0xff] }
 0x1e3   :  { %4326 = vmatpush1.bf16.msra.mxu0 %v5530_v52  ;;  %v5533_v51 = vcombine.high %v416_v46, %v428_v47  ;;  %v392_v52 = vld [vmem:[%s8311_s1 + $0xb90] sm:$0xff]  ;;  %v5532_v57 = vcombine.low %v416_v46, %v428_v47 }
 0x1e4   :  { %4299 = vmatpush2.bf16.msra.mxu1 %v5338_v53  ;;  %4354 = vmatprep.subr.bf16.mxu0 %v5317_v54  ;;  %v404_v53 = vld [vmem:[%s8311_s1 + $0xbf0] sm:$0xff]  ;;  %v201_v54 = vld [vmem:[%s8311_s1 + $0x598] sm:$0xff] }
 0x1e5   :  { %4397 = vmatprep.subr.bf16.mxu1 %v5701_v55  ;;  %v213_v55 = vld [vmem:[%s8311_s1 + $0x5f8] sm:$0xff]  ;;  %v5509_v58 = vcombine.high %v392_v52, %v404_v53  ;;  %v5508_v1 = vcombine.low %v392_v52, %v404_v53  ;;  %v272_v31 = vld [vmem:[%s8311_s1 + $0x7d0] sm:$0xff] }
 0x1e6   :  { %4344 = vmatmul.mubr.bf16.vlgmr.msra.gmra.mxu0 %v7153_v62  ;;  %v5319_v60 = vcombine.high %v201_v54, %v213_v55  ;;  %v5318_v2 = vcombine.low %v201_v54, %v213_v55  ;;  %v248_v39 = vld [vmem:[%s8311_s1 + $0x710] sm:$0xff]  ;;  %v585_v55 = vld [vmem:[%s8311_s1 + $0x1198] sm:$0xff] }
 0x1e7   :  { %4301 = vmatmul.mubr.bf16.vlgmr.msra.gmra.mxu1 %v7250_v42  ;;  %4355 = vmatpush1.bf16.msra.mxu0 %v5316_v61  ;;  %v368_v61 = vld [vmem:[%s8311_s1 + $0xad0] sm:$0xff] }
 0x1e8   :  { %4398 = vmatpush1.bf16.msra.mxu1 %v5700_v63  ;;  %4356 = vmatprep.subr.bf16.mxu0 %v5293_v0  ;;  %v380_v63 = vld [vmem:[%s8311_s1 + $0xb30] sm:$0xff]  ;;  %v177_v0 = vld [vmem:[%s8311_s1 + $0x4d8] sm:$0xff] }
 0x1e9   :  { %4399 = vmatprep.subr.bf16.mxu1 %v5677_v13  ;;  %4429 = vmatprep.mubr.bf16.mxu1 %v5769_v3  ;;  %v189_v13 = vld [vmem:[%s8311_s1 + $0x538] sm:$0xff]  ;;  %v5485_v4 = vcombine.high %v368_v61, %v380_v63  ;;  %v5484_v10 = vcombine.low %v368_v61, %v380_v63  ;;  %v224_v47 = vld [vmem:[%s8311_s1 + $0x650] sm:$0xff] }
 0x1ea   :  { %4386 = vmatprep.mubr.bf16.mxu0 %v7063_v59  ;;  %v5295_v5 = vcombine.high %v177_v0, %v189_v13  ;;  %v5294_v11 = vcombine.low %v177_v0, %v189_v13  ;;  %v561_v13 = vld [vmem:[%s8311_s1 + $0x10d8] sm:$0xff] }
 0x1eb   :  { %4357 = vmatpush1.bf16.msra.mxu0 %v5292_v6  ;;  %v344_v6 = vld [vmem:[%s8311_s1 + $0xa10] sm:$0xff] }
 0x1ec   :  { %4400 = vmatpush1.bf16.msra.mxu1 %v5676_v7  ;;  %4358 = vmatprep.subr.bf16.mxu0 %v5269_v8  ;;  %v356_v7 = vld [vmem:[%s8311_s1 + $0xa70] sm:$0xff]  ;;  %v153_v8 = vld [vmem:[%s8311_s1 + $0x418] sm:$0xff] }
 0x1ed   :  { %4401 = vmatprep.subr.bf16.mxu1 %v5653_v9  ;;  %v165_v9 = vld [vmem:[%s8311_s1 + $0x478] sm:$0xff]  ;;  %v5461_v12 = vcombine.high %v344_v6, %v356_v7  ;;  %v5460_v20 = vcombine.low %v344_v6, %v356_v7 }
 0x1ee   :  { %v5271_v14 = vcombine.high %v153_v8, %v165_v9  ;;  %v5270_v21 = vcombine.low %v153_v8, %v165_v9  ;;  %v537_v9 = vld [vmem:[%s8311_s1 + $0x1018] sm:$0xff] }
 0x1ef   :  { %4359 = vmatpush1.bf16.msra.mxu0 %v5268_v16  ;;  %v320_v16 = vld [vmem:[%s8311_s1 + $0x950] sm:$0xff] }
 0x1f0   :  { %4402 = vmatpush1.bf16.msra.mxu1 %v5652_v17  ;;  %4360 = vmatprep.subr.bf16.mxu0 %v5245_v18  ;;  %v332_v17 = vld [vmem:[%s8311_s1 + $0x9b0] sm:$0xff]  ;;  %v129_v18 = vld [vmem:[%s8311_s1 + $0x358] sm:$0xff] }
 0x1f1   :  { %4403 = vmatprep.subr.bf16.mxu1 %v5629_v19  ;;  %v141_v19 = vld [vmem:[%s8311_s1 + $0x3b8] sm:$0xff]  ;;  %v5437_v22 = vcombine.high %v320_v16, %v332_v17 }
 0x1f2   :  { %v5247_v23 = vcombine.high %v129_v18, %v141_v19  ;;  %v5246_v28 = vcombine.low %v129_v18, %v141_v19  ;;  %v513_v19 = vld [vmem:[%s8311_s1 + $0xf58] sm:$0xff] }
 0x1f3   :  { %4361 = vmatpush1.bf16.msra.mxu0 %v5244_v24  ;;  %v308_v24 = vld [vmem:[%s8311_s1 + $0x8f0] sm:$0xff] }
 0x1f4   :  { %4404 = vmatpush1.bf16.msra.mxu1 %v5628_v25  ;;  %4362 = vmatprep.subr.bf16.mxu0 %v5221_v26  ;;  %v105_v25 = vld [vmem:[%s8311_s1 + $0x298] sm:$0xff] }
 0x1f5   :  { %4405 = vmatprep.subr.bf16.mxu1 %v5605_v27  ;;  %v117_v26 = vld [vmem:[%s8311_s1 + $0x2f8] sm:$0xff]  ;;  %v5436_v27 = vcombine.low %v320_v16, %v332_v17 }
 0x1f6   :  { %v5223_v30 = vcombine.high %v105_v25, %v117_v26  ;;  %v5222_v36 = vcombine.low %v105_v25, %v117_v26  ;;  %v489_v25 = vld [vmem:[%s8311_s1 + $0xe98] sm:$0xff] }
 0x1f7   :  { %4363 = vmatpush1.bf16.msra.mxu0 %v5220_v32  ;;  %v284_v32 = vld [vmem:[%s8311_s1 + $0x830] sm:$0xff]  ;;  %v501_v26 = vld [vmem:[%s8311_s1 + $0xef8] sm:$0xff] }
 0x1f8   :  { %4406 = vmatpush1.bf16.msra.mxu1 %v5604_v33  ;;  %4364 = vmatprep.subr.bf16.mxu0 %v5197_v34  ;;  %v81_v33 = vld [vmem:[%s8311_s1 + $0x1d8] sm:$0xff]  ;;  %v5389_v37 = vcombine.high %v272_v31, %v284_v32 }
 0x1f9   :  { %4407 = vmatprep.subr.bf16.mxu1 %v5581_v35  ;;  %v93_v34 = vld [vmem:[%s8311_s1 + $0x238] sm:$0xff] }
 0x1fa   :  { %v5199_v38 = vcombine.high %v81_v33, %v93_v34  ;;  %v5198_v15 = vcombine.low %v81_v33, %v93_v34  ;;  %v465_v33 = vld [vmem:[%s8311_s1 + $0xdd8] sm:$0xff] }
 0x1fb   :  { %4365 = vmatpush1.bf16.msra.mxu0 %v5196_v40  ;;  %v260_v40 = vld [vmem:[%s8311_s1 + $0x770] sm:$0xff]  ;;  %v477_v34 = vld [vmem:[%s8311_s1 + $0xe38] sm:$0xff] }
 0x1fc   :  { %4408 = vmatpush1.bf16.msra.mxu1 %v5580_v41  ;;  %4366 = vmatprep.subr.bf16.mxu0 %v5173_v43  ;;  %v57_v41 = vld [vmem:[%s8311_s1 + $0x118] sm:$0xff]  ;;  %v5365_v45 = vcombine.high %v248_v39, %v260_v40 }
 0x1fd   :  { %4409 = vmatprep.subr.bf16.mxu1 %v5557_v44  ;;  %v69_v43 = vld [vmem:[%s8311_s1 + $0x178] sm:$0xff]  ;;  %v5388_v44 = vcombine.low %v272_v31, %v284_v32  ;;  %v5607_v31 = vcombine.high %v489_v25, %v501_v26 }
 0x1fe   :  { %v5175_v46 = vcombine.high %v57_v41, %v69_v43  ;;  %v5174_v52 = vcombine.low %v57_v41, %v69_v43  ;;  %v441_v41 = vld [vmem:[%s8311_s1 + $0xd18] sm:$0xff] }
 0x1ff   :  { %4367 = vmatpush1.bf16.msra.mxu0 %v5172_v48  ;;  %v236_v48 = vld [vmem:[%s8311_s1 + $0x6b0] sm:$0xff]  ;;  %v453_v43 = vld [vmem:[%s8311_s1 + $0xd78] sm:$0xff] }
 0x200   :  { %4410 = vmatpush1.bf16.msra.mxu1 %v5556_v49  ;;  %4368 = vmatprep.subr.bf16.mxu0 %v5149_v50  ;;  %v33_v49 = vld [vmem:[%s8311_s1 + $0x58] sm:$0xff]  ;;  %v5341_v53 = vcombine.high %v224_v47, %v236_v48 }
 0x201   :  { %4411 = vmatprep.subr.bf16.mxu1 %v5533_v51  ;;  %v45_v50 = vld [vmem:[%s8311_s1 + $0xb8] sm:$0xff]  ;;  %v5364_v51 = vcombine.low %v248_v39, %v260_v40  ;;  %v5583_v39 = vcombine.high %v465_v33, %v477_v34 }
 0x202   :  { %v5151_v54 = vcombine.high %v33_v49, %v45_v50  ;;  %v5150_v61 = vcombine.low %v33_v49, %v45_v50  ;;  %v417_v49 = vld [vmem:[%s8311_s1 + $0xc58] sm:$0xff] }
 0x203   :  { %4369 = vmatpush1.bf16.msra.mxu0 %v5148_v56  ;;  %v597_v56 = vld [vmem:[%s8311_s1 + $0x11f8] sm:$0xff] }
 0x204   :  { %4412 = vmatpush1.bf16.msra.mxu1 %v5532_v57  ;;  %4370 = vmatprep.subr.bf16.mxu0 %v5509_v58  ;;  %v393_v57 = vld [vmem:[%s8311_s1 + $0xb98] sm:$0xff]  ;;  %v5703_v63 = vcombine.high %v585_v55, %v597_v56 }
 0x205   :  { %4440 = vmatprep.subr.bf16.mxu1 %v5319_v60  ;;  %v405_v58 = vld [vmem:[%s8311_s1 + $0xbf8] sm:$0xff]  ;;  %v5340_v60 = vcombine.low %v224_v47, %v236_v48  ;;  %v5559_v47 = vcombine.high %v441_v41, %v453_v43 }
 0x206   :  { %v5511_v0 = vcombine.high %v393_v57, %v405_v58  ;;  %v5510_v6 = vcombine.low %v393_v57, %v405_v58  ;;  %v429_v50 = vld [vmem:[%s8311_s1 + $0xcb8] sm:$0xff] }
 0x207   :  { %4430 = vmatmul.mubr.bf16.vlgmr.msra.gmra.mxu1 %v7153_v62  ;;  %4371 = vmatpush2.bf16.msra.mxu0 %v5508_v1  ;;  %v573_v1 = vld [vmem:[%s8311_s1 + $0x1138] sm:$0xff]  ;;  %v5534_v57 = vcombine.low %v417_v49, %v429_v50 }
 0x208   :  { %4441 = vmatpush1.bf16.msra.mxu1 %v5318_v2  ;;  %4372 = vmatprep.subr.bf16.mxu0 %v5485_v4  ;;  %v369_v2 = vld [vmem:[%s8311_s1 + $0xad8] sm:$0xff]  ;;  %v5679_v7 = vcombine.high %v561_v13, %v573_v1 }
 0x209   :  { %4442 = vmatprep.subr.bf16.mxu1 %v5295_v5  ;;  %4472 = vmatprep.mubr.bf16.mxu1 %v7063_v59  ;;  %v296_v59 = vld [vmem:[%s8311_s1 + $0x890] sm:$0xff]  ;;  %v381_v4 = vld [vmem:[%s8311_s1 + $0xb38] sm:$0xff]  ;;  %v5702_v5 = vcombine.low %v585_v55, %v597_v56  ;;  %v5535_v55 = vcombine.high %v417_v49, %v429_v50 }
 0x20a   :  { %v5413_v29 = vcombine.high %v296_v59, %v308_v24  ;;  %v5412_v35 = vcombine.low %v296_v59, %v308_v24  ;;  %v5487_v8 = vcombine.high %v369_v2, %v381_v4  ;;  %v5486_v16 = vcombine.low %v369_v2, %v381_v4 }
 0x20b   :  { %4373 = vmatpush2.bf16.msra.mxu0 %v5484_v10  ;;  %v549_v10 = vld [vmem:[%s8311_s1 + $0x1078] sm:$0xff] }
 0x20c   :  { %4443 = vmatpush1.bf16.msra.mxu1 %v5294_v11  ;;  %4374 = vmatprep.subr.bf16.mxu0 %v5461_v12  ;;  %v345_v11 = vld [vmem:[%s8311_s1 + $0xa18] sm:$0xff]  ;;  %v5655_v17 = vcombine.high %v537_v9, %v549_v10 }
 0x20d   :  { %4444 = vmatprep.subr.bf16.mxu1 %v5271_v14  ;;  %v357_v12 = vld [vmem:[%s8311_s1 + $0xa78] sm:$0xff]  ;;  %v5678_v14 = vcombine.low %v561_v13, %v573_v1 }
 0x20e   :  { %v5463_v18 = vcombine.high %v345_v11, %v357_v12 }
 0x20f   :  { %4375 = vmatpush2.bf16.msra.mxu0 %v5460_v20  ;;  %v525_v20 = vld [vmem:[%s8311_s1 + $0xfb8] sm:$0xff] }
 0x210   :  { %4445 = vmatpush1.bf16.msra.mxu1 %v5270_v21  ;;  %4376 = vmatprep.subr.bf16.mxu0 %v5437_v22  ;;  %v321_v21 = vld [vmem:[%s8311_s1 + $0x958] sm:$0xff]  ;;  %v5654_v22 = vcombine.low %v537_v9, %v549_v10  ;;  %v5631_v59 = vcombine.high %v513_v19, %v525_v20 }
 0x211   :  { %4446 = vmatprep.subr.bf16.mxu1 %v5247_v23  ;;  %v5462_v23 = vcombine.low %v345_v11, %v357_v12 }
 0x213   :  { %4377 = vmatpush2.bf16.msra.mxu0 %v5436_v27  ;;  %v297_v27 = vld [vmem:[%s8311_s1 + $0x898] sm:$0xff] }
 0x214   :  { %4447 = vmatpush1.bf16.msra.mxu1 %v5246_v28  ;;  %4378 = vmatprep.subr.bf16.mxu0 %v5413_v29  ;;  %v309_v28 = vld [vmem:[%s8311_s1 + $0x8f8] sm:$0xff]  ;;  %v5630_v29 = vcombine.low %v513_v19, %v525_v20 }
 0x215   :  { %4448 = vmatprep.subr.bf16.mxu1 %v5223_v30  ;;  %v5415_v32 = vcombine.high %v297_v27, %v309_v28 }
 0x217   :  { %4379 = vmatpush2.bf16.msra.mxu0 %v5412_v35  ;;  %v273_v35 = vld [vmem:[%s8311_s1 + $0x7d8] sm:$0xff] }
 0x218   :  { %4449 = vmatpush1.bf16.msra.mxu1 %v5222_v36  ;;  %4380 = vmatprep.subr.bf16.mxu0 %v5389_v37  ;;  %v285_v36 = vld [vmem:[%s8311_s1 + $0x838] sm:$0xff]  ;;  %v5606_v37 = vcombine.low %v489_v25, %v501_v26 }
 0x219   :  { %4450 = vmatprep.subr.bf16.mxu1 %v5199_v38  ;;  %v5414_v38 = vcombine.low %v297_v27, %v309_v28  ;;  %v5391_v40 = vcombine.high %v273_v35, %v285_v36 }
 0x21b   :  { %4381 = vmatpush2.bf16.msra.mxu0 %v5388_v44  ;;  %v249_v44 = vld [vmem:[%s8311_s1 + $0x718] sm:$0xff] }
 0x21c   :  { %4451 = vmatpush1.bf16.msra.mxu1 %v5198_v15  ;;  %4382 = vmatprep.subr.bf16.mxu0 %v5365_v45  ;;  %v261_v15 = vld [vmem:[%s8311_s1 + $0x778] sm:$0xff]  ;;  %v5582_v45 = vcombine.low %v465_v33, %v477_v34 }
 0x21d   :  { %4452 = vmatprep.subr.bf16.mxu1 %v5175_v46  ;;  %v5390_v46 = vcombine.low %v273_v35, %v285_v36  ;;  %v5367_v48 = vcombine.high %v249_v44, %v261_v15 }
 0x21f   :  { %4383 = vmatpush2.bf16.msra.mxu0 %v5364_v51  ;;  %v225_v51 = vld [vmem:[%s8311_s1 + $0x658] sm:$0xff] }
 0x220   :  { %4453 = vmatpush1.bf16.msra.mxu1 %v5174_v52  ;;  %4384 = vmatprep.subr.bf16.mxu0 %v5341_v53  ;;  %v237_v52 = vld [vmem:[%s8311_s1 + $0x6b8] sm:$0xff]  ;;  %v5558_v53 = vcombine.low %v441_v41, %v453_v43 }
 0x221   :  { %4454 = vmatprep.subr.bf16.mxu1 %v5151_v54  ;;  %v5366_v54 = vcombine.low %v249_v44, %v261_v15  ;;  %v5343_v56 = vcombine.high %v225_v51, %v237_v52  ;;  %v5342_v58 = vcombine.low %v225_v51, %v237_v52 }
 0x223   :  { %4385 = vmatpush2.bf16.msra.mxu0 %v5340_v60  ;;  %v3528_v60 = vpop.f32.mrf.mxu0 }
 0x224   :  { %4455 = vmatpush1.bf16.msra.mxu1 %v5150_v61  ;;  %4483 = vmatprep.subr.bf16.mxu0 %v5703_v63  ;;  %v3571_v61 = vpop.f32.mrf.mxu1 }
 0x225   :  { %4456 = vmatprep.subr.bf16.mxu1 %v5511_v0  ;;  %v3530_v63 = vpop.f32.mrf.mxu0  ;;  %v7654_v50 = vadd.f32 %v3571_v61, %v3528_v60 }
 0x226   :  { %4387 = vmatmul.mubr.bf16.vlgmr.msra.gmra.mxu0 %v7250_v42  ;;  %v3573_v0 = vpop.f32.mrf.mxu1 }
 0x227   :  { %4484 = vmatpush1.bf16.msra.mxu0 %v5702_v5  ;;  %4515 = vmatprep.mubr.bf16.mxu0 %v5769_v3  ;;  %v333_v3 = vld [vmem:[%s8311_s1 + $0x9b8] sm:$0xff]  ;;  %v3532_v13 = vpop.f32.mrf.mxu0 }
 0x228   :  { %4457 = vmatpush2.bf16.msra.mxu1 %v5510_v6  ;;  %4485 = vmatprep.subr.bf16.mxu0 %v5679_v7  ;;  %v5439_v24 = vcombine.high %v321_v21, %v333_v3  ;;  %v5438_v30 = vcombine.low %v321_v21, %v333_v3  ;;  %v3575_v1 = vpop.f32.mrf.mxu1 }
 0x229   :  { %4458 = vmatprep.subr.bf16.mxu1 %v5487_v8  ;;  %v3534_v2 = vpop.f32.mrf.mxu0 }
 0x22a   :  { %v3577_v4 = vpop.f32.mrf.mxu1 }
 0x22b   :  { %4486 = vmatpush1.bf16.msra.mxu0 %v5678_v14  ;;  %v3657_v5 = vpop.f32.mrf.mxu0 }
 0x22c   :  { %4459 = vmatpush2.bf16.msra.mxu1 %v5486_v16  ;;  %4487 = vmatprep.subr.bf16.mxu0 %v5655_v17  ;;  %v3614_v6 = vpop.f32.mrf.mxu1 }
 0x22d   :  { %4460 = vmatprep.subr.bf16.mxu1 %v5463_v18  ;;  %v3659_v7 = vpop.f32.mrf.mxu0  ;;  %v7656_v51 = vadd.f32 %v3657_v5, %v3614_v6 }
 0x22e   :  { %v3616_v8 = vpop.f32.mrf.mxu1 }
 0x22f   :  { %4488 = vmatpush1.bf16.msra.mxu0 %v5654_v22  ;;  %v3661_v9 = vpop.f32.mrf.mxu0  ;;  %8326 = vst [vmem:[#allocation2_spill] sm:$0xff] %v7656_v51 }
 0x230   :  { %4461 = vmatpush2.bf16.msra.mxu1 %v5462_v23  ;;  %4489 = vmatprep.subr.bf16.mxu0 %v5631_v59  ;;  %v3618_v10 = vpop.f32.mrf.mxu1 }
 0x231   :  { %4462 = vmatprep.subr.bf16.mxu1 %v5439_v24  ;;  %v3663_v11 = vpop.f32.mrf.mxu0 }
 0x232   :  { %v3620_v12 = vpop.f32.mrf.mxu1 }
 0x233   :  { %4490 = vmatpush1.bf16.msra.mxu0 %v5630_v29  ;;  %v3700_v14 = vpop.f32.mrf.mxu0  ;;  %v7679_v6 = vadd.f32 %v3663_v11, %v3620_v12 }
 0x234   :  { %4463 = vmatpush2.bf16.msra.mxu1 %v5438_v30  ;;  %4491 = vmatprep.subr.bf16.mxu0 %v5607_v31 }
 0x235   :  { %4464 = vmatprep.subr.bf16.mxu1 %v5415_v32  ;;  %v3702_v16 = vpop.f32.mrf.mxu0  ;;  %8331 = vst [vmem:[#allocation7_spill] sm:$0xff] %v7679_v6 }
 0x237   :  { %4492 = vmatpush1.bf16.msra.mxu0 %v5606_v37  ;;  %v3704_v17 = vpop.f32.mrf.mxu0 }
 0x238   :  { %4465 = vmatpush2.bf16.msra.mxu1 %v5414_v38  ;;  %4493 = vmatprep.subr.bf16.mxu0 %v5583_v39 }
 0x239   :  { %4466 = vmatprep.subr.bf16.mxu1 %v5391_v40  ;;  %v3706_v19 = vpop.f32.mrf.mxu0 }
 0x23b   :  { %4494 = vmatpush1.bf16.msra.mxu0 %v5582_v45  ;;  %v3829_v21 = vpop.f32.mrf.mxu0 }
 0x23c   :  { %4467 = vmatpush2.bf16.msra.mxu1 %v5390_v46  ;;  %4495 = vmatprep.subr.bf16.mxu0 %v5559_v47  ;;  %v7648_v47 = vadd.f32 %v3573_v0, %v3530_v63  ;;  %v7671_v63 = vadd.f32 %v3661_v9, %v3618_v10 }
 0x23d   :  { %4468 = vmatprep.subr.bf16.mxu1 %v5367_v48  ;;  %v3831_v22 = vpop.f32.mrf.mxu0 }
 0x23e   :  { %v4526_v52 = vadd.f32 %v7648_v47, %v7654_v50  ;;  %8330 = vst [vmem:[#allocation6_spill] sm:$0xff] %v7671_v63 }
 0x23f   :  { %4496 = vmatpush1.bf16.msra.mxu0 %v5558_v53  ;;  %v3833_v59 = vpop.f32.mrf.mxu0  ;;  %v7660_v53 = vadd.f32 %v3577_v4, %v3534_v2 }
 0x240   :  { %4469 = vmatpush2.bf16.msra.mxu1 %v5366_v54  ;;  %4497 = vmatprep.subr.bf16.mxu0 %v5535_v55 }
 0x241   :  { %4470 = vmatprep.subr.bf16.mxu1 %v5343_v56  ;;  %v7618_v25 = vpop.f32.mrf.mxu0  ;;  %8327 = vst [vmem:[#allocation3_spill] sm:$0xff] %v7660_v53  ;;  %v7666_v56 = vadd.f32 %v3575_v1, %v3532_v13 }
 0x243   :  { %4498 = vmatpush1.bf16.msra.mxu0 %v5534_v57  ;;  %v3872_v27 = vpop.f32.mrf.mxu0  ;;  %8328 = vst [vmem:[#allocation4_spill] sm:$0xff] %v7666_v56  ;;  %v4527_v57 = vadd.f32 %v4526_v52, %v7656_v51  ;;  %v4551_v0 = vadd.f32 %v7660_v53, %v7666_v56 }
 0x244   :  { %4471 = vmatpush2.bf16.msra.mxu1 %v5342_v58  ;;  %v7669_v58 = vadd.f32 %v3659_v7, %v3616_v8 }
 0x245   :  { %v7622_v29 = vpop.f32.mrf.mxu0  ;;  %v4552_v4 = vadd.f32 %v4551_v0, %v7671_v63 }
 0x246   :  { %4516 = vmatmul.mubr.bf16.vlgmr.msra.gmra.mxu0 %v7153_v62  ;;  %v3743_v62 = vpop.f32.mrf.mxu1  ;;  %8329 = vst [vmem:[#allocation5_spill] sm:$0xff] %v7669_v58  ;;  %v4528_v2 = vadd.f32 %v4527_v57, %v7669_v58 }
 0x247   :  { %4473 = vmatmul.mubr.bf16.vlgmr.msra.gmra.mxu1 %v7250_v42  ;;  %v3876_v31 = vpop.f32.mrf.mxu0  ;;  %v7675_v5 = vadd.f32 %v3743_v62, %v3700_v14  ;;  %v4553_v10 = vadd.f32 %v4552_v4, %v7679_v6 }
 0x248   :  { %v3745_v42 = vpop.f32.mrf.mxu1 }
 0x249   :  { %v7624_v33 = vpop.f32.mrf.mxu0  ;;  %v4529_v7 = vadd.f32 %v4528_v2, %v7675_v5  ;;  %v7682_v8 = vadd.f32 %v3745_v42, %v3702_v16 }
 0x24a   :  { %v3747_v18 = vpop.f32.mrf.mxu1 }
 0x24b   :  { %v4001_v35 = vpop.f32.mrf.mxu0  ;;  %v7684_v9 = vadd.f32 %v3747_v18, %v3704_v17  ;;  %v4530_v57 = vadd.f32 %v4529_v7, %v7682_v8 }
 0x24c   :  { %v3749_v20 = vpop.f32.mrf.mxu1 }
 0x24d   :  { %v7628_v37 = vpop.f32.mrf.mxu0  ;;  %v4554_v0 = vadd.f32 %v4553_v10, %v7684_v9  ;;  %v7691_v11 = vadd.f32 %v3749_v20, %v3706_v19 }
 0x24e   :  { %v3786_v3 = vpop.f32.mrf.mxu1 }
 0x24f   :  { %v7632_v39 = vpop.f32.mrf.mxu0  ;;  %v7687_v52 = vadd.f32 %v3829_v21, %v3786_v3  ;;  %v4555_v18 = vadd.f32 %v4554_v0, %v7691_v11 }
 0x250   :  { %v3788_v23 = vpop.f32.mrf.mxu1 }
 0x251   :  { %v7636_v41 = vpop.f32.mrf.mxu0  ;;  %v4531_v12 = vadd.f32 %v4530_v57, %v7687_v52  ;;  %v7694_v63 = vadd.f32 %v3831_v22, %v3788_v23 }
 0x252   :  { %v3790_v24 = vpop.f32.mrf.mxu1 }
 0x253   :  { %v7640_v44 = vpop.f32.mrf.mxu0  ;;  %v7696_v16 = vadd.f32 %v3833_v59, %v3790_v24  ;;  %v4532_v4 = vadd.f32 %v4531_v12, %v7694_v63 }
 0x254   :  { %v7620_v26 = vpop.f32.mrf.mxu1 }
 0x255   :  { %v7644_v45 = vpop.f32.mrf.mxu0  ;;  %v4556_v7 = vadd.f32 %v4555_v18, %v7696_v16  ;;  %v7705_v19 = vadd.f32 %v7618_v25, %v7620_v26 }
 0x256   :  { %v3915_v28 = vpop.f32.mrf.mxu1 }
 0x257   :  { %v7650_v48 = vpop.f32.mrf.mxu0  ;;  %v7699_v21 = vadd.f32 %v3915_v28, %v3872_v27  ;;  %v4557_v27 = vadd.f32 %v4556_v7, %v7705_v19 }
 0x258   :  { %v3917_v30 = vpop.f32.mrf.mxu1 }
 0x259   :  { %v7662_v54 = vpop.f32.mrf.mxu0  ;;  %8332 = vst [vmem:[#allocation8_spill] sm:$0xff] %v7699_v21  ;;  %v4533_v20 = vadd.f32 %v4532_v4, %v7699_v21  ;;  %v7709_v22 = vadd.f32 %v3917_v30, %v7622_v29 }
 0x25a   :  { %v3919_v32 = vpop.f32.mrf.mxu1 }
 0x25b   :  { %v4173_v60 = vpop.f32.mrf.mxu0  ;;  %v7711_v23 = vadd.f32 %v3919_v32, %v3876_v31  ;;  %v4534_v10 = vadd.f32 %v4533_v20, %v7709_v22 }
 0x25c   :  { %v7626_v34 = vpop.f32.mrf.mxu1 }
 0x25d   :  { %v4175_v13 = vpop.f32.mrf.mxu0  ;;  %v4558_v57 = vadd.f32 %v4557_v27, %v7711_v23  ;;  %v7720_v25 = vadd.f32 %v7626_v34, %v7624_v33 }
 0x25e   :  { %v3958_v36 = vpop.f32.mrf.mxu1 }
 0x25f   :  { %v4177_v14 = vpop.f32.mrf.mxu0  ;;  %v7714_v28 = vadd.f32 %v4001_v35, %v3958_v36  ;;  %v4559_v32 = vadd.f32 %v4558_v57, %v7720_v25 }
 0x260   :  { %v7630_v38 = vpop.f32.mrf.mxu1 }
 0x261   :  { %v4179_v42 = vpop.f32.mrf.mxu0  ;;  %v4535_v29 = vadd.f32 %v4534_v10, %v7714_v28  ;;  %v7725_v30 = vadd.f32 %v7628_v37, %v7630_v38 }
 0x262   :  { %v7634_v40 = vpop.f32.mrf.mxu1 }
 0x263   :  { %v7729_v31 = vadd.f32 %v7632_v39, %v7634_v40  ;;  %v4536_v36 = vadd.f32 %v4535_v29, %v7725_v30 }
 0x264   :  { %v7638_v43 = vpop.f32.mrf.mxu1 }
 0x265   :  { %v4560_v12 = vadd.f32 %v4559_v32, %v7729_v31  ;;  %v7740_v37 = vadd.f32 %v7636_v41, %v7638_v43 }
 0x266   :  { %v7642_v15 = vpop.f32.mrf.mxu1 }
 0x267   :  { %v7734_v35 = vadd.f32 %v7642_v15, %v7640_v44  ;;  %v4561_v15 = vadd.f32 %v4560_v12, %v7740_v37 }
 0x268   :  { %v7646_v46 = vpop.f32.mrf.mxu1 }
 0x269   :  { %v4537_v39 = vadd.f32 %v4536_v36, %v7734_v35  ;;  %v7745_v40 = vadd.f32 %v7646_v46, %v7644_v45 }
 0x26a   :  { %v7652_v49 = vpop.f32.mrf.mxu1 }
 0x26b   :  { %v7749_v44 = vadd.f32 %v7652_v49, %v7650_v48  ;;  %v4538_v41 = vadd.f32 %v4537_v39, %v7745_v40 }
 0x26c   :  { %v7664_v55 = vpop.f32.mrf.mxu1 }
 0x26d   :  { %v4562_v43 = vadd.f32 %v4561_v15, %v7749_v44  ;;  %v7758_v27 = vadd.f32 %v7664_v55, %v7662_v54 }
 0x26e   :  { %v4130_v61 = vpop.f32.mrf.mxu1 }
 0x26f   :  { %v7752_v4 = vadd.f32 %v4173_v60, %v4130_v61  ;;  %v4563_v60 = vadd.f32 %v4562_v43, %v7758_v27 }
 0x270   :  { %v4132_v1 = vpop.f32.mrf.mxu1 }
 0x271   :  { %v4539_v45 = vadd.f32 %v4538_v41, %v7752_v4  ;;  %v7761_v46 = vadd.f32 %v4175_v13, %v4132_v1 }
 0x272   :  { %v4134_v62 = vpop.f32.mrf.mxu1 }
 0x273   :  { %v7763_v48 = vadd.f32 %v4177_v14, %v4134_v62  ;;  %v4540_v57 = vadd.f32 %v4539_v45, %v7761_v46 }
 0x274   :  { %v4136_v17 = vpop.f32.mrf.mxu1 }
 0x275   :  { %8333 = vst [vmem:[#allocation9_spill] sm:$0xff] %v7763_v48  ;;  %v4564_v29 = vadd.f32 %v4563_v60, %v7763_v48  ;;  %v7770_v32 = vadd.f32 %v4179_v42, %v4136_v17 }
 0x276   :  { %v4259_v2 = vpop.f32.mrf.mxu1 }
 0x277   :  { %8334 = vst [vmem:[#allocation10_spill] sm:$0xff] %v7770_v32  ;;  %v4565_v12 = vadd.f32 %v4564_v29, %v7770_v32 }
 0x278   :  { %v4261_v24 = vpop.f32.mrf.mxu1 }
 0x27a   :  { %v4263_v0 = vpop.f32.mrf.mxu1 }
 0x27c   :  { %v4265_v34 = vpop.f32.mrf.mxu1 }
 0x286   :  { %v4216_v3 = vpop.f32.mrf.mxu0 }
 0x287   :  { %v7766_v61 = vadd.f32 %v4259_v2, %v4216_v3 }
 0x288   :  { %v4218_v59 = vpop.f32.mrf.mxu0 }
 0x289   :  { %v4541_v36 = vadd.f32 %v4540_v57, %v7766_v61  ;;  %v7773_v13 = vadd.f32 %v4261_v24, %v4218_v59 }
 0x28a   :  { %v4220_v26 = vpop.f32.mrf.mxu0 }
 0x28b   :  { %v7775_v1 = vadd.f32 %v4263_v0, %v4220_v26  ;;  %v4542_v2 = vadd.f32 %v4541_v36, %v7773_v13 }
 0x28c   :  { %v4222_v33 = vpop.f32.mrf.mxu0 }
 0x28d   :  { %v4566_v39 = vadd.f32 %v4565_v12, %v7775_v1  ;;  %v7782_v42 = vadd.f32 %v4265_v34, %v4222_v33 }
 0x28f   :  { %v4567_v26 = vadd.f32 %v4566_v39, %v7782_v42 }
 0x2a6   :  { %v4345_v38 = vpop.f32.mrf.mxu0 }
 0x2a7   :  { %v4302_v18 = vpop.f32.mrf.mxu1 }
 0x2a8   :  { %v4347_v7 = vpop.f32.mrf.mxu0  ;;  %v7778_v3 = vadd.f32 %v4345_v38, %v4302_v18 }
 0x2a9   :  { %v4304_v20 = vpop.f32.mrf.mxu1 }
 0x2aa   :  { %v4349_v49 = vpop.f32.mrf.mxu0  ;;  %v4543_v41 = vadd.f32 %v4542_v2, %v7778_v3  ;;  %v7785_v59 = vadd.f32 %v4347_v7, %v4304_v20 }
 0x2ab   :  { %v4306_v10 = vpop.f32.mrf.mxu1 }
 0x2ac   :  { %v4351_v54 = vpop.f32.mrf.mxu0  ;;  %v7787_v24 = vadd.f32 %v4349_v49, %v4306_v10  ;;  %v4544_v43 = vadd.f32 %v4543_v41, %v7785_v59 }
 0x2ad   :  { %v4308_v55 = vpop.f32.mrf.mxu1 }
 0x2ae   :  { %v4568_v45 = vadd.f32 %v4567_v26, %v7787_v24  ;;  %v7794_v33 = vadd.f32 %v4351_v54, %v4308_v55 }
 0x2b0   :  { %v4569_v10 = vadd.f32 %v4568_v45, %v7794_v33 }
 0x2c7   :  { %v4431_v62 = vpop.f32.mrf.mxu1 }
 0x2c9   :  { %v4433_v15 = vpop.f32.mrf.mxu1 }
 0x2cb   :  { %v4435_v18 = vpop.f32.mrf.mxu1 }
 0x2cd   :  { %v4437_v49 = vpop.f32.mrf.mxu1 }
 0x2e6   :  { %v4388_v14 = vpop.f32.mrf.mxu0 }
 0x2e7   :  { %v7790_v0 = vadd.f32 %v4431_v62, %v4388_v14 }
 0x2e8   :  { %v4390_v17 = vpop.f32.mrf.mxu0 }
 0x2e9   :  { %v4545_v34 = vadd.f32 %v4544_v43, %v7790_v0  ;;  %v7797_v60 = vadd.f32 %v4433_v15, %v4390_v17 }
 0x2ea   :  { %v4392_v38 = vpop.f32.mrf.mxu0 }
 0x2eb   :  { %v7799_v7 = vadd.f32 %v4435_v18, %v4392_v38  ;;  %v4546_v55 = vadd.f32 %v4545_v34, %v7797_v60 }
 0x2ec   :  { %v4394_v20 = vpop.f32.mrf.mxu0 }
 0x2ed   :  { %v4570_v36 = vadd.f32 %v4569_v10, %v7799_v7  ;;  %v7803_v14 = vadd.f32 %v4437_v49, %v4394_v20 }
 0x2ef   :  { %v4571_v41 = vadd.f32 %v4570_v36, %v7803_v14 }
 0x306   :  { %v4517_v57 = vpop.f32.mrf.mxu0 }
 0x307   :  { %v4474_v29 = vpop.f32.mrf.mxu1 }
 0x308   :  { %v7805_v62 = vadd.f32 %v4517_v57, %v4474_v29  ;;  %v4519_v54 = vpop.f32.mrf.mxu0 }
 0x309   :  { %v4476_v12 = vpop.f32.mrf.mxu1 }
 0x30a   :  { %v7808_v2 = vadd.f32 %v4519_v54, %v4476_v12  ;;  %v4521_v39 = vpop.f32.mrf.mxu0  ;;  %v4547_v17 = vadd.f32 %v4546_v55, %v7805_v62 }
 0x30b   :  { %v4478_v15 = vpop.f32.mrf.mxu1 }
 0x30c   :  { %v7812_v26 = vadd.f32 %v4521_v39, %v4478_v15  ;;  %v4523_v38 = vpop.f32.mrf.mxu0  ;;  %v4548_v18 = vadd.f32 %v4547_v17, %v7808_v2 }
 0x30d   :  { %v4480_v43 = vpop.f32.mrf.mxu1 }
 0x30e   :  { %v7815_v45 = vadd.f32 %v4523_v38, %v4480_v43  ;;  %4549 = vadd.xlane.f32.xlu0 %v4548_v18  ;;  %v4572_v34 = vadd.f32 %v4571_v41, %v7812_v26 }
 0x310   :  { %v4573_v20 = vadd.f32 %v4572_v34, %v7815_v45 }
 0x312   :  { %4574 = vadd.xlane.f32.xlu0 %v4573_v20 }
 0x397   :  { %v4550_v49 = vpop.xlane.xlu0 %4549 }
 0x398   :  { %v7819_v10 = vmul.f32 0.00032552084, %v4550_v49 }
 0x39a   :  { %v4579_v57 = vsub.f32 %v7654_v50, %v7819_v10  ;;  %v4580_v29 = vsub.f32 %v7648_v47, %v7819_v10  ;;  %v4581_v36 = vsub.f32 %v7656_v51, %v7819_v10  ;;  %v4582_v12 = vsub.f32 %v7669_v58, %v7819_v10 }
 0x39b   :  { %v4575_v39 = vpop.xlane.xlu0 %4574  ;;  %v4583_v17 = vsub.f32 %v7675_v5, %v7819_v10  ;;  %v4584_v18 = vsub.f32 %v7682_v8, %v7819_v10  ;;  %v4585_v20 = vsub.f32 %v7687_v52, %v7819_v10 }
 0x39c   :  { %v4627_v54 = vmul.f32 %v4579_v57, %v4579_v57  ;;  %v4628_v55 = vmul.f32 %v4580_v29, %v4580_v29  ;;  %v4629_v15 = vmul.f32 %v4581_v36, %v4581_v36  ;;  %v7831_v38 = vmul.f32 0.00032552084, %v4575_v39 }
 0x39d   :  { %v4630_v43 = vmul.f32 %v4582_v12, %v4582_v12  ;;  %v4631_v49 = vmul.f32 %v4583_v17, %v4583_v17  ;;  %v4586_v29 = vsub.f32 %v7694_v63, %v7819_v10  ;;  %v4632_v58 = vmul.f32 %v4584_v18, %v4584_v18 }
 0x39e   :  { %v4675_v41 = vadd.f32 %v4628_v55, %v4627_v54  ;;  %v4603_v36 = vsub.f32 %v7666_v56, %v7831_v38  ;;  %v4604_v54 = vsub.f32 %v7660_v53, %v7831_v38  ;;  %v4587_v55 = vsub.f32 %v7699_v21, %v7819_v10 }
 0x39f   :  { %v4633_v12 = vmul.f32 %v4585_v20, %v4585_v20  ;;  %v4588_v17 = vsub.f32 %v7709_v22, %v7819_v10  ;;  %v4606_v21 = vsub.f32 %v7679_v6, %v7831_v38  ;;  %v4592_v6 = vsub.f32 %v7745_v40, %v7819_v10 }
 0x3a0   :  { %v4676_v34 = vadd.f32 %v4675_v41, %v4629_v15  ;;  %v4634_v15 = vmul.f32 %v4586_v29, %v4586_v29  ;;  %v4635_v56 = vmul.f32 %v4587_v55, %v4587_v55  ;;  %v4607_v29 = vsub.f32 %v7684_v9, %v7831_v38 }
 0x3a1   :  { %v4608_v55 = vsub.f32 %v7691_v11, %v7831_v38 }
 0x3a2   :  { %v4677_v57 = vadd.f32 %v4676_v34, %v4630_v43  ;;  %v8335_v43 = vld [vmem:[#allocation6_spill] sm:$0xff]  ;;  %v4651_v34 = vmul.f32 %v4603_v36, %v4603_v36  ;;  %v4591_v36 = vsub.f32 %v7734_v35, %v7819_v10 }
 0x3a3   :  { %v4605_v18 = vsub.f32 %v8335_v43, %v7831_v38 }
 0x3a4   :  { %v4678_v51 = vadd.f32 %v4677_v57, %v4631_v49  ;;  %v4652_v49 = vmul.f32 %v4604_v54, %v4604_v54  ;;  %v4589_v57 = vsub.f32 %v7714_v28, %v7819_v10 }
 0x3a6   :  { %v4679_v39 = vadd.f32 %v4678_v51, %v4632_v58  ;;  %v4590_v51 = vsub.f32 %v7725_v30, %v7819_v10  ;;  %v4636_v58 = vmul.f32 %v4588_v17, %v4588_v17  ;;  %v4637_v54 = vmul.f32 %v4589_v57, %v4589_v57 }
 0x3a7   :  { %v4639_v57 = vmul.f32 %v4591_v36, %v4591_v36 }
 0x3a8   :  { %v4680_v41 = vadd.f32 %v4679_v39, %v4633_v12  ;;  %v4653_v12 = vmul.f32 %v4605_v18, %v4605_v18  ;;  %v4700_v39 = vadd.f32 %v4652_v49, %v4651_v34  ;;  %v4638_v17 = vmul.f32 %v4590_v51, %v4590_v51 }
 0x3a9   :  { %v4655_v18 = vmul.f32 %v4607_v29, %v4607_v29  ;;  %v4593_v49 = vsub.f32 %v7752_v4, %v7819_v10  ;;  %v4640_v51 = vmul.f32 %v4592_v6, %v4592_v6 }
 0x3aa   :  { %v4681_v53 = vadd.f32 %v4680_v41, %v4634_v15  ;;  %v4654_v15 = vmul.f32 %v4606_v21, %v4606_v21  ;;  %v4701_v41 = vadd.f32 %v4700_v39, %v4653_v12  ;;  %v4656_v21 = vmul.f32 %v4608_v55, %v4608_v55 }
 0x3ab   :  { %v4594_v39 = vsub.f32 %v7761_v46, %v7819_v10  ;;  %v4641_v36 = vmul.f32 %v4593_v49, %v4593_v49 }
 0x3ac   :  { %v4682_v20 = vadd.f32 %v4681_v53, %v4635_v56  ;;  %v4609_v56 = vsub.f32 %v7696_v16, %v7831_v38  ;;  %v4702_v34 = vadd.f32 %v4701_v41, %v4654_v15  ;;  %v4595_v41 = vsub.f32 %v7766_v61, %v7819_v10 }
 0x3ad   :  { %v4642_v6 = vmul.f32 %v4594_v39, %v4594_v39 }
 0x3ae   :  { %v4683_v43 = vadd.f32 %v4682_v20, %v4636_v58  ;;  %v4610_v20 = vsub.f32 %v7705_v19, %v7831_v38  ;;  %v4703_v12 = vadd.f32 %v4702_v34, %v4655_v18  ;;  %v4657_v29 = vmul.f32 %v4609_v56, %v4609_v56 }
 0x3af   :  { %v4596_v34 = vsub.f32 %v7773_v13, %v7819_v10  ;;  %v4643_v49 = vmul.f32 %v4595_v41, %v4595_v41 }
 0x3b0   :  { %v4684_v53 = vadd.f32 %v4683_v43, %v4637_v54  ;;  %v4611_v54 = vsub.f32 %v7711_v23, %v7831_v38  ;;  %v4704_v15 = vadd.f32 %v4703_v12, %v4656_v21  ;;  %v4658_v55 = vmul.f32 %v4610_v20, %v4610_v20 }
 0x3b1   :  { %v4597_v12 = vsub.f32 %v7778_v3, %v7819_v10  ;;  %v4644_v39 = vmul.f32 %v4596_v34, %v4596_v34 }
 0x3b2   :  { %v4685_v58 = vadd.f32 %v4684_v53, %v4638_v17  ;;  %v4612_v53 = vsub.f32 %v7720_v25, %v7831_v38  ;;  %v4705_v18 = vadd.f32 %v4704_v15, %v4657_v29  ;;  %v4659_v56 = vmul.f32 %v4611_v54, %v4611_v54 }
 0x3b3   :  { %v4598_v15 = vsub.f32 %v7785_v59, %v7819_v10  ;;  %v4645_v41 = vmul.f32 %v4597_v12, %v4597_v12 }
 0x3b4   :  { %v4686_v43 = vadd.f32 %v4685_v58, %v4639_v57  ;;  %v4613_v58 = vsub.f32 %v7729_v31, %v7831_v38  ;;  %v4706_v21 = vadd.f32 %v4705_v18, %v4658_v55  ;;  %v4660_v20 = vmul.f32 %v4612_v53, %v4612_v53 }
 0x3b5   :  { %v4599_v18 = vsub.f32 %v7790_v0, %v7819_v10  ;;  %v4646_v34 = vmul.f32 %v4598_v15, %v4598_v15 }
 0x3b6   :  { %v4687_v17 = vadd.f32 %v4686_v43, %v4640_v51  ;;  %v4614_v43 = vsub.f32 %v7740_v37, %v7831_v38  ;;  %v4707_v29 = vadd.f32 %v4706_v21, %v4659_v56  ;;  %v4661_v54 = vmul.f32 %v4613_v58, %v4613_v58 }
 0x3b7   :  { %v4600_v21 = vsub.f32 %v7797_v60, %v7819_v10  ;;  %v4647_v12 = vmul.f32 %v4599_v18, %v4599_v18  ;;  %v4620_v18 = vsub.f32 %v7782_v42, %v7831_v38 }
 0x3b8   :  { %v4688_v57 = vadd.f32 %v4687_v17, %v4641_v36  ;;  %v4615_v17 = vsub.f32 %v7749_v44, %v7831_v38  ;;  %v4708_v55 = vadd.f32 %v4707_v29, %v4660_v20  ;;  %v4662_v53 = vmul.f32 %v4614_v43, %v4614_v43 }
 0x3b9   :  { %v4601_v29 = vsub.f32 %v7805_v62, %v7819_v10  ;;  %v4648_v15 = vmul.f32 %v4600_v21, %v4600_v21 }
 0x3ba   :  { %v4689_v51 = vadd.f32 %v4688_v57, %v4642_v6  ;;  %v4616_v57 = vsub.f32 %v7758_v27, %v7831_v38  ;;  %v4709_v56 = vadd.f32 %v4708_v55, %v4661_v54  ;;  %v4663_v58 = vmul.f32 %v4615_v17, %v4615_v17 }
 0x3bb   :  { %v4602_v55 = vsub.f32 %v7808_v2, %v7819_v10 }
 0x3bc   :  { %v4690_v36 = vadd.f32 %v4689_v51, %v4643_v49  ;;  %v4617_v51 = vsub.f32 %v7763_v48, %v7831_v38  ;;  %v4710_v20 = vadd.f32 %v4709_v56, %v4662_v53  ;;  %v4664_v43 = vmul.f32 %v4616_v57, %v4616_v57 }
 0x3bd   :  { %v4649_v56 = vmul.f32 %v4601_v29, %v4601_v29  ;;  %v4623_v29 = vsub.f32 %v7799_v7, %v7831_v38 }
 0x3be   :  { %v4691_v6 = vadd.f32 %v4690_v36, %v4644_v39  ;;  %v4618_v36 = vsub.f32 %v7770_v32, %v7831_v38  ;;  %v4711_v54 = vadd.f32 %v4710_v20, %v4663_v58  ;;  %v4665_v17 = vmul.f32 %v4617_v51, %v4617_v51 }
 0x3bf   :  { %v4650_v32 = vmul.f32 %v4602_v55, %v4602_v55  ;;  %v4621_v58 = vsub.f32 %v7787_v24, %v7831_v38  ;;  %v4668_v51 = vmul.f32 %v4620_v18, %v4620_v18 }
 0x3c0   :  { %v4692_v49 = vadd.f32 %v4691_v6, %v4645_v41  ;;  %v4619_v6 = vsub.f32 %v7775_v1, %v7831_v38  ;;  %v4712_v53 = vadd.f32 %v4711_v54, %v4664_v43 }
 0x3c1   :  { %v4669_v54 = vmul.f32 %v4621_v58, %v4621_v58 }
 0x3c2   :  { %v4693_v39 = vadd.f32 %v4692_v49, %v4646_v34  ;;  %v4666_v34 = vmul.f32 %v4618_v36, %v4618_v36  ;;  %v4713_v49 = vadd.f32 %v4712_v53, %v4665_v17  ;;  %v4667_v20 = vmul.f32 %v4619_v6, %v4619_v6 }
 0x3c3   :  { %v4626_v17 = vsub.f32 %v7815_v45, %v7831_v38 }
 0x3c4   :  { %v4694_v41 = vadd.f32 %v4693_v39, %v4647_v12  ;;  %v4714_v21 = vadd.f32 %v4713_v49, %v4666_v34  ;;  %v4622_v39 = vsub.f32 %v7794_v33, %v7831_v38 }
 0x3c5   :  { %v4674_v49 = vmul.f32 %v4626_v17, %v4626_v17 }
 0x3c6   :  { %v4695_v48 = vadd.f32 %v4694_v41, %v4648_v15  ;;  %v4715_v43 = vadd.f32 %v4714_v21, %v4667_v20  ;;  %v4670_v55 = vmul.f32 %v4622_v39, %v4622_v39  ;;  %v4625_v41 = vsub.f32 %v7812_v26, %v7831_v38 }
 0x3c8   :  { %v4696_v57 = vadd.f32 %v4695_v48, %v4649_v56  ;;  %v4716_v36 = vadd.f32 %v4715_v43, %v4668_v51  ;;  %v4624_v48 = vsub.f32 %v7803_v14, %v7831_v38  ;;  %v4673_v18 = vmul.f32 %v4625_v41, %v4625_v41  ;;  %v4727_v43 = vld [vmem:[%s8313_s2] sm:$0xff] }
 0x3ca   :  { %v4697_v12 = vadd.f32 %v4696_v57, %v4650_v32  ;;  %v4717_v15 = vadd.f32 %v4716_v36, %v4669_v54  ;;  %v4671_v32 = vmul.f32 %v4623_v29, %v4623_v29  ;;  %v4672_v53 = vmul.f32 %v4624_v48, %v4624_v48  ;;  %v4728_v48 = vld [vmem:[%s8313_s2 + $0x8] sm:$0xff] }
 0x3cc   :  { %4698 = vadd.xlane.f32.xlu1 %v4697_v12  ;;  %v4718_v6 = vadd.f32 %v4717_v15, %v4670_v55 }
 0x3ce   :  { %v4719_v56 = vadd.f32 %v4718_v6, %v4671_v32  ;;  %v4735_v32 = vld [vmem:[%s8314_s3] sm:$0xff] }
 0x3d0   :  { %v4720_v34 = vadd.f32 %v4719_v56, %v4672_v53  ;;  %v4736_v53 = vld [vmem:[%s8314_s3 + $0x8] sm:$0xff] }
 0x3d2   :  { %v4721_v57 = vadd.f32 %v4720_v34, %v4673_v18 }
 0x3d4   :  { %v4722_v58 = vadd.f32 %v4721_v57, %v4674_v49  ;;  %v8336_v49 = vld [vmem:[#allocation2_spill] sm:$0xff] }
 0x3d6   :  { %4723 = vadd.xlane.f32.xlu1 %v4722_v58  ;;  %v8337_v58 = vld [vmem:[#allocation5_spill] sm:$0xff] }
 0x455   :  { %v4699_v20 = vpop.xlane.xlu1 %4698 }
 0x456   :  { %v4725_v21 = vmul.f32 0.00032552084, %v4699_v20 }
 0x458   :  { %v4729_v12 = vadd.f32 1e-05, %v4725_v21 }
 0x45a   :  { %5759 = vrsqrt.f32 %v4729_v12 }
 0x45f   :  { %v4724_v39 = vpop.xlane.xlu1 %4723 }
 0x460   :  { %v4726_v51 = vmul.f32 0.00032552084, %v4724_v39 }
 0x462   :  { %v4730_v29 = vadd.f32 1e-05, %v4726_v51  ;;  %v8338_v51 = vld [vmem:[#allocation8_spill] sm:$0xff] }
 0x464   :  { %5761 = vrsqrt.f32 %v4730_v29 }
 0x467   :  { %v5760_v54 = vpop.eup %5759 }
 0x468   :  { %v4733_v36 = vmul.f32 %v5760_v54, %v4727_v43 }
 0x46a   :  { %4743 = vperm.xlu0 %5753, %v4733_v36   ;;  %v4737_v41 = vmul.f32 %v4733_v36, %v7819_v10 }
 0x46c   :  { %v4739_v6 = vsub.f32 %v4735_v32, %v4737_v41 }
 0x471   :  { %v5762_v55 = vpop.eup %5761 }
 0x472   :  { %v4734_v15 = vmul.f32 %v5762_v55, %v4728_v48 }
 0x474   :  { %4748 = vperm.xlu1 %5754, %v4734_v15   ;;  %v4738_v17 = vmul.f32 %v4734_v15, %v7831_v38 }
 0x476   :  { %v4740_v56 = vsub.f32 %v4736_v53, %v4738_v17  ;;  %v8355_v53 = vld [vmem:[#allocation9_spill] sm:$0xff] }
 0x478   :  { %4801 = vperm.xlu1 %5754, %v4739_v6  }
 0x47c   :  { %4806 = vperm.xlu1 %5754, %v4740_v56   ;;  %v8357_v56 = vld [vmem:[#allocation10_spill] sm:$0xff] }
 0x4e5   :  { %v4744_v18 = vpop.permute.xlu0 %4743 }
 0x4e6   :  { %v4751_v34 = vmul.f32 %v4744_v18, %v7654_v50  ;;  %v4752_v10 = vmul.f32 %v4744_v18, %v7648_v47  ;;  %v4753_v57 = vmul.f32 %v4744_v18, %v8336_v49  ;;  %v4754_v20 = vmul.f32 %v4744_v18, %v8337_v58 }
 0x4e7   :  { %v4755_v21 = vmul.f32 %v4744_v18, %v7675_v5  ;;  %v4756_v38 = vmul.f32 %v4744_v18, %v7682_v8  ;;  %v4757_v12 = vmul.f32 %v4744_v18, %v7687_v52  ;;  %v4758_v39 = vmul.f32 %v4744_v18, %v7694_v63 }
 0x4e8   :  { %v4759_v43 = vmul.f32 %v4744_v18, %v8338_v51  ;;  %v4760_v29 = vmul.f32 %v4744_v18, %v7709_v22  ;;  %v4761_v50 = vmul.f32 %v4744_v18, %v7714_v28  ;;  %v4762_v47 = vmul.f32 %v4744_v18, %v7725_v30 }
 0x4e9   :  { %v4763_v54 = vmul.f32 %v4744_v18, %v7734_v35  ;;  %v4764_v36 = vmul.f32 %v4744_v18, %v7745_v40  ;;  %v4765_v5 = vmul.f32 %v4744_v18, %v7752_v4  ;;  %v4766_v8 = vmul.f32 %v4744_v18, %v7761_v46  ;;  %v8339_v4 = vld [vmem:[#allocation4_spill] sm:$0xff] }
 0x4ea   :  { %v4767_v52 = vmul.f32 %v4744_v18, %v7766_v61  ;;  %v4768_v63 = vmul.f32 %v4744_v18, %v7773_v13  ;;  %v4769_v48 = vmul.f32 %v4744_v18, %v7778_v3  ;;  %v4770_v22 = vmul.f32 %v4744_v18, %v7785_v59  ;;  %v8340_v61 = vld [vmem:[#allocation3_spill] sm:$0xff]  ;;  %v8341_v3 = vld [vmem:[#allocation6_spill] sm:$0xff] }
 0x4eb   :  { %v4771_v28 = vmul.f32 %v4744_v18, %v7790_v0  ;;  %v4772_v30 = vmul.f32 %v4744_v18, %v7797_v60  ;;  %v4773_v35 = vmul.f32 %v4744_v18, %v7805_v62  ;;  %v4774_v40 = vmul.f32 %v4744_v18, %v7808_v2  ;;  %v8343_v0 = vld [vmem:[#allocation7_spill] sm:$0xff] }
 0x4ef   :  { %v7955_v55 = vpop.permute.xlu1 %4748 }
 0x4f0   :  { %v7961_v46 = vmul.f32 %v7955_v55, %v8339_v4  ;;  %v7965_v13 = vmul.f32 %v7955_v55, %v8340_v61  ;;  %v7969_v59 = vmul.f32 %v7955_v55, %v8341_v3  ;;  %v7973_v60 = vmul.f32 %v7955_v55, %v8343_v0 }
 0x4f1   :  { %v7977_v62 = vmul.f32 %v7955_v55, %v7684_v9  ;;  %v7981_v2 = vmul.f32 %v7955_v55, %v7691_v11  ;;  %v7985_v15 = vmul.f32 %v7955_v55, %v7696_v16  ;;  %v7989_v41 = vmul.f32 %v7955_v55, %v7705_v19 }
 0x4f2   :  { %8342 = vst [vmem:[#allocation2_spill] sm:$0xff] %v7969_v59  ;;  %8344 = vst [vmem:[#allocation5_spill] sm:$0xff] %v7973_v60  ;;  %v7993_v32 = vmul.f32 %v7955_v55, %v7711_v23  ;;  %v7997_v9 = vmul.f32 %v7955_v55, %v7720_v25  ;;  %v8001_v11 = vmul.f32 %v7955_v55, %v7729_v31 }
 0x4f3   :  { %8345 = vst [vmem:[#allocation8_spill] sm:$0xff] %v7977_v62  ;;  %8346 = vst [vmem:[#allocation4_spill] sm:$0xff] %v7981_v2  ;;  %v4802_v6 = vpop.permute.xlu1 %4801  ;;  %v8005_v16 = vmul.f32 %v7955_v55, %v7740_v37  ;;  %v8009_v19 = vmul.f32 %v7955_v55, %v7749_v44  ;;  %v8013_v23 = vmul.f32 %v7955_v55, %v7758_v27 }
 0x4f4   :  { %8347 = vst [vmem:[#allocation3_spill] sm:$0xff] %v7985_v15  ;;  %8348 = vst [vmem:[#allocation6_spill] sm:$0xff] %v7989_v41  ;;  %v8015_v17 = vadd.f32 %v4802_v6, %v4751_v34  ;;  %v8017_v25 = vadd.f32 %v4802_v6, %v4752_v10  ;;  %v8021_v31 = vmul.f32 %v7955_v55, %v8355_v53 }
 0x4f5   :  { %8349 = vst [vmem:[#allocation7_spill] sm:$0xff] %v7993_v32  ;;  %8350 = vst [vmem:[#allocation11_spill] sm:$0xff] %v7997_v9  ;;  %v8025_v37 = vmul.f32 %v7955_v55, %v8357_v56  ;;  %v8027_v18 = vadd.f32 %v4802_v6, %v4753_v57  ;;  %v8029_v44 = vadd.f32 %v4802_v6, %v4754_v20 }
 0x4f6   :  { %8351 = vst [vmem:[#allocation12_spill] sm:$0xff] %v8001_v11  ;;  %8352 = vst [vmem:[#allocation13_spill] sm:$0xff] %v8005_v16  ;;  %v8031_v49 = vadd.f32 %v4802_v6, %v4755_v21  ;;  %v8033_v27 = vadd.f32 %v4802_v6, %v4756_v38  ;;  %v8035_v34 = vadd.f32 %v4802_v6, %v4757_v12 }
 0x4f7   :  { %8353 = vst [vmem:[#allocation14_spill] sm:$0xff] %v8009_v19  ;;  %8354 = vst [vmem:[#allocation15_spill] sm:$0xff] %v8013_v23  ;;  %v8037_v10 = vadd.f32 %v4802_v6, %v4758_v39  ;;  %v8039_v58 = vadd.f32 %v4802_v6, %v4759_v43  ;;  %v8041_v51 = vadd.f32 %v4802_v6, %v4760_v29 }
 0x4f8   :  { %8356 = vst [vmem:[#allocation9_spill] sm:$0xff] %v8021_v31  ;;  %8358 = vst [vmem:[#allocation10_spill] sm:$0xff] %v8025_v37  ;;  %v8043_v4 = vadd.f32 %v4802_v6, %v4761_v50  ;;  %v8045_v61 = vadd.f32 %v4802_v6, %v4762_v47  ;;  %v8047_v57 = vadd.f32 %v4802_v6, %v4763_v54 }
 0x4f9   :  { %v8049_v20 = vadd.f32 %v4802_v6, %v4764_v36  ;;  %v8051_v21 = vadd.f32 %v4802_v6, %v4765_v5  ;;  %v8053_v38 = vadd.f32 %v4802_v6, %v4766_v8  ;;  %v8055_v12 = vadd.f32 %v4802_v6, %v4767_v52 }
 0x4fa   :  { %v8057_v39 = vadd.f32 %v4802_v6, %v4768_v63  ;;  %v8059_v43 = vadd.f32 %v4802_v6, %v4769_v48  ;;  %v8061_v29 = vadd.f32 %v4802_v6, %v4770_v22  ;;  %v8063_v50 = vadd.f32 %v4802_v6, %v4771_v28 }
 0x4fb   :  { %v8065_v47 = vadd.f32 %v4802_v6, %v4772_v30  ;;  %v8067_v54 = vadd.f32 %v4802_v6, %v4773_v35  ;;  %v4857_v36 = vmul.f32 0.2, %v8015_v17  ;;  %v4858_v5 = vmul.f32 0.2, %v8017_v25 }
 0x4fc   :  { %v4859_v8 = vmul.f32 0.2, %v8027_v18  ;;  %v4832_v52 = vadd.f32 %v4802_v6, %v4774_v40  ;;  %v4860_v63 = vmul.f32 0.2, %v8029_v44  ;;  %v4861_v48 = vmul.f32 0.2, %v8031_v49 }
 0x4fd   :  { %v4862_v22 = vmul.f32 0.2, %v8033_v27  ;;  %v4863_v28 = vmul.f32 0.2, %v8035_v34  ;;  %v4864_v30 = vmul.f32 0.2, %v8037_v10  ;;  %v4905_v3 = vmax.f32 %v8015_v17, %v4857_v36 }
 0x4fe   :  { %v4865_v35 = vmul.f32 0.2, %v8039_v58  ;;  %v4866_v0 = vmul.f32 0.2, %v8041_v51  ;;  %v4867_v53 = vmul.f32 0.2, %v8043_v4  ;;  %v4906_v6 = vmax.f32 %v8017_v25, %v4858_v5 }
 0x4ff   :  { %v4868_v40 = vmul.f32 0.2, %v8045_v61  ;;  %v4869_v56 = vmul.f32 0.2, %v8047_v57  ;;  %v4870_v37 = vmul.f32 0.2, %v8049_v20  ;;  %v4907_v23 = vmax.f32 %v8027_v18, %v4859_v8 }
 0x500   :  { %v4871_v31 = vmul.f32 0.2, %v8051_v21  ;;  %v4872_v19 = vmul.f32 0.2, %v8053_v38  ;;  %v4873_v17 = vmul.f32 0.2, %v8055_v12  ;;  %v4908_v16 = vmax.f32 %v8029_v44, %v4860_v63 }
 0x501   :  { %v4874_v36 = vmul.f32 0.2, %v8057_v39  ;;  %v4875_v11 = vmul.f32 0.2, %v8059_v43  ;;  %v4876_v25 = vmul.f32 0.2, %v8061_v29  ;;  %v4909_v9 = vmax.f32 %v8031_v49, %v4861_v48 }
 0x502   :  { %v4877_v5 = vmul.f32 0.2, %v8063_v50  ;;  %v4878_v32 = vmul.f32 0.2, %v8065_v47  ;;  %v4879_v18 = vmul.f32 0.2, %v8067_v54  ;;  %v4910_v41 = vmax.f32 %v8033_v27, %v4862_v22 }
 0x503   :  { %v4880_v8 = vmul.f32 0.2, %v4832_v52  ;;  %v4911_v15 = vmax.f32 %v8035_v34, %v4863_v28  ;;  %v4912_v2 = vmax.f32 %v8037_v10, %v4864_v30  ;;  %v4913_v44 = vmax.f32 %v8039_v58, %v4865_v35 }
 0x504   :  { %v4914_v63 = vmax.f32 %v8041_v51, %v4866_v0  ;;  %v4915_v62 = vmax.f32 %v8043_v4, %v4867_v53  ;;  %v4916_v60 = vmax.f32 %v8045_v61, %v4868_v40  ;;  %v4917_v49 = vmax.f32 %v8047_v57, %v4869_v56  ;;  %v8368_v53 = vld [vmem:[#allocation13_spill] sm:$0xff] }
 0x505   :  { %v4918_v48 = vmax.f32 %v8049_v20, %v4870_v37  ;;  %v4919_v59 = vmax.f32 %v8051_v21, %v4871_v31  ;;  %v4920_v27 = vmax.f32 %v8053_v38, %v4872_v19  ;;  %v4921_v34 = vmax.f32 %v8055_v12, %v4873_v17  ;;  %v8370_v17 = vld [vmem:[#allocation15_spill] sm:$0xff] }
 0x506   :  { %v4922_v10 = vmax.f32 %v8057_v39, %v4874_v36  ;;  %v4923_v58 = vmax.f32 %v8059_v43, %v4875_v11  ;;  %v4924_v51 = vmax.f32 %v8061_v29, %v4876_v25  ;;  %v4925_v4 = vmax.f32 %v8063_v50, %v4877_v5  ;;  %v8362_v50 = vld [vmem:[#allocation4_spill] sm:$0xff]  ;;  %v8371_v25 = vld [vmem:[#allocation9_spill] sm:$0xff] }
 0x507   :  { %v4926_v61 = vmax.f32 %v8065_v47, %v4878_v32  ;;  %v4927_v57 = vmax.f32 %v8067_v54, %v4879_v18  ;;  %v4928_v22 = vmax.f32 %v4832_v52, %v4880_v8  ;;  %v5728_v37 = vpack.c.bf16 %v4906_v6, %v4905_v3  ;;  %v4807_v32 = vpop.permute.xlu1 %4806  ;;  %v8363_v47 = vld [vmem:[#allocation3_spill] sm:$0xff]  ;;  %v8367_v3 = vld [vmem:[#allocation12_spill] sm:$0xff]  ;;  %v8369_v6 = vld [vmem:[#allocation14_spill] sm:$0xff] }
 0x508   :  { %v5729_v20 = vpack.c.bf16 %v4908_v16, %v4907_v23  ;;  %v5730_v31 = vpack.c.bf16 %v4910_v41, %v4909_v9  ;;  %v5731_v21 = vpack.c.bf16 %v4912_v2, %v4911_v15  ;;  %v5732_v19 = vpack.c.bf16 %v4914_v63, %v4913_v44  ;;  %v8360_v9 = vld [vmem:[#allocation5_spill] sm:$0xff]  ;;  %v8361_v23 = vld [vmem:[#allocation8_spill] sm:$0xff]  ;;  %v8366_v52 = vld [vmem:[#allocation11_spill] sm:$0xff] }
 0x509   :  { %v5733_v38 = vpack.c.bf16 %v4916_v60, %v4915_v62  ;;  %v5734_v12 = vpack.c.bf16 %v4918_v48, %v4917_v49  ;;  %v5735_v28 = vpack.c.bf16 %v4920_v27, %v4919_v59  ;;  %v5736_v39 = vpack.c.bf16 %v4922_v10, %v4921_v34  ;;  %5097 = vst [vmem:[%s8315_s4] sm:$0xff] %v5728_v37  ;;  %v8372_v18 = vld [vmem:[#allocation10_spill] sm:$0xff] }
 0x50a   :  { %v5737_v30 = vpack.c.bf16 %v4924_v51, %v4923_v58  ;;  %5098 = vst [vmem:[%s8315_s4 + $0x8] sm:$0xff] %v5729_v20  ;;  %v5738_v11 = vpack.c.bf16 %v4926_v61, %v4925_v4  ;;  %v5739_v43 = vpack.c.bf16 %v4928_v22, %v4927_v57  ;;  %5099 = vst [vmem:[%s8315_s4 + $0x10] sm:$0xff] %v5730_v31 }
 0x50b   :  { %5100 = vst [vmem:[%s8315_s4 + $0x18] sm:$0xff] %v5731_v21  ;;  %5101 = vst [vmem:[%s8315_s4 + $0x20] sm:$0xff] %v5732_v19  ;;  %v4791_v59 = vmul.f32 %v7955_v55, %v7775_v1  ;;  %v4792_v60 = vmul.f32 %v7955_v55, %v7782_v42  ;;  %v4793_v1 = vmul.f32 %v7955_v55, %v7787_v24 }
 0x50c   :  { %5102 = vst [vmem:[%s8315_s4 + $0x28] sm:$0xff] %v5733_v38  ;;  %5103 = vst [vmem:[%s8315_s4 + $0x30] sm:$0xff] %v5734_v12  ;;  %v4794_v42 = vmul.f32 %v7955_v55, %v7794_v33  ;;  %v4795_v62 = vmul.f32 %v7955_v55, %v7799_v7  ;;  %v4796_v2 = vmul.f32 %v7955_v55, %v7803_v14  ;;  %v8359_v14 = vld [vmem:[#allocation2_spill] sm:$0xff] }
 0x50d   :  { %5104 = vst [vmem:[%s8315_s4 + $0x38] sm:$0xff] %v5735_v28  ;;  %5105 = vst [vmem:[%s8315_s4 + $0x40] sm:$0xff] %v5736_v39  ;;  %v4797_v24 = vmul.f32 %v7955_v55, %v7812_v26  ;;  %v4798_v33 = vmul.f32 %v7955_v55, %v7815_v45  ;;  %v8168_v15 = vadd.f32 %v4807_v32, %v7961_v46  ;;  %v8364_v55 = vld [vmem:[#allocation6_spill] sm:$0xff] }
 0x50e   :  { %5106 = vst [vmem:[%s8315_s4 + $0x48] sm:$0xff] %v5737_v30  ;;  %5107 = vst [vmem:[%s8315_s4 + $0x50] sm:$0xff] %v5738_v11  ;;  %v8171_v7 = vadd.f32 %v4807_v32, %v7965_v13  ;;  %v8174_v41 = vadd.f32 %v4807_v32, %v8359_v14  ;;  %v8177_v16 = vadd.f32 %v4807_v32, %v8360_v9  ;;  %v8365_v13 = vld [vmem:[#allocation7_spill] sm:$0xff] }
 0x50f   :  { %5108 = vst [vmem:[%s8315_s4 + $0x58] sm:$0xff] %v5739_v43  ;;  %v8180_v29 = vadd.f32 %v4807_v32, %v8361_v23  ;;  %v8183_v26 = vadd.f32 %v4807_v32, %v8362_v50  ;;  %v8186_v45 = vadd.f32 %v4807_v32, %v8363_v47  ;;  %v8189_v46 = vadd.f32 %v4807_v32, %v8364_v55 }
 0x510   :  { %v8192_v54 = vadd.f32 %v4807_v32, %v8365_v13  ;;  %v8195_v35 = vadd.f32 %v4807_v32, %v8366_v52  ;;  %v8198_v0 = vadd.f32 %v4807_v32, %v8367_v3  ;;  %v8201_v40 = vadd.f32 %v4807_v32, %v8368_v53 }
 0x511   :  { %v8204_v56 = vadd.f32 %v4807_v32, %v8369_v6  ;;  %v8207_v36 = vadd.f32 %v4807_v32, %v8370_v17  ;;  %v8210_v5 = vadd.f32 %v4807_v32, %v8371_v25  ;;  %v8213_v8 = vadd.f32 %v4807_v32, %v8372_v18 }
 0x512   :  { %v8215_v44 = vadd.f32 %v4807_v32, %v4791_v59  ;;  %v8217_v63 = vadd.f32 %v4807_v32, %v4792_v60  ;;  %v8219_v49 = vadd.f32 %v4807_v32, %v4793_v1  ;;  %v8221_v48 = vadd.f32 %v4807_v32, %v4794_v42 }
 0x513   :  { %v8223_v27 = vadd.f32 %v4807_v32, %v4795_v62  ;;  %v8225_v34 = vadd.f32 %v4807_v32, %v4796_v2  ;;  %v8227_v10 = vadd.f32 %v4807_v32, %v4797_v24  ;;  %v4881_v58 = vmul.f32 0.2, %v8168_v15 }
 0x514   :  { %v4882_v51 = vmul.f32 0.2, %v8171_v7  ;;  %v4883_v4 = vmul.f32 0.2, %v8174_v41  ;;  %v4856_v61 = vadd.f32 %v4807_v32, %v4798_v33  ;;  %v4884_v57 = vmul.f32 0.2, %v8177_v16 }
 0x515   :  { %v4885_v22 = vmul.f32 0.2, %v8180_v29  ;;  %v4886_v37 = vmul.f32 0.2, %v8183_v26  ;;  %v4887_v20 = vmul.f32 0.2, %v8186_v45  ;;  %v4929_v19 = vmax.f32 %v8168_v15, %v4881_v58 }
 0x516   :  { %v4888_v31 = vmul.f32 0.2, %v8189_v46  ;;  %v4889_v21 = vmul.f32 0.2, %v8192_v54  ;;  %v4890_v38 = vmul.f32 0.2, %v8195_v35  ;;  %v4930_v39 = vmax.f32 %v8171_v7, %v4882_v51 }
 0x517   :  { %v4891_v12 = vmul.f32 0.2, %v8198_v0  ;;  %v4892_v28 = vmul.f32 0.2, %v8201_v40  ;;  %v4893_v30 = vmul.f32 0.2, %v8204_v56  ;;  %v4931_v43 = vmax.f32 %v8174_v41, %v4883_v4 }
 0x518   :  { %v4894_v32 = vmul.f32 0.2, %v8207_v36  ;;  %v4895_v11 = vmul.f32 0.2, %v8210_v5  ;;  %v4896_v59 = vmul.f32 0.2, %v8213_v8  ;;  %v4932_v42 = vmax.f32 %v8177_v16, %v4884_v57 }
 0x519   :  { %v4897_v60 = vmul.f32 0.2, %v8215_v44  ;;  %v4898_v1 = vmul.f32 0.2, %v8217_v63  ;;  %v4899_v62 = vmul.f32 0.2, %v8219_v49  ;;  %v4933_v33 = vmax.f32 %v8180_v29, %v4885_v22 }
 0x51a   :  { %v4900_v2 = vmul.f32 0.2, %v8221_v48  ;;  %v4901_v24 = vmul.f32 0.2, %v8223_v27  ;;  %v4902_v15 = vmul.f32 0.2, %v8225_v34  ;;  %v4934_v41 = vmax.f32 %v8183_v26, %v4886_v37 }
 0x51b   :  { %v4903_v7 = vmul.f32 0.2, %v8227_v10  ;;  %v4904_v14 = vmul.f32 0.2, %v4856_v61  ;;  %v4935_v9 = vmax.f32 %v8186_v45, %v4887_v20  ;;  %v4936_v23 = vmax.f32 %v8189_v46, %v4888_v31 }
 0x51c   :  { %v4937_v16 = vmax.f32 %v8192_v54, %v4889_v21  ;;  %v4938_v50 = vmax.f32 %v8195_v35, %v4890_v38  ;;  %v4939_v47 = vmax.f32 %v8198_v0, %v4891_v12  ;;  %v4940_v55 = vmax.f32 %v8201_v40, %v4892_v28 }
 0x51d   :  { %v4941_v29 = vmax.f32 %v8204_v56, %v4893_v30  ;;  %v4942_v13 = vmax.f32 %v8207_v36, %v4894_v32  ;;  %v4943_v52 = vmax.f32 %v8210_v5, %v4895_v11  ;;  %v4944_v26 = vmax.f32 %v8213_v8, %v4896_v59 }
 0x51e   :  { %v4945_v45 = vmax.f32 %v8215_v44, %v4897_v60  ;;  %v4946_v46 = vmax.f32 %v8217_v63, %v4898_v1  ;;  %v4947_v54 = vmax.f32 %v8219_v49, %v4899_v62  ;;  %v4948_v35 = vmax.f32 %v8221_v48, %v4900_v2 }
 0x51f   :  { %v4949_v3 = vmax.f32 %v8223_v27, %v4901_v24  ;;  %v4950_v0 = vmax.f32 %v8225_v34, %v4902_v15  ;;  %v4951_v53 = vmax.f32 %v8227_v10, %v4903_v7  ;;  %v4952_v40 = vmax.f32 %v4856_v61, %v4904_v14 }
 0x520   :  { %v5740_v6 = vpack.c.bf16 %v4930_v39, %v4929_v19  ;;  %v5741_v56 = vpack.c.bf16 %v4932_v42, %v4931_v43  ;;  %v5742_v17 = vpack.c.bf16 %v4934_v41, %v4933_v33  ;;  %v5743_v36 = vpack.c.bf16 %v4936_v23, %v4935_v9 }
 0x521   :  { %v5744_v25 = vpack.c.bf16 %v4938_v50, %v4937_v16  ;;  %v5745_v5 = vpack.c.bf16 %v4940_v55, %v4939_v47  ;;  %v5746_v18 = vpack.c.bf16 %v4942_v13, %v4941_v29  ;;  %v5747_v8 = vpack.c.bf16 %v4944_v26, %v4943_v52 }
 0x522   :  { %v5748_v44 = vpack.c.bf16 %v4946_v46, %v4945_v45  ;;  %v5749_v63 = vpack.c.bf16 %v4948_v35, %v4947_v54  ;;  %5109 = vst [vmem:[%s8315_s4 + $0x60] sm:$0xff] %v5740_v6  ;;  %5110 = vst [vmem:[%s8315_s4 + $0x68] sm:$0xff] %v5741_v56  ;;  %v5750_v49 = vpack.c.bf16 %v4950_v0, %v4949_v3 }
 0x523   :  { %v5751_v48 = vpack.c.bf16 %v4952_v40, %v4951_v53  ;;  %5111 = vst [vmem:[%s8315_s4 + $0x70] sm:$0xff] %v5742_v17  ;;  %5112 = vst [vmem:[%s8315_s4 + $0x78] sm:$0xff] %v5743_v36 }
 0x524   :  { %5113 = vst [vmem:[%s8315_s4 + $0x80] sm:$0xff] %v5744_v25  ;;  %5114 = vst [vmem:[%s8315_s4 + $0x88] sm:$0xff] %v5745_v5 }
 0x525   :  { %5115 = vst [vmem:[%s8315_s4 + $0x90] sm:$0xff] %v5746_v18  ;;  %5116 = vst [vmem:[%s8315_s4 + $0x98] sm:$0xff] %v5747_v8 }
 0x526   :  { %5117 = vst [vmem:[%s8315_s4 + $0xa0] sm:$0xff] %v5748_v44  ;;  %5118 = vst [vmem:[%s8315_s4 + $0xa8] sm:$0xff] %v5749_v63 }
 0x527   :  { %5119 = vst [vmem:[%s8315_s4 + $0xb0] sm:$0xff] %v5750_v49  ;;  %5120 = vst [vmem:[%s8315_s4 + $0xb8] sm:$0xff] %v5751_v48 }

// kernel: video_discriminator_forward.6
= control target key start
LH: loop header
LB: loop body
LE: loop exit
PB: predicated region body
PF: predicated region fallthrough
CT: control target
= control target key end

     0   :  { %s3211_s1 = inlined_call_operand.vmem [shape: bf16[768,512], index: 1, kind: input, shape index: {}]   ;;  %s3212_s0 = inlined_call_operand.vmem [shape: bf16[32,768], index: 0, kind: input, shape index: {}]   ;;  %s3213_s2 = inlined_call_operand.vmem [shape: f32[32,1], index: 2, kind: input, shape index: {}]   ;;  %s3214_s3 = inlined_call_operand.vmem [shape: f32[32,1], index: 3, kind: input, shape index: {}]   ;;  %s3215_s4 = inlined_call_operand.vmem [shape: bf16[32,512], index: 4, kind: output, shape index: {}]  }
   0x1   :  { %v2055_v0 = vld [vmem:[%s3211_s1 + $0xe4] ss:$16 sps:$4 sm:$0xff]   ;;  %v2059_v2 = vld [vmem:[%s3211_s1 + $0xe0] ss:$16 sps:$4 sm:$0xff]  }
   0x2   :  { %v2057_v1 = vld [vmem:[%s3211_s1 + $0x2e4] ss:$16 sps:$4 sm:$0xff]   ;;  %1241 = vmatprep.subr.bf16.mxu0 %v2055_v0  ;;  %v2060_v3 = vld [vmem:[%s3211_s1 + $0x2e0] ss:$16 sps:$4 sm:$0xff]  }
   0x3   :  { %1294 = vmatprep.subr.bf16.mxu1 %v2057_v1  ;;  %v2061_v4 = vld [vmem:[%s3211_s1 + $0xc4] ss:$16 sps:$4 sm:$0xff]   ;;  %1242 = vmatpush1.bf16.msra.mxu0 %v2059_v2  ;;  %v2065_v6 = vld [vmem:[%s3211_s1 + $0xc0] ss:$16 sps:$4 sm:$0xff]  }
   0x4   :  { %1295 = vmatpush1.bf16.msra.mxu1 %v2060_v3  ;;  %v2063_v5 = vld [vmem:[%s3211_s1 + $0x2c4] ss:$16 sps:$4 sm:$0xff]   ;;  %1243 = vmatprep.subr.bf16.mxu0 %v2061_v4  ;;  %v2066_v7 = vld [vmem:[%s3211_s1 + $0x2c0] ss:$16 sps:$4 sm:$0xff]   ;;  %v2162_v3 = vld [vmem:[%s3211_s1 + $0xec] ss:$16 sps:$4 sm:$0xff]  }
   0x5   :  { %1296 = vmatprep.subr.bf16.mxu1 %v2063_v5  ;;  %v2067_v8 = vld [vmem:[%s3211_s1 + $0xa4] ss:$16 sps:$4 sm:$0xff]   ;;  %v2071_v10 = vld [vmem:[%s3211_s1 + $0xa0] ss:$16 sps:$4 sm:$0xff]  }
   0x6   :  { %v2069_v9 = vld [vmem:[%s3211_s1 + $0x2a4] ss:$16 sps:$4 sm:$0xff]   ;;  %v2072_v11 = vld [vmem:[%s3211_s1 + $0x2a0] ss:$16 sps:$4 sm:$0xff]  }
   0x7   :  { %1244 = vmatpush1.bf16.msra.mxu0 %v2065_v6  ;;  %v2073_v12 = vld [vmem:[%s3211_s1 + $0x84] ss:$16 sps:$4 sm:$0xff]   ;;  %v2077_v14 = vld [vmem:[%s3211_s1 + $0x80] ss:$16 sps:$4 sm:$0xff]  }
   0x8   :  { %1297 = vmatpush1.bf16.msra.mxu1 %v2066_v7  ;;  %1245 = vmatprep.subr.bf16.mxu0 %v2067_v8  ;;  %v2075_v13 = vld [vmem:[%s3211_s1 + $0x284] ss:$16 sps:$4 sm:$0xff]   ;;  %v2078_v15 = vld [vmem:[%s3211_s1 + $0x280] ss:$16 sps:$4 sm:$0xff]   ;;  %v2160_v7 = vld [vmem:[%s3211_s1 + $0xe8] ss:$16 sps:$4 sm:$0xff]  }
   0x9   :  { %1298 = vmatprep.subr.bf16.mxu1 %v2069_v9  ;;  %v2079_v16 = vld [vmem:[%s3211_s1 + $0x64] ss:$16 sps:$4 sm:$0xff]   ;;  %v2083_v18 = vld [vmem:[%s3211_s1 + $0x60] ss:$16 sps:$4 sm:$0xff]   ;;  %v2168_v9 = vld [vmem:[%s3211_s1 + $0xcc] ss:$16 sps:$4 sm:$0xff]  }
   0xa   :  { %v2081_v17 = vld [vmem:[%s3211_s1 + $0x264] ss:$16 sps:$4 sm:$0xff]   ;;  %v2084_v19 = vld [vmem:[%s3211_s1 + $0x260] ss:$16 sps:$4 sm:$0xff]  }
   0xb   :  { %1246 = vmatpush1.bf16.msra.mxu0 %v2071_v10  ;;  %v2085_v20 = vld [vmem:[%s3211_s1 + $0x44] ss:$16 sps:$4 sm:$0xff]   ;;  %v2089_v22 = vld [vmem:[%s3211_s1 + $0x40] ss:$16 sps:$4 sm:$0xff]  }
   0xc   :  { %1299 = vmatpush1.bf16.msra.mxu1 %v2072_v11  ;;  %1247 = vmatprep.subr.bf16.mxu0 %v2073_v12  ;;  %v2087_v21 = vld [vmem:[%s3211_s1 + $0x244] ss:$16 sps:$4 sm:$0xff]   ;;  %v2090_v23 = vld [vmem:[%s3211_s1 + $0x240] ss:$16 sps:$4 sm:$0xff]   ;;  %v2166_v11 = vld [vmem:[%s3211_s1 + $0xc8] ss:$16 sps:$4 sm:$0xff]  }
   0xd   :  { %1300 = vmatprep.subr.bf16.mxu1 %v2075_v13  ;;  %v2091_v24 = vld [vmem:[%s3211_s1 + $0x24] ss:$16 sps:$4 sm:$0xff]   ;;  %v2095_v26 = vld [vmem:[%s3211_s1 + $0x20] ss:$16 sps:$4 sm:$0xff]   ;;  %v2174_v13 = vld [vmem:[%s3211_s1 + $0xac] ss:$16 sps:$4 sm:$0xff]  }
   0xe   :  { %v2093_v25 = vld [vmem:[%s3211_s1 + $0x224] ss:$16 sps:$4 sm:$0xff]   ;;  %v2096_v27 = vld [vmem:[%s3211_s1 + $0x220] ss:$16 sps:$4 sm:$0xff]  }
   0xf   :  { %1248 = vmatpush1.bf16.msra.mxu0 %v2077_v14  ;;  %v2097_v28 = vld [vmem:[%s3211_s1 + $0x4] ss:$16 sps:$4 sm:$0xff]   ;;  %v2101_v30 = vld [vmem:[%s3211_s1] ss:$16 sps:$4 sm:$0xff]  }
  0x10   :  { %1301 = vmatpush1.bf16.msra.mxu1 %v2078_v15  ;;  %1249 = vmatprep.subr.bf16.mxu0 %v2079_v16  ;;  %v2099_v29 = vld [vmem:[%s3211_s1 + $0x204] ss:$16 sps:$4 sm:$0xff]   ;;  %v2102_v31 = vld [vmem:[%s3211_s1 + $0x200] ss:$16 sps:$4 sm:$0xff]   ;;  %v2172_v15 = vld [vmem:[%s3211_s1 + $0xa8] ss:$16 sps:$4 sm:$0xff]  }
  0x11   :  { %1302 = vmatprep.subr.bf16.mxu1 %v2081_v17  ;;  %v2103_v32 = vld [vmem:[%s3211_s1 + $0x1e4] ss:$16 sps:$4 sm:$0xff]   ;;  %v2107_v34 = vld [vmem:[%s3211_s1 + $0x1e0] ss:$16 sps:$4 sm:$0xff]   ;;  %v2180_v17 = vld [vmem:[%s3211_s1 + $0x8c] ss:$16 sps:$4 sm:$0xff]  }
  0x12   :  { %v2105_v33 = vld [vmem:[%s3211_s1 + $0x3e4] ss:$16 sps:$4 sm:$0xff]   ;;  %v2108_v35 = vld [vmem:[%s3211_s1 + $0x3e0] ss:$16 sps:$4 sm:$0xff]  }
  0x13   :  { %1250 = vmatpush1.bf16.msra.mxu0 %v2083_v18  ;;  %v2109_v36 = vld [vmem:[%s3211_s1 + $0x1c4] ss:$16 sps:$4 sm:$0xff]   ;;  %v2113_v38 = vld [vmem:[%s3211_s1 + $0x1c0] ss:$16 sps:$4 sm:$0xff]  }
  0x14   :  { %1303 = vmatpush1.bf16.msra.mxu1 %v2084_v19  ;;  %1251 = vmatprep.subr.bf16.mxu0 %v2085_v20  ;;  %v2111_v37 = vld [vmem:[%s3211_s1 + $0x3c4] ss:$16 sps:$4 sm:$0xff]   ;;  %v2114_v39 = vld [vmem:[%s3211_s1 + $0x3c0] ss:$16 sps:$4 sm:$0xff]   ;;  %v2178_v19 = vld [vmem:[%s3211_s1 + $0x88] ss:$16 sps:$4 sm:$0xff]  }
  0x15   :  { %1304 = vmatprep.subr.bf16.mxu1 %v2087_v21  ;;  %v2115_v40 = vld [vmem:[%s3211_s1 + $0x1a4] ss:$16 sps:$4 sm:$0xff]   ;;  %v2119_v42 = vld [vmem:[%s3211_s1 + $0x1a0] ss:$16 sps:$4 sm:$0xff]   ;;  %v2186_v21 = vld [vmem:[%s3211_s1 + $0x6c] ss:$16 sps:$4 sm:$0xff]  }
  0x16   :  { %v2117_v41 = vld [vmem:[%s3211_s1 + $0x3a4] ss:$16 sps:$4 sm:$0xff]   ;;  %v2120_v43 = vld [vmem:[%s3211_s1 + $0x3a0] ss:$16 sps:$4 sm:$0xff]  }
  0x17   :  { %1252 = vmatpush1.bf16.msra.mxu0 %v2089_v22  ;;  %v2121_v44 = vld [vmem:[%s3211_s1 + $0x184] ss:$16 sps:$4 sm:$0xff]   ;;  %v2125_v46 = vld [vmem:[%s3211_s1 + $0x180] ss:$16 sps:$4 sm:$0xff]  }
  0x18   :  { %1305 = vmatpush1.bf16.msra.mxu1 %v2090_v23  ;;  %1253 = vmatprep.subr.bf16.mxu0 %v2091_v24  ;;  %v2123_v45 = vld [vmem:[%s3211_s1 + $0x384] ss:$16 sps:$4 sm:$0xff]   ;;  %v2126_v47 = vld [vmem:[%s3211_s1 + $0x380] ss:$16 sps:$4 sm:$0xff]   ;;  %v2184_v23 = vld [vmem:[%s3211_s1 + $0x68] ss:$16 sps:$4 sm:$0xff]  }
  0x19   :  { %1306 = vmatprep.subr.bf16.mxu1 %v2093_v25  ;;  %v2127_v48 = vld [vmem:[%s3211_s1 + $0x164] ss:$16 sps:$4 sm:$0xff]   ;;  %v2131_v52 = vld [vmem:[%s3211_s1 + $0x160] ss:$16 sps:$4 sm:$0xff]   ;;  %v2192_v25 = vld [vmem:[%s3211_s1 + $0x4c] ss:$16 sps:$4 sm:$0xff]  }
  0x1a   :  { %v2545_v49 = vld [vmem:[%s3212_s0 + $0x4] ss:$24 sps:$4 sm:$0xff]   ;;  %v2132_v53 = vld [vmem:[%s3211_s1 + $0x360] ss:$16 sps:$4 sm:$0xff]  }
  0x1b   :  { %1254 = vmatpush1.bf16.msra.mxu0 %v2095_v26  ;;  %v2129_v50 = vld [vmem:[%s3211_s1 + $0x364] ss:$16 sps:$4 sm:$0xff]   ;;  %1273 = vmatprep.mubr.bf16.mxu0 %v2545_v49  ;;  %v2137_v56 = vld [vmem:[%s3211_s1 + $0x140] ss:$16 sps:$4 sm:$0xff]  }
  0x1c   :  { %1307 = vmatpush1.bf16.msra.mxu1 %v2096_v27  ;;  %1255 = vmatprep.subr.bf16.mxu0 %v2097_v28  ;;  %v2553_v51 = vld [vmem:[%s3212_s0 + $0xc] ss:$24 sps:$4 sm:$0xff]   ;;  %v2138_v57 = vld [vmem:[%s3211_s1 + $0x340] ss:$16 sps:$4 sm:$0xff]   ;;  %v2685_v27 = vld [vmem:[%s3212_s0 + $0x3c] ss:$24 sps:$4 sm:$0xff]  }
  0x1d   :  { %1308 = vmatprep.subr.bf16.mxu1 %v2099_v29  ;;  %1326 = vmatprep.mubr.bf16.mxu1 %v2553_v51  ;;  %v2133_v54 = vld [vmem:[%s3211_s1 + $0x144] ss:$16 sps:$4 sm:$0xff]   ;;  %v2143_v60 = vld [vmem:[%s3211_s1 + $0x120] ss:$16 sps:$4 sm:$0xff]  }
  0x1e   :  { %v2135_v55 = vld [vmem:[%s3211_s1 + $0x344] ss:$16 sps:$4 sm:$0xff]   ;;  %v2144_v61 = vld [vmem:[%s3211_s1 + $0x320] ss:$16 sps:$4 sm:$0xff]  }
  0x1f   :  { %1256 = vmatpush1.bf16.msra.mxu0 %v2101_v30  ;;  %v2139_v58 = vld [vmem:[%s3211_s1 + $0x124] ss:$16 sps:$4 sm:$0xff]   ;;  %v2149_v0 = vld [vmem:[%s3211_s1 + $0x100] ss:$16 sps:$4 sm:$0xff]  }
  0x20   :  { %1309 = vmatpush1.bf16.msra.mxu1 %v2102_v31  ;;  %1257 = vmatprep.subr.bf16.mxu0 %v2103_v32  ;;  %v2141_v59 = vld [vmem:[%s3211_s1 + $0x324] ss:$16 sps:$4 sm:$0xff]   ;;  %v2150_v1 = vld [vmem:[%s3211_s1 + $0x300] ss:$16 sps:$4 sm:$0xff]   ;;  %v2190_v31 = vld [vmem:[%s3211_s1 + $0x48] ss:$16 sps:$4 sm:$0xff]  }
  0x21   :  { %1310 = vmatprep.subr.bf16.mxu1 %v2105_v33  ;;  %v2145_v62 = vld [vmem:[%s3211_s1 + $0x104] ss:$16 sps:$4 sm:$0xff]   ;;  %v2608_v4 = vld [vmem:[%s3212_s0] ss:$24 sps:$4 sm:$0xff]   ;;  %v2691_v28 = vld [vmem:[%s3212_s0 + $0x30] ss:$24 sps:$4 sm:$0xff]  }
  0x22   :  { %v2147_v63 = vld [vmem:[%s3211_s1 + $0x304] ss:$16 sps:$4 sm:$0xff]   ;;  %v2613_v5 = vld [vmem:[%s3212_s0 + $0x8] ss:$24 sps:$4 sm:$0xff]   ;;  %v2696_v29 = vld [vmem:[%s3212_s0 + $0x38] ss:$24 sps:$4 sm:$0xff]  }
  0x23   :  { %1258 = vmatpush2.bf16.msra.mxu0 %v2107_v34  ;;  %v2159_v2 = vld [vmem:[%s3211_s1 + $0x4e4] ss:$16 sps:$4 sm:$0xff]   ;;  %v2157_v6 = vld [vmem:[%s3211_s1 + $0x4e0] ss:$16 sps:$4 sm:$0xff]   ;;  %v2198_v33 = vld [vmem:[%s3211_s1 + $0x2c] ss:$16 sps:$4 sm:$0xff]  }
  0x24   :  { %1311 = vmatpush2.bf16.msra.mxu1 %v2108_v35  ;;  %1259 = vmatprep.subr.bf16.mxu0 %v2109_v36  ;;  %v2165_v8 = vld [vmem:[%s3211_s1 + $0x4c4] ss:$16 sps:$4 sm:$0xff]   ;;  %v2163_v10 = vld [vmem:[%s3211_s1 + $0x4c0] ss:$16 sps:$4 sm:$0xff]   ;;  %v2196_v35 = vld [vmem:[%s3211_s1 + $0x28] ss:$16 sps:$4 sm:$0xff]  }
  0x25   :  { %1312 = vmatprep.subr.bf16.mxu1 %v2111_v37  ;;  %v2171_v12 = vld [vmem:[%s3211_s1 + $0x4a4] ss:$16 sps:$4 sm:$0xff]   ;;  %v2169_v14 = vld [vmem:[%s3211_s1 + $0x4a0] ss:$16 sps:$4 sm:$0xff]   ;;  %v2204_v37 = vld [vmem:[%s3211_s1 + $0xc] ss:$16 sps:$4 sm:$0xff]  }
  0x26   :  { %v2177_v16 = vld [vmem:[%s3211_s1 + $0x484] ss:$16 sps:$4 sm:$0xff]   ;;  %v2175_v18 = vld [vmem:[%s3211_s1 + $0x480] ss:$16 sps:$4 sm:$0xff]  }
  0x27   :  { %1260 = vmatpush2.bf16.msra.mxu0 %v2113_v38  ;;  %v2183_v20 = vld [vmem:[%s3211_s1 + $0x464] ss:$16 sps:$4 sm:$0xff]   ;;  %v2181_v22 = vld [vmem:[%s3211_s1 + $0x460] ss:$16 sps:$4 sm:$0xff]  }
  0x28   :  { %1313 = vmatpush2.bf16.msra.mxu1 %v2114_v39  ;;  %1261 = vmatprep.subr.bf16.mxu0 %v2115_v40  ;;  %v2189_v24 = vld [vmem:[%s3211_s1 + $0x444] ss:$16 sps:$4 sm:$0xff]   ;;  %v2187_v30 = vld [vmem:[%s3211_s1 + $0x440] ss:$16 sps:$4 sm:$0xff]   ;;  %v2202_v39 = vld [vmem:[%s3211_s1 + $0x8] ss:$16 sps:$4 sm:$0xff]  }
  0x29   :  { %1314 = vmatprep.subr.bf16.mxu1 %v2117_v41  ;;  %v2680_v26 = vld [vmem:[%s3212_s0 + $0x34] ss:$24 sps:$4 sm:$0xff]   ;;  %v2193_v34 = vld [vmem:[%s3211_s1 + $0x420] ss:$16 sps:$4 sm:$0xff]  }
  0x2a   :  { %v2195_v32 = vld [vmem:[%s3211_s1 + $0x424] ss:$16 sps:$4 sm:$0xff]   ;;  %v2199_v38 = vld [vmem:[%s3211_s1 + $0x400] ss:$16 sps:$4 sm:$0xff]  }
  0x2b   :  { %1262 = vmatpush2.bf16.msra.mxu0 %v2119_v42  ;;  %v2201_v36 = vld [vmem:[%s3211_s1 + $0x404] ss:$16 sps:$4 sm:$0xff]   ;;  %v2210_v42 = vld [vmem:[%s3211_s1 + $0x1ec] ss:$16 sps:$4 sm:$0xff]  }
  0x2c   :  { %1315 = vmatpush2.bf16.msra.mxu1 %v2120_v43  ;;  %1263 = vmatprep.subr.bf16.mxu0 %v2121_v44  ;;  %v2735_v40 = vld [vmem:[%s3212_s0 + $0x14] ss:$24 sps:$4 sm:$0xff]   ;;  %v2205_v43 = vld [vmem:[%s3211_s1 + $0x5e0] ss:$16 sps:$4 sm:$0xff]   ;;  %v2208_v44 = vld [vmem:[%s3211_s1 + $0x1e8] ss:$16 sps:$4 sm:$0xff]  }
  0x2d   :  { %1316 = vmatprep.subr.bf16.mxu1 %v2123_v45  ;;  %v2207_v41 = vld [vmem:[%s3211_s1 + $0x5e4] ss:$16 sps:$4 sm:$0xff]  }
  0x2e   :  { %v2213_v45 = vld [vmem:[%s3211_s1 + $0x5c4] ss:$16 sps:$4 sm:$0xff]  }
  0x2f   :  { %1264 = vmatpush2.bf16.msra.mxu0 %v2125_v46  ;;  %v2216_v46 = vld [vmem:[%s3211_s1 + $0x1cc] ss:$16 sps:$4 sm:$0xff]  }
  0x30   :  { %1317 = vmatpush2.bf16.msra.mxu1 %v2126_v47  ;;  %1265 = vmatprep.subr.bf16.mxu0 %v2127_v48  ;;  %v2211_v47 = vld [vmem:[%s3211_s1 + $0x5c0] ss:$16 sps:$4 sm:$0xff]   ;;  %v2214_v48 = vld [vmem:[%s3211_s1 + $0x1c8] ss:$16 sps:$4 sm:$0xff]  }
  0x31   :  { %1318 = vmatprep.subr.bf16.mxu1 %v2129_v50  ;;  %v2222_v50 = vld [vmem:[%s3211_s1 + $0x1ac] ss:$16 sps:$4 sm:$0xff]  }
  0x33   :  { %1266 = vmatpush2.bf16.msra.mxu0 %v2131_v52  ;;  %v2217_v52 = vld [vmem:[%s3211_s1 + $0x5a0] ss:$16 sps:$4 sm:$0xff]  }
  0x34   :  { %1319 = vmatpush2.bf16.msra.mxu1 %v2132_v53  ;;  %1267 = vmatprep.subr.bf16.mxu0 %v2133_v54  ;;  %v2220_v53 = vld [vmem:[%s3211_s1 + $0x1a8] ss:$16 sps:$4 sm:$0xff]   ;;  %v2225_v54 = vld [vmem:[%s3211_s1 + $0x584] ss:$16 sps:$4 sm:$0xff]  }
  0x35   :  { %1320 = vmatprep.subr.bf16.mxu1 %v2135_v55  ;;  %v2228_v55 = vld [vmem:[%s3211_s1 + $0x18c] ss:$16 sps:$4 sm:$0xff]  }
  0x37   :  { %1268 = vmatpush2.bf16.msra.mxu0 %v2137_v56  ;;  %v2223_v56 = vld [vmem:[%s3211_s1 + $0x580] ss:$16 sps:$4 sm:$0xff]  }
  0x38   :  { %1321 = vmatpush2.bf16.msra.mxu1 %v2138_v57  ;;  %1269 = vmatprep.subr.bf16.mxu0 %v2139_v58  ;;  %v2226_v57 = vld [vmem:[%s3211_s1 + $0x188] ss:$16 sps:$4 sm:$0xff]   ;;  %v2231_v58 = vld [vmem:[%s3211_s1 + $0x564] ss:$16 sps:$4 sm:$0xff]  }
  0x39   :  { %1322 = vmatprep.subr.bf16.mxu1 %v2141_v59  ;;  %v2234_v59 = vld [vmem:[%s3211_s1 + $0x16c] ss:$16 sps:$4 sm:$0xff]  }
  0x3b   :  { %1270 = vmatpush2.bf16.msra.mxu0 %v2143_v60  ;;  %v2229_v60 = vld [vmem:[%s3211_s1 + $0x560] ss:$16 sps:$4 sm:$0xff]  }
  0x3c   :  { %1323 = vmatpush2.bf16.msra.mxu1 %v2144_v61  ;;  %1271 = vmatprep.subr.bf16.mxu0 %v2145_v62  ;;  %v2232_v61 = vld [vmem:[%s3211_s1 + $0x168] ss:$16 sps:$4 sm:$0xff]   ;;  %v2243_v62 = vld [vmem:[%s3211_s1 + $0x544] ss:$16 sps:$4 sm:$0xff]  }
  0x3d   :  { %1324 = vmatprep.subr.bf16.mxu1 %v2147_v63  ;;  %v2246_v63 = vld [vmem:[%s3211_s1 + $0x14c] ss:$16 sps:$4 sm:$0xff]  }
  0x3f   :  { %1272 = vmatpush2.bf16.msra.mxu0 %v2149_v0  ;;  %v2241_v0 = vld [vmem:[%s3211_s1 + $0x540] ss:$16 sps:$4 sm:$0xff]  }
  0x40   :  { %1325 = vmatpush2.bf16.msra.mxu1 %v2150_v1  ;;  %1347 = vmatprep.subr.bf16.mxu0 %v2159_v2  ;;  %v2244_v1 = vld [vmem:[%s3211_s1 + $0x148] ss:$16 sps:$4 sm:$0xff]   ;;  %v2249_v2 = vld [vmem:[%s3211_s1 + $0x524] ss:$16 sps:$4 sm:$0xff]  }
  0x41   :  { %1400 = vmatprep.subr.bf16.mxu1 %v2162_v3  ;;  %v2252_v3 = vld [vmem:[%s3211_s1 + $0x12c] ss:$16 sps:$4 sm:$0xff]  }
  0x42   :  { %1274 = vmatmul.mubr.bf16.vlgmr.msra.gmra.mxu0 %v2608_v4 }
  0x43   :  { %1327 = vmatmul.mubr.bf16.vlgmr.msra.gmra.mxu1 %v2613_v5  ;;  %1348 = vmatpush1.bf16.msra.mxu0 %v2157_v6  ;;  %v2247_v6 = vld [vmem:[%s3211_s1 + $0x520] ss:$16 sps:$4 sm:$0xff]  }
  0x44   :  { %1401 = vmatpush1.bf16.msra.mxu1 %v2160_v7  ;;  %1349 = vmatprep.subr.bf16.mxu0 %v2165_v8  ;;  %v2250_v7 = vld [vmem:[%s3211_s1 + $0x128] ss:$16 sps:$4 sm:$0xff]   ;;  %v2255_v8 = vld [vmem:[%s3211_s1 + $0x504] ss:$16 sps:$4 sm:$0xff]  }
  0x45   :  { %1402 = vmatprep.subr.bf16.mxu1 %v2168_v9  ;;  %1283 = vmatprep.mubr.bf16.mxu0 %v2680_v26  ;;  %v2258_v9 = vld [vmem:[%s3211_s1 + $0x10c] ss:$16 sps:$4 sm:$0xff]  }
  0x46   :  { %1336 = vmatprep.mubr.bf16.mxu1 %v2685_v27 }
  0x47   :  { %1350 = vmatpush1.bf16.msra.mxu0 %v2163_v10  ;;  %v2253_v10 = vld [vmem:[%s3211_s1 + $0x500] ss:$16 sps:$4 sm:$0xff]  }
  0x48   :  { %1403 = vmatpush1.bf16.msra.mxu1 %v2166_v11  ;;  %1351 = vmatprep.subr.bf16.mxu0 %v2171_v12  ;;  %v2256_v11 = vld [vmem:[%s3211_s1 + $0x108] ss:$16 sps:$4 sm:$0xff]   ;;  %v2264_v12 = vld [vmem:[%s3211_s1 + $0x2ec] ss:$16 sps:$4 sm:$0xff]  }
  0x49   :  { %1404 = vmatprep.subr.bf16.mxu1 %v2174_v13  ;;  %v2267_v13 = vld [vmem:[%s3211_s1 + $0x4ec] ss:$16 sps:$4 sm:$0xff]  }
  0x4a   :  { %1284 = vmatmul.mubr.bf16.gmra.mxu0 %v2691_v28 }
  0x4b   :  { %1352 = vmatpush1.bf16.msra.mxu0 %v2169_v14  ;;  %1337 = vmatmul.mubr.bf16.gmra.mxu1 %v2696_v29  ;;  %v2843_v14 = vld [vmem:[%s3212_s0 + $0x10] ss:$24 sps:$4 sm:$0xff]  }
  0x4c   :  { %1405 = vmatpush1.bf16.msra.mxu1 %v2172_v15  ;;  %1353 = vmatprep.subr.bf16.mxu0 %v2177_v16  ;;  %v2262_v15 = vld [vmem:[%s3211_s1 + $0x2e8] ss:$16 sps:$4 sm:$0xff]  }
  0x4d   :  { %1406 = vmatprep.subr.bf16.mxu1 %v2180_v17  ;;  %1432 = vmatprep.mubr.bf16.mxu1 %v2545_v49  ;;  %v2219_v49 = vld [vmem:[%s3211_s1 + $0x5a4] ss:$16 sps:$4 sm:$0xff]   ;;  %v2265_v16 = vld [vmem:[%s3211_s1 + $0x4e8] ss:$16 sps:$4 sm:$0xff]   ;;  %v2270_v17 = vld [vmem:[%s3211_s1 + $0x2cc] ss:$16 sps:$4 sm:$0xff]  }
  0x4e   :  { %1379 = vmatprep.mubr.bf16.mxu0 %v2735_v40 }
  0x4f   :  { %1354 = vmatpush1.bf16.msra.mxu0 %v2175_v18  ;;  %v2273_v18 = vld [vmem:[%s3211_s1 + $0x4cc] ss:$16 sps:$4 sm:$0xff]  }
  0x50   :  { %1407 = vmatpush1.bf16.msra.mxu1 %v2178_v19  ;;  %1355 = vmatprep.subr.bf16.mxu0 %v2183_v20  ;;  %v2860_v19 = vld [vmem:[%s3212_s0 + $0x44] ss:$24 sps:$4 sm:$0xff]   ;;  %v2268_v20 = vld [vmem:[%s3211_s1 + $0x2c8] ss:$16 sps:$4 sm:$0xff]  }
  0x51   :  { %1408 = vmatprep.subr.bf16.mxu1 %v2186_v21  ;;  %v2271_v21 = vld [vmem:[%s3211_s1 + $0x4c8] ss:$16 sps:$4 sm:$0xff]  }
  0x53   :  { %1356 = vmatpush1.bf16.msra.mxu0 %v2181_v22  ;;  %v2279_v22 = vld [vmem:[%s3211_s1 + $0x2ac] ss:$16 sps:$4 sm:$0xff]  }
  0x54   :  { %1409 = vmatpush1.bf16.msra.mxu1 %v2184_v23  ;;  %1357 = vmatprep.subr.bf16.mxu0 %v2189_v24  ;;  %v2881_v23 = vld [vmem:[%s3212_s0 + $0x40] ss:$24 sps:$4 sm:$0xff]  }
  0x55   :  { %1410 = vmatprep.subr.bf16.mxu1 %v2192_v25  ;;  %v2277_v24 = vld [vmem:[%s3211_s1 + $0x2a8] ss:$16 sps:$4 sm:$0xff]  }
  0x56   :  { %v2280_v25 = vld [vmem:[%s3211_s1 + $0x4a8] ss:$16 sps:$4 sm:$0xff]  }
  0x57   :  { %1358 = vmatpush1.bf16.msra.mxu0 %v2187_v30  ;;  %v2288_v30 = vld [vmem:[%s3211_s1 + $0x48c] ss:$16 sps:$4 sm:$0xff]  }
  0x58   :  { %1411 = vmatpush1.bf16.msra.mxu1 %v2190_v31  ;;  %1359 = vmatprep.subr.bf16.mxu0 %v2195_v32  ;;  %v2283_v31 = vld [vmem:[%s3211_s1 + $0x288] ss:$16 sps:$4 sm:$0xff]  }
  0x59   :  { %1412 = vmatprep.subr.bf16.mxu1 %v2198_v33  ;;  %v2286_v32 = vld [vmem:[%s3211_s1 + $0x488] ss:$16 sps:$4 sm:$0xff]   ;;  %v2291_v33 = vld [vmem:[%s3211_s1 + $0x26c] ss:$16 sps:$4 sm:$0xff]  }
  0x5b   :  { %1360 = vmatpush1.bf16.msra.mxu0 %v2193_v34  ;;  %v2289_v34 = vld [vmem:[%s3211_s1 + $0x268] ss:$16 sps:$4 sm:$0xff]  }
  0x5c   :  { %1413 = vmatpush1.bf16.msra.mxu1 %v2196_v35  ;;  %1361 = vmatprep.subr.bf16.mxu0 %v2201_v36  ;;  %v2292_v35 = vld [vmem:[%s3211_s1 + $0x468] ss:$16 sps:$4 sm:$0xff]   ;;  %v2297_v36 = vld [vmem:[%s3211_s1 + $0x24c] ss:$16 sps:$4 sm:$0xff]  }
  0x5d   :  { %1414 = vmatprep.subr.bf16.mxu1 %v2204_v37  ;;  %v2295_v37 = vld [vmem:[%s3211_s1 + $0x248] ss:$16 sps:$4 sm:$0xff]  }
  0x5f   :  { %1362 = vmatpush1.bf16.msra.mxu0 %v2199_v38  ;;  %v2298_v38 = vld [vmem:[%s3211_s1 + $0x448] ss:$16 sps:$4 sm:$0xff]  }
  0x60   :  { %1415 = vmatpush1.bf16.msra.mxu1 %v2202_v39  ;;  %1363 = vmatprep.subr.bf16.mxu0 %v2207_v41  ;;  %v2303_v39 = vld [vmem:[%s3211_s1 + $0x22c] ss:$16 sps:$4 sm:$0xff]   ;;  %v2301_v41 = vld [vmem:[%s3211_s1 + $0x228] ss:$16 sps:$4 sm:$0xff]  }
  0x61   :  { %1416 = vmatprep.subr.bf16.mxu1 %v2210_v42  ;;  %v2304_v42 = vld [vmem:[%s3211_s1 + $0x428] ss:$16 sps:$4 sm:$0xff]  }
  0x63   :  { %1364 = vmatpush2.bf16.msra.mxu0 %v2205_v43  ;;  %v2309_v43 = vld [vmem:[%s3211_s1 + $0x20c] ss:$16 sps:$4 sm:$0xff]  }
  0x64   :  { %1417 = vmatpush2.bf16.msra.mxu1 %v2208_v44  ;;  %1365 = vmatprep.subr.bf16.mxu0 %v2213_v45  ;;  %v2312_v44 = vld [vmem:[%s3211_s1 + $0x40c] ss:$16 sps:$4 sm:$0xff]   ;;  %v2307_v45 = vld [vmem:[%s3211_s1 + $0x208] ss:$16 sps:$4 sm:$0xff]  }
  0x65   :  { %1418 = vmatprep.subr.bf16.mxu1 %v2216_v46  ;;  %v2310_v46 = vld [vmem:[%s3211_s1 + $0x408] ss:$16 sps:$4 sm:$0xff]  }
  0x67   :  { %1366 = vmatpush2.bf16.msra.mxu0 %v2211_v47  ;;  %v2315_v47 = vld [vmem:[%s3211_s1 + $0x3ec] ss:$16 sps:$4 sm:$0xff]  }
  0x68   :  { %1419 = vmatpush2.bf16.msra.mxu1 %v2214_v48  ;;  %1367 = vmatprep.subr.bf16.mxu0 %v2219_v49  ;;  %v2318_v48 = vld [vmem:[%s3211_s1 + $0x5ec] ss:$16 sps:$4 sm:$0xff]   ;;  %v2313_v49 = vld [vmem:[%s3211_s1 + $0x3e8] ss:$16 sps:$4 sm:$0xff]  }
  0x69   :  { %1420 = vmatprep.subr.bf16.mxu1 %v2222_v50  ;;  %v2316_v50 = vld [vmem:[%s3211_s1 + $0x5e8] ss:$16 sps:$4 sm:$0xff]  }
  0x6b   :  { %1368 = vmatpush2.bf16.msra.mxu0 %v2217_v52  ;;  %v2321_v52 = vld [vmem:[%s3211_s1 + $0x3cc] ss:$16 sps:$4 sm:$0xff]  }
  0x6c   :  { %1421 = vmatpush2.bf16.msra.mxu1 %v2220_v53  ;;  %1369 = vmatprep.subr.bf16.mxu0 %v2225_v54  ;;  %v2324_v53 = vld [vmem:[%s3211_s1 + $0x5cc] ss:$16 sps:$4 sm:$0xff]   ;;  %v2319_v54 = vld [vmem:[%s3211_s1 + $0x3c8] ss:$16 sps:$4 sm:$0xff]  }
  0x6d   :  { %1422 = vmatprep.subr.bf16.mxu1 %v2228_v55  ;;  %v2322_v55 = vld [vmem:[%s3211_s1 + $0x5c8] ss:$16 sps:$4 sm:$0xff]  }
  0x6f   :  { %1370 = vmatpush2.bf16.msra.mxu0 %v2223_v56  ;;  %v2327_v56 = vld [vmem:[%s3211_s1 + $0x3ac] ss:$16 sps:$4 sm:$0xff]  }
  0x70   :  { %1423 = vmatpush2.bf16.msra.mxu1 %v2226_v57  ;;  %1371 = vmatprep.subr.bf16.mxu0 %v2231_v58  ;;  %v2330_v57 = vld [vmem:[%s3211_s1 + $0x5ac] ss:$16 sps:$4 sm:$0xff]   ;;  %v2325_v58 = vld [vmem:[%s3211_s1 + $0x3a8] ss:$16 sps:$4 sm:$0xff]  }
  0x71   :  { %1424 = vmatprep.subr.bf16.mxu1 %v2234_v59  ;;  %v2328_v59 = vld [vmem:[%s3211_s1 + $0x5a8] ss:$16 sps:$4 sm:$0xff]  }
  0x73   :  { %1372 = vmatpush2.bf16.msra.mxu0 %v2229_v60  ;;  %v2333_v60 = vld [vmem:[%s3211_s1 + $0x38c] ss:$16 sps:$4 sm:$0xff]  }
  0x74   :  { %1425 = vmatpush2.bf16.msra.mxu1 %v2232_v61  ;;  %1373 = vmatprep.subr.bf16.mxu0 %v2243_v62  ;;  %v2336_v61 = vld [vmem:[%s3211_s1 + $0x58c] ss:$16 sps:$4 sm:$0xff]   ;;  %v2331_v62 = vld [vmem:[%s3211_s1 + $0x388] ss:$16 sps:$4 sm:$0xff]  }
  0x75   :  { %1426 = vmatprep.subr.bf16.mxu1 %v2246_v63  ;;  %v2334_v63 = vld [vmem:[%s3211_s1 + $0x588] ss:$16 sps:$4 sm:$0xff]  }
  0x77   :  { %1374 = vmatpush2.bf16.msra.mxu0 %v2241_v0  ;;  %v2339_v0 = vld [vmem:[%s3211_s1 + $0x36c] ss:$16 sps:$4 sm:$0xff]  }
  0x78   :  { %1427 = vmatpush2.bf16.msra.mxu1 %v2244_v1  ;;  %1375 = vmatprep.subr.bf16.mxu0 %v2249_v2  ;;  %v2342_v1 = vld [vmem:[%s3211_s1 + $0x56c] ss:$16 sps:$4 sm:$0xff]   ;;  %v2337_v2 = vld [vmem:[%s3211_s1 + $0x368] ss:$16 sps:$4 sm:$0xff]  }
  0x79   :  { %1428 = vmatprep.subr.bf16.mxu1 %v2252_v3  ;;  %v2340_v3 = vld [vmem:[%s3211_s1 + $0x568] ss:$16 sps:$4 sm:$0xff]  }
  0x7b   :  { %1376 = vmatpush2.bf16.msra.mxu0 %v2247_v6  ;;  %v2345_v6 = vld [vmem:[%s3211_s1 + $0x34c] ss:$16 sps:$4 sm:$0xff]  }
  0x7c   :  { %1429 = vmatpush2.bf16.msra.mxu1 %v2250_v7  ;;  %1377 = vmatprep.subr.bf16.mxu0 %v2255_v8  ;;  %v2348_v7 = vld [vmem:[%s3211_s1 + $0x54c] ss:$16 sps:$4 sm:$0xff]   ;;  %v2343_v8 = vld [vmem:[%s3211_s1 + $0x348] ss:$16 sps:$4 sm:$0xff]  }
  0x7d   :  { %1430 = vmatprep.subr.bf16.mxu1 %v2258_v9  ;;  %v2346_v9 = vld [vmem:[%s3211_s1 + $0x548] ss:$16 sps:$4 sm:$0xff]  }
  0x7f   :  { %1378 = vmatpush2.bf16.msra.mxu0 %v2253_v10  ;;  %v2351_v10 = vld [vmem:[%s3211_s1 + $0x32c] ss:$16 sps:$4 sm:$0xff]  }
  0x80   :  { %1431 = vmatpush2.bf16.msra.mxu1 %v2256_v11  ;;  %1453 = vmatprep.subr.bf16.mxu0 %v2264_v12  ;;  %v2354_v11 = vld [vmem:[%s3211_s1 + $0x52c] ss:$16 sps:$4 sm:$0xff]   ;;  %v2349_v12 = vld [vmem:[%s3211_s1 + $0x328] ss:$16 sps:$4 sm:$0xff]  }
  0x81   :  { %1506 = vmatprep.subr.bf16.mxu1 %v2267_v13  ;;  %v2352_v13 = vld [vmem:[%s3211_s1 + $0x528] ss:$16 sps:$4 sm:$0xff]  }
  0x82   :  { %1380 = vmatmul.mubr.bf16.vlgmr.msra.gmra.mxu0 %v2843_v14 }
  0x83   :  { %1433 = vmatmul.mubr.bf16.vlgmr.msra.gmra.mxu1 %v2608_v4  ;;  %1454 = vmatpush1.bf16.msra.mxu0 %v2262_v15  ;;  %v2282_v4 = vld [vmem:[%s3211_s1 + $0x4ac] ss:$16 sps:$4 sm:$0xff]  }
  0x84   :  { %1507 = vmatpush1.bf16.msra.mxu1 %v2265_v16  ;;  %1455 = vmatprep.subr.bf16.mxu0 %v2270_v17  ;;  %v2357_v15 = vld [vmem:[%s3211_s1 + $0x30c] ss:$16 sps:$4 sm:$0xff]   ;;  %v2355_v17 = vld [vmem:[%s3211_s1 + $0x308] ss:$16 sps:$4 sm:$0xff]  }
  0x85   :  { %1508 = vmatprep.subr.bf16.mxu1 %v2273_v18  ;;  %1389 = vmatprep.mubr.bf16.mxu0 %v2860_v19  ;;  %v2360_v16 = vld [vmem:[%s3211_s1 + $0x50c] ss:$16 sps:$4 sm:$0xff]   ;;  %v2358_v18 = vld [vmem:[%s3211_s1 + $0x508] ss:$16 sps:$4 sm:$0xff]  }
  0x86   :  { %1442 = vmatprep.mubr.bf16.mxu1 %v2680_v26  ;;  %v2285_v26 = vld [vmem:[%s3211_s1 + $0x28c] ss:$16 sps:$4 sm:$0xff]  }
  0x87   :  { %1456 = vmatpush1.bf16.msra.mxu0 %v2268_v20 }
  0x88   :  { %1509 = vmatpush1.bf16.msra.mxu1 %v2271_v21  ;;  %1457 = vmatprep.subr.bf16.mxu0 %v2279_v22 }
  0x89   :  { %1510 = vmatprep.subr.bf16.mxu1 %v2282_v4 }
  0x8a   :  { %1390 = vmatmul.mubr.bf16.gmra.mxu0 %v2881_v23 }
  0x8b   :  { %1443 = vmatmul.mubr.bf16.gmra.mxu1 %v2691_v28  ;;  %1458 = vmatpush1.bf16.msra.mxu0 %v2277_v24  ;;  %v2294_v28 = vld [vmem:[%s3211_s1 + $0x46c] ss:$16 sps:$4 sm:$0xff]  }
  0x8c   :  { %1511 = vmatpush1.bf16.msra.mxu1 %v2280_v25  ;;  %1459 = vmatprep.subr.bf16.mxu0 %v2285_v26 }
  0x8d   :  { %1512 = vmatprep.subr.bf16.mxu1 %v2288_v30  ;;  %1485 = vmatprep.mubr.bf16.mxu0 %v2553_v51  ;;  %v2300_v51 = vld [vmem:[%s3211_s1 + $0x44c] ss:$16 sps:$4 sm:$0xff]  }
  0x8e   :  { %1538 = vmatprep.mubr.bf16.mxu1 %v2735_v40  ;;  %v2306_v40 = vld [vmem:[%s3211_s1 + $0x42c] ss:$16 sps:$4 sm:$0xff]  }
  0x8f   :  { %1460 = vmatpush1.bf16.msra.mxu0 %v2283_v31 }
  0x90   :  { %1513 = vmatpush1.bf16.msra.mxu1 %v2286_v32  ;;  %1461 = vmatprep.subr.bf16.mxu0 %v2291_v33 }
  0x91   :  { %1514 = vmatprep.subr.bf16.mxu1 %v2294_v28 }
  0x93   :  { %1462 = vmatpush1.bf16.msra.mxu0 %v2289_v34 }
  0x94   :  { %1515 = vmatpush1.bf16.msra.mxu1 %v2292_v35  ;;  %1463 = vmatprep.subr.bf16.mxu0 %v2297_v36 }
  0x95   :  { %1516 = vmatprep.subr.bf16.mxu1 %v2300_v51 }
  0x97   :  { %1464 = vmatpush1.bf16.msra.mxu0 %v2295_v37 }
  0x98   :  { %1517 = vmatpush1.bf16.msra.mxu1 %v2298_v38  ;;  %1465 = vmatprep.subr.bf16.mxu0 %v2303_v39 }
  0x99   :  { %1518 = vmatprep.subr.bf16.mxu1 %v2306_v40 }
  0x9b   :  { %1466 = vmatpush1.bf16.msra.mxu0 %v2301_v41 }
  0x9c   :  { %1519 = vmatpush1.bf16.msra.mxu1 %v2304_v42  ;;  %1467 = vmatprep.subr.bf16.mxu0 %v2309_v43 }
  0x9d   :  { %1520 = vmatprep.subr.bf16.mxu1 %v2312_v44 }
  0x9f   :  { %1468 = vmatpush1.bf16.msra.mxu0 %v2307_v45 }
  0xa0   :  { %1521 = vmatpush1.bf16.msra.mxu1 %v2310_v46  ;;  %1469 = vmatprep.subr.bf16.mxu0 %v2315_v47 }
  0xa1   :  { %1522 = vmatprep.subr.bf16.mxu1 %v2318_v48 }
  0xa3   :  { %1470 = vmatpush2.bf16.msra.mxu0 %v2313_v49 }
  0xa4   :  { %1523 = vmatpush2.bf16.msra.mxu1 %v2316_v50  ;;  %1471 = vmatprep.subr.bf16.mxu0 %v2321_v52 }
  0xa5   :  { %1524 = vmatprep.subr.bf16.mxu1 %v2324_v53 }
  0xa7   :  { %1472 = vmatpush2.bf16.msra.mxu0 %v2319_v54 }
  0xa8   :  { %1525 = vmatpush2.bf16.msra.mxu1 %v2322_v55  ;;  %1473 = vmatprep.subr.bf16.mxu0 %v2327_v56 }
  0xa9   :  { %1526 = vmatprep.subr.bf16.mxu1 %v2330_v57 }
  0xab   :  { %1474 = vmatpush2.bf16.msra.mxu0 %v2325_v58 }
  0xac   :  { %1527 = vmatpush2.bf16.msra.mxu1 %v2328_v59  ;;  %1475 = vmatprep.subr.bf16.mxu0 %v2333_v60 }
  0xad   :  { %1528 = vmatprep.subr.bf16.mxu1 %v2336_v61 }
  0xaf   :  { %1476 = vmatpush2.bf16.msra.mxu0 %v2331_v62 }
  0xb0   :  { %1529 = vmatpush2.bf16.msra.mxu1 %v2334_v63  ;;  %1477 = vmatprep.subr.bf16.mxu0 %v2339_v0 }
  0xb1   :  { %1530 = vmatprep.subr.bf16.mxu1 %v2342_v1 }
  0xb3   :  { %1478 = vmatpush2.bf16.msra.mxu0 %v2337_v2 }
  0xb4   :  { %1531 = vmatpush2.bf16.msra.mxu1 %v2340_v3  ;;  %1479 = vmatprep.subr.bf16.mxu0 %v2345_v6 }
  0xb5   :  { %1532 = vmatprep.subr.bf16.mxu1 %v2348_v7 }
  0xb7   :  { %1480 = vmatpush2.bf16.msra.mxu0 %v2343_v8 }
  0xb8   :  { %1533 = vmatpush2.bf16.msra.mxu1 %v2346_v9  ;;  %1481 = vmatprep.subr.bf16.mxu0 %v2351_v10 }
  0xb9   :  { %1534 = vmatprep.subr.bf16.mxu1 %v2354_v11 }
  0xbb   :  { %1482 = vmatpush2.bf16.msra.mxu0 %v2349_v12 }
  0xbc   :  { %1535 = vmatpush2.bf16.msra.mxu1 %v2352_v13  ;;  %1483 = vmatprep.subr.bf16.mxu0 %v2357_v15 }
  0xbd   :  { %1536 = vmatprep.subr.bf16.mxu1 %v2360_v16 }
  0xbf   :  { %1484 = vmatpush2.bf16.msra.mxu0 %v2355_v17 }
  0xc0   :  { %1537 = vmatpush2.bf16.msra.mxu1 %v2358_v18 }
  0xc2   :  { %1486 = vmatmul.mubr.bf16.vlgmr.msra.gmra.mxu0 %v2613_v5 }
  0xc3   :  { %1539 = vmatmul.mubr.bf16.vlgmr.msra.gmra.mxu1 %v2843_v14  ;;  %1495 = vmatprep.mubr.bf16.mxu0 %v2685_v27 }
  0xc4   :  { %1548 = vmatprep.mubr.bf16.mxu1 %v2860_v19 }
  0xca   :  { %1496 = vmatmul.mubr.bf16.gmra.mxu0 %v2696_v29 }
  0xcb   :  { %1549 = vmatmul.mubr.bf16.gmra.mxu1 %v2881_v23 }
 0x102   :  { %v1275_v20 = vpop.f32.mrf.mxu0 }
 0x103   :  { %v1328_v21 = vpop.f32.mrf.mxu1 }
 0x104   :  { %v1277_v22 = vpop.f32.mrf.mxu0  ;;  %v1329_v48 = vadd.f32 %v1328_v21, %v1275_v20 }
 0x105   :  { %v1330_v4 = vpop.f32.mrf.mxu1 }
 0x106   :  { %v1279_v24 = vpop.f32.mrf.mxu0  ;;  %v1331_v45 = vadd.f32 %v1330_v4, %v1277_v22 }
 0x107   :  { %v1332_v25 = vpop.f32.mrf.mxu1 }
 0x108   :  { %v1281_v26 = vpop.f32.mrf.mxu0  ;;  %v1333_v56 = vadd.f32 %v1332_v25, %v1279_v24 }
 0x109   :  { %v1334_v30 = vpop.f32.mrf.mxu1 }
 0x10a   :  { %v1285_v31 = vpop.f32.mrf.mxu0  ;;  %v1335_v53 = vadd.f32 %v1334_v30, %v1281_v26 }
 0x10b   :  { %v1338_v5 = vpop.f32.mrf.mxu1 }
 0x10c   :  { %v1287_v32 = vpop.f32.mrf.mxu0  ;;  %v1339_v8 = vadd.f32 %v1338_v5, %v1285_v31 }
 0x10d   :  { %v1340_v14 = vpop.f32.mrf.mxu1 }
 0x10e   :  { %v1289_v33 = vpop.f32.mrf.mxu0  ;;  %v1341_v63 = vadd.f32 %v1340_v14, %v1287_v32 }
 0x10f   :  { %v1342_v27 = vpop.f32.mrf.mxu1 }
 0x110   :  { %v1291_v28 = vpop.f32.mrf.mxu0  ;;  %v1343_v25 = vadd.f32 %v1342_v27, %v1289_v33 }
 0x111   :  { %v1344_v19 = vpop.f32.mrf.mxu1 }
 0x112   :  { %v1345_v21 = vadd.f32 %v1344_v19, %v1291_v28 }
 0x142   :  { %v1381_v34 = vpop.f32.mrf.mxu0 }
 0x143   :  { %v1434_v29 = vpop.f32.mrf.mxu1  ;;  %v3057_v54 = vadd.f32 %v1381_v34, %v1329_v48 }
 0x144   :  { %v1383_v35 = vpop.f32.mrf.mxu0 }
 0x145   :  { %v1436_v23 = vpop.f32.mrf.mxu1  ;;  %v3055_v49 = vadd.f32 %v1383_v35, %v1331_v45 }
 0x146   :  { %v1385_v36 = vpop.f32.mrf.mxu0 }
 0x147   :  { %v1438_v51 = vpop.f32.mrf.mxu1  ;;  %v1559_v62 = vadd.f32 %v3055_v49, %v3057_v54  ;;  %v3065_v2 = vadd.f32 %v1385_v36, %v1333_v56 }
 0x148   :  { %v1387_v37 = vpop.f32.mrf.mxu0 }
 0x149   :  { %v1440_v38 = vpop.f32.mrf.mxu1  ;;  %v3059_v59 = vadd.f32 %v1387_v37, %v1335_v53 }
 0x14a   :  { %v1391_v39 = vpop.f32.mrf.mxu0 }
 0x14b   :  { %v1444_v40 = vpop.f32.mrf.mxu1  ;;  %v1564_v12 = vadd.f32 %v3059_v59, %v3065_v2  ;;  %v3077_v17 = vadd.f32 %v1391_v39, %v1339_v8 }
 0x14c   :  { %v1393_v41 = vpop.f32.mrf.mxu0 }
 0x14d   :  { %v1446_v42 = vpop.f32.mrf.mxu1  ;;  %v3070_v9 = vadd.f32 %v1393_v41, %v1341_v63 }
 0x14e   :  { %v1395_v43 = vpop.f32.mrf.mxu0 }
 0x14f   :  { %v1448_v44 = vpop.f32.mrf.mxu1  ;;  %v1569_v31 = vadd.f32 %v3070_v9, %v3077_v17 }
 0x150   :  { %v1397_v46 = vpop.f32.mrf.mxu0 }
 0x151   :  { %v1450_v47 = vpop.f32.mrf.mxu1  ;;  %v3084_v5 = vadd.f32 %v1397_v46, %v1345_v21 }
 0x182   :  { %v1487_v50 = vpop.f32.mrf.mxu0 }
 0x183   :  { %v1540_v52 = vpop.f32.mrf.mxu1  ;;  %v1488_v55 = vadd.f32 %v1487_v50, %v1434_v29  ;;  %v3089_v29 = vadd.f32 %v1395_v43, %v1343_v25 }
 0x184   :  { %v1489_v57 = vpop.f32.mrf.mxu0 }
 0x185   :  { %v1542_v58 = vpop.f32.mrf.mxu1  ;;  %v3061_v60 = vadd.f32 %v1540_v52, %v1488_v55  ;;  %v1490_v61 = vadd.f32 %v1489_v57, %v1436_v23  ;;  %v1574_v36 = vadd.f32 %v3084_v5, %v3089_v29 }
 0x186   :  { %v1491_v0 = vpop.f32.mrf.mxu0 }
 0x187   :  { %v1544_v1 = vpop.f32.mrf.mxu1  ;;  %v3067_v3 = vadd.f32 %v1542_v58, %v1490_v61  ;;  %v1492_v6 = vadd.f32 %v1491_v0, %v1438_v51  ;;  %v1560_v7 = vadd.f32 %v1559_v62, %v3061_v60 }
 0x188   :  { %v1493_v10 = vpop.f32.mrf.mxu0 }
 0x189   :  { %v1546_v11 = vpop.f32.mrf.mxu1  ;;  %v3074_v13 = vadd.f32 %v1544_v1, %v1492_v6  ;;  %v1494_v15 = vadd.f32 %v1493_v10, %v1440_v38  ;;  %v1561_v16 = vadd.f32 %v1560_v7, %v3067_v3 }
 0x18a   :  { %v1497_v18 = vpop.f32.mrf.mxu0 }
 0x18b   :  { %v1550_v20 = vpop.f32.mrf.mxu1  ;;  %v3079_v22 = vadd.f32 %v1546_v11, %v1494_v15  ;;  %v1498_v4 = vadd.f32 %v1497_v18, %v1444_v40  ;;  %1562 = vadd.xlane.f32.xlu0 %v1561_v16  ;;  %v1565_v24 = vadd.f32 %v1564_v12, %v3074_v13 }
 0x18c   :  { %v1499_v26 = vpop.f32.mrf.mxu0 }
 0x18d   :  { %v1552_v30 = vpop.f32.mrf.mxu1  ;;  %v3086_v32 = vadd.f32 %v1550_v20, %v1498_v4  ;;  %v1500_v14 = vadd.f32 %v1499_v26, %v1446_v42  ;;  %v1566_v34 = vadd.f32 %v1565_v24, %v3079_v22 }
 0x18e   :  { %v1501_v28 = vpop.f32.mrf.mxu0 }
 0x18f   :  { %v1554_v19 = vpop.f32.mrf.mxu1  ;;  %v3091_v35 = vadd.f32 %v1552_v30, %v1500_v14  ;;  %v1502_v23 = vadd.f32 %v1501_v28, %v1448_v44  ;;  %1567 = vadd.xlane.f32.xlu0 %v1566_v34  ;;  %v1570_v33 = vadd.f32 %v1569_v31, %v3086_v32 }
 0x190   :  { %v1503_v27 = vpop.f32.mrf.mxu0 }
 0x191   :  { %v3096_v51 = vadd.f32 %v1554_v19, %v1502_v23  ;;  %v1504_v37 = vadd.f32 %v1503_v27, %v1450_v47  ;;  %v1571_v38 = vadd.f32 %v1570_v33, %v3091_v35  ;;  %v1556_v39 = vpop.f32.mrf.mxu1 }
 0x193   :  { %v3099_v40 = vadd.f32 %v1556_v39, %v1504_v37  ;;  %1572 = vadd.xlane.f32.xlu1 %v1571_v38  ;;  %v1575_v41 = vadd.f32 %v1574_v36, %v3096_v51 }
 0x195   :  { %v1576_v42 = vadd.f32 %v1575_v41, %v3099_v40 }
 0x197   :  { %1577 = vadd.xlane.f32.xlu1 %v1576_v42 }
 0x214   :  { %v1563_v43 = vpop.xlane.xlu0 %1562 }
 0x215   :  { %v3103_v44 = vmul.f32 0.001953125, %v1563_v43 }
 0x217   :  { %v1584_v45 = vsub.f32 %v3057_v54, %v3103_v44  ;;  %v1585_v46 = vsub.f32 %v3055_v49, %v3103_v44  ;;  %v1586_v47 = vsub.f32 %v3061_v60, %v3103_v44  ;;  %v1587_v50 = vsub.f32 %v3067_v3, %v3103_v44 }
 0x218   :  { %v1568_v48 = vpop.xlane.xlu0 %1567 }
 0x219   :  { %v3113_v52 = vmul.f32 0.001953125, %v1568_v48  ;;  %v1600_v53 = vmul.f32 %v1584_v45, %v1584_v45  ;;  %v1601_v55 = vmul.f32 %v1585_v46, %v1585_v46  ;;  %v1602_v56 = vmul.f32 %v1586_v47, %v1586_v47 }
 0x21a   :  { %v1603_v0 = vmul.f32 %v1587_v50, %v1587_v50  ;;  %v2369_v48 = vmov 0  }
 0x21b   :  { %v1616_v57 = vadd.f32 %v1601_v55, %v1600_v53  ;;  %v1588_v58 = vsub.f32 %v3065_v2, %v3113_v52  ;;  %v1589_v61 = vsub.f32 %v3059_v59, %v3113_v52  ;;  %v1590_v62 = vsub.f32 %v3074_v13, %v3113_v52  ;;  %2053 = vset.pattern.permute.xlu0 %v2369_v48 }
 0x21c   :  { %v1573_v63 = vpop.xlane.xlu1 %1572  ;;  %v1591_v1 = vsub.f32 %v3079_v22, %v3113_v52  ;;  %2054 = vset.pattern.permute.xlu1 %v2369_v48 }
 0x21d   :  { %v3123_v6 = vmul.f32 0.001953125, %v1573_v63  ;;  %v1617_v7 = vadd.f32 %v1616_v57, %v1602_v56  ;;  %v1604_v8 = vmul.f32 %v1588_v58, %v1588_v58  ;;  %v1605_v10 = vmul.f32 %v1589_v61, %v1589_v61 }
 0x21e   :  { %v1606_v11 = vmul.f32 %v1590_v62, %v1590_v62  ;;  %v1607_v21 = vmul.f32 %v1591_v1, %v1591_v1 }
 0x21f   :  { %v1618_v12 = vadd.f32 %v1617_v7, %v1603_v0  ;;  %v1621_v15 = vadd.f32 %v1605_v10, %v1604_v8  ;;  %v1592_v16 = vsub.f32 %v3077_v17, %v3123_v6  ;;  %v1593_v18 = vsub.f32 %v3070_v9, %v3123_v6  ;;  %v1640_v7 = vld [vmem:[%s3213_s2] sm:$0xff] }
 0x220   :  { %v1578_v20 = vpop.xlane.xlu1 %1577  ;;  %v1594_v4 = vsub.f32 %v3086_v32, %v3123_v6  ;;  %v1595_v24 = vsub.f32 %v3091_v35, %v3123_v6 }
 0x221   :  { %v3133_v25 = vmul.f32 0.001953125, %v1578_v20  ;;  %1619 = vadd.xlane.f32.xlu0 %v1618_v12  ;;  %v1622_v26 = vadd.f32 %v1621_v15, %v1606_v11  ;;  %v1608_v30 = vmul.f32 %v1592_v16, %v1592_v16  ;;  %v1609_v31 = vmul.f32 %v1593_v18, %v1593_v18  ;;  %v1641_v12 = vld [vmem:[%s3213_s2 + $0x8] sm:$0xff]  ;;  %v1656_v20 = vld [vmem:[%s3214_s3] sm:$0xff] }
 0x222   :  { %v1610_v14 = vmul.f32 %v1594_v4, %v1594_v4  ;;  %v1611_v33 = vmul.f32 %v1595_v24, %v1595_v24  ;;  %v1642_v24 = vld [vmem:[%s3213_s2 + $0x10] sm:$0xff] }
 0x223   :  { %v1623_v34 = vadd.f32 %v1622_v26, %v1607_v21  ;;  %v1626_v28 = vadd.f32 %v1609_v31, %v1608_v30  ;;  %v1596_v19 = vsub.f32 %v3089_v29, %v3133_v25  ;;  %v1597_v23 = vsub.f32 %v3084_v5, %v3133_v25  ;;  %v1657_v31 = vld [vmem:[%s3214_s3 + $0x8] sm:$0xff] }
 0x224   :  { %v1598_v27 = vsub.f32 %v3096_v51, %v3133_v25  ;;  %v1599_v37 = vsub.f32 %v3099_v40, %v3133_v25 }
 0x225   :  { %1624 = vadd.xlane.f32.xlu1 %v1623_v34  ;;  %v1627_v36 = vadd.f32 %v1626_v28, %v1610_v14  ;;  %v1612_v38 = vmul.f32 %v1596_v19, %v1596_v19  ;;  %v1613_v39 = vmul.f32 %v1597_v23, %v1597_v23  ;;  %v1643_v34 = vld [vmem:[%s3213_s2 + $0x18] sm:$0xff]  ;;  %v1658_v23 = vld [vmem:[%s3214_s3 + $0x10] sm:$0xff] }
 0x226   :  { %v1614_v42 = vmul.f32 %v1598_v27, %v1598_v27  ;;  %v1615_v45 = vmul.f32 %v1599_v37, %v1599_v37  ;;  %v1659_v27 = vld [vmem:[%s3214_s3 + $0x18] sm:$0xff] }
 0x227   :  { %v1628_v41 = vadd.f32 %v1627_v36, %v1611_v33  ;;  %v1631_v43 = vadd.f32 %v1613_v39, %v1612_v38 }
 0x229   :  { %1629 = vadd.xlane.f32.xlu0 %v1628_v41  ;;  %v1632_v46 = vadd.f32 %v1631_v43, %v1614_v42 }
 0x22b   :  { %v1633_v47 = vadd.f32 %v1632_v46, %v1615_v45 }
 0x22d   :  { %1634 = vadd.xlane.f32.xlu1 %v1633_v47 }
 0x2aa   :  { %v1620_v50 = vpop.xlane.xlu0 %1619 }
 0x2ab   :  { %v1636_v53 = vmul.f32 0.001953125, %v1620_v50 }
 0x2ad   :  { %v1644_v55 = vadd.f32 1e-05, %v1636_v53 }
 0x2ae   :  { %v1625_v56 = vpop.xlane.xlu1 %1624 }
 0x2af   :  { %2361 = vrsqrt.f32 %v1644_v55  ;;  %v1637_v57 = vmul.f32 0.001953125, %v1625_v56 }
 0x2b1   :  { %v1645_v58 = vadd.f32 1e-05, %v1637_v57 }
 0x2b2   :  { %v1630_v61 = vpop.xlane.xlu0 %1629 }
 0x2b3   :  { %2363 = vrsqrt.f32 %v1645_v58  ;;  %v1638_v62 = vmul.f32 0.001953125, %v1630_v61 }
 0x2b5   :  { %v1646_v63 = vadd.f32 1e-05, %v1638_v62 }
 0x2b6   :  { %v1635_v0 = vpop.xlane.xlu1 %1634 }
 0x2b7   :  { %2365 = vrsqrt.f32 %v1646_v63  ;;  %v1639_v1 = vmul.f32 0.001953125, %v1635_v0 }
 0x2b9   :  { %v1647_v10 = vadd.f32 1e-05, %v1639_v1 }
 0x2bb   :  { %2367 = vrsqrt.f32 %v1647_v10 }
 0x2bc   :  { %v2362_v8 = vpop.eup %2361 }
 0x2bd   :  { %v1652_v11 = vmul.f32 %v2362_v8, %v1640_v7 }
 0x2bf   :  { %1670 = vperm.xlu0 %2053, %v1652_v11   ;;  %v1660_v18 = vmul.f32 %v1652_v11, %v3103_v44 }
 0x2c0   :  { %v2364_v15 = vpop.eup %2363 }
 0x2c1   :  { %v1653_v16 = vmul.f32 %v2364_v15, %v1641_v12  ;;  %v1664_v21 = vsub.f32 %v1656_v20, %v1660_v18 }
 0x2c3   :  { %1675 = vperm.xlu1 %2054, %v1653_v16   ;;  %v1661_v30 = vmul.f32 %v1653_v16, %v3113_v52 }
 0x2c4   :  { %v2366_v4 = vpop.eup %2365 }
 0x2c5   :  { %v1654_v26 = vmul.f32 %v2366_v4, %v1642_v24  ;;  %v1665_v44 = vsub.f32 %v1657_v31, %v1661_v30 }
 0x2c7   :  { %1706 = vperm.xlu1 %2054, %v1664_v21   ;;  %v1662_v19 = vmul.f32 %v1654_v26, %v3123_v6 }
 0x2c8   :  { %v2368_v14 = vpop.eup %2367 }
 0x2c9   :  { %v1655_v28 = vmul.f32 %v2368_v14, %v1643_v34  ;;  %v1666_v52 = vsub.f32 %v1658_v23, %v1662_v19 }
 0x2cb   :  { %1680 = vperm.xlu1 %2054, %v1654_v26   ;;  %v1663_v33 = vmul.f32 %v1655_v28, %v3133_v25 }
 0x2cd   :  { %v1667_v36 = vsub.f32 %v1659_v27, %v1663_v33 }
 0x2cf   :  { %1711 = vperm.xlu1 %2054, %v1665_v44  }
 0x2d3   :  { %1685 = vperm.xlu1 %2054, %v1655_v28  }
 0x2d7   :  { %1716 = vperm.xlu1 %2054, %v1666_v52  }
 0x2db   :  { %1721 = vperm.xlu1 %2054, %v1667_v36  }
 0x33a   :  { %v1671_v37 = vpop.permute.xlu0 %1670 }
 0x33b   :  { %v1688_v39 = vmul.f32 %v1671_v37, %v3057_v54  ;;  %v1689_v6 = vmul.f32 %v1671_v37, %v3055_v49  ;;  %v1690_v41 = vmul.f32 %v1671_v37, %v3061_v60  ;;  %v1691_v42 = vmul.f32 %v1671_v37, %v3067_v3 }
 0x33e   :  { %v1676_v38 = vpop.permute.xlu1 %1675 }
 0x33f   :  { %v1692_v54 = vmul.f32 %v1676_v38, %v3065_v2  ;;  %v1693_v60 = vmul.f32 %v1676_v38, %v3059_v59  ;;  %v1694_v3 = vmul.f32 %v1676_v38, %v3074_v13  ;;  %v1695_v62 = vmul.f32 %v1676_v38, %v3079_v22 }
 0x342   :  { %v1707_v43 = vpop.permute.xlu1 %1706 }
 0x343   :  { %v1724_v45 = vadd.f32 %v1707_v43, %v1688_v39  ;;  %v1725_v25 = vadd.f32 %v1707_v43, %v1689_v6  ;;  %v1726_v46 = vadd.f32 %v1707_v43, %v1690_v41  ;;  %v1727_v47 = vadd.f32 %v1707_v43, %v1691_v42 }
 0x345   :  { %v1740_v48 = vmul.f32 0.2, %v1724_v45  ;;  %v1741_v50 = vmul.f32 0.2, %v1725_v25  ;;  %v1742_v53 = vmul.f32 0.2, %v1726_v46 }
 0x346   :  { %v1743_v55 = vmul.f32 0.2, %v1727_v47  ;;  %v1681_v56 = vpop.permute.xlu1 %1680 }
 0x347   :  { %v1756_v57 = vmax.f32 %v1724_v45, %v1740_v48  ;;  %v1757_v58 = vmax.f32 %v1725_v25, %v1741_v50  ;;  %v1758_v61 = vmax.f32 %v1726_v46, %v1742_v53  ;;  %v1696_v20 = vmul.f32 %v1681_v56, %v3077_v17 }
 0x348   :  { %v1759_v49 = vmax.f32 %v1727_v47, %v1743_v55  ;;  %v1697_v4 = vmul.f32 %v1681_v56, %v3070_v9  ;;  %v1698_v24 = vmul.f32 %v1681_v56, %v3086_v32  ;;  %v1699_v26 = vmul.f32 %v1681_v56, %v3091_v35 }
 0x349   :  { %v2044_v63 = vpack.c.bf16 %v1757_v58, %v1756_v57 }
 0x34a   :  { %v2045_v0 = vpack.c.bf16 %v1759_v49, %v1758_v61  ;;  %v1712_v1 = vpop.permute.xlu1 %1711 }
 0x34b   :  { %1820 = vst [vmem:[%s3215_s4] sm:$0xff] %v2044_v63  ;;  %v1728_v7 = vadd.f32 %v1712_v1, %v1692_v54  ;;  %v1729_v8 = vadd.f32 %v1712_v1, %v1693_v60  ;;  %v1730_v10 = vadd.f32 %v1712_v1, %v1694_v3  ;;  %v1731_v11 = vadd.f32 %v1712_v1, %v1695_v62 }
 0x34c   :  { %1821 = vst [vmem:[%s3215_s4 + $0x8] sm:$0xff] %v2045_v0 }
 0x34d   :  { %v1744_v59 = vmul.f32 0.2, %v1728_v7  ;;  %v1745_v2 = vmul.f32 0.2, %v1729_v8  ;;  %v1746_v13 = vmul.f32 0.2, %v1730_v10 }
 0x34e   :  { %v1747_v12 = vmul.f32 0.2, %v1731_v11  ;;  %v1686_v22 = vpop.permute.xlu1 %1685 }
 0x34f   :  { %v1760_v15 = vmax.f32 %v1728_v7, %v1744_v59  ;;  %v1761_v16 = vmax.f32 %v1729_v8, %v1745_v2  ;;  %v1762_v18 = vmax.f32 %v1730_v10, %v1746_v13  ;;  %v1700_v35 = vmul.f32 %v1686_v22, %v3089_v29 }
 0x350   :  { %v1763_v21 = vmax.f32 %v1731_v11, %v1747_v12  ;;  %v1701_v52 = vmul.f32 %v1686_v22, %v3084_v5  ;;  %v1702_v33 = vmul.f32 %v1686_v22, %v3096_v51  ;;  %v1703_v27 = vmul.f32 %v1686_v22, %v3099_v40 }
 0x351   :  { %v2046_v30 = vpack.c.bf16 %v1761_v16, %v1760_v15 }
 0x352   :  { %v2047_v31 = vpack.c.bf16 %v1763_v21, %v1762_v18  ;;  %v1717_v44 = vpop.permute.xlu1 %1716 }
 0x353   :  { %1822 = vst [vmem:[%s3215_s4 + $0x10] sm:$0xff] %v2046_v30  ;;  %v1732_v14 = vadd.f32 %v1717_v44, %v1696_v20  ;;  %v1733_v34 = vadd.f32 %v1717_v44, %v1697_v4  ;;  %v1734_v28 = vadd.f32 %v1717_v44, %v1698_v24  ;;  %v1735_v19 = vadd.f32 %v1717_v44, %v1699_v26 }
 0x354   :  { %1823 = vst [vmem:[%s3215_s4 + $0x18] sm:$0xff] %v2047_v31 }
 0x355   :  { %v1748_v9 = vmul.f32 0.2, %v1732_v14  ;;  %v1749_v17 = vmul.f32 0.2, %v1733_v34  ;;  %v1750_v32 = vmul.f32 0.2, %v1734_v28 }
 0x356   :  { %v1751_v23 = vmul.f32 0.2, %v1735_v19  ;;  %v1722_v36 = vpop.permute.xlu1 %1721 }
 0x357   :  { %v1764_v37 = vmax.f32 %v1732_v14, %v1748_v9  ;;  %v1765_v38 = vmax.f32 %v1733_v34, %v1749_v17  ;;  %v1766_v39 = vmax.f32 %v1734_v28, %v1750_v32  ;;  %v1736_v6 = vadd.f32 %v1722_v36, %v1700_v35 }
 0x358   :  { %v1767_v41 = vmax.f32 %v1735_v19, %v1751_v23  ;;  %v1737_v42 = vadd.f32 %v1722_v36, %v1701_v52  ;;  %v1738_v43 = vadd.f32 %v1722_v36, %v1702_v33  ;;  %v1739_v45 = vadd.f32 %v1722_v36, %v1703_v27 }
 0x359   :  { %v2048_v25 = vpack.c.bf16 %v1765_v38, %v1764_v37  ;;  %v1752_v46 = vmul.f32 0.2, %v1736_v6 }
 0x35a   :  { %v2049_v47 = vpack.c.bf16 %v1767_v41, %v1766_v39  ;;  %v1753_v29 = vmul.f32 0.2, %v1737_v42  ;;  %v1754_v48 = vmul.f32 0.2, %v1738_v43  ;;  %v1755_v50 = vmul.f32 0.2, %v1739_v45 }
 0x35b   :  { %1824 = vst [vmem:[%s3215_s4 + $0x20] sm:$0xff] %v2048_v25  ;;  %v1768_v5 = vmax.f32 %v1736_v6, %v1752_v46 }
 0x35c   :  { %1825 = vst [vmem:[%s3215_s4 + $0x28] sm:$0xff] %v2049_v47  ;;  %v1769_v51 = vmax.f32 %v1737_v42, %v1753_v29  ;;  %v1770_v40 = vmax.f32 %v1738_v43, %v1754_v48  ;;  %v1771_v53 = vmax.f32 %v1739_v45, %v1755_v50 }
 0x35e   :  { %v2050_v55 = vpack.c.bf16 %v1769_v51, %v1768_v5  ;;  %v2051_v56 = vpack.c.bf16 %v1771_v53, %v1770_v40 }
 0x360   :  { %1826 = vst [vmem:[%s3215_s4 + $0x30] sm:$0xff] %v2050_v55  ;;  %1827 = vst [vmem:[%s3215_s4 + $0x38] sm:$0xff] %v2051_v56 }

// kernel: video_discriminator_forward.7
= control target key start
LH: loop header
LB: loop body
LE: loop exit
PB: predicated region body
PF: predicated region fallthrough
CT: control target
= control target key end

     0   :  { %vm1464_vm0 = vcmask 523264   ;;  %vm1746_vm1 = vcmask 519168   ;;  %s3098_s1 = inlined_call_operand.vmem [shape: bf16[1536,64], index: 1, kind: input, shape index: {}]   ;;  %s3099_s0 = inlined_call_operand.vmem [shape: bf16[64,1536], index: 0, kind: input, shape index: {}]   ;;  %s3100_s2 = inlined_call_operand.vmem [shape: f32[64,1], index: 2, kind: input, shape index: {}]   ;;  %s3101_s3 = inlined_call_operand.vmem [shape: f32[64,1], index: 3, kind: input, shape index: {}]   ;;  %s3102_s4 = inlined_call_operand.vmem [shape: bf16[64,64], index: 4, kind: output, shape index: {}]  }
   0x1   :  { %v2162_v0 = vld [vmem:[%s3098_s1 + $0x78] sm:$0xff]   ;;  %v2166_v4 = vld [vmem:[%s3098_s1 + $0x70] sm:$0xff]   ;;  %v2170_v8 = vld [vmem:[%s3098_s1 + $0x68] sm:$0xff]  }
   0x2   :  { %v2163_v1 = vld [vmem:[%s3098_s1 + $0xf8] sm:$0xff]   ;;  %1919 = vmatprep.subr.bf16.mxu0 %v2162_v0  ;;  %v2167_v5 = vld [vmem:[%s3098_s1 + $0xf0] sm:$0xff]   ;;  %v2171_v9 = vld [vmem:[%s3098_s1 + $0xe8] sm:$0xff]  }
   0x3   :  { %v2164_v2 = vld [vmem:[%s3098_s1 + $0x38] sm:$0xff]   ;;  %1959 = vmatprep.subr.bf16.mxu1 %v2163_v1  ;;  %v2168_v6 = vld [vmem:[%s3098_s1 + $0x30] sm:$0xff]   ;;  %v2172_v10 = vld [vmem:[%s3098_s1 + $0x28] sm:$0xff]  }
   0x4   :  { %v2165_v3 = vld [vmem:[%s3098_s1 + $0xb8] sm:$0xff]   ;;  %1920 = vmatpush3.bf16.msra.mxu0 %v2164_v2  ;;  %v2169_v7 = vld [vmem:[%s3098_s1 + $0xb0] sm:$0xff]   ;;  %v2173_v11 = vld [vmem:[%s3098_s1 + $0xa8] sm:$0xff]  }
   0x5   :  { %1960 = vmatpush3.bf16.msra.mxu1 %v2165_v3  ;;  %1921 = vmatprep.subr.bf16.mxu0 %v2166_v4  ;;  %v2174_v12 = vld [vmem:[%s3098_s1 + $0x60] sm:$0xff]   ;;  %v2178_v16 = vld [vmem:[%s3098_s1 + $0x58] sm:$0xff]   ;;  %v2182_v20 = vld [vmem:[%s3098_s1 + $0x50] sm:$0xff]  }
   0x6   :  { %1961 = vmatprep.subr.bf16.mxu1 %v2167_v5  ;;  %v2175_v13 = vld [vmem:[%s3098_s1 + $0xe0] sm:$0xff]   ;;  %v2179_v17 = vld [vmem:[%s3098_s1 + $0xd8] sm:$0xff]   ;;  %v2183_v21 = vld [vmem:[%s3098_s1 + $0xd0] sm:$0xff]  }
   0x7   :  { %v2176_v14 = vld [vmem:[%s3098_s1 + $0x20] sm:$0xff]   ;;  %v2180_v18 = vld [vmem:[%s3098_s1 + $0x18] sm:$0xff]   ;;  %v2184_v22 = vld [vmem:[%s3098_s1 + $0x10] sm:$0xff]  }
   0x8   :  { %1922 = vmatpush3.bf16.msra.mxu0 %v2168_v6  ;;  %v2177_v15 = vld [vmem:[%s3098_s1 + $0xa0] sm:$0xff]   ;;  %v2181_v19 = vld [vmem:[%s3098_s1 + $0x98] sm:$0xff]   ;;  %v2185_v23 = vld [vmem:[%s3098_s1 + $0x90] sm:$0xff]  }
   0x9   :  { %1962 = vmatpush3.bf16.msra.mxu1 %v2169_v7  ;;  %1923 = vmatprep.subr.bf16.mxu0 %v2170_v8  ;;  %v2186_v24 = vld [vmem:[%s3098_s1 + $0x48] sm:$0xff]   ;;  %v2190_v28 = vld [vmem:[%s3098_s1 + $0x40] sm:$0xff]   ;;  %v2200_v36 = vld [vmem:[%s3098_s1 + $0x178] sm:$0xff]  }
   0xa   :  { %1963 = vmatprep.subr.bf16.mxu1 %v2171_v9  ;;  %v2187_v25 = vld [vmem:[%s3098_s1 + $0xc8] sm:$0xff]   ;;  %v2191_v29 = vld [vmem:[%s3098_s1 + $0xc0] sm:$0xff]   ;;  %v2201_v37 = vld [vmem:[%s3098_s1 + $0x1f8] sm:$0xff]  }
   0xb   :  { %v2188_v26 = vld [vmem:[%s3098_s1 + $0x8] sm:$0xff]   ;;  %v2192_v30 = vld [vmem:[%s3098_s1] sm:$0xff]   ;;  %v2202_v38 = vld [vmem:[%s3098_s1 + $0x138] sm:$0xff]  }
   0xc   :  { %1924 = vmatpush3.bf16.msra.mxu0 %v2172_v10  ;;  %v2189_v27 = vld [vmem:[%s3098_s1 + $0x88] sm:$0xff]   ;;  %v2193_v31 = vld [vmem:[%s3098_s1 + $0x80] sm:$0xff]   ;;  %v2203_v39 = vld [vmem:[%s3098_s1 + $0x1b8] sm:$0xff]  }
   0xd   :  { %1964 = vmatpush3.bf16.msra.mxu1 %v2173_v11  ;;  %1925 = vmatprep.subr.bf16.mxu0 %v2174_v12  ;;  %v2194_v32 = vld [vmem:[%s3099_s0] ss:$48 sps:$4 sm:$0xff]   ;;  %v2196_v33 = vld [vmem:[%s3099_s0 + $0x4] ss:$48 sps:$4 sm:$0xff]   ;;  %v2197_v34 = vld [vmem:[%s3099_s0 + $0x8] ss:$48 sps:$4 sm:$0xff]  }
   0xe   :  { %1965 = vmatprep.subr.bf16.mxu1 %v2175_v13  ;;  %v2199_v35 = vld [vmem:[%s3099_s0 + $0xc] ss:$48 sps:$4 sm:$0xff]   ;;  %1106 = vmatprep.mubr.bf16.mxu0 %v2196_v33  ;;  %v2204_v40 = vld [vmem:[%s3098_s1 + $0x170] sm:$0xff]   ;;  %v2213_v47 = vld [vmem:[%s3099_s0 + $0x68] ss:$48 sps:$4 sm:$0xff]  }
   0xf   :  { %1171 = vmatprep.mubr.bf16.mxu1 %v2199_v35  ;;  %v2205_v41 = vld [vmem:[%s3098_s1 + $0x1f0] sm:$0xff]   ;;  %v2210_v45 = vld [vmem:[%s3099_s0 + $0x6c] ss:$48 sps:$4 sm:$0xff]   ;;  %v2218_v52 = vld [vmem:[%s3098_s1 + $0x160] sm:$0xff]  }
  0x10   :  { %1926 = vmatpush3.bf16.msra.mxu0 %v2176_v14  ;;  %v2206_v42 = vld [vmem:[%s3098_s1 + $0x130] sm:$0xff]   ;;  %v2214_v48 = vld [vmem:[%s3098_s1 + $0x168] sm:$0xff]   ;;  %v2219_v53 = vld [vmem:[%s3098_s1 + $0x1e0] sm:$0xff]  }
  0x11   :  { %1966 = vmatpush3.bf16.msra.mxu1 %v2177_v15  ;;  %1927 = vmatprep.subr.bf16.mxu0 %v2178_v16  ;;  %v2207_v43 = vld [vmem:[%s3098_s1 + $0x1b0] sm:$0xff]   ;;  %v2215_v49 = vld [vmem:[%s3098_s1 + $0x1e8] sm:$0xff]   ;;  %v2220_v54 = vld [vmem:[%s3098_s1 + $0x120] sm:$0xff]  }
  0x12   :  { %1967 = vmatprep.subr.bf16.mxu1 %v2179_v17  ;;  %v2208_v44 = vld [vmem:[%s3099_s0 + $0x64] ss:$48 sps:$4 sm:$0xff]   ;;  %v2212_v46 = vld [vmem:[%s3099_s0 + $0x60] ss:$48 sps:$4 sm:$0xff]   ;;  %v2216_v50 = vld [vmem:[%s3098_s1 + $0x128] sm:$0xff]  }
  0x13   :  { %v2217_v51 = vld [vmem:[%s3098_s1 + $0x1a8] sm:$0xff]   ;;  %v2221_v55 = vld [vmem:[%s3098_s1 + $0x1a0] sm:$0xff]   ;;  %v2228_v60 = vld [vmem:[%s3098_s1 + $0x158] sm:$0xff]  }
  0x14   :  { %1928 = vmatpush3.bf16.msra.mxu0 %v2180_v18  ;;  %v2222_v56 = vld [vmem:[%s3099_s0 + $0xc4] ss:$48 sps:$4 sm:$0xff]   ;;  %v2224_v57 = vld [vmem:[%s3099_s0 + $0xcc] ss:$48 sps:$4 sm:$0xff]   ;;  %v2226_v58 = vld [vmem:[%s3099_s0 + $0xc0] ss:$48 sps:$4 sm:$0xff]  }
  0x15   :  { %1968 = vmatpush3.bf16.msra.mxu1 %v2181_v19  ;;  %1929 = vmatprep.subr.bf16.mxu0 %v2182_v20  ;;  %v2227_v59 = vld [vmem:[%s3099_s0 + $0xc8] ss:$48 sps:$4 sm:$0xff]   ;;  %v2232_v0 = vld [vmem:[%s3098_s1 + $0x150] sm:$0xff]   ;;  %v2238_v5 = vld [vmem:[%s3099_s0 + $0x12c] ss:$48 sps:$4 sm:$0xff]  }
  0x16   :  { %1969 = vmatprep.subr.bf16.mxu1 %v2183_v21  ;;  %v2229_v61 = vld [vmem:[%s3098_s1 + $0x1d8] sm:$0xff]   ;;  %v2233_v1 = vld [vmem:[%s3098_s1 + $0x1d0] sm:$0xff]   ;;  %v2242_v8 = vld [vmem:[%s3098_s1 + $0x148] sm:$0xff]  }
  0x17   :  { %v2230_v62 = vld [vmem:[%s3098_s1 + $0x118] sm:$0xff]   ;;  %v2234_v2 = vld [vmem:[%s3098_s1 + $0x110] sm:$0xff]   ;;  %v2243_v9 = vld [vmem:[%s3098_s1 + $0x1c8] sm:$0xff]  }
  0x18   :  { %1930 = vmatpush3.bf16.msra.mxu0 %v2184_v22  ;;  %v2231_v63 = vld [vmem:[%s3098_s1 + $0x198] sm:$0xff]   ;;  %v2235_v3 = vld [vmem:[%s3098_s1 + $0x190] sm:$0xff]   ;;  %v2244_v10 = vld [vmem:[%s3098_s1 + $0x108] sm:$0xff]  }
  0x19   :  { %1970 = vmatpush3.bf16.msra.mxu1 %v2185_v23  ;;  %1931 = vmatprep.subr.bf16.mxu0 %v2186_v24  ;;  %v2236_v4 = vld [vmem:[%s3099_s0 + $0x124] ss:$48 sps:$4 sm:$0xff]   ;;  %v2240_v6 = vld [vmem:[%s3099_s0 + $0x120] ss:$48 sps:$4 sm:$0xff]   ;;  %v2241_v7 = vld [vmem:[%s3099_s0 + $0x128] ss:$48 sps:$4 sm:$0xff]  }
  0x1a   :  { %1971 = vmatprep.subr.bf16.mxu1 %v2187_v25  ;;  %v2245_v11 = vld [vmem:[%s3098_s1 + $0x188] sm:$0xff]   ;;  %v2246_v12 = vld [vmem:[%s3098_s1 + $0x140] sm:$0xff]   ;;  %v2256_v20 = vld [vmem:[%s3098_s1 + $0x278] sm:$0xff]  }
  0x1b   :  { %v2247_v13 = vld [vmem:[%s3098_s1 + $0x1c0] sm:$0xff]   ;;  %v2253_v18 = vld [vmem:[%s3099_s0 + $0x18] ss:$48 sps:$4 sm:$0xff]   ;;  %v2255_v19 = vld [vmem:[%s3099_s0 + $0x1c] ss:$48 sps:$4 sm:$0xff]  }
  0x1c   :  { %1932 = vmatpush3.bf16.msra.mxu0 %v2188_v26  ;;  %v2248_v14 = vld [vmem:[%s3098_s1 + $0x100] sm:$0xff]   ;;  %v2257_v21 = vld [vmem:[%s3098_s1 + $0x2f8] sm:$0xff]   ;;  %v2260_v24 = vld [vmem:[%s3098_s1 + $0x270] sm:$0xff]  }
  0x1d   :  { %1972 = vmatpush3.bf16.msra.mxu1 %v2189_v27  ;;  %1933 = vmatprep.subr.bf16.mxu0 %v2190_v28  ;;  %v2249_v15 = vld [vmem:[%s3098_s1 + $0x180] sm:$0xff]   ;;  %v2258_v22 = vld [vmem:[%s3098_s1 + $0x238] sm:$0xff]   ;;  %v2261_v25 = vld [vmem:[%s3098_s1 + $0x2f0] sm:$0xff]  }
  0x1e   :  { %1973 = vmatprep.subr.bf16.mxu1 %v2191_v29  ;;  %v2250_v16 = vld [vmem:[%s3099_s0 + $0x10] ss:$48 sps:$4 sm:$0xff]   ;;  %v2252_v17 = vld [vmem:[%s3099_s0 + $0x14] ss:$48 sps:$4 sm:$0xff]   ;;  %v2259_v23 = vld [vmem:[%s3098_s1 + $0x2b8] sm:$0xff]  }
  0x1f   :  { %v2262_v26 = vld [vmem:[%s3098_s1 + $0x230] sm:$0xff]   ;;  %v2266_v29 = vld [vmem:[%s3099_s0 + $0x7c] ss:$48 sps:$4 sm:$0xff]  }
  0x20   :  { %1934 = vmatpush3.bf16.msra.mxu0 %v2192_v30  ;;  %v2263_v27 = vld [vmem:[%s3098_s1 + $0x2b0] sm:$0xff]   ;;  %v2271_v33 = vld [vmem:[%s3098_s1 + $0x2e8] sm:$0xff]  }
  0x21   :  { %1974 = vmatpush3.bf16.msra.mxu1 %v2193_v31  ;;  %1999 = vmatprep.subr.bf16.mxu0 %v2200_v36  ;;  %v2264_v28 = vld [vmem:[%s3099_s0 + $0x74] ss:$48 sps:$4 sm:$0xff]   ;;  %v2268_v30 = vld [vmem:[%s3099_s0 + $0x70] ss:$48 sps:$4 sm:$0xff]   ;;  %v2269_v31 = vld [vmem:[%s3099_s0 + $0x78] ss:$48 sps:$4 sm:$0xff]  }
  0x22   :  { %2039 = vmatprep.subr.bf16.mxu1 %v2201_v37  ;;  %v2273_v35 = vld [vmem:[%s3098_s1 + $0x2a8] sm:$0xff]   ;;  %v2274_v36 = vld [vmem:[%s3098_s1 + $0x260] sm:$0xff]  }
  0x23   :  { %1107 = vmatmul.mubr.bf16.vlgmr.msra.gmra.mxu0 %v2194_v32  ;;  %v2270_v32 = vld [vmem:[%s3098_s1 + $0x268] sm:$0xff]   ;;  %v2275_v37 = vld [vmem:[%s3098_s1 + $0x2e0] sm:$0xff]  }
  0x24   :  { %1172 = vmatmul.mubr.bf16.vlgmr.msra.gmra.mxu1 %v2197_v34  ;;  %2000 = vmatpush3.bf16.msra.mxu0 %v2202_v38  ;;  %v2272_v34 = vld [vmem:[%s3098_s1 + $0x228] sm:$0xff]   ;;  %v2276_v38 = vld [vmem:[%s3098_s1 + $0x220] sm:$0xff]  }
  0x25   :  { %2040 = vmatpush3.bf16.msra.mxu1 %v2203_v39  ;;  %2001 = vmatprep.subr.bf16.mxu0 %v2204_v40  ;;  %v2277_v39 = vld [vmem:[%s3098_s1 + $0x2a0] sm:$0xff]  }
  0x26   :  { %2041 = vmatprep.subr.bf16.mxu1 %v2205_v41  ;;  %1114 = vmatprep.mubr.bf16.mxu0 %v2208_v44  ;;  %v2278_v40 = vld [vmem:[%s3099_s0 + $0xd4] ss:$48 sps:$4 sm:$0xff]   ;;  %v2280_v41 = vld [vmem:[%s3099_s0 + $0xdc] ss:$48 sps:$4 sm:$0xff]  }
  0x27   :  { %1179 = vmatprep.mubr.bf16.mxu1 %v2210_v45  ;;  %v2284_v44 = vld [vmem:[%s3098_s1 + $0x258] sm:$0xff]  }
  0x28   :  { %2002 = vmatpush3.bf16.msra.mxu0 %v2206_v42  ;;  %v2282_v42 = vld [vmem:[%s3099_s0 + $0xd0] ss:$48 sps:$4 sm:$0xff]   ;;  %v2285_v45 = vld [vmem:[%s3098_s1 + $0x2d8] sm:$0xff]  }
  0x29   :  { %2042 = vmatpush3.bf16.msra.mxu1 %v2207_v43  ;;  %2003 = vmatprep.subr.bf16.mxu0 %v2214_v48  ;;  %v2283_v43 = vld [vmem:[%s3099_s0 + $0xd8] ss:$48 sps:$4 sm:$0xff]   ;;  %v2288_v48 = vld [vmem:[%s3098_s1 + $0x250] sm:$0xff]  }
  0x2a   :  { %2043 = vmatprep.subr.bf16.mxu1 %v2215_v49  ;;  %v2289_v49 = vld [vmem:[%s3098_s1 + $0x2d0] sm:$0xff]  }
  0x2b   :  { %1115 = vmatmul.mubr.bf16.gmra.mxu0 %v2212_v46  ;;  %v2286_v46 = vld [vmem:[%s3098_s1 + $0x218] sm:$0xff]  }
  0x2c   :  { %1180 = vmatmul.mubr.bf16.gmra.mxu1 %v2213_v47  ;;  %2004 = vmatpush3.bf16.msra.mxu0 %v2216_v50  ;;  %v2287_v47 = vld [vmem:[%s3098_s1 + $0x298] sm:$0xff]   ;;  %v2290_v50 = vld [vmem:[%s3098_s1 + $0x210] sm:$0xff]  }
  0x2d   :  { %2044 = vmatpush3.bf16.msra.mxu1 %v2217_v51  ;;  %2005 = vmatprep.subr.bf16.mxu0 %v2218_v52  ;;  %v2291_v51 = vld [vmem:[%s3098_s1 + $0x290] sm:$0xff]  }
  0x2e   :  { %2045 = vmatprep.subr.bf16.mxu1 %v2219_v53  ;;  %1122 = vmatprep.mubr.bf16.mxu0 %v2222_v56  ;;  %v2292_v52 = vld [vmem:[%s3099_s0 + $0x134] ss:$48 sps:$4 sm:$0xff]   ;;  %v2294_v53 = vld [vmem:[%s3099_s0 + $0x13c] ss:$48 sps:$4 sm:$0xff]  }
  0x2f   :  { %1187 = vmatprep.mubr.bf16.mxu1 %v2224_v57  ;;  %v2298_v56 = vld [vmem:[%s3098_s1 + $0x248] sm:$0xff]  }
  0x30   :  { %2006 = vmatpush3.bf16.msra.mxu0 %v2220_v54  ;;  %v2296_v54 = vld [vmem:[%s3099_s0 + $0x130] ss:$48 sps:$4 sm:$0xff]   ;;  %v2299_v57 = vld [vmem:[%s3098_s1 + $0x2c8] sm:$0xff]  }
  0x31   :  { %2046 = vmatpush3.bf16.msra.mxu1 %v2221_v55  ;;  %2007 = vmatprep.subr.bf16.mxu0 %v2228_v60  ;;  %v2297_v55 = vld [vmem:[%s3099_s0 + $0x138] ss:$48 sps:$4 sm:$0xff]   ;;  %v2302_v60 = vld [vmem:[%s3098_s1 + $0x240] sm:$0xff]  }
  0x32   :  { %2047 = vmatprep.subr.bf16.mxu1 %v2229_v61  ;;  %v2303_v61 = vld [vmem:[%s3098_s1 + $0x2c0] sm:$0xff]  }
  0x33   :  { %1123 = vmatmul.mubr.bf16.gmra.mxu0 %v2226_v58  ;;  %v2300_v58 = vld [vmem:[%s3098_s1 + $0x208] sm:$0xff]  }
  0x34   :  { %1188 = vmatmul.mubr.bf16.gmra.mxu1 %v2227_v59  ;;  %2008 = vmatpush3.bf16.msra.mxu0 %v2230_v62  ;;  %v2301_v59 = vld [vmem:[%s3098_s1 + $0x288] sm:$0xff]   ;;  %v2304_v62 = vld [vmem:[%s3098_s1 + $0x200] sm:$0xff]  }
  0x35   :  { %2048 = vmatpush3.bf16.msra.mxu1 %v2231_v63  ;;  %2009 = vmatprep.subr.bf16.mxu0 %v2232_v0  ;;  %v2305_v63 = vld [vmem:[%s3098_s1 + $0x280] sm:$0xff]  }
  0x36   :  { %2049 = vmatprep.subr.bf16.mxu1 %v2233_v1  ;;  %1130 = vmatprep.mubr.bf16.mxu0 %v2236_v4  ;;  %v2306_v0 = vld [vmem:[%s3099_s0 + $0x20] ss:$48 sps:$4 sm:$0xff]   ;;  %v2308_v1 = vld [vmem:[%s3099_s0 + $0x24] ss:$48 sps:$4 sm:$0xff]  }
  0x37   :  { %1195 = vmatprep.mubr.bf16.mxu1 %v2238_v5  ;;  %v2312_v4 = vld [vmem:[%s3099_s0 + $0x84] ss:$48 sps:$4 sm:$0xff]   ;;  %v2315_v5 = vld [vmem:[%s3099_s0 + $0x8c] ss:$48 sps:$4 sm:$0xff]  }
  0x38   :  { %2010 = vmatpush3.bf16.msra.mxu0 %v2234_v2  ;;  %v2309_v2 = vld [vmem:[%s3099_s0 + $0x28] ss:$48 sps:$4 sm:$0xff]  }
  0x39   :  { %2050 = vmatpush3.bf16.msra.mxu1 %v2235_v3  ;;  %2011 = vmatprep.subr.bf16.mxu0 %v2242_v8  ;;  %v2311_v3 = vld [vmem:[%s3099_s0 + $0x2c] ss:$48 sps:$4 sm:$0xff]   ;;  %v2318_v8 = vld [vmem:[%s3099_s0 + $0xe4] ss:$48 sps:$4 sm:$0xff]  }
  0x3a   :  { %2051 = vmatprep.subr.bf16.mxu1 %v2243_v9  ;;  %v2321_v9 = vld [vmem:[%s3099_s0 + $0xec] ss:$48 sps:$4 sm:$0xff]  }
  0x3b   :  { %1131 = vmatmul.mubr.bf16.gmra.mxu0 %v2240_v6  ;;  %v2314_v6 = vld [vmem:[%s3099_s0 + $0x80] ss:$48 sps:$4 sm:$0xff]  }
  0x3c   :  { %1196 = vmatmul.mubr.bf16.gmra.mxu1 %v2241_v7  ;;  %2012 = vmatpush3.bf16.msra.mxu0 %v2244_v10  ;;  %v2317_v7 = vld [vmem:[%s3099_s0 + $0x88] ss:$48 sps:$4 sm:$0xff]   ;;  %v2320_v10 = vld [vmem:[%s3099_s0 + $0xe0] ss:$48 sps:$4 sm:$0xff]  }
  0x3d   :  { %2052 = vmatpush3.bf16.msra.mxu1 %v2245_v11  ;;  %2013 = vmatprep.subr.bf16.mxu0 %v2246_v12  ;;  %v2323_v11 = vld [vmem:[%s3099_s0 + $0xe8] ss:$48 sps:$4 sm:$0xff]   ;;  %v2324_v12 = vld [vmem:[%s3099_s0 + $0x144] ss:$48 sps:$4 sm:$0xff]  }
  0x3e   :  { %2053 = vmatprep.subr.bf16.mxu1 %v2247_v13  ;;  %1236 = vmatprep.mubr.bf16.mxu0 %v2252_v17  ;;  %v2327_v13 = vld [vmem:[%s3099_s0 + $0x14c] ss:$48 sps:$4 sm:$0xff]  }
  0x3f   :  { %1301 = vmatprep.mubr.bf16.mxu1 %v2255_v19 }
  0x40   :  { %2014 = vmatpush3.bf16.msra.mxu0 %v2248_v14  ;;  %v2326_v14 = vld [vmem:[%s3099_s0 + $0x140] ss:$48 sps:$4 sm:$0xff]  }
  0x41   :  { %2054 = vmatpush3.bf16.msra.mxu1 %v2249_v15  ;;  %2079 = vmatprep.subr.bf16.mxu0 %v2256_v20  ;;  %v2329_v15 = vld [vmem:[%s3099_s0 + $0x148] ss:$48 sps:$4 sm:$0xff]  }
  0x42   :  { %2119 = vmatprep.subr.bf16.mxu1 %v2257_v21 }
  0x43   :  { %1237 = vmatmul.mubr.bf16.vlgmr.msra.gmra.mxu0 %v2250_v16 }
  0x44   :  { %1302 = vmatmul.mubr.bf16.vlgmr.msra.gmra.mxu1 %v2253_v18  ;;  %2080 = vmatpush3.bf16.msra.mxu0 %v2258_v22 }
  0x45   :  { %2120 = vmatpush3.bf16.msra.mxu1 %v2259_v23  ;;  %2081 = vmatprep.subr.bf16.mxu0 %v2260_v24 }
  0x46   :  { %2121 = vmatprep.subr.bf16.mxu1 %v2261_v25  ;;  %1244 = vmatprep.mubr.bf16.mxu0 %v2264_v28 }
  0x47   :  { %1309 = vmatprep.mubr.bf16.mxu1 %v2266_v29 }
  0x48   :  { %2082 = vmatpush3.bf16.msra.mxu0 %v2262_v26 }
  0x49   :  { %2122 = vmatpush3.bf16.msra.mxu1 %v2263_v27  ;;  %2083 = vmatprep.subr.bf16.mxu0 %v2270_v32 }
  0x4a   :  { %2123 = vmatprep.subr.bf16.mxu1 %v2271_v33 }
  0x4b   :  { %1245 = vmatmul.mubr.bf16.gmra.mxu0 %v2268_v30 }
  0x4c   :  { %1310 = vmatmul.mubr.bf16.gmra.mxu1 %v2269_v31  ;;  %2084 = vmatpush3.bf16.msra.mxu0 %v2272_v34 }
  0x4d   :  { %2124 = vmatpush3.bf16.msra.mxu1 %v2273_v35  ;;  %2085 = vmatprep.subr.bf16.mxu0 %v2274_v36 }
  0x4e   :  { %2125 = vmatprep.subr.bf16.mxu1 %v2275_v37  ;;  %1252 = vmatprep.mubr.bf16.mxu0 %v2278_v40 }
  0x4f   :  { %1317 = vmatprep.mubr.bf16.mxu1 %v2280_v41 }
  0x50   :  { %2086 = vmatpush3.bf16.msra.mxu0 %v2276_v38 }
  0x51   :  { %2126 = vmatpush3.bf16.msra.mxu1 %v2277_v39  ;;  %2087 = vmatprep.subr.bf16.mxu0 %v2284_v44 }
  0x52   :  { %2127 = vmatprep.subr.bf16.mxu1 %v2285_v45 }
  0x53   :  { %1253 = vmatmul.mubr.bf16.gmra.mxu0 %v2282_v42 }
  0x54   :  { %1318 = vmatmul.mubr.bf16.gmra.mxu1 %v2283_v43  ;;  %2088 = vmatpush3.bf16.msra.mxu0 %v2286_v46 }
  0x55   :  { %2128 = vmatpush3.bf16.msra.mxu1 %v2287_v47  ;;  %2089 = vmatprep.subr.bf16.mxu0 %v2288_v48 }
  0x56   :  { %2129 = vmatprep.subr.bf16.mxu1 %v2289_v49  ;;  %1260 = vmatprep.mubr.bf16.mxu0 %v2292_v52 }
  0x57   :  { %1325 = vmatprep.mubr.bf16.mxu1 %v2294_v53 }
  0x58   :  { %2090 = vmatpush3.bf16.msra.mxu0 %v2290_v50 }
  0x59   :  { %2130 = vmatpush3.bf16.msra.mxu1 %v2291_v51  ;;  %2091 = vmatprep.subr.bf16.mxu0 %v2298_v56 }
  0x5a   :  { %2131 = vmatprep.subr.bf16.mxu1 %v2299_v57 }
  0x5b   :  { %1261 = vmatmul.mubr.bf16.gmra.mxu0 %v2296_v54 }
  0x5c   :  { %1326 = vmatmul.mubr.bf16.gmra.mxu1 %v2297_v55  ;;  %2092 = vmatpush3.bf16.msra.mxu0 %v2300_v58 }
  0x5d   :  { %2132 = vmatpush3.bf16.msra.mxu1 %v2301_v59  ;;  %2093 = vmatprep.subr.bf16.mxu0 %v2302_v60 }
  0x5e   :  { %2133 = vmatprep.subr.bf16.mxu1 %v2303_v61  ;;  %1366 = vmatprep.mubr.bf16.mxu0 %v2308_v1 }
  0x5f   :  { %1431 = vmatprep.mubr.bf16.mxu1 %v2311_v3 }
  0x60   :  { %2094 = vmatpush3.bf16.msra.mxu0 %v2304_v62 }
  0x61   :  { %2134 = vmatpush3.bf16.msra.mxu1 %v2305_v63 }
  0x63   :  { %1367 = vmatmul.mubr.bf16.vlgmr.msra.gmra.mxu0 %v2306_v0 }
  0x64   :  { %1432 = vmatmul.mubr.bf16.vlgmr.msra.gmra.mxu1 %v2309_v2  ;;  %1374 = vmatprep.mubr.bf16.mxu0 %v2312_v4 }
  0x65   :  { %1439 = vmatprep.mubr.bf16.mxu1 %v2315_v5 }
  0x6b   :  { %1375 = vmatmul.mubr.bf16.gmra.mxu0 %v2314_v6 }
  0x6c   :  { %1440 = vmatmul.mubr.bf16.gmra.mxu1 %v2317_v7  ;;  %1382 = vmatprep.mubr.bf16.mxu0 %v2318_v8 }
  0x6d   :  { %1447 = vmatprep.mubr.bf16.mxu1 %v2321_v9 }
  0x73   :  { %1383 = vmatmul.mubr.bf16.gmra.mxu0 %v2320_v10 }
  0x74   :  { %1448 = vmatmul.mubr.bf16.gmra.mxu1 %v2323_v11  ;;  %1390 = vmatprep.mubr.bf16.mxu0 %v2324_v12 }
  0x75   :  { %1455 = vmatprep.mubr.bf16.mxu1 %v2327_v13 }
  0x7b   :  { %1391 = vmatmul.mubr.bf16.gmra.mxu0 %v2326_v14 }
  0x7c   :  { %1456 = vmatmul.mubr.bf16.gmra.mxu1 %v2329_v15 }
  0xe3   :  { %v1935_v16 = vpop.f32.mrf.mxu0 }
  0xe4   :  { %v1975_v17 = vpop.f32.mrf.mxu1 }
  0xe5   :  { %v1936_v18 = vpop.f32.mrf.mxu0 }
  0xe6   :  { %v1976_v19 = vpop.f32.mrf.mxu1  ;;  %v1937_v12 = vadd.f32 %v1936_v18, %v1935_v16 }
  0xe7   :  { %v2804_v20 = vpop.f32.mrf.mxu0  ;;  %v1977_v13 = vadd.f32 %v1976_v19, %v1975_v17 }
  0xe8   :  { %v2806_v21 = vpop.f32.mrf.mxu1 }
  0xe9   :  { %v1939_v22 = vpop.f32.mrf.mxu0 }
  0xea   :  { %v1979_v23 = vpop.f32.mrf.mxu1 }
  0xeb   :  { %v2808_v24 = vpop.f32.mrf.mxu0 }
  0xec   :  { %v2810_v25 = vpop.f32.mrf.mxu1 }
  0xed   :  { %v1942_v26 = vpop.f32.mrf.mxu0 }
  0xee   :  { %v1982_v27 = vpop.f32.mrf.mxu1 }
  0xef   :  { %v2812_v28 = vpop.f32.mrf.mxu0  ;;  %v1983_v16 = vadd.f32 %v1982_v27, %v2810_v25 }
  0xf0   :  { %v2814_v29 = vpop.f32.mrf.mxu1 }
  0xf1   :  { %v2816_v30 = vpop.f32.mrf.mxu0 }
  0xf2   :  { %v2818_v31 = vpop.f32.mrf.mxu1 }
  0xf3   :  { %v2820_v32 = vpop.f32.mrf.mxu0 }
  0xf4   :  { %v2822_v33 = vpop.f32.mrf.mxu1 }
  0xf5   :  { %v2824_v34 = vpop.f32.mrf.mxu0 }
  0xf6   :  { %v2826_v35 = vpop.f32.mrf.mxu1 }
  0xf7   :  { %v2828_v36 = vpop.f32.mrf.mxu0 }
  0xf8   :  { %v2830_v37 = vpop.f32.mrf.mxu1 }
  0xf9   :  { %v2832_v38 = vpop.f32.mrf.mxu0 }
  0xfa   :  { %v2834_v39 = vpop.f32.mrf.mxu1 }
  0xfb   :  { %v2836_v40 = vpop.f32.mrf.mxu0 }
  0xfc   :  { %v2838_v41 = vpop.f32.mrf.mxu1 }
  0xfd   :  { %v2840_v42 = vpop.f32.mrf.mxu0 }
  0xfe   :  { %v2842_v43 = vpop.f32.mrf.mxu1 }
  0xff   :  { %v2844_v44 = vpop.f32.mrf.mxu0 }
 0x100   :  { %3103 = vst [vmem:[#allocation2_spill] sm:$0xff] %v2844_v44  ;;  %v2846_v45 = vpop.f32.mrf.mxu1  ;;  %v1940_v44 = vadd.f32 %v1939_v22, %v2804_v20 }
 0x101   :  { %3104 = vst [vmem:[#allocation3_spill] sm:$0xff] %v2846_v45  ;;  %v2848_v46 = vpop.f32.mrf.mxu0 }
 0x102   :  { %3105 = vst [vmem:[#allocation4_spill] sm:$0xff] %v2848_v46  ;;  %v2850_v47 = vpop.f32.mrf.mxu1  ;;  %v1174_v46 = vadd.f32 %v1977_v13, %v1937_v12 }
 0x103   :  { %3106 = vst [vmem:[#allocation5_spill] sm:$0xff] %v2850_v47  ;;  %v2015_v48 = vpop.f32.mrf.mxu0 }
 0x104   :  { %v2055_v49 = vpop.f32.mrf.mxu1 }
 0x105   :  { %v2016_v50 = vpop.f32.mrf.mxu0 }
 0x106   :  { %v2056_v51 = vpop.f32.mrf.mxu1  ;;  %v2017_v47 = vadd.f32 %v2016_v50, %v2015_v48 }
 0x107   :  { %v2018_v52 = vpop.f32.mrf.mxu0  ;;  %v2057_v19 = vadd.f32 %v2056_v51, %v2055_v49 }
 0x108   :  { %v2058_v53 = vpop.f32.mrf.mxu1 }
 0x109   :  { %v2019_v54 = vpop.f32.mrf.mxu0 }
 0x10a   :  { %v2059_v55 = vpop.f32.mrf.mxu1 }
 0x10b   :  { %v2021_v56 = vpop.f32.mrf.mxu0 }
 0x10c   :  { %v2061_v57 = vpop.f32.mrf.mxu1 }
 0x10d   :  { %v2022_v58 = vpop.f32.mrf.mxu0 }
 0x10e   :  { %v2062_v59 = vpop.f32.mrf.mxu1  ;;  %v2023_v48 = vadd.f32 %v2022_v58, %v2021_v56 }
 0x10f   :  { %v2024_v60 = vpop.f32.mrf.mxu0 }
 0x110   :  { %v2852_v61 = vpop.f32.mrf.mxu1 }
 0x111   :  { %v2025_v62 = vpop.f32.mrf.mxu0 }
 0x112   :  { %v2854_v63 = vpop.f32.mrf.mxu1  ;;  %v2026_v51 = vadd.f32 %v2025_v62, %v2024_v60 }
 0x113   :  { %v2856_v0 = vpop.f32.mrf.mxu0 }
 0x114   :  { %v2858_v1 = vpop.f32.mrf.mxu1 }
 0x115   :  { %v2860_v2 = vpop.f32.mrf.mxu0 }
 0x116   :  { %v2862_v3 = vpop.f32.mrf.mxu1 }
 0x117   :  { %v2864_v4 = vpop.f32.mrf.mxu0 }
 0x118   :  { %v2866_v5 = vpop.f32.mrf.mxu1 }
 0x119   :  { %3107 = vst [vmem:[#allocation6_spill] sm:$0xff] %v2866_v5  ;;  %v2868_v6 = vpop.f32.mrf.mxu0 }
 0x11a   :  { %v2870_v7 = vpop.f32.mrf.mxu1 }
 0x11b   :  { %3108 = vst [vmem:[#allocation7_spill] sm:$0xff] %v2870_v7  ;;  %v2872_v8 = vpop.f32.mrf.mxu0  ;;  %v1980_v7 = vadd.f32 %v1979_v23, %v2806_v21  ;;  %v1946_v21 = vadd.f32 %v2816_v30, %v2812_v28  ;;  %v1986_v23 = vadd.f32 %v2818_v31, %v2814_v29  ;;  %v1949_v28 = vadd.f32 %v2824_v34, %v2820_v32 }
 0x11c   :  { %v2874_v9 = vpop.f32.mrf.mxu1  ;;  %v2063_v30 = vadd.f32 %v2062_v59, %v2061_v57  ;;  %v1989_v31 = vadd.f32 %v2826_v35, %v2822_v33  ;;  %v1952_v33 = vadd.f32 %v2832_v38, %v2828_v36  ;;  %v1992_v35 = vadd.f32 %v2834_v39, %v2830_v37 }
 0x11d   :  { %3109 = vst [vmem:[#allocation8_spill] sm:$0xff] %v2874_v9  ;;  %v2876_v10 = vpop.f32.mrf.mxu0  ;;  %v1239_v9 = vadd.f32 %v2017_v47, %v1174_v46  ;;  %v1177_v18 = vadd.f32 %v1980_v7, %v1940_v44  ;;  %v1185_v58 = vadd.f32 %v1986_v23, %v1946_v21 }
 0x11e   :  { %3110 = vst [vmem:[#allocation9_spill] sm:$0xff] %v2876_v10  ;;  %v2878_v11 = vpop.f32.mrf.mxu1  ;;  %v2020_v10 = vadd.f32 %v2019_v54, %v2018_v52 }
 0x11f   :  { %3111 = vst [vmem:[#allocation10_spill] sm:$0xff] %v2878_v11  ;;  %v2880_v14 = vpop.f32.mrf.mxu0  ;;  %v1943_v11 = vadd.f32 %v1942_v26, %v2808_v24  ;;  %v2060_v26 = vadd.f32 %v2059_v55, %v2058_v53 }
 0x120   :  { %v2882_v15 = vpop.f32.mrf.mxu1  ;;  %v1242_v12 = vadd.f32 %v2020_v10, %v1177_v18  ;;  %v2029_v10 = vadd.f32 %v2860_v2, %v2856_v0  ;;  %v2032_v2 = vadd.f32 %v2868_v6, %v2864_v4 }
 0x121   :  { %3112 = vst [vmem:[#allocation11_spill] sm:$0xff] %v2882_v15  ;;  %v2884_v45 = vpop.f32.mrf.mxu0  ;;  %v1182_v22 = vadd.f32 %v1983_v16, %v1943_v11  ;;  %v2066_v16 = vadd.f32 %v2854_v63, %v2852_v61  ;;  %v1955_v61 = vadd.f32 %v2840_v42, %v2836_v40  ;;  %v1995_v63 = vadd.f32 %v2842_v43, %v2838_v41 }
 0x122   :  { %3113 = vst [vmem:[#allocation12_spill] sm:$0xff] %v2884_v45  ;;  %v2888_v5 = vpop.f32.mrf.mxu1  ;;  %v1304_v45 = vadd.f32 %v2057_v19, %v1239_v9  ;;  %v1307_v49 = vadd.f32 %v2060_v26, %v1242_v12  ;;  %v1250_v9 = vadd.f32 %v2026_v51, %v1185_v58 }
 0x123   :  { %v2095_v17 = vpop.f32.mrf.mxu0  ;;  %v1247_v46 = vadd.f32 %v2023_v48, %v1182_v22 }
 0x124   :  { %v2135_v15 = vpop.f32.mrf.mxu1  ;;  %v1315_v36 = vadd.f32 %v2066_v16, %v1250_v9 }
 0x125   :  { %v2096_v50 = vpop.f32.mrf.mxu0  ;;  %v1312_v60 = vadd.f32 %v2063_v30, %v1247_v46  ;;  %v3114_v26 = vld [vmem:[#allocation9_spill] sm:$0xff] }
 0x126   :  { %v2097_v13 = vadd.f32 %v2096_v50, %v2095_v17  ;;  %v2136_v20 = vpop.f32.mrf.mxu1  ;;  %v1193_v50 = vadd.f32 %v1992_v35, %v1952_v33  ;;  %v2035_v40 = vadd.f32 %v3114_v26, %v2872_v8  ;;  %v3123_v33 = vld [vmem:[#allocation10_spill] sm:$0xff] }
 0x127   :  { %v2098_v24 = vpop.f32.mrf.mxu0  ;;  %v2137_v27 = vadd.f32 %v2136_v20, %v2135_v15  ;;  %v1190_v15 = vadd.f32 %v1989_v31, %v1949_v28 }
 0x128   :  { %v1369_v25 = vadd.f32 %v2097_v13, %v1304_v45  ;;  %v2138_v44 = vpop.f32.mrf.mxu1  ;;  %v2069_v13 = vadd.f32 %v2862_v3, %v2858_v1  ;;  %v1258_v21 = vadd.f32 %v2032_v2, %v1193_v50  ;;  %v3116_v1 = vld [vmem:[#allocation7_spill] sm:$0xff] }
 0x129   :  { %v2099_v47 = vpop.f32.mrf.mxu0  ;;  %v1255_v38 = vadd.f32 %v2029_v10, %v1190_v15 }
 0x12a   :  { %v2896_v52 = vadd.f32 %v2137_v27, %v1369_v25  ;;  %v2100_v54 = vadd.f32 %v2099_v47, %v2098_v24  ;;  %v2139_v56 = vpop.f32.mrf.mxu1  ;;  %v1198_v25 = vadd.f32 %v1995_v63, %v1955_v61  ;;  %v3115_v27 = vld [vmem:[#allocation6_spill] sm:$0xff] }
 0x12b   :  { %v2101_v29 = vpop.f32.mrf.mxu0  ;;  %v2140_v53 = vadd.f32 %v2139_v56, %v2138_v44  ;;  %v1320_v24 = vadd.f32 %v2069_v13, %v1255_v38  ;;  %v2072_v3 = vadd.f32 %v3116_v1, %v3115_v27  ;;  %v3117_v47 = vld [vmem:[#allocation2_spill] sm:$0xff]  ;;  %v3120_v56 = vld [vmem:[#allocation5_spill] sm:$0xff]  ;;  %v3124_v38 = vld [vmem:[#allocation11_spill] sm:$0xff] }
 0x12c   :  { %v1372_v45 = vadd.f32 %v2100_v54, %v1307_v49  ;;  %v2141_v55 = vpop.f32.mrf.mxu1  ;;  %v1465_v7 = vsel %vm1464_vm0, %v2896_v52, 0.0  ;;  %v3118_v49 = vld [vmem:[#allocation4_spill] sm:$0xff]  ;;  %v3119_v54 = vld [vmem:[#allocation3_spill] sm:$0xff] }
 0x12d   :  { %v2102_v62 = vpop.f32.mrf.mxu0  ;;  %1466 = vadd.xlane.f32.xlu0 %v1465_v7  ;;  %v1958_v51 = vadd.f32 %v3118_v49, %v3117_v47  ;;  %v1998_v58 = vadd.f32 %v3120_v56, %v3119_v54 }
 0x12e   :  { %v2906_v11 = vadd.f32 %v2140_v53, %v1372_v45  ;;  %v2103_v32 = vadd.f32 %v2102_v62, %v2101_v29  ;;  %v2142_v34 = vpop.f32.mrf.mxu1  ;;  %v1323_v29 = vadd.f32 %v2072_v3, %v1258_v21  ;;  %v1263_v45 = vadd.f32 %v2035_v40, %v1198_v25  ;;  %v3121_v53 = vld [vmem:[#allocation12_spill] sm:$0xff] }
 0x12f   :  { %v2143_v57 = vadd.f32 %v2142_v34, %v2141_v55  ;;  %v2104_v59 = vpop.f32.mrf.mxu0  ;;  %v2038_v55 = vadd.f32 %v3121_v53, %v2880_v14  ;;  %v3122_v34 = vld [vmem:[#allocation8_spill] sm:$0xff] }
 0x130   :  { %v1377_v17 = vadd.f32 %v2103_v32, %v1312_v60  ;;  %v2144_v18 = vpop.f32.mrf.mxu1  ;;  %v1468_v0 = vsel %vm1464_vm0, %v2906_v11, 0.0  ;;  %v1201_v32 = vadd.f32 %v1998_v58, %v1958_v51  ;;  %v2075_v35 = vadd.f32 %v3123_v33, %v3122_v34 }
 0x131   :  { %v2105_v19 = vpop.f32.mrf.mxu0  ;;  %1469 = vadd.xlane.f32.xlu0 %v1468_v0 }
 0x132   :  { %v2918_v48 = vadd.f32 %v2143_v57, %v1377_v17  ;;  %v2106_v37 = vadd.f32 %v2105_v19, %v2104_v59  ;;  %v2145_v39 = vpop.f32.mrf.mxu1  ;;  %v1328_v17 = vadd.f32 %v2075_v35, %v1263_v45 }
 0x133   :  { %v2107_v12 = vpop.f32.mrf.mxu0  ;;  %v2146_v6 = vadd.f32 %v2145_v39, %v2144_v18  ;;  %v1266_v18 = vadd.f32 %v2038_v55, %v1201_v32 }
 0x134   :  { %v1380_v4 = vadd.f32 %v2106_v37, %v1315_v36  ;;  %v2147_v20 = vpop.f32.mrf.mxu1  ;;  %v1471_v22 = vsel %vm1464_vm0, %v2918_v48, 0.0  ;;  %v2078_v37 = vadd.f32 %v2888_v5, %v3124_v38 }
 0x135   :  { %v2108_v23 = vpop.f32.mrf.mxu0  ;;  %1472 = vadd.xlane.f32.xlu1 %v1471_v22 }
 0x136   :  { %v2930_v42 = vadd.f32 %v2146_v6, %v1380_v4  ;;  %v2109_v41 = vadd.f32 %v2108_v23, %v2107_v12  ;;  %v2148_v43 = vpop.f32.mrf.mxu1  ;;  %v1331_v12 = vadd.f32 %v2078_v37, %v1266_v18 }
 0x137   :  { %v2110_v44 = vpop.f32.mrf.mxu0  ;;  %v2149_v46 = vadd.f32 %v2148_v43, %v2147_v20 }
 0x138   :  { %v1385_v28 = vadd.f32 %v2109_v41, %v1320_v24  ;;  %v2150_v30 = vpop.f32.mrf.mxu1  ;;  %v1474_v8 = vsel %vm1464_vm0, %v2930_v42, 0.0 }
 0x139   :  { %v2111_v31 = vpop.f32.mrf.mxu0  ;;  %1475 = vadd.xlane.f32.xlu1 %v1474_v8 }
 0x13a   :  { %v2942_v7 = vadd.f32 %v2149_v46, %v1385_v28  ;;  %v2112_v60 = vadd.f32 %v2111_v31, %v2110_v44  ;;  %v2151_v62 = vpop.f32.mrf.mxu1 }
 0x13b   :  { %v2113_v9 = vpop.f32.mrf.mxu0  ;;  %v2152_v10 = vadd.f32 %v2151_v62, %v2150_v30 }
 0x13c   :  { %v1388_v57 = vadd.f32 %v2112_v60, %v1323_v29  ;;  %v2153_v59 = vpop.f32.mrf.mxu1  ;;  %v1477_v15 = vsel %vm1464_vm0, %v2942_v7, 0.0 }
 0x13d   :  { %v2114_v16 = vpop.f32.mrf.mxu0  ;;  %1478 = vadd.xlane.f32.xlu0 %v1477_v15 }
 0x13e   :  { %v2948_v14 = vadd.f32 %v2152_v10, %v1388_v57  ;;  %v2115_v0 = vadd.f32 %v2114_v16, %v2113_v9  ;;  %v2154_v2 = vpop.f32.mrf.mxu1 }
 0x13f   :  { %v2116_v19 = vpop.f32.mrf.mxu0  ;;  %v2155_v36 = vadd.f32 %v2154_v2, %v2153_v59  ;;  %v2346_v2 = vmov 0  }
 0x140   :  { %v1393_v39 = vadd.f32 %v2115_v0, %v1328_v17  ;;  %v2156_v50 = vpop.f32.mrf.mxu1  ;;  %v1480_v61 = vsel %vm1464_vm0, %v2948_v14, 0.0  ;;  %2160 = vset.pattern.permute.xlu0 %v2346_v2  ;;  %2161 = vset.pattern.permute.xlu1 %v2346_v2 }
 0x141   :  { %v2117_v63 = vpop.f32.mrf.mxu0  ;;  %1481 = vadd.xlane.f32.xlu1 %v1480_v61 }
 0x142   :  { %v2954_v13 = vadd.f32 %v2155_v36, %v1393_v39  ;;  %v2118_v4 = vadd.f32 %v2117_v63, %v2116_v19  ;;  %v2157_v6 = vpop.f32.mrf.mxu1 }
 0x143   :  { %v2158_v20 = vadd.f32 %v2157_v6, %v2156_v50 }
 0x144   :  { %v1396_v22 = vadd.f32 %v2118_v4, %v1331_v12  ;;  %v1483_v21 = vsel %vm1464_vm0, %v2954_v13, 0.0 }
 0x145   :  { %1484 = vadd.xlane.f32.xlu0 %v1483_v21  ;;  %v1546_v21 = vld [vmem:[%s3100_s2] sm:$0xff] }
 0x146   :  { %v2958_v23 = vadd.f32 %v2158_v20, %v1396_v22 }
 0x148   :  { %v1486_v5 = vsel %vm1464_vm0, %v2958_v23, 0.0 }
 0x149   :  { %1487 = vadd.xlane.f32.xlu1 %v1486_v5 }
 0x1b6   :  { %v1467_v24 = vpop.xlane.xlu0 %1466 }
 0x1b7   :  { %v2962_v26 = vmul.f32 0.015625, %v1467_v24 }
 0x1b9   :  { %v1498_v40 = vsub.f32 %v2896_v52, %v2962_v26 }
 0x1ba   :  { %v1470_v41 = vpop.xlane.xlu0 %1469 }
 0x1bb   :  { %v2966_v43 = vmul.f32 0.015625, %v1470_v41  ;;  %v1506_v25 = vmul.f32 %v1498_v40, %v1498_v40 }
 0x1bd   :  { %v1499_v27 = vsub.f32 %v2906_v11, %v2966_v43  ;;  %v1514_v1 = vsel %vm1464_vm0, %v1506_v25, 0.0  ;;  %v1547_v25 = vld [vmem:[%s3100_s2 + $0x8] sm:$0xff] }
 0x1be   :  { %v1473_v3 = vpop.xlane.xlu1 %1472  ;;  %1515 = vadd.xlane.f32.xlu0 %v1514_v1 }
 0x1bf   :  { %v2971_v44 = vmul.f32 0.015625, %v1473_v3  ;;  %v1507_v46 = vmul.f32 %v1499_v27, %v1499_v27 }
 0x1c1   :  { %v1500_v47 = vsub.f32 %v2918_v48, %v2971_v44  ;;  %v1517_v49 = vsel %vm1464_vm0, %v1507_v46, 0.0 }
 0x1c2   :  { %v1476_v51 = vpop.xlane.xlu1 %1475  ;;  %1518 = vadd.xlane.f32.xlu1 %v1517_v49 }
 0x1c3   :  { %v2976_v54 = vmul.f32 0.015625, %v1476_v51  ;;  %v1508_v56 = vmul.f32 %v1500_v47, %v1500_v47  ;;  %v1579_v51 = vld [vmem:[%s3101_s3 + $0x8] sm:$0xff] }
 0x1c5   :  { %v1501_v58 = vsub.f32 %v2930_v42, %v2976_v54  ;;  %v1520_v28 = vsel %vm1464_vm0, %v1508_v56, 0.0  ;;  %v1578_v56 = vld [vmem:[%s3101_s3] sm:$0xff] }
 0x1c6   :  { %1521 = vadd.xlane.f32.xlu0 %v1520_v28  ;;  %v1479_v30 = vpop.xlane.xlu0 %1478 }
 0x1c7   :  { %v2981_v8 = vmul.f32 0.015625, %v1479_v30  ;;  %v1509_v29 = vmul.f32 %v1501_v58, %v1501_v58 }
 0x1c9   :  { %v1502_v31 = vsub.f32 %v2942_v7, %v2981_v8  ;;  %v1523_v45 = vsel %vm1464_vm0, %v1509_v29, 0.0 }
 0x1ca   :  { %v1482_v53 = vpop.xlane.xlu1 %1481  ;;  %1524 = vadd.xlane.f32.xlu1 %v1523_v45 }
 0x1cb   :  { %v2986_v55 = vmul.f32 0.015625, %v1482_v53  ;;  %v1510_v60 = vmul.f32 %v1502_v31, %v1502_v31  ;;  %v1549_v53 = vld [vmem:[%s3100_s2 + $0x18] sm:$0xff] }
 0x1cd   :  { %v1503_v62 = vsub.f32 %v2948_v14, %v2986_v55  ;;  %v1526_v9 = vsel %vm1464_vm0, %v1510_v60, 0.0 }
 0x1ce   :  { %1527 = vadd.xlane.f32.xlu0 %v1526_v9  ;;  %v1485_v10 = vpop.xlane.xlu0 %1484 }
 0x1cf   :  { %v2991_v32 = vmul.f32 0.015625, %v1485_v10  ;;  %v1511_v34 = vmul.f32 %v1503_v62, %v1503_v62 }
 0x1d1   :  { %v1504_v33 = vsub.f32 %v2954_v13, %v2991_v32  ;;  %v1529_v35 = vsel %vm1464_vm0, %v1511_v34, 0.0 }
 0x1d2   :  { %v1488_v57 = vpop.xlane.xlu1 %1487  ;;  %1530 = vadd.xlane.f32.xlu1 %v1529_v35 }
 0x1d3   :  { %v2996_v59 = vmul.f32 0.015625, %v1488_v57  ;;  %v1512_v15 = vmul.f32 %v1504_v33, %v1504_v33  ;;  %v1581_v33 = vld [vmem:[%s3101_s3 + $0x18] sm:$0xff] }
 0x1d5   :  { %v1505_v16 = vsub.f32 %v2958_v23, %v2996_v59  ;;  %v1532_v17 = vsel %vm1464_vm0, %v1512_v15, 0.0 }
 0x1d6   :  { %1533 = vadd.xlane.f32.xlu0 %v1532_v17  ;;  %v1580_v17 = vld [vmem:[%s3101_s3 + $0x10] sm:$0xff] }
 0x1d7   :  { %v1513_v18 = vmul.f32 %v1505_v16, %v1505_v16 }
 0x1d9   :  { %v1535_v0 = vsel %vm1464_vm0, %v1513_v18, 0.0  ;;  %v1551_v18 = vld [vmem:[%s3100_s2 + $0x28] sm:$0xff] }
 0x1da   :  { %1536 = vadd.xlane.f32.xlu1 %v1535_v0 }
 0x247   :  { %v1516_v19 = vpop.xlane.xlu0 %1515 }
 0x248   :  { %v1538_v36 = vmul.f32 0.015625, %v1516_v19 }
 0x24a   :  { %v1554_v38 = vadd.f32 1e-05, %v1538_v36 }
 0x24b   :  { %v1519_v37 = vpop.xlane.xlu1 %1518 }
 0x24c   :  { %2330 = vrsqrt.f32 %v1554_v38  ;;  %v1539_v39 = vmul.f32 0.015625, %v1519_v37 }
 0x24e   :  { %v1555_v50 = vadd.f32 1e-05, %v1539_v39 }
 0x24f   :  { %v1522_v61 = vpop.xlane.xlu0 %1521 }
 0x250   :  { %2332 = vrsqrt.f32 %v1555_v50  ;;  %v1540_v63 = vmul.f32 0.015625, %v1522_v61  ;;  %v1553_v50 = vld [vmem:[%s3100_s2 + $0x38] sm:$0xff] }
 0x252   :  { %v1556_v12 = vadd.f32 1e-05, %v1540_v63 }
 0x253   :  { %v1525_v4 = vpop.xlane.xlu1 %1524 }
 0x254   :  { %v1541_v6 = vmul.f32 0.015625, %v1525_v4  ;;  %2334 = vrsqrt.f32 %v1556_v12  ;;  %v1585_v4 = vld [vmem:[%s3101_s3 + $0x38] sm:$0xff] }
 0x256   :  { %v1557_v20 = vadd.f32 1e-05, %v1541_v6 }
 0x257   :  { %v1528_v22 = vpop.xlane.xlu0 %1527 }
 0x258   :  { %2336 = vrsqrt.f32 %v1557_v20  ;;  %v1542_v24 = vmul.f32 0.015625, %v1528_v22 }
 0x259   :  { %v2331_v5 = vpop.eup %2330 }
 0x25a   :  { %v1570_v40 = vmul.f32 %v2331_v5, %v1546_v21  ;;  %v1558_v3 = vadd.f32 1e-05, %v1542_v24  ;;  %v1552_v5 = vld [vmem:[%s3100_s2 + $0x30] sm:$0xff] }
 0x25b   :  { %v1531_v41 = vpop.xlane.xlu1 %1530 }
 0x25c   :  { %v1543_v27 = vmul.f32 0.015625, %v1531_v41  ;;  %1604 = vperm.xlu0 %2160, %v1570_v40   ;;  %v1586_v49 = vmul.f32 %v1570_v40, %v2962_v26  ;;  %v1548_v26 = vld [vmem:[%s3100_s2 + $0x10] sm:$0xff] }
 0x25d   :  { %v2333_v1 = vpop.eup %2332  ;;  %v1584_v40 = vld [vmem:[%s3101_s3 + $0x30] sm:$0xff] }
 0x25e   :  { %v1559_v46 = vadd.f32 1e-05, %v1543_v27  ;;  %v1571_v47 = vmul.f32 %v2333_v1, %v1547_v25  ;;  %v1594_v30 = vsub.f32 %v1578_v56, %v1586_v49 }
 0x25f   :  { %v1534_v31 = vpop.xlane.xlu0 %1533 }
 0x260   :  { %2338 = vrsqrt.f32 %v1559_v46  ;;  %1609 = vperm.xlu1 %2161, %v1571_v47   ;;  %v1587_v58 = vmul.f32 %v1571_v47, %v2966_v43  ;;  %v1544_v9 = vmul.f32 0.015625, %v1534_v31 }
 0x261   :  { %2340 = vrsqrt.f32 %v1558_v3  ;;  %v2335_v29 = vpop.eup %2334 }
 0x262   :  { %v1595_v28 = vsub.f32 %v1579_v51, %v1587_v58  ;;  %v1572_v10 = vmul.f32 %v2335_v29, %v1548_v26  ;;  %v1560_v57 = vadd.f32 1e-05, %v1544_v9 }
 0x263   :  { %v1537_v45 = vpop.xlane.xlu1 %1536 }
 0x264   :  { %v1545_v60 = vmul.f32 0.015625, %v1537_v45  ;;  %1657 = vperm.xlu0 %2160, %v1595_v28   ;;  %1652 = vperm.xlu1 %2161, %v1594_v30   ;;  %v1588_v16 = vmul.f32 %v1572_v10, %v2971_v44  ;;  %v1550_v44 = vld [vmem:[%s3100_s2 + $0x20] sm:$0xff] }
 0x265   :  { %v2337_v62 = vpop.eup %2336 }
 0x266   :  { %v1561_v43 = vadd.f32 1e-05, %v1545_v60  ;;  %v1573_v34 = vmul.f32 %v2337_v62, %v1549_v53  ;;  %v1596_v2 = vsub.f32 %v1580_v17, %v1588_v16 }
 0x268   :  { %2342 = vrsqrt.f32 %v1561_v43  ;;  %1614 = vperm.xlu1 %2161, %v1572_v10   ;;  %v1589_v35 = vmul.f32 %v1573_v34, %v2976_v54  ;;  %v1583_v54 = vld [vmem:[%s3101_s3 + $0x28] sm:$0xff] }
 0x269   :  { %2344 = vrsqrt.f32 %v1560_v57 }
 0x26a   :  { %v1597_v15 = vsub.f32 %v1581_v33, %v1589_v35 }
 0x26c   :  { %1667 = vperm.xlu0 %2160, %v1597_v15   ;;  %1619 = vperm.xlu1 %2161, %v1573_v34  }
 0x26d   :  { %v2339_v0 = vpop.eup %2338 }
 0x26e   :  { %v1575_v19 = vmul.f32 %v2339_v0, %v1551_v18  ;;  %v2341_v36 = vpop.eup %2340 }
 0x26f   :  { %v1574_v39 = vmul.f32 %v2341_v36, %v1550_v44 }
 0x270   :  { %1662 = vperm.xlu1 %2161, %v1596_v2   ;;  %v1591_v38 = vmul.f32 %v1575_v19, %v2986_v55  ;;  %v1582_v55 = vld [vmem:[%s3101_s3 + $0x20] sm:$0xff] }
 0x271   :  { %v1590_v12 = vmul.f32 %v1574_v39, %v2981_v8 }
 0x272   :  { %v1599_v37 = vsub.f32 %v1583_v54, %v1591_v38 }
 0x273   :  { %v1598_v22 = vsub.f32 %v1582_v55, %v1590_v12 }
 0x274   :  { %1677 = vperm.xlu0 %2160, %v1599_v37   ;;  %1624 = vperm.xlu1 %2161, %v1574_v39  }
 0x275   :  { %v2343_v61 = vpop.eup %2342 }
 0x276   :  { %v1577_v63 = vmul.f32 %v2343_v61, %v1553_v50  ;;  %v2345_v21 = vpop.eup %2344 }
 0x277   :  { %v1576_v8 = vmul.f32 %v2345_v21, %v1552_v5 }
 0x278   :  { %1629 = vperm.xlu1 %2161, %v1575_v19   ;;  %v1593_v6 = vmul.f32 %v1577_v63, %v2996_v59 }
 0x279   :  { %v1592_v24 = vmul.f32 %v1576_v8, %v2991_v32 }
 0x27a   :  { %v1601_v20 = vsub.f32 %v1585_v4, %v1593_v6 }
 0x27b   :  { %v1600_v41 = vsub.f32 %v1584_v40, %v1592_v24 }
 0x27c   :  { %1687 = vperm.xlu0 %2160, %v1601_v20   ;;  %1672 = vperm.xlu1 %2161, %v1598_v22  }
 0x280   :  { %1634 = vperm.xlu1 %2161, %v1576_v8  }
 0x284   :  { %1639 = vperm.xlu1 %2161, %v1577_v63  }
 0x288   :  { %1682 = vperm.xlu1 %2161, %v1600_v41  }
 0x2d7   :  { %v1605_v59 = vpop.permute.xlu0 %1604 }
 0x2d8   :  { %v1642_v27 = vmul.f32 %v1605_v59, %v2896_v52 }
 0x2db   :  { %v1610_v25 = vpop.permute.xlu1 %1609 }
 0x2dc   :  { %v1643_v1 = vmul.f32 %v1610_v25, %v2906_v11 }
 0x2df   :  { %v1653_v3 = vpop.permute.xlu1 %1652  ;;  %v1658_v46 = vpop.permute.xlu0 %1657 }
 0x2e0   :  { %v1690_v47 = vadd.f32 %v1653_v3, %v1642_v27  ;;  %v1691_v49 = vadd.f32 %v1658_v46, %v1643_v1 }
 0x2e2   :  { %v1698_v51 = vmul.f32 0.2, %v1690_v47  ;;  %v1699_v56 = vmul.f32 0.2, %v1691_v49 }
 0x2e3   :  { %v1615_v32 = vpop.permute.xlu1 %1614 }
 0x2e4   :  { %v1706_v58 = vmax.f32 %v1690_v47, %v1698_v51  ;;  %v1707_v28 = vmax.f32 %v1691_v49, %v1699_v56  ;;  %v1644_v45 = vmul.f32 %v1615_v32, %v2918_v48 }
 0x2e6   :  { %v1911_v30 = vpack.c.bf16 %v1706_v58, %v1706_v58  ;;  %v1912_v29 = vpack.c.bf16 %v1707_v28, %v1707_v28 }
 0x2e7   :  { %v1620_v31 = vpop.permute.xlu1 %1619  ;;  %v1668_v11 = vpop.permute.xlu0 %1667 }
 0x2e8   :  { %1747 = vst.msk [vmem:[%s3102_s4] sm:$0xf] %vm1746_vm1, %v1911_v30  ;;  %1748 = vst.msk [vmem:[%s3102_s4 + $0x4] sm:$0xf] %vm1746_vm1, %v1912_v29  ;;  %v1645_v52 = vmul.f32 %v1620_v31, %v2930_v42 }
 0x2ea   :  { %v1693_v26 = vadd.f32 %v1668_v11, %v1645_v52 }
 0x2eb   :  { %v1663_v53 = vpop.permute.xlu1 %1662 }
 0x2ec   :  { %v1701_v60 = vmul.f32 0.2, %v1693_v26  ;;  %v1692_v62 = vadd.f32 %v1663_v53, %v1644_v45 }
 0x2ee   :  { %v1709_v9 = vmax.f32 %v1693_v26, %v1701_v60  ;;  %v1700_v43 = vmul.f32 0.2, %v1692_v62 }
 0x2ef   :  { %v1625_v10 = vpop.permute.xlu1 %1624  ;;  %v1678_v42 = vpop.permute.xlu0 %1677 }
 0x2f0   :  { %v1914_v34 = vpack.c.bf16 %v1709_v9, %v1709_v9  ;;  %v1708_v33 = vmax.f32 %v1692_v62, %v1700_v43  ;;  %v1646_v15 = vmul.f32 %v1625_v10, %v2942_v7 }
 0x2f2   :  { %1750 = vst.msk [vmem:[%s3102_s4 + $0xc] sm:$0xf] %vm1746_vm1, %v1914_v34  ;;  %v1913_v35 = vpack.c.bf16 %v1708_v33, %v1708_v33 }
 0x2f3   :  { %v1630_v57 = vpop.permute.xlu1 %1629 }
 0x2f4   :  { %1749 = vst.msk [vmem:[%s3102_s4 + $0x8] sm:$0xf] %vm1746_vm1, %v1913_v35  ;;  %v1647_v48 = vmul.f32 %v1630_v57, %v2948_v14 }
 0x2f6   :  { %v1695_v16 = vadd.f32 %v1678_v42, %v1647_v48 }
 0x2f7   :  { %v1673_v17 = vpop.permute.xlu1 %1672  ;;  %v1688_v14 = vpop.permute.xlu0 %1687 }
 0x2f8   :  { %v1703_v18 = vmul.f32 0.2, %v1695_v16  ;;  %v1694_v0 = vadd.f32 %v1673_v17, %v1646_v15 }
 0x2fa   :  { %v1711_v2 = vmax.f32 %v1695_v16, %v1703_v18  ;;  %v1702_v19 = vmul.f32 0.2, %v1694_v0 }
 0x2fb   :  { %v1635_v36 = vpop.permute.xlu1 %1634 }
 0x2fc   :  { %v1916_v54 = vpack.c.bf16 %v1711_v2, %v1711_v2  ;;  %v1710_v44 = vmax.f32 %v1694_v0, %v1702_v19  ;;  %v1648_v39 = vmul.f32 %v1635_v36, %v2954_v13 }
 0x2fe   :  { %1752 = vst.msk [vmem:[%s3102_s4 + $0x14] sm:$0xf] %vm1746_vm1, %v1916_v54  ;;  %v1915_v38 = vpack.c.bf16 %v1710_v44, %v1710_v44 }
 0x2ff   :  { %v1640_v37 = vpop.permute.xlu1 %1639 }
 0x300   :  { %1751 = vst.msk [vmem:[%s3102_s4 + $0x10] sm:$0xf] %vm1746_vm1, %v1915_v38  ;;  %v1649_v7 = vmul.f32 %v1640_v37, %v2958_v23 }
 0x302   :  { %v1697_v50 = vadd.f32 %v1688_v14, %v1649_v7 }
 0x303   :  { %v1683_v61 = vpop.permute.xlu1 %1682 }
 0x304   :  { %v1705_v63 = vmul.f32 0.2, %v1697_v50  ;;  %v1696_v12 = vadd.f32 %v1683_v61, %v1648_v39 }
 0x306   :  { %v1713_v4 = vmax.f32 %v1697_v50, %v1705_v63  ;;  %v1704_v55 = vmul.f32 0.2, %v1696_v12 }
 0x308   :  { %v1918_v6 = vpack.c.bf16 %v1713_v4, %v1713_v4  ;;  %v1712_v20 = vmax.f32 %v1696_v12, %v1704_v55 }
 0x30a   :  { %1754 = vst.msk [vmem:[%s3102_s4 + $0x1c] sm:$0xf] %vm1746_vm1, %v1918_v6  ;;  %v1917_v22 = vpack.c.bf16 %v1712_v20, %v1712_v20 }
 0x30c   :  { %1753 = vst.msk [vmem:[%s3102_s4 + $0x18] sm:$0xf] %vm1746_vm1, %v1917_v22 }

</bundles_post_ra>
